<compile_context>
chip_gen: v5e
topology: v5e:2x2
jax: 0.10.0
libtpu: 0.0.40
codegen_flags: <defaults>
</compile_context>

<pallas_src>
import functools

import jax
import jax.numpy as jnp
from jax.experimental import pallas as pl
from jax.experimental.pallas import tpu as pltpu

F32 = jnp.float32
BF16 = jnp.bfloat16

NUM_CLASSES = 17
LAYER_CFG = [(64, 64, 1), (64, 128, 2), (128, 256, 2), (256, 512, 2)]

VMEM_LIMIT_BYTES = 48 * 1024 * 1024   # fits v7x's 64 MiB physical VMEM
TM_MAX = 512                          # 512-row tiles: ~85% of HBM roofline regime
TK_MAX = 512
TN = 128                              # lane-dense output tiles, v5e MXU friendly


def _round_up(x, m):
    return (x + m - 1) // m * m


def _pick_tile(dim, max_tile, quantum):
    """Largest multiple of `quantum` that divides `dim` (a multiple of quantum)
    and is <= max_tile."""
    best = quantum
    t = quantum
    limit = min(dim, max_tile)
    while t <= limit:
        if dim % t == 0:
            best = t
        t += quantum
    return best


def _mosaic_params(dims=None):
    return pltpu.CompilerParams(dimension_semantics=dims,
                                vmem_limit_bytes=VMEM_LIMIT_BYTES)


# ---------------------------------------------------------------------------
# Pallas kernels
# ---------------------------------------------------------------------------
def _mm_bn_kernel(x_ref, w_ref, s_ref, b_ref, o_ref, acc_ref, *, relu):
    """Tiled (TM,TK)@(TK,TN) with K-reduction grid axis; fused BN (+ReLU)."""
    @pl.when(pl.program_id(2) == 0)
    def _init():
        acc_ref[...] = jnp.zeros_like(acc_ref)

    acc_ref[...] += jnp.dot(x_ref[...], w_ref[...],
                            preferred_element_type=jnp.float32)

    @pl.when(pl.program_id(2) == pl.num_programs(2) - 1)
    def _fin():
        y = acc_ref[...] * s_ref[...] + b_ref[...]
        if relu:
            y = jnp.maximum(y, 0.0)
        o_ref[...] = y.astype(o_ref.dtype)


def _mm_bn_res_kernel(x_ref, w_ref, s_ref, b_ref, r_ref, o_ref, acc_ref):
    """Same as above, plus residual add + ReLU (second conv of a BasicBlock)."""
    @pl.when(pl.program_id(2) == 0)
    def _init():
        acc_ref[...] = jnp.zeros_like(acc_ref)

    acc_ref[...] += jnp.dot(x_ref[...], w_ref[...],
                            preferred_element_type=jnp.float32)

    @pl.when(pl.program_id(2) == pl.num_programs(2) - 1)
    def _fin():
        y = acc_ref[...] * s_ref[...] + b_ref[...] + r_ref[...].astype(jnp.float32)
        o_ref[...] = jnp.maximum(y, 0.0).astype(o_ref.dtype)


def _maxpool_kernel(p_ref, o_ref):
    # p_ref: (kh*kw, TM, C) window taps -> elementwise max over the tap axis.
    o_ref[...] = jnp.max(p_ref[...], axis=0)


def _head_kernel(x_ref, w_ref, b_ref, o_ref):
    # x_ref: (N, H*W, C) bf16 -> global avg pool -> (N, C) @ (C, Ncls_pad) + bias.
    feat = jnp.mean(x_ref[...].astype(jnp.float32), axis=1)
    o_ref[...] = (jnp.dot(feat, w_ref[...], preferred_element_type=jnp.float32)
                  + b_ref[...])


# ---------------------------------------------------------------------------
# Pallas wrappers
# ---------------------------------------------------------------------------
def matmul_bn(patches, wmat, scale, bias, *, relu, residual=None):
    """patches: (Mp, Kp) bf16; wmat: (Kp, Coutp) bf16; scale/bias: (1, Coutp) f32;
    residual: optional (Mp, Coutp) bf16.  Returns (Mp, Coutp) bf16."""
    Mp, Kp = patches.shape
    Coutp = wmat.shape[1]
    TM = _pick_tile(Mp, TM_MAX, 8)
    TK = _pick_tile(Kp, TK_MAX, 128)
    grid = (Mp // TM, Coutp // TN, Kp // TK)

    x_spec = pl.BlockSpec((TM, TK), lambda i, j, k: (i, k))
    w_spec = pl.BlockSpec((TK, TN), lambda i, j, k: (k, j))
    v_spec = pl.BlockSpec((1, TN), lambda i, j, k: (0, j))
    o_spec = pl.BlockSpec((TM, TN), lambda i, j, k: (i, j))

    if residual is None:
        kern = functools.partial(_mm_bn_kernel, relu=relu)
        in_specs = [x_spec, w_spec, v_spec, v_spec]
        args = (patches, wmat, scale, bias)
    else:
        kern = _mm_bn_res_kernel
        in_specs = [x_spec, w_spec, v_spec, v_spec, o_spec]
        args = (patches, wmat, scale, bias, residual)

    return pl.pallas_call(
        kern,
        out_shape=jax.ShapeDtypeStruct((Mp, Coutp), BF16),
        grid_spec=pltpu.PrefetchScalarGridSpec(
            num_scalar_prefetch=0,
            grid=grid,
            in_specs=in_specs,
            out_specs=o_spec,
            scratch_shapes=[pltpu.VMEM((TM, TN), jnp.float32)]),
        compiler_params=_mosaic_params(("parallel", "parallel", "arbitrary")),
    )(*args)


def maxpool2d(x, kh=3, kw=3, stride=2, pad=1):
    """3x3/2 max pool (PyTorch semantics); bf16 in/out (max is exact in bf16)."""
    N, H, W, C = x.shape
    xp = jnp.pad(x, ((0, 0), (pad, pad), (pad, pad), (0, 0)),
                 constant_values=-jnp.inf)
    Ho = (H + 2 * pad - kh) // stride + 1
    Wo = (W + 2 * pad - kw) // stride + 1
    M = N * Ho * Wo
    cols = []
    for i in range(kh):
        for j in range(kw):
            sl = xp[:, i:i + (Ho - 1) * stride + 1:stride,
                    j:j + (Wo - 1) * stride + 1:stride, :]
            cols.append(sl.reshape(M, C))
    patches = jnp.stack(cols, axis=0)                       # (kh*kw, M, C)
    Mp = _round_up(M, 8)
    patches = jnp.pad(patches, ((0, 0), (0, Mp - M), (0, 0)),
                      constant_values=-jnp.inf)
    TMp = _pick_tile(Mp, 1024, 8)
    out = pl.pallas_call(
        _maxpool_kernel,
        out_shape=jax.ShapeDtypeStruct((Mp, C), x.dtype),
        grid=(Mp // TMp,),
        in_specs=[pl.BlockSpec((kh * kw, TMp, C), lambda i: (0, i, 0))],
        out_specs=pl.BlockSpec((TMp, C), lambda i: (i, 0)),
        compiler_params=_mosaic_params(("parallel",)),
    )(patches)
    return out[:M].reshape(N, Ho, Wo, C)


def avgpool_fc(h, fc_w, fc_b):
    """Fused global-average-pool + final Linear (output padded to 128 lanes)."""
    N, H, W, C = h.shape
    feats = h.reshape(N, H * W, C)
    ncp = fc_w.shape[1]
    return pl.pallas_call(
        _head_kernel,
        out_shape=jax.ShapeDtypeStruct((N, ncp), F32),
        grid=(1,),
        in_specs=[pl.BlockSpec((N, H * W, C), lambda i: (0, 0, 0)),
                  pl.BlockSpec((C, ncp), lambda i: (0, 0)),
                  pl.BlockSpec((1, ncp), lambda i: (0, 0))],
        out_specs=pl.BlockSpec((N, ncp), lambda i: (0, 0)),
        compiler_params=_mosaic_params(),
    )(feats, fc_w, fc_b)


# ---------------------------------------------------------------------------
# Glue: im2col (padded to tile-friendly shapes) and conv+BN wrapper
# ---------------------------------------------------------------------------
def im2col(x, k, stride, pad, Mp, Kp):
    """NHWC -> (Mp, Kp) bf16 patches, matching PyTorch conv2d windowing;
    rows/cols zero-padded up to (Mp, Kp)."""
    x = x.astype(BF16)
    N, H, W, C = x.shape
    if pad > 0:
        x = jnp.pad(x, ((0, 0), (pad, pad), (pad, pad), (0, 0)))
    Ho = (H + 2 * pad - k) // stride + 1
    Wo = (W + 2 * pad - k) // stride + 1
    cols = []
    for i in range(k):
        for j in range(k):
            cols.append(x[:, i:i + (Ho - 1) * stride + 1:stride,
                          j:j + (Wo - 1) * stride + 1:stride, :])
    p = jnp.stack(cols, axis=3)                 # (N, Ho, Wo, k*k, C)
    p = p.reshape(N * Ho * Wo, k * k * C)
    M, K = p.shape
    return jnp.pad(p, ((0, Mp - M), (0, Kp - K)))


def conv2d_bn(x, cw, *, k, stride, pad, relu, residual=None):
    """x: NHWC activation (real channel count).  cw: prepped {w, scale, bias}.
    Returns (padded (Mp, Coutp) bf16 output, Ho, Wo)."""
    N, H, W, _ = x.shape
    Ho = (H + 2 * pad - k) // stride + 1
    Wo = (W + 2 * pad - k) // stride + 1
    M = N * Ho * Wo
    Mp = _round_up(M, 8)
    Kp = cw["w"].shape[0]
    patches = im2col(x, k, stride, pad, Mp, Kp)
    out = matmul_bn(patches, cw["w"], cw["scale"], cw["bias"],
                    relu=relu, residual=residual)
    return out, Ho, Wo


# ---------------------------------------------------------------------------
# One-time parameter preparation (hoisted out of the forward pass)
# ---------------------------------------------------------------------------
def prep_conv_bn(w, bn, eps=1e-5):
    """Torch conv weight (Cout, Cin, kh, kw) + BN stats -> padded bf16 matmul
    weight (Kp, Coutp) and folded f32 scale/bias (1, Coutp)."""
    cout, cin, kh, kw = w.shape
    coutp = _round_up(cout, 128)
    K = kh * kw * cin
    Kp = _round_up(K, 128)
    wmat = jnp.transpose(w, (2, 3, 1, 0)).reshape(K, cout)
    wmat = jnp.pad(wmat, ((0, Kp - K), (0, coutp - cout))).astype(BF16)
    gamma, beta, mean, var = bn
    scale = gamma / jnp.sqrt(var + eps)
    bias = beta - mean * scale
    scale = jnp.pad(scale, (0, coutp - cout)).reshape(1, coutp).astype(F32)
    bias = jnp.pad(bias, (0, coutp - cout)).reshape(1, coutp).astype(F32)
    return {"w": wmat, "scale": scale, "bias": bias}


def prepare_params(params):
    pp = {"stem": prep_conv_bn(params["conv1"], params["bn1"])}
    layers = []
    for li in range(1, 5):
        blocks = []
        for blk in params[f"layer{li}"]:
            b = {"conv1": prep_conv_bn(blk["conv1"], blk["bn1"]),
                 "conv2": prep_conv_bn(blk["conv2"], blk["bn2"])}
            if "down_conv" in blk:
                b["down"] = prep_conv_bn(blk["down_conv"], blk["down_bn"])
            blocks.append(b)
        layers.append(blocks)
    pp["layers"] = layers
    ncp = _round_up(NUM_CLASSES, 128)
    pp["fc_w"] = jnp.pad(params["fc_w"],
                         ((0, 0), (0, ncp - NUM_CLASSES))).astype(F32)
    pp["fc_b"] = jnp.pad(params["fc_b"],
                         (0, ncp - NUM_CLASSES)).reshape(1, ncp).astype(F32)
    return pp


# ---------------------------------------------------------------------------
# Deterministic parameter init (synthetic ResNet-18 weights, fc -> 17 classes)
# ---------------------------------------------------------------------------
def conv_params(key, cin, cout, k):
    std = (2.0 / (cin * k * k)) ** 0.5
    return jax.random.normal(key, (cout, cin, k, k), F32) * std


def bn_params(key, c):
    k1, k2, k3, k4 = jax.random.split(key, 4)
    gamma = 1.0 + 0.1 * jax.random.normal(k1, (c,), F32)
    beta = 0.1 * jax.random.normal(k2, (c,), F32)
    mean = 0.1 * jax.random.normal(k3, (c,), F32)
    var = jnp.abs(jax.random.normal(k4, (c,), F32)) * 0.1 + 1.0
    return gamma, beta, mean, var


def init_resnet18_params(key, num_classes=17):
    keys = iter(jax.random.split(key, 256))
    params = {
        "conv1": conv_params(next(keys), 3, 64, 7),
        "bn1": bn_params(next(keys), 64),
    }
    for li, (cin, cout, stride) in enumerate(LAYER_CFG, start=1):
        blocks = []
        for bi in range(2):
            s = stride if bi == 0 else 1
            in_c = cin if bi == 0 else cout
            blk = {
                "conv1": conv_params(next(keys), in_c, cout, 3),
                "bn1": bn_params(next(keys), cout),
                "conv2": conv_params(next(keys), cout, cout, 3),
                "bn2": bn_params(next(keys), cout),
            }
            if s != 1 or in_c != cout:
                blk["down_conv"] = conv_params(next(keys), in_c, cout, 1)
                blk["down_bn"] = bn_params(next(keys), cout)
            blocks.append(blk)
        params[f"layer{li}"] = blocks
    kfw, kfb = jax.random.split(next(keys))
    lim = 1.0 / (512 ** 0.5)
    params["fc_w"] = jax.random.uniform(kfw, (512, num_classes), F32, -lim, lim)
    params["fc_b"] = jax.random.uniform(kfb, (num_classes,), F32, -lim, lim)
    return params


# ---------------------------------------------------------------------------
# Forward pass
# ---------------------------------------------------------------------------
def basic_block(x, bp, cout, stride):
    N = x.shape[0]
    coutp = _round_up(cout, 128)

    out1_p, Ho, Wo = conv2d_bn(x, bp["conv1"], k=3, stride=stride, pad=1,
                               relu=True)
    M = N * Ho * Wo
    Mp = _round_up(M, 8)
    out1 = out1_p[:M, :cout].reshape(N, Ho, Wo, cout)

    if "down" in bp:
        residual, _, _ = conv2d_bn(x, bp["down"], k=1, stride=stride, pad=0,
                                   relu=False)          # (Mp, coutp) bf16
    else:
        residual = jnp.pad(x.reshape(M, cout).astype(BF16),
                           ((0, Mp - M), (0, coutp - cout)))

    out2_p, _, _ = conv2d_bn(out1, bp["conv2"], k=3, stride=1, pad=1,
                             relu=True, residual=residual)
    return out2_p[:M, :cout].reshape(N, Ho, Wo, cout)


def resnet18_forward(x_nchw, pp):
    # PyTorch input is NCHW; transpose once to NHWC.
    x = jnp.transpose(x_nchw, (0, 2, 3, 1)).astype(F32)
    N = x.shape[0]

    # stem: conv 7x7/2 + BN + ReLU, then maxpool 3x3/2
    out_p, Ho, Wo = conv2d_bn(x, pp["stem"], k=7, stride=2, pad=3, relu=True)
    h = out_p[:N * Ho * Wo, :64].reshape(N, Ho, Wo, 64)
    h = maxpool2d(h, 3, 3, 2, 1)

    for li, (_, cout, stride) in enumerate(LAYER_CFG):
        for bi in range(2):
            s = stride if bi == 0 else 1
            h = basic_block(h, pp["layers"][li][bi], cout, s)

    logits_p = avgpool_fc(h, pp["fc_w"], pp["fc_b"])   # (N, 128) f32
    return logits_p[:, :NUM_CLASSES]


if __name__ == "__main__":
    key = jax.random.PRNGKey(0)
    kp, kx = jax.random.split(key)
    params = init_resnet18_params(kp, num_classes=NUM_CLASSES)
    pp = prepare_params(params)          # one-time layout/fold/pad/bf16 prep

    # Small NCHW RGB input; 32x32 is the smallest spatial size that survives
    # ResNet-18's 32x total downsampling.
    x = jax.random.normal(kx, (2, 3, 32, 32), F32)

    fwd = jax.jit(resnet18_forward)
    logits = fwd(x, pp)
    jax.block_until_ready(logits)

    assert logits.shape == (2, NUM_CLASSES) and logits.dtype == jnp.float32
    assert bool(jnp.all(jnp.isfinite(logits)))
    print("KERNEL_OK")
</pallas_src>

<mosaic_0001>
module attributes {stable_mosaic.version = 11 : i64} {
  func.func @_mm_bn_kernel(%arg0: i32, %arg1: i32, %arg2: i32, %arg3: memref<512x256xbf16, #tpu.memory_space<vmem>>, %arg4: memref<256x128xbf16, #tpu.memory_space<vmem>>, %arg5: memref<1x128xf32, #tpu.memory_space<vmem>>, %arg6: memref<1x128xf32, #tpu.memory_space<vmem>>, %arg7: memref<512x128xbf16, #tpu.memory_space<vmem>>, %arg8: memref<512x128xf32, #tpu.memory_space<vmem>>) attributes {dimension_semantics = [#tpu.dimension_semantics<parallel>, #tpu.dimension_semantics<parallel>, #tpu.dimension_semantics<arbitrary>], iteration_bounds = array<i64: 1, 1, 1>, scalar_prefetch = 0 : i64, scratch_operands = 1 : i64, tpu.core_type = #tpu.core_type<tc>, window_params = [{transform_indices = @transform_0, window_bounds = array<i64: 512, 256>}, {transform_indices = @transform_1, window_bounds = array<i64: 256, 128>}, {transform_indices = @transform_2, window_bounds = array<i64: 1, 128>}, {transform_indices = @transform_3, window_bounds = array<i64: 1, 128>}, {transform_indices = @transform_4, window_bounds = array<i64: 512, 128>}]} {
    %c0_i32 = arith.constant 0 : i32
    %0 = arith.cmpi eq, %arg2, %c0_i32 : i32
    %1 = arith.extui %0 : i1 to i32
    %c0_i32_0 = arith.constant 0 : i32
    %2 = arith.cmpi ne, %1, %c0_i32_0 : i32
    scf.if %2 {
      %cst_10 = arith.constant 0.000000e+00 : f32
      %12 = vector.broadcast %cst_10 : f32 to vector<512x128xf32>
      %c0_11 = arith.constant 0 : index
      %c0_12 = arith.constant 0 : index
      %13 = vector.load %arg8[%c0_11, %c0_12] : memref<512x128xf32, #tpu.memory_space<vmem>>, vector<512x128xf32>
      tpu.vector_store %arg8[%c0_11, %c0_12], %12 {strides = array<i32>} : memref<512x128xf32, #tpu.memory_space<vmem>>, vector<512x128xf32>,
    } else {
    }
    %c0 = arith.constant 0 : index
    %c0_1 = arith.constant 0 : index
    %3 = vector.load %arg8[%c0, %c0_1] : memref<512x128xf32, #tpu.memory_space<vmem>>, vector<512x128xf32>
    %c0_2 = arith.constant 0 : index
    %c0_3 = arith.constant 0 : index
    %4 = vector.load %arg3[%c0_2, %c0_3] : memref<512x256xbf16, #tpu.memory_space<vmem>>, vector<512x256xbf16>
    %c0_4 = arith.constant 0 : index
    %c0_5 = arith.constant 0 : index
    %5 = vector.load %arg4[%c0_4, %c0_5] : memref<256x128xbf16, #tpu.memory_space<vmem>>, vector<256x128xbf16>
    %cst = arith.constant dense<0.000000e+00> : vector<512x128xf32>
    %6 = tpu.matmul %4, %5, %cst {dimension_numbers = #tpu.dot_dimension_numbers<[1], [0], [0], [1], [0, 0, 1, 1], [], []>} : vector<512x256xbf16>, vector<256x128xbf16>, vector<512x128xf32> -> vector<512x128xf32>
    %7 = arith.addf %3, %6 : vector<512x128xf32>
    %c0_6 = arith.constant 0 : index
    %c0_7 = arith.constant 0 : index
    %8 = vector.load %arg8[%c0_6, %c0_7] : memref<512x128xf32, #tpu.memory_space<vmem>>, vector<512x128xf32>
    tpu.vector_store %arg8[%c0_6, %c0_7], %7 {strides = array<i32>} : memref<512x128xf32, #tpu.memory_space<vmem>>, vector<512x128xf32>,
    %c0_i32_8 = arith.constant 0 : i32
    %9 = arith.cmpi eq, %arg2, %c0_i32_8 : i32
    %10 = arith.extui %9 : i1 to i32
    %c0_i32_9 = arith.constant 0 : i32
    %11 = arith.cmpi ne, %10, %c0_i32_9 : i32
    scf.if %11 {
      %c0_10 = arith.constant 0 : index
      %c0_11 = arith.constant 0 : index
      %12 = vector.load %arg8[%c0_10, %c0_11] : memref<512x128xf32, #tpu.memory_space<vmem>>, vector<512x128xf32>
      %c0_12 = arith.constant 0 : index
      %c0_13 = arith.constant 0 : index
      %13 = vector.load %arg5[%c0_12, %c0_13] : memref<1x128xf32, #tpu.memory_space<vmem>>, vector<1x128xf32>
      %14 = vector.broadcast %13 : vector<1x128xf32> to vector<512x128xf32>
      %15 = arith.mulf %12, %14 : vector<512x128xf32>
      %c0_14 = arith.constant 0 : index
      %c0_15 = arith.constant 0 : index
      %16 = vector.load %arg6[%c0_14, %c0_15] : memref<1x128xf32, #tpu.memory_space<vmem>>, vector<1x128xf32>
      %17 = vector.broadcast %16 : vector<1x128xf32> to vector<512x128xf32>
      %18 = arith.addf %15, %17 : vector<512x128xf32>
      %cst_16 = arith.constant 0.000000e+00 : f32
      %19 = vector.broadcast %cst_16 : f32 to vector<512x128xf32>
      %20 = arith.maximumf %18, %19 : vector<512x128xf32>
      %21 = arith.truncf %20 : vector<512x128xf32> to vector<512x128xbf16>
      %c0_17 = arith.constant 0 : index
      %c0_18 = arith.constant 0 : index
      %22 = vector.load %arg7[%c0_17, %c0_18] : memref<512x128xbf16, #tpu.memory_space<vmem>>, vector<512x128xbf16>
      tpu.vector_store %arg7[%c0_17, %c0_18], %21 {strides = array<i32>} : memref<512x128xbf16, #tpu.memory_space<vmem>>, vector<512x128xbf16>,
    } else {
    }
    return
  }
  func.func @transform_0(%arg0: i32, %arg1: i32, %arg2: i32) -> (i32, i32) {
    %c0_i32 = arith.constant 0 : i32
    return %arg0, %arg2 : i32, i32
  }
  func.func @transform_1(%arg0: i32, %arg1: i32, %arg2: i32) -> (i32, i32) {
    %c0_i32 = arith.constant 0 : i32
    return %arg2, %arg1 : i32, i32
  }
  func.func @transform_2(%arg0: i32, %arg1: i32, %arg2: i32) -> (i32, i32) {
    %c0_i32 = arith.constant 0 : i32
    %c0_i32_0 = arith.constant 0 : i32
    return %c0_i32, %arg1 : i32, i32
  }
  func.func @transform_3(%arg0: i32, %arg1: i32, %arg2: i32) -> (i32, i32) {
    %c0_i32 = arith.constant 0 : i32
    %c0_i32_0 = arith.constant 0 : i32
    return %c0_i32, %arg1 : i32, i32
  }
  func.func @transform_4(%arg0: i32, %arg1: i32, %arg2: i32) -> (i32, i32) {
    %c0_i32 = arith.constant 0 : i32
    return %arg0, %arg1 : i32, i32
  }
}

module attributes {stable_mosaic.version = 11 : i64} {
  func.func @_maxpool_kernel(%arg0: i32, %arg1: memref<9x128x64xbf16, #tpu.memory_space<vmem>>, %arg2: memref<128x64xbf16, #tpu.memory_space<vmem>>) attributes {dimension_semantics = [#tpu.dimension_semantics<parallel>], iteration_bounds = array<i64: 1>, scalar_prefetch = 0 : i64, scratch_operands = 0 : i64, tpu.core_type = #tpu.core_type<tc>, window_params = [{transform_indices = @transform_0, window_bounds = array<i64: 9, 128, 64>}, {transform_indices = @transform_1, window_bounds = array<i64: 128, 64>}]} {
    %c0 = arith.constant 0 : index
    %c0_0 = arith.constant 0 : index
    %c0_1 = arith.constant 0 : index
    %0 = vector.load %arg1[%c0, %c0_0, %c0_1] : memref<9x128x64xbf16, #tpu.memory_space<vmem>>, vector<9x128x64xbf16>
    %cst = arith.constant dense<0xFF80> : vector<128x64xbf16>
    %1 = vector.multi_reduction <maximumf>, %0, %cst [0] : vector<9x128x64xbf16> to vector<128x64xbf16>
    %c0_2 = arith.constant 0 : index
    %c0_3 = arith.constant 0 : index
    %2 = vector.load %arg2[%c0_2, %c0_3] : memref<128x64xbf16, #tpu.memory_space<vmem>>, vector<128x64xbf16>
    tpu.vector_store %arg2[%c0_2, %c0_3], %1 {strides = array<i32>} : memref<128x64xbf16, #tpu.memory_space<vmem>>, vector<128x64xbf16>,
    return
  }
  func.func @transform_0(%arg0: i32) -> (i32, i32, i32) {
    %c0_i32 = arith.constant 0 : i32
    %c0_i32_0 = arith.constant 0 : i32
    %c0_i32_1 = arith.constant 0 : i32
    return %c0_i32, %arg0, %c0_i32_0 : i32, i32, i32
  }
  func.func @transform_1(%arg0: i32) -> (i32, i32) {
    %c0_i32 = arith.constant 0 : i32
    %c0_i32_0 = arith.constant 0 : i32
    return %arg0, %c0_i32 : i32, i32
  }
}

module attributes {stable_mosaic.version = 11 : i64} {
  func.func @_mm_bn_kernel(%arg0: i32, %arg1: i32, %arg2: i32, %arg3: memref<128x128xbf16, #tpu.memory_space<vmem>>, %arg4: memref<128x128xbf16, #tpu.memory_space<vmem>>, %arg5: memref<1x128xf32, #tpu.memory_space<vmem>>, %arg6: memref<1x128xf32, #tpu.memory_space<vmem>>, %arg7: memref<128x128xbf16, #tpu.memory_space<vmem>>, %arg8: memref<128x128xf32, #tpu.memory_space<vmem>>) attributes {dimension_semantics = [#tpu.dimension_semantics<parallel>, #tpu.dimension_semantics<parallel>, #tpu.dimension_semantics<arbitrary>], iteration_bounds = array<i64: 1, 1, 5>, scalar_prefetch = 0 : i64, scratch_operands = 1 : i64, tpu.core_type = #tpu.core_type<tc>, window_params = [{transform_indices = @transform_0, window_bounds = array<i64: 128, 128>}, {transform_indices = @transform_1, window_bounds = array<i64: 128, 128>}, {transform_indices = @transform_2, window_bounds = array<i64: 1, 128>}, {transform_indices = @transform_3, window_bounds = array<i64: 1, 128>}, {transform_indices = @transform_4, window_bounds = array<i64: 128, 128>}]} {
    %c0_i32 = arith.constant 0 : i32
    %0 = arith.cmpi eq, %arg2, %c0_i32 : i32
    %1 = arith.extui %0 : i1 to i32
    %c0_i32_0 = arith.constant 0 : i32
    %2 = arith.cmpi ne, %1, %c0_i32_0 : i32
    scf.if %2 {
      %cst_9 = arith.constant 0.000000e+00 : f32
      %12 = vector.broadcast %cst_9 : f32 to vector<128x128xf32>
      %c0_10 = arith.constant 0 : index
      %c0_11 = arith.constant 0 : index
      %13 = vector.load %arg8[%c0_10, %c0_11] : memref<128x128xf32, #tpu.memory_space<vmem>>, vector<128x128xf32>
      tpu.vector_store %arg8[%c0_10, %c0_11], %12 {strides = array<i32>} : memref<128x128xf32, #tpu.memory_space<vmem>>, vector<128x128xf32>,
    } else {
    }
    %c0 = arith.constant 0 : index
    %c0_1 = arith.constant 0 : index
    %3 = vector.load %arg8[%c0, %c0_1] : memref<128x128xf32, #tpu.memory_space<vmem>>, vector<128x128xf32>
    %c0_2 = arith.constant 0 : index
    %c0_3 = arith.constant 0 : index
    %4 = vector.load %arg3[%c0_2, %c0_3] : memref<128x128xbf16, #tpu.memory_space<vmem>>, vector<128x128xbf16>
    %c0_4 = arith.constant 0 : index
    %c0_5 = arith.constant 0 : index
    %5 = vector.load %arg4[%c0_4, %c0_5] : memref<128x128xbf16, #tpu.memory_space<vmem>>, vector<128x128xbf16>
    %cst = arith.constant dense<0.000000e+00> : vector<128x128xf32>
    %6 = tpu.matmul %4, %5, %cst {dimension_numbers = #tpu.dot_dimension_numbers<[1], [0], [0], [1], [0, 0, 1, 1], [], []>} : vector<128x128xbf16>, vector<128x128xbf16>, vector<128x128xf32> -> vector<128x128xf32>
    %7 = arith.addf %3, %6 : vector<128x128xf32>
    %c0_6 = arith.constant 0 : index
    %c0_7 = arith.constant 0 : index
    %8 = vector.load %arg8[%c0_6, %c0_7] : memref<128x128xf32, #tpu.memory_space<vmem>>, vector<128x128xf32>
    tpu.vector_store %arg8[%c0_6, %c0_7], %7 {strides = array<i32>} : memref<128x128xf32, #tpu.memory_space<vmem>>, vector<128x128xf32>,
    %c4_i32 = arith.constant 4 : i32
    %9 = arith.cmpi eq, %arg2, %c4_i32 : i32
    %10 = arith.extui %9 : i1 to i32
    %c0_i32_8 = arith.constant 0 : i32
    %11 = arith.cmpi ne, %10, %c0_i32_8 : i32
    scf.if %11 {
      %c0_9 = arith.constant 0 : index
      %c0_10 = arith.constant 0 : index
      %12 = vector.load %arg8[%c0_9, %c0_10] : memref<128x128xf32, #tpu.memory_space<vmem>>, vector<128x128xf32>
      %c0_11 = arith.constant 0 : index
      %c0_12 = arith.constant 0 : index
      %13 = vector.load %arg5[%c0_11, %c0_12] : memref<1x128xf32, #tpu.memory_space<vmem>>, vector<1x128xf32>
      %14 = vector.broadcast %13 : vector<1x128xf32> to vector<128x128xf32>
      %15 = arith.mulf %12, %14 : vector<128x128xf32>
      %c0_13 = arith.constant 0 : index
      %c0_14 = arith.constant 0 : index
      %16 = vector.load %arg6[%c0_13, %c0_14] : memref<1x128xf32, #tpu.memory_space<vmem>>, vector<1x128xf32>
      %17 = vector.broadcast %16 : vector<1x128xf32> to vector<128x128xf32>
      %18 = arith.addf %15, %17 : vector<128x128xf32>
      %cst_15 = arith.constant 0.000000e+00 : f32
      %19 = vector.broadcast %cst_15 : f32 to vector<128x128xf32>
      %20 = arith.maximumf %18, %19 : vector<128x128xf32>
      %21 = arith.truncf %20 : vector<128x128xf32> to vector<128x128xbf16>
      %c0_16 = arith.constant 0 : index
      %c0_17 = arith.constant 0 : index
      %22 = vector.load %arg7[%c0_16, %c0_17] : memref<128x128xbf16, #tpu.memory_space<vmem>>, vector<128x128xbf16>
      tpu.vector_store %arg7[%c0_16, %c0_17], %21 {strides = array<i32>} : memref<128x128xbf16, #tpu.memory_space<vmem>>, vector<128x128xbf16>,
    } else {
    }
    return
  }
  func.func @transform_0(%arg0: i32, %arg1: i32, %arg2: i32) -> (i32, i32) {
    %c0_i32 = arith.constant 0 : i32
    return %arg0, %arg2 : i32, i32
  }
  func.func @transform_1(%arg0: i32, %arg1: i32, %arg2: i32) -> (i32, i32) {
    %c0_i32 = arith.constant 0 : i32
    return %arg2, %arg1 : i32, i32
  }
  func.func @transform_2(%arg0: i32, %arg1: i32, %arg2: i32) -> (i32, i32) {
    %c0_i32 = arith.constant 0 : i32
    %c0_i32_0 = arith.constant 0 : i32
    return %c0_i32, %arg1 : i32, i32
  }
  func.func @transform_3(%arg0: i32, %arg1: i32, %arg2: i32) -> (i32, i32) {
    %c0_i32 = arith.constant 0 : i32
    %c0_i32_0 = arith.constant 0 : i32
    return %c0_i32, %arg1 : i32, i32
  }
  func.func @transform_4(%arg0: i32, %arg1: i32, %arg2: i32) -> (i32, i32) {
    %c0_i32 = arith.constant 0 : i32
    return %arg0, %arg1 : i32, i32
  }
}

module attributes {stable_mosaic.version = 11 : i64} {
  func.func @_mm_bn_res_kernel(%arg0: i32, %arg1: i32, %arg2: i32, %arg3: memref<128x128xbf16, #tpu.memory_space<vmem>>, %arg4: memref<128x128xbf16, #tpu.memory_space<vmem>>, %arg5: memref<1x128xf32, #tpu.memory_space<vmem>>, %arg6: memref<1x128xf32, #tpu.memory_space<vmem>>, %arg7: memref<128x128xbf16, #tpu.memory_space<vmem>>, %arg8: memref<128x128xbf16, #tpu.memory_space<vmem>>, %arg9: memref<128x128xf32, #tpu.memory_space<vmem>>) attributes {dimension_semantics = [#tpu.dimension_semantics<parallel>, #tpu.dimension_semantics<parallel>, #tpu.dimension_semantics<arbitrary>], iteration_bounds = array<i64: 1, 1, 5>, scalar_prefetch = 0 : i64, scratch_operands = 1 : i64, tpu.core_type = #tpu.core_type<tc>, window_params = [{transform_indices = @transform_0, window_bounds = array<i64: 128, 128>}, {transform_indices = @transform_1, window_bounds = array<i64: 128, 128>}, {transform_indices = @transform_2, window_bounds = array<i64: 1, 128>}, {transform_indices = @transform_3, window_bounds = array<i64: 1, 128>}, {transform_indices = @transform_4, window_bounds = array<i64: 128, 128>}, {transform_indices = @transform_5, window_bounds = array<i64: 128, 128>}]} {
    %c0_i32 = arith.constant 0 : i32
    %0 = arith.cmpi eq, %arg2, %c0_i32 : i32
    %1 = arith.extui %0 : i1 to i32
    %c0_i32_0 = arith.constant 0 : i32
    %2 = arith.cmpi ne, %1, %c0_i32_0 : i32
    scf.if %2 {
      %cst_9 = arith.constant 0.000000e+00 : f32
      %12 = vector.broadcast %cst_9 : f32 to vector<128x128xf32>
      %c0_10 = arith.constant 0 : index
      %c0_11 = arith.constant 0 : index
      %13 = vector.load %arg9[%c0_10, %c0_11] : memref<128x128xf32, #tpu.memory_space<vmem>>, vector<128x128xf32>
      tpu.vector_store %arg9[%c0_10, %c0_11], %12 {strides = array<i32>} : memref<128x128xf32, #tpu.memory_space<vmem>>, vector<128x128xf32>,
    } else {
    }
    %c0 = arith.constant 0 : index
    %c0_1 = arith.constant 0 : index
    %3 = vector.load %arg9[%c0, %c0_1] : memref<128x128xf32, #tpu.memory_space<vmem>>, vector<128x128xf32>
    %c0_2 = arith.constant 0 : index
    %c0_3 = arith.constant 0 : index
    %4 = vector.load %arg3[%c0_2, %c0_3] : memref<128x128xbf16, #tpu.memory_space<vmem>>, vector<128x128xbf16>
    %c0_4 = arith.constant 0 : index
    %c0_5 = arith.constant 0 : index
    %5 = vector.load %arg4[%c0_4, %c0_5] : memref<128x128xbf16, #tpu.memory_space<vmem>>, vector<128x128xbf16>
    %cst = arith.constant dense<0.000000e+00> : vector<128x128xf32>
    %6 = tpu.matmul %4, %5, %cst {dimension_numbers = #tpu.dot_dimension_numbers<[1], [0], [0], [1], [0, 0, 1, 1], [], []>} : vector<128x128xbf16>, vector<128x128xbf16>, vector<128x128xf32> -> vector<128x128xf32>
    %7 = arith.addf %3, %6 : vector<128x128xf32>
    %c0_6 = arith.constant 0 : index
    %c0_7 = arith.constant 0 : index
    %8 = vector.load %arg9[%c0_6, %c0_7] : memref<128x128xf32, #tpu.memory_space<vmem>>, vector<128x128xf32>
    tpu.vector_store %arg9[%c0_6, %c0_7], %7 {strides = array<i32>} : memref<128x128xf32, #tpu.memory_space<vmem>>, vector<128x128xf32>,
    %c4_i32 = arith.constant 4 : i32
    %9 = arith.cmpi eq, %arg2, %c4_i32 : i32
    %10 = arith.extui %9 : i1 to i32
    %c0_i32_8 = arith.constant 0 : i32
    %11 = arith.cmpi ne, %10, %c0_i32_8 : i32
    scf.if %11 {
      %c0_9 = arith.constant 0 : index
      %c0_10 = arith.constant 0 : index
      %12 = vector.load %arg9[%c0_9, %c0_10] : memref<128x128xf32, #tpu.memory_space<vmem>>, vector<128x128xf32>
      %c0_11 = arith.constant 0 : index
      %c0_12 = arith.constant 0 : index
      %13 = vector.load %arg5[%c0_11, %c0_12] : memref<1x128xf32, #tpu.memory_space<vmem>>, vector<1x128xf32>
      %14 = vector.broadcast %13 : vector<1x128xf32> to vector<128x128xf32>
      %15 = arith.mulf %12, %14 : vector<128x128xf32>
      %c0_13 = arith.constant 0 : index
      %c0_14 = arith.constant 0 : index
      %16 = vector.load %arg6[%c0_13, %c0_14] : memref<1x128xf32, #tpu.memory_space<vmem>>, vector<1x128xf32>
      %17 = vector.broadcast %16 : vector<1x128xf32> to vector<128x128xf32>
      %18 = arith.addf %15, %17 : vector<128x128xf32>
      %c0_15 = arith.constant 0 : index
      %c0_16 = arith.constant 0 : index
      %19 = vector.load %arg7[%c0_15, %c0_16] : memref<128x128xbf16, #tpu.memory_space<vmem>>, vector<128x128xbf16>
      %20 = arith.extf %19 : vector<128x128xbf16> to vector<128x128xf32>
      %21 = arith.addf %18, %20 : vector<128x128xf32>
      %cst_17 = arith.constant 0.000000e+00 : f32
      %22 = vector.broadcast %cst_17 : f32 to vector<128x128xf32>
      %23 = arith.maximumf %21, %22 : vector<128x128xf32>
      %24 = arith.truncf %23 : vector<128x128xf32> to vector<128x128xbf16>
      %c0_18 = arith.constant 0 : index
      %c0_19 = arith.constant 0 : index
      %25 = vector.load %arg8[%c0_18, %c0_19] : memref<128x128xbf16, #tpu.memory_space<vmem>>, vector<128x128xbf16>
      tpu.vector_store %arg8[%c0_18, %c0_19], %24 {strides = array<i32>} : memref<128x128xbf16, #tpu.memory_space<vmem>>, vector<128x128xbf16>,
    } else {
    }
    return
  }
  func.func @transform_0(%arg0: i32, %arg1: i32, %arg2: i32) -> (i32, i32) {
    %c0_i32 = arith.constant 0 : i32
    return %arg0, %arg2 : i32, i32
  }
  func.func @transform_1(%arg0: i32, %arg1: i32, %arg2: i32) -> (i32, i32) {
    %c0_i32 = arith.constant 0 : i32
    return %arg2, %arg1 : i32, i32
  }
  func.func @transform_2(%arg0: i32, %arg1: i32, %arg2: i32) -> (i32, i32) {
    %c0_i32 = arith.constant 0 : i32
    %c0_i32_0 = arith.constant 0 : i32
    return %c0_i32, %arg1 : i32, i32
  }
  func.func @transform_3(%arg0: i32, %arg1: i32, %arg2: i32) -> (i32, i32) {
    %c0_i32 = arith.constant 0 : i32
    %c0_i32_0 = arith.constant 0 : i32
    return %c0_i32, %arg1 : i32, i32
  }
  func.func @transform_4(%arg0: i32, %arg1: i32, %arg2: i32) -> (i32, i32) {
    %c0_i32 = arith.constant 0 : i32
    return %arg0, %arg1 : i32, i32
  }
  func.func @transform_5(%arg0: i32, %arg1: i32, %arg2: i32) -> (i32, i32) {
    %c0_i32 = arith.constant 0 : i32
    return %arg0, %arg1 : i32, i32
  }
}

module attributes {stable_mosaic.version = 11 : i64} {
  func.func @_mm_bn_res_kernel(%arg0: i32, %arg1: i32, %arg2: i32, %arg3: memref<128x128xbf16, #tpu.memory_space<vmem>>, %arg4: memref<128x128xbf16, #tpu.memory_space<vmem>>, %arg5: memref<1x128xf32, #tpu.memory_space<vmem>>, %arg6: memref<1x128xf32, #tpu.memory_space<vmem>>, %arg7: memref<128x128xbf16, #tpu.memory_space<vmem>>, %arg8: memref<128x128xbf16, #tpu.memory_space<vmem>>, %arg9: memref<128x128xf32, #tpu.memory_space<vmem>>) attributes {dimension_semantics = [#tpu.dimension_semantics<parallel>, #tpu.dimension_semantics<parallel>, #tpu.dimension_semantics<arbitrary>], iteration_bounds = array<i64: 1, 1, 5>, scalar_prefetch = 0 : i64, scratch_operands = 1 : i64, tpu.core_type = #tpu.core_type<tc>, window_params = [{transform_indices = @transform_0, window_bounds = array<i64: 128, 128>}, {transform_indices = @transform_1, window_bounds = array<i64: 128, 128>}, {transform_indices = @transform_2, window_bounds = array<i64: 1, 128>}, {transform_indices = @transform_3, window_bounds = array<i64: 1, 128>}, {transform_indices = @transform_4, window_bounds = array<i64: 128, 128>}, {transform_indices = @transform_5, window_bounds = array<i64: 128, 128>}]} {
    %c0_i32 = arith.constant 0 : i32
    %0 = arith.cmpi eq, %arg2, %c0_i32 : i32
    %1 = arith.extui %0 : i1 to i32
    %c0_i32_0 = arith.constant 0 : i32
    %2 = arith.cmpi ne, %1, %c0_i32_0 : i32
    scf.if %2 {
      %cst_9 = arith.constant 0.000000e+00 : f32
      %12 = vector.broadcast %cst_9 : f32 to vector<128x128xf32>
      %c0_10 = arith.constant 0 : index
      %c0_11 = arith.constant 0 : index
      %13 = vector.load %arg9[%c0_10, %c0_11] : memref<128x128xf32, #tpu.memory_space<vmem>>, vector<128x128xf32>
      tpu.vector_store %arg9[%c0_10, %c0_11], %12 {strides = array<i32>} : memref<128x128xf32, #tpu.memory_space<vmem>>, vector<128x128xf32>,
    } else {
    }
    %c0 = arith.constant 0 : index
    %c0_1 = arith.constant 0 : index
    %3 = vector.load %arg9[%c0, %c0_1] : memref<128x128xf32, #tpu.memory_space<vmem>>, vector<128x128xf32>
    %c0_2 = arith.constant 0 : index
    %c0_3 = arith.constant 0 : index
    %4 = vector.load %arg3[%c0_2, %c0_3] : memref<128x128xbf16, #tpu.memory_space<vmem>>, vector<128x128xbf16>
    %c0_4 = arith.constant 0 : index
    %c0_5 = arith.constant 0 : index
    %5 = vector.load %arg4[%c0_4, %c0_5] : memref<128x128xbf16, #tpu.memory_space<vmem>>, vector<128x128xbf16>
    %cst = arith.constant dense<0.000000e+00> : vector<128x128xf32>
    %6 = tpu.matmul %4, %5, %cst {dimension_numbers = #tpu.dot_dimension_numbers<[1], [0], [0], [1], [0, 0, 1, 1], [], []>} : vector<128x128xbf16>, vector<128x128xbf16>, vector<128x128xf32> -> vector<128x128xf32>
    %7 = arith.addf %3, %6 : vector<128x128xf32>
    %c0_6 = arith.constant 0 : index
    %c0_7 = arith.constant 0 : index
    %8 = vector.load %arg9[%c0_6, %c0_7] : memref<128x128xf32, #tpu.memory_space<vmem>>, vector<128x128xf32>
    tpu.vector_store %arg9[%c0_6, %c0_7], %7 {strides = array<i32>} : memref<128x128xf32, #tpu.memory_space<vmem>>, vector<128x128xf32>,
    %c4_i32 = arith.constant 4 : i32
    %9 = arith.cmpi eq, %arg2, %c4_i32 : i32
    %10 = arith.extui %9 : i1 to i32
    %c0_i32_8 = arith.constant 0 : i32
    %11 = arith.cmpi ne, %10, %c0_i32_8 : i32
    scf.if %11 {
      %c0_9 = arith.constant 0 : index
      %c0_10 = arith.constant 0 : index
      %12 = vector.load %arg9[%c0_9, %c0_10] : memref<128x128xf32, #tpu.memory_space<vmem>>, vector<128x128xf32>
      %c0_11 = arith.constant 0 : index
      %c0_12 = arith.constant 0 : index
      %13 = vector.load %arg5[%c0_11, %c0_12] : memref<1x128xf32, #tpu.memory_space<vmem>>, vector<1x128xf32>
      %14 = vector.broadcast %13 : vector<1x128xf32> to vector<128x128xf32>
      %15 = arith.mulf %12, %14 : vector<128x128xf32>
      %c0_13 = arith.constant 0 : index
      %c0_14 = arith.constant 0 : index
      %16 = vector.load %arg6[%c0_13, %c0_14] : memref<1x128xf32, #tpu.memory_space<vmem>>, vector<1x128xf32>
      %17 = vector.broadcast %16 : vector<1x128xf32> to vector<128x128xf32>
      %18 = arith.addf %15, %17 : vector<128x128xf32>
      %c0_15 = arith.constant 0 : index
      %c0_16 = arith.constant 0 : index
      %19 = vector.load %arg7[%c0_15, %c0_16] : memref<128x128xbf16, #tpu.memory_space<vmem>>, vector<128x128xbf16>
      %20 = arith.extf %19 : vector<128x128xbf16> to vector<128x128xf32>
      %21 = arith.addf %18, %20 : vector<128x128xf32>
      %cst_17 = arith.constant 0.000000e+00 : f32
      %22 = vector.broadcast %cst_17 : f32 to vector<128x128xf32>
      %23 = arith.maximumf %21, %22 : vector<128x128xf32>
      %24 = arith.truncf %23 : vector<128x128xf32> to vector<128x128xbf16>
      %c0_18 = arith.constant 0 : index
      %c0_19 = arith.constant 0 : index
      %25 = vector.load %arg8[%c0_18, %c0_19] : memref<128x128xbf16, #tpu.memory_space<vmem>>, vector<128x128xbf16>
      tpu.vector_store %arg8[%c0_18, %c0_19], %24 {strides = array<i32>} : memref<128x128xbf16, #tpu.memory_space<vmem>>, vector<128x128xbf16>,
    } else {
    }
    return
  }
  func.func @transform_0(%arg0: i32, %arg1: i32, %arg2: i32) -> (i32, i32) {
    %c0_i32 = arith.constant 0 : i32
    return %arg0, %arg2 : i32, i32
  }
  func.func @transform_1(%arg0: i32, %arg1: i32, %arg2: i32) -> (i32, i32) {
    %c0_i32 = arith.constant 0 : i32
    return %arg2, %arg1 : i32, i32
  }
  func.func @transform_2(%arg0: i32, %arg1: i32, %arg2: i32) -> (i32, i32) {
    %c0_i32 = arith.constant 0 : i32
    %c0_i32_0 = arith.constant 0 : i32
    return %c0_i32, %arg1 : i32, i32
  }
  func.func @transform_3(%arg0: i32, %arg1: i32, %arg2: i32) -> (i32, i32) {
    %c0_i32 = arith.constant 0 : i32
    %c0_i32_0 = arith.constant 0 : i32
    return %c0_i32, %arg1 : i32, i32
  }
  func.func @transform_4(%arg0: i32, %arg1: i32, %arg2: i32) -> (i32, i32) {
    %c0_i32 = arith.constant 0 : i32
    return %arg0, %arg1 : i32, i32
  }
  func.func @transform_5(%arg0: i32, %arg1: i32, %arg2: i32) -> (i32, i32) {
    %c0_i32 = arith.constant 0 : i32
    return %arg0, %arg1 : i32, i32
  }
}

module attributes {stable_mosaic.version = 11 : i64} {
  func.func @_mm_bn_kernel(%arg0: i32, %arg1: i32, %arg2: i32, %arg3: memref<32x128xbf16, #tpu.memory_space<vmem>>, %arg4: memref<128x128xbf16, #tpu.memory_space<vmem>>, %arg5: memref<1x128xf32, #tpu.memory_space<vmem>>, %arg6: memref<1x128xf32, #tpu.memory_space<vmem>>, %arg7: memref<32x128xbf16, #tpu.memory_space<vmem>>, %arg8: memref<32x128xf32, #tpu.memory_space<vmem>>) attributes {dimension_semantics = [#tpu.dimension_semantics<parallel>, #tpu.dimension_semantics<parallel>, #tpu.dimension_semantics<arbitrary>], iteration_bounds = array<i64: 1, 1, 5>, scalar_prefetch = 0 : i64, scratch_operands = 1 : i64, tpu.core_type = #tpu.core_type<tc>, window_params = [{transform_indices = @transform_0, window_bounds = array<i64: 32, 128>}, {transform_indices = @transform_1, window_bounds = array<i64: 128, 128>}, {transform_indices = @transform_2, window_bounds = array<i64: 1, 128>}, {transform_indices = @transform_3, window_bounds = array<i64: 1, 128>}, {transform_indices = @transform_4, window_bounds = array<i64: 32, 128>}]} {
    %c0_i32 = arith.constant 0 : i32
    %0 = arith.cmpi eq, %arg2, %c0_i32 : i32
    %1 = arith.extui %0 : i1 to i32
    %c0_i32_0 = arith.constant 0 : i32
    %2 = arith.cmpi ne, %1, %c0_i32_0 : i32
    scf.if %2 {
      %cst_9 = arith.constant 0.000000e+00 : f32
      %12 = vector.broadcast %cst_9 : f32 to vector<32x128xf32>
      %c0_10 = arith.constant 0 : index
      %c0_11 = arith.constant 0 : index
      %13 = vector.load %arg8[%c0_10, %c0_11] : memref<32x128xf32, #tpu.memory_space<vmem>>, vector<32x128xf32>
      tpu.vector_store %arg8[%c0_10, %c0_11], %12 {strides = array<i32>} : memref<32x128xf32, #tpu.memory_space<vmem>>, vector<32x128xf32>,
    } else {
    }
    %c0 = arith.constant 0 : index
    %c0_1 = arith.constant 0 : index
    %3 = vector.load %arg8[%c0, %c0_1] : memref<32x128xf32, #tpu.memory_space<vmem>>, vector<32x128xf32>
    %c0_2 = arith.constant 0 : index
    %c0_3 = arith.constant 0 : index
    %4 = vector.load %arg3[%c0_2, %c0_3] : memref<32x128xbf16, #tpu.memory_space<vmem>>, vector<32x128xbf16>
    %c0_4 = arith.constant 0 : index
    %c0_5 = arith.constant 0 : index
    %5 = vector.load %arg4[%c0_4, %c0_5] : memref<128x128xbf16, #tpu.memory_space<vmem>>, vector<128x128xbf16>
    %cst = arith.constant dense<0.000000e+00> : vector<32x128xf32>
    %6 = tpu.matmul %4, %5, %cst {dimension_numbers = #tpu.dot_dimension_numbers<[1], [0], [0], [1], [0, 0, 1, 1], [], []>} : vector<32x128xbf16>, vector<128x128xbf16>, vector<32x128xf32> -> vector<32x128xf32>
    %7 = arith.addf %3, %6 : vector<32x128xf32>
    %c0_6 = arith.constant 0 : index
    %c0_7 = arith.constant 0 : index
    %8 = vector.load %arg8[%c0_6, %c0_7] : memref<32x128xf32, #tpu.memory_space<vmem>>, vector<32x128xf32>
    tpu.vector_store %arg8[%c0_6, %c0_7], %7 {strides = array<i32>} : memref<32x128xf32, #tpu.memory_space<vmem>>, vector<32x128xf32>,
    %c4_i32 = arith.constant 4 : i32
    %9 = arith.cmpi eq, %arg2, %c4_i32 : i32
    %10 = arith.extui %9 : i1 to i32
    %c0_i32_8 = arith.constant 0 : i32
    %11 = arith.cmpi ne, %10, %c0_i32_8 : i32
    scf.if %11 {
      %c0_9 = arith.constant 0 : index
      %c0_10 = arith.constant 0 : index
      %12 = vector.load %arg8[%c0_9, %c0_10] : memref<32x128xf32, #tpu.memory_space<vmem>>, vector<32x128xf32>
      %c0_11 = arith.constant 0 : index
      %c0_12 = arith.constant 0 : index
      %13 = vector.load %arg5[%c0_11, %c0_12] : memref<1x128xf32, #tpu.memory_space<vmem>>, vector<1x128xf32>
      %14 = vector.broadcast %13 : vector<1x128xf32> to vector<32x128xf32>
      %15 = arith.mulf %12, %14 : vector<32x128xf32>
      %c0_13 = arith.constant 0 : index
      %c0_14 = arith.constant 0 : index
      %16 = vector.load %arg6[%c0_13, %c0_14] : memref<1x128xf32, #tpu.memory_space<vmem>>, vector<1x128xf32>
      %17 = vector.broadcast %16 : vector<1x128xf32> to vector<32x128xf32>
      %18 = arith.addf %15, %17 : vector<32x128xf32>
      %cst_15 = arith.constant 0.000000e+00 : f32
      %19 = vector.broadcast %cst_15 : f32 to vector<32x128xf32>
      %20 = arith.maximumf %18, %19 : vector<32x128xf32>
      %21 = arith.truncf %20 : vector<32x128xf32> to vector<32x128xbf16>
      %c0_16 = arith.constant 0 : index
      %c0_17 = arith.constant 0 : index
      %22 = vector.load %arg7[%c0_16, %c0_17] : memref<32x128xbf16, #tpu.memory_space<vmem>>, vector<32x128xbf16>
      tpu.vector_store %arg7[%c0_16, %c0_17], %21 {strides = array<i32>} : memref<32x128xbf16, #tpu.memory_space<vmem>>, vector<32x128xbf16>,
    } else {
    }
    return
  }
  func.func @transform_0(%arg0: i32, %arg1: i32, %arg2: i32) -> (i32, i32) {
    %c0_i32 = arith.constant 0 : i32
    return %arg0, %arg2 : i32, i32
  }
  func.func @transform_1(%arg0: i32, %arg1: i32, %arg2: i32) -> (i32, i32) {
    %c0_i32 = arith.constant 0 : i32
    return %arg2, %arg1 : i32, i32
  }
  func.func @transform_2(%arg0: i32, %arg1: i32, %arg2: i32) -> (i32, i32) {
    %c0_i32 = arith.constant 0 : i32
    %c0_i32_0 = arith.constant 0 : i32
    return %c0_i32, %arg1 : i32, i32
  }
  func.func @transform_3(%arg0: i32, %arg1: i32, %arg2: i32) -> (i32, i32) {
    %c0_i32 = arith.constant 0 : i32
    %c0_i32_0 = arith.constant 0 : i32
    return %c0_i32, %arg1 : i32, i32
  }
  func.func @transform_4(%arg0: i32, %arg1: i32, %arg2: i32) -> (i32, i32) {
    %c0_i32 = arith.constant 0 : i32
    return %arg0, %arg1 : i32, i32
  }
}

module attributes {stable_mosaic.version = 11 : i64} {
  func.func @_mm_bn_res_kernel(%arg0: i32, %arg1: i32, %arg2: i32, %arg3: memref<32x384xbf16, #tpu.memory_space<vmem>>, %arg4: memref<384x128xbf16, #tpu.memory_space<vmem>>, %arg5: memref<1x128xf32, #tpu.memory_space<vmem>>, %arg6: memref<1x128xf32, #tpu.memory_space<vmem>>, %arg7: memref<32x128xbf16, #tpu.memory_space<vmem>>, %arg8: memref<32x128xbf16, #tpu.memory_space<vmem>>, %arg9: memref<32x128xf32, #tpu.memory_space<vmem>>) attributes {dimension_semantics = [#tpu.dimension_semantics<parallel>, #tpu.dimension_semantics<parallel>, #tpu.dimension_semantics<arbitrary>], iteration_bounds = array<i64: 1, 1, 3>, scalar_prefetch = 0 : i64, scratch_operands = 1 : i64, tpu.core_type = #tpu.core_type<tc>, window_params = [{transform_indices = @transform_0, window_bounds = array<i64: 32, 384>}, {transform_indices = @transform_1, window_bounds = array<i64: 384, 128>}, {transform_indices = @transform_2, window_bounds = array<i64: 1, 128>}, {transform_indices = @transform_3, window_bounds = array<i64: 1, 128>}, {transform_indices = @transform_4, window_bounds = array<i64: 32, 128>}, {transform_indices = @transform_5, window_bounds = array<i64: 32, 128>}]} {
    %c0_i32 = arith.constant 0 : i32
    %0 = arith.cmpi eq, %arg2, %c0_i32 : i32
    %1 = arith.extui %0 : i1 to i32
    %c0_i32_0 = arith.constant 0 : i32
    %2 = arith.cmpi ne, %1, %c0_i32_0 : i32
    scf.if %2 {
      %cst_9 = arith.constant 0.000000e+00 : f32
      %12 = vector.broadcast %cst_9 : f32 to vector<32x128xf32>
      %c0_10 = arith.constant 0 : index
      %c0_11 = arith.constant 0 : index
      %13 = vector.load %arg9[%c0_10, %c0_11] : memref<32x128xf32, #tpu.memory_space<vmem>>, vector<32x128xf32>
      tpu.vector_store %arg9[%c0_10, %c0_11], %12 {strides = array<i32>} : memref<32x128xf32, #tpu.memory_space<vmem>>, vector<32x128xf32>,
    } else {
    }
    %c0 = arith.constant 0 : index
    %c0_1 = arith.constant 0 : index
    %3 = vector.load %arg9[%c0, %c0_1] : memref<32x128xf32, #tpu.memory_space<vmem>>, vector<32x128xf32>
    %c0_2 = arith.constant 0 : index
    %c0_3 = arith.constant 0 : index
    %4 = vector.load %arg3[%c0_2, %c0_3] : memref<32x384xbf16, #tpu.memory_space<vmem>>, vector<32x384xbf16>
    %c0_4 = arith.constant 0 : index
    %c0_5 = arith.constant 0 : index
    %5 = vector.load %arg4[%c0_4, %c0_5] : memref<384x128xbf16, #tpu.memory_space<vmem>>, vector<384x128xbf16>
    %cst = arith.constant dense<0.000000e+00> : vector<32x128xf32>
    %6 = tpu.matmul %4, %5, %cst {dimension_numbers = #tpu.dot_dimension_numbers<[1], [0], [0], [1], [0, 0, 1, 1], [], []>} : vector<32x384xbf16>, vector<384x128xbf16>, vector<32x128xf32> -> vector<32x128xf32>
    %7 = arith.addf %3, %6 : vector<32x128xf32>
    %c0_6 = arith.constant 0 : index
    %c0_7 = arith.constant 0 : index
    %8 = vector.load %arg9[%c0_6, %c0_7] : memref<32x128xf32, #tpu.memory_space<vmem>>, vector<32x128xf32>
    tpu.vector_store %arg9[%c0_6, %c0_7], %7 {strides = array<i32>} : memref<32x128xf32, #tpu.memory_space<vmem>>, vector<32x128xf32>,
    %c2_i32 = arith.constant 2 : i32
    %9 = arith.cmpi eq, %arg2, %c2_i32 : i32
    %10 = arith.extui %9 : i1 to i32
    %c0_i32_8 = arith.constant 0 : i32
    %11 = arith.cmpi ne, %10, %c0_i32_8 : i32
    scf.if %11 {
      %c0_9 = arith.constant 0 : index
      %c0_10 = arith.constant 0 : index
      %12 = vector.load %arg9[%c0_9, %c0_10] : memref<32x128xf32, #tpu.memory_space<vmem>>, vector<32x128xf32>
      %c0_11 = arith.constant 0 : index
      %c0_12 = arith.constant 0 : index
      %13 = vector.load %arg5[%c0_11, %c0_12] : memref<1x128xf32, #tpu.memory_space<vmem>>, vector<1x128xf32>
      %14 = vector.broadcast %13 : vector<1x128xf32> to vector<32x128xf32>
      %15 = arith.mulf %12, %14 : vector<32x128xf32>
      %c0_13 = arith.constant 0 : index
      %c0_14 = arith.constant 0 : index
      %16 = vector.load %arg6[%c0_13, %c0_14] : memref<1x128xf32, #tpu.memory_space<vmem>>, vector<1x128xf32>
      %17 = vector.broadcast %16 : vector<1x128xf32> to vector<32x128xf32>
      %18 = arith.addf %15, %17 : vector<32x128xf32>
      %c0_15 = arith.constant 0 : index
      %c0_16 = arith.constant 0 : index
      %19 = vector.load %arg7[%c0_15, %c0_16] : memref<32x128xbf16, #tpu.memory_space<vmem>>, vector<32x128xbf16>
      %20 = arith.extf %19 : vector<32x128xbf16> to vector<32x128xf32>
      %21 = arith.addf %18, %20 : vector<32x128xf32>
      %cst_17 = arith.constant 0.000000e+00 : f32
      %22 = vector.broadcast %cst_17 : f32 to vector<32x128xf32>
      %23 = arith.maximumf %21, %22 : vector<32x128xf32>
      %24 = arith.truncf %23 : vector<32x128xf32> to vector<32x128xbf16>
      %c0_18 = arith.constant 0 : index
      %c0_19 = arith.constant 0 : index
      %25 = vector.load %arg8[%c0_18, %c0_19] : memref<32x128xbf16, #tpu.memory_space<vmem>>, vector<32x128xbf16>
      tpu.vector_store %arg8[%c0_18, %c0_19], %24 {strides = array<i32>} : memref<32x128xbf16, #tpu.memory_space<vmem>>, vector<32x128xbf16>,
    } else {
    }
    return
  }
  func.func @transform_0(%arg0: i32, %arg1: i32, %arg2: i32) -> (i32, i32) {
    %c0_i32 = arith.constant 0 : i32
    return %arg0, %arg2 : i32, i32
  }
  func.func @transform_1(%arg0: i32, %arg1: i32, %arg2: i32) -> (i32, i32) {
    %c0_i32 = arith.constant 0 : i32
    return %arg2, %arg1 : i32, i32
  }
  func.func @transform_2(%arg0: i32, %arg1: i32, %arg2: i32) -> (i32, i32) {
    %c0_i32 = arith.constant 0 : i32
    %c0_i32_0 = arith.constant 0 : i32
    return %c0_i32, %arg1 : i32, i32
  }
  func.func @transform_3(%arg0: i32, %arg1: i32, %arg2: i32) -> (i32, i32) {
    %c0_i32 = arith.constant 0 : i32
    %c0_i32_0 = arith.constant 0 : i32
    return %c0_i32, %arg1 : i32, i32
  }
  func.func @transform_4(%arg0: i32, %arg1: i32, %arg2: i32) -> (i32, i32) {
    %c0_i32 = arith.constant 0 : i32
    return %arg0, %arg1 : i32, i32
  }
  func.func @transform_5(%arg0: i32, %arg1: i32, %arg2: i32) -> (i32, i32) {
    %c0_i32 = arith.constant 0 : i32
    return %arg0, %arg1 : i32, i32
  }
}

module attributes {stable_mosaic.version = 11 : i64} {
  func.func @_mm_bn_kernel(%arg0: i32, %arg1: i32, %arg2: i32, %arg3: memref<32x128xbf16, #tpu.memory_space<vmem>>, %arg4: memref<128x128xbf16, #tpu.memory_space<vmem>>, %arg5: memref<1x128xf32, #tpu.memory_space<vmem>>, %arg6: memref<1x128xf32, #tpu.memory_space<vmem>>, %arg7: memref<32x128xbf16, #tpu.memory_space<vmem>>, %arg8: memref<32x128xf32, #tpu.memory_space<vmem>>) attributes {dimension_semantics = [#tpu.dimension_semantics<parallel>, #tpu.dimension_semantics<parallel>, #tpu.dimension_semantics<arbitrary>], iteration_bounds = array<i64: 1, 1, 1>, scalar_prefetch = 0 : i64, scratch_operands = 1 : i64, tpu.core_type = #tpu.core_type<tc>, window_params = [{transform_indices = @transform_0, window_bounds = array<i64: 32, 128>}, {transform_indices = @transform_1, window_bounds = array<i64: 128, 128>}, {transform_indices = @transform_2, window_bounds = array<i64: 1, 128>}, {transform_indices = @transform_3, window_bounds = array<i64: 1, 128>}, {transform_indices = @transform_4, window_bounds = array<i64: 32, 128>}]} {
    %c0_i32 = arith.constant 0 : i32
    %0 = arith.cmpi eq, %arg2, %c0_i32 : i32
    %1 = arith.extui %0 : i1 to i32
    %c0_i32_0 = arith.constant 0 : i32
    %2 = arith.cmpi ne, %1, %c0_i32_0 : i32
    scf.if %2 {
      %cst_10 = arith.constant 0.000000e+00 : f32
      %12 = vector.broadcast %cst_10 : f32 to vector<32x128xf32>
      %c0_11 = arith.constant 0 : index
      %c0_12 = arith.constant 0 : index
      %13 = vector.load %arg8[%c0_11, %c0_12] : memref<32x128xf32, #tpu.memory_space<vmem>>, vector<32x128xf32>
      tpu.vector_store %arg8[%c0_11, %c0_12], %12 {strides = array<i32>} : memref<32x128xf32, #tpu.memory_space<vmem>>, vector<32x128xf32>,
    } else {
    }
    %c0 = arith.constant 0 : index
    %c0_1 = arith.constant 0 : index
    %3 = vector.load %arg8[%c0, %c0_1] : memref<32x128xf32, #tpu.memory_space<vmem>>, vector<32x128xf32>
    %c0_2 = arith.constant 0 : index
    %c0_3 = arith.constant 0 : index
    %4 = vector.load %arg3[%c0_2, %c0_3] : memref<32x128xbf16, #tpu.memory_space<vmem>>, vector<32x128xbf16>
    %c0_4 = arith.constant 0 : index
    %c0_5 = arith.constant 0 : index
    %5 = vector.load %arg4[%c0_4, %c0_5] : memref<128x128xbf16, #tpu.memory_space<vmem>>, vector<128x128xbf16>
    %cst = arith.constant dense<0.000000e+00> : vector<32x128xf32>
    %6 = tpu.matmul %4, %5, %cst {dimension_numbers = #tpu.dot_dimension_numbers<[1], [0], [0], [1], [0, 0, 1, 1], [], []>} : vector<32x128xbf16>, vector<128x128xbf16>, vector<32x128xf32> -> vector<32x128xf32>
    %7 = arith.addf %3, %6 : vector<32x128xf32>
    %c0_6 = arith.constant 0 : index
    %c0_7 = arith.constant 0 : index
    %8 = vector.load %arg8[%c0_6, %c0_7] : memref<32x128xf32, #tpu.memory_space<vmem>>, vector<32x128xf32>
    tpu.vector_store %arg8[%c0_6, %c0_7], %7 {strides = array<i32>} : memref<32x128xf32, #tpu.memory_space<vmem>>, vector<32x128xf32>,
    %c0_i32_8 = arith.constant 0 : i32
    %9 = arith.cmpi eq, %arg2, %c0_i32_8 : i32
    %10 = arith.extui %9 : i1 to i32
    %c0_i32_9 = arith.constant 0 : i32
    %11 = arith.cmpi ne, %10, %c0_i32_9 : i32
    scf.if %11 {
      %c0_10 = arith.constant 0 : index
      %c0_11 = arith.constant 0 : index
      %12 = vector.load %arg8[%c0_10, %c0_11] : memref<32x128xf32, #tpu.memory_space<vmem>>, vector<32x128xf32>
      %c0_12 = arith.constant 0 : index
      %c0_13 = arith.constant 0 : index
      %13 = vector.load %arg5[%c0_12, %c0_13] : memref<1x128xf32, #tpu.memory_space<vmem>>, vector<1x128xf32>
      %14 = vector.broadcast %13 : vector<1x128xf32> to vector<32x128xf32>
      %15 = arith.mulf %12, %14 : vector<32x128xf32>
      %c0_14 = arith.constant 0 : index
      %c0_15 = arith.constant 0 : index
      %16 = vector.load %arg6[%c0_14, %c0_15] : memref<1x128xf32, #tpu.memory_space<vmem>>, vector<1x128xf32>
      %17 = vector.broadcast %16 : vector<1x128xf32> to vector<32x128xf32>
      %18 = arith.addf %15, %17 : vector<32x128xf32>
      %19 = arith.truncf %18 : vector<32x128xf32> to vector<32x128xbf16>
      %c0_16 = arith.constant 0 : index
      %c0_17 = arith.constant 0 : index
      %20 = vector.load %arg7[%c0_16, %c0_17] : memref<32x128xbf16, #tpu.memory_space<vmem>>, vector<32x128xbf16>
      tpu.vector_store %arg7[%c0_16, %c0_17], %19 {strides = array<i32>} : memref<32x128xbf16, #tpu.memory_space<vmem>>, vector<32x128xbf16>,
    } else {
    }
    return
  }
  func.func @transform_0(%arg0: i32, %arg1: i32, %arg2: i32) -> (i32, i32) {
    %c0_i32 = arith.constant 0 : i32
    return %arg0, %arg2 : i32, i32
  }
  func.func @transform_1(%arg0: i32, %arg1: i32, %arg2: i32) -> (i32, i32) {
    %c0_i32 = arith.constant 0 : i32
    return %arg2, %arg1 : i32, i32
  }
  func.func @transform_2(%arg0: i32, %arg1: i32, %arg2: i32) -> (i32, i32) {
    %c0_i32 = arith.constant 0 : i32
    %c0_i32_0 = arith.constant 0 : i32
    return %c0_i32, %arg1 : i32, i32
  }
  func.func @transform_3(%arg0: i32, %arg1: i32, %arg2: i32) -> (i32, i32) {
    %c0_i32 = arith.constant 0 : i32
    %c0_i32_0 = arith.constant 0 : i32
    return %c0_i32, %arg1 : i32, i32
  }
  func.func @transform_4(%arg0: i32, %arg1: i32, %arg2: i32) -> (i32, i32) {
    %c0_i32 = arith.constant 0 : i32
    return %arg0, %arg1 : i32, i32
  }
}

module attributes {stable_mosaic.version = 11 : i64} {
  func.func @_mm_bn_kernel(%arg0: i32, %arg1: i32, %arg2: i32, %arg3: memref<32x384xbf16, #tpu.memory_space<vmem>>, %arg4: memref<384x128xbf16, #tpu.memory_space<vmem>>, %arg5: memref<1x128xf32, #tpu.memory_space<vmem>>, %arg6: memref<1x128xf32, #tpu.memory_space<vmem>>, %arg7: memref<32x128xbf16, #tpu.memory_space<vmem>>, %arg8: memref<32x128xf32, #tpu.memory_space<vmem>>) attributes {dimension_semantics = [#tpu.dimension_semantics<parallel>, #tpu.dimension_semantics<parallel>, #tpu.dimension_semantics<arbitrary>], iteration_bounds = array<i64: 1, 1, 3>, scalar_prefetch = 0 : i64, scratch_operands = 1 : i64, tpu.core_type = #tpu.core_type<tc>, window_params = [{transform_indices = @transform_0, window_bounds = array<i64: 32, 384>}, {transform_indices = @transform_1, window_bounds = array<i64: 384, 128>}, {transform_indices = @transform_2, window_bounds = array<i64: 1, 128>}, {transform_indices = @transform_3, window_bounds = array<i64: 1, 128>}, {transform_indices = @transform_4, window_bounds = array<i64: 32, 128>}]} {
    %c0_i32 = arith.constant 0 : i32
    %0 = arith.cmpi eq, %arg2, %c0_i32 : i32
    %1 = arith.extui %0 : i1 to i32
    %c0_i32_0 = arith.constant 0 : i32
    %2 = arith.cmpi ne, %1, %c0_i32_0 : i32
    scf.if %2 {
      %cst_9 = arith.constant 0.000000e+00 : f32
      %12 = vector.broadcast %cst_9 : f32 to vector<32x128xf32>
      %c0_10 = arith.constant 0 : index
      %c0_11 = arith.constant 0 : index
      %13 = vector.load %arg8[%c0_10, %c0_11] : memref<32x128xf32, #tpu.memory_space<vmem>>, vector<32x128xf32>
      tpu.vector_store %arg8[%c0_10, %c0_11], %12 {strides = array<i32>} : memref<32x128xf32, #tpu.memory_space<vmem>>, vector<32x128xf32>,
    } else {
    }
    %c0 = arith.constant 0 : index
    %c0_1 = arith.constant 0 : index
    %3 = vector.load %arg8[%c0, %c0_1] : memref<32x128xf32, #tpu.memory_space<vmem>>, vector<32x128xf32>
    %c0_2 = arith.constant 0 : index
    %c0_3 = arith.constant 0 : index
    %4 = vector.load %arg3[%c0_2, %c0_3] : memref<32x384xbf16, #tpu.memory_space<vmem>>, vector<32x384xbf16>
    %c0_4 = arith.constant 0 : index
    %c0_5 = arith.constant 0 : index
    %5 = vector.load %arg4[%c0_4, %c0_5] : memref<384x128xbf16, #tpu.memory_space<vmem>>, vector<384x128xbf16>
    %cst = arith.constant dense<0.000000e+00> : vector<32x128xf32>
    %6 = tpu.matmul %4, %5, %cst {dimension_numbers = #tpu.dot_dimension_numbers<[1], [0], [0], [1], [0, 0, 1, 1], [], []>} : vector<32x384xbf16>, vector<384x128xbf16>, vector<32x128xf32> -> vector<32x128xf32>
    %7 = arith.addf %3, %6 : vector<32x128xf32>
    %c0_6 = arith.constant 0 : index
    %c0_7 = arith.constant 0 : index
    %8 = vector.load %arg8[%c0_6, %c0_7] : memref<32x128xf32, #tpu.memory_space<vmem>>, vector<32x128xf32>
    tpu.vector_store %arg8[%c0_6, %c0_7], %7 {strides = array<i32>} : memref<32x128xf32, #tpu.memory_space<vmem>>, vector<32x128xf32>,
    %c2_i32 = arith.constant 2 : i32
    %9 = arith.cmpi eq, %arg2, %c2_i32 : i32
    %10 = arith.extui %9 : i1 to i32
    %c0_i32_8 = arith.constant 0 : i32
    %11 = arith.cmpi ne, %10, %c0_i32_8 : i32
    scf.if %11 {
      %c0_9 = arith.constant 0 : index
      %c0_10 = arith.constant 0 : index
      %12 = vector.load %arg8[%c0_9, %c0_10] : memref<32x128xf32, #tpu.memory_space<vmem>>, vector<32x128xf32>
      %c0_11 = arith.constant 0 : index
      %c0_12 = arith.constant 0 : index
      %13 = vector.load %arg5[%c0_11, %c0_12] : memref<1x128xf32, #tpu.memory_space<vmem>>, vector<1x128xf32>
      %14 = vector.broadcast %13 : vector<1x128xf32> to vector<32x128xf32>
      %15 = arith.mulf %12, %14 : vector<32x128xf32>
      %c0_13 = arith.constant 0 : index
      %c0_14 = arith.constant 0 : index
      %16 = vector.load %arg6[%c0_13, %c0_14] : memref<1x128xf32, #tpu.memory_space<vmem>>, vector<1x128xf32>
      %17 = vector.broadcast %16 : vector<1x128xf32> to vector<32x128xf32>
      %18 = arith.addf %15, %17 : vector<32x128xf32>
      %cst_15 = arith.constant 0.000000e+00 : f32
      %19 = vector.broadcast %cst_15 : f32 to vector<32x128xf32>
      %20 = arith.maximumf %18, %19 : vector<32x128xf32>
      %21 = arith.truncf %20 : vector<32x128xf32> to vector<32x128xbf16>
      %c0_16 = arith.constant 0 : index
      %c0_17 = arith.constant 0 : index
      %22 = vector.load %arg7[%c0_16, %c0_17] : memref<32x128xbf16, #tpu.memory_space<vmem>>, vector<32x128xbf16>
      tpu.vector_store %arg7[%c0_16, %c0_17], %21 {strides = array<i32>} : memref<32x128xbf16, #tpu.memory_space<vmem>>, vector<32x128xbf16>,
    } else {
    }
    return
  }
  func.func @transform_0(%arg0: i32, %arg1: i32, %arg2: i32) -> (i32, i32) {
    %c0_i32 = arith.constant 0 : i32
    return %arg0, %arg2 : i32, i32
  }
  func.func @transform_1(%arg0: i32, %arg1: i32, %arg2: i32) -> (i32, i32) {
    %c0_i32 = arith.constant 0 : i32
    return %arg2, %arg1 : i32, i32
  }
  func.func @transform_2(%arg0: i32, %arg1: i32, %arg2: i32) -> (i32, i32) {
    %c0_i32 = arith.constant 0 : i32
    %c0_i32_0 = arith.constant 0 : i32
    return %c0_i32, %arg1 : i32, i32
  }
  func.func @transform_3(%arg0: i32, %arg1: i32, %arg2: i32) -> (i32, i32) {
    %c0_i32 = arith.constant 0 : i32
    %c0_i32_0 = arith.constant 0 : i32
    return %c0_i32, %arg1 : i32, i32
  }
  func.func @transform_4(%arg0: i32, %arg1: i32, %arg2: i32) -> (i32, i32) {
    %c0_i32 = arith.constant 0 : i32
    return %arg0, %arg1 : i32, i32
  }
}

module attributes {stable_mosaic.version = 11 : i64} {
  func.func @_mm_bn_kernel(%arg0: i32, %arg1: i32, %arg2: i32, %arg3: memref<8x384xbf16, #tpu.memory_space<vmem>>, %arg4: memref<384x128xbf16, #tpu.memory_space<vmem>>, %arg5: memref<1x128xf32, #tpu.memory_space<vmem>>, %arg6: memref<1x128xf32, #tpu.memory_space<vmem>>, %arg7: memref<8x128xbf16, #tpu.memory_space<vmem>>, %arg8: memref<8x128xf32, #tpu.memory_space<vmem>>) attributes {dimension_semantics = [#tpu.dimension_semantics<parallel>, #tpu.dimension_semantics<parallel>, #tpu.dimension_semantics<arbitrary>], iteration_bounds = array<i64: 1, 2, 3>, scalar_prefetch = 0 : i64, scratch_operands = 1 : i64, tpu.core_type = #tpu.core_type<tc>, window_params = [{transform_indices = @transform_0, window_bounds = array<i64: 8, 384>}, {transform_indices = @transform_1, window_bounds = array<i64: 384, 128>}, {transform_indices = @transform_2, window_bounds = array<i64: 1, 128>}, {transform_indices = @transform_3, window_bounds = array<i64: 1, 128>}, {transform_indices = @transform_4, window_bounds = array<i64: 8, 128>}]} {
    %c0_i32 = arith.constant 0 : i32
    %0 = arith.cmpi eq, %arg2, %c0_i32 : i32
    %1 = arith.extui %0 : i1 to i32
    %c0_i32_0 = arith.constant 0 : i32
    %2 = arith.cmpi ne, %1, %c0_i32_0 : i32
    scf.if %2 {
      %cst_9 = arith.constant 0.000000e+00 : f32
      %12 = vector.broadcast %cst_9 : f32 to vector<8x128xf32>
      %c0_10 = arith.constant 0 : index
      %c0_11 = arith.constant 0 : index
      %13 = vector.load %arg8[%c0_10, %c0_11] : memref<8x128xf32, #tpu.memory_space<vmem>>, vector<8x128xf32>
      tpu.vector_store %arg8[%c0_10, %c0_11], %12 {strides = array<i32>} : memref<8x128xf32, #tpu.memory_space<vmem>>, vector<8x128xf32>,
    } else {
    }
    %c0 = arith.constant 0 : index
    %c0_1 = arith.constant 0 : index
    %3 = vector.load %arg8[%c0, %c0_1] : memref<8x128xf32, #tpu.memory_space<vmem>>, vector<8x128xf32>
    %c0_2 = arith.constant 0 : index
    %c0_3 = arith.constant 0 : index
    %4 = vector.load %arg3[%c0_2, %c0_3] : memref<8x384xbf16, #tpu.memory_space<vmem>>, vector<8x384xbf16>
    %c0_4 = arith.constant 0 : index
    %c0_5 = arith.constant 0 : index
    %5 = vector.load %arg4[%c0_4, %c0_5] : memref<384x128xbf16, #tpu.memory_space<vmem>>, vector<384x128xbf16>
    %cst = arith.constant dense<0.000000e+00> : vector<8x128xf32>
    %6 = tpu.matmul %4, %5, %cst {dimension_numbers = #tpu.dot_dimension_numbers<[1], [0], [0], [1], [0, 0, 1, 1], [], []>} : vector<8x384xbf16>, vector<384x128xbf16>, vector<8x128xf32> -> vector<8x128xf32>
    %7 = arith.addf %3, %6 : vector<8x128xf32>
    %c0_6 = arith.constant 0 : index
    %c0_7 = arith.constant 0 : index
    %8 = vector.load %arg8[%c0_6, %c0_7] : memref<8x128xf32, #tpu.memory_space<vmem>>, vector<8x128xf32>
    tpu.vector_store %arg8[%c0_6, %c0_7], %7 {strides = array<i32>} : memref<8x128xf32, #tpu.memory_space<vmem>>, vector<8x128xf32>,
    %c2_i32 = arith.constant 2 : i32
    %9 = arith.cmpi eq, %arg2, %c2_i32 : i32
    %10 = arith.extui %9 : i1 to i32
    %c0_i32_8 = arith.constant 0 : i32
    %11 = arith.cmpi ne, %10, %c0_i32_8 : i32
    scf.if %11 {
      %c0_9 = arith.constant 0 : index
      %c0_10 = arith.constant 0 : index
      %12 = vector.load %arg8[%c0_9, %c0_10] : memref<8x128xf32, #tpu.memory_space<vmem>>, vector<8x128xf32>
      %c0_11 = arith.constant 0 : index
      %c0_12 = arith.constant 0 : index
      %13 = vector.load %arg5[%c0_11, %c0_12] : memref<1x128xf32, #tpu.memory_space<vmem>>, vector<1x128xf32>
      %14 = vector.broadcast %13 : vector<1x128xf32> to vector<8x128xf32>
      %15 = arith.mulf %12, %14 : vector<8x128xf32>
      %c0_13 = arith.constant 0 : index
      %c0_14 = arith.constant 0 : index
      %16 = vector.load %arg6[%c0_13, %c0_14] : memref<1x128xf32, #tpu.memory_space<vmem>>, vector<1x128xf32>
      %17 = vector.broadcast %16 : vector<1x128xf32> to vector<8x128xf32>
      %18 = arith.addf %15, %17 : vector<8x128xf32>
      %cst_15 = arith.constant 0.000000e+00 : f32
      %19 = vector.broadcast %cst_15 : f32 to vector<8x128xf32>
      %20 = arith.maximumf %18, %19 : vector<8x128xf32>
      %21 = arith.truncf %20 : vector<8x128xf32> to vector<8x128xbf16>
      %c0_16 = arith.constant 0 : index
      %c0_17 = arith.constant 0 : index
      %22 = vector.load %arg7[%c0_16, %c0_17] : memref<8x128xbf16, #tpu.memory_space<vmem>>, vector<8x128xbf16>
      tpu.vector_store %arg7[%c0_16, %c0_17], %21 {strides = array<i32>} : memref<8x128xbf16, #tpu.memory_space<vmem>>, vector<8x128xbf16>,
    } else {
    }
    return
  }
  func.func @transform_0(%arg0: i32, %arg1: i32, %arg2: i32) -> (i32, i32) {
    %c0_i32 = arith.constant 0 : i32
    return %arg0, %arg2 : i32, i32
  }
  func.func @transform_1(%arg0: i32, %arg1: i32, %arg2: i32) -> (i32, i32) {
    %c0_i32 = arith.constant 0 : i32
    return %arg2, %arg1 : i32, i32
  }
  func.func @transform_2(%arg0: i32, %arg1: i32, %arg2: i32) -> (i32, i32) {
    %c0_i32 = arith.constant 0 : i32
    %c0_i32_0 = arith.constant 0 : i32
    return %c0_i32, %arg1 : i32, i32
  }
  func.func @transform_3(%arg0: i32, %arg1: i32, %arg2: i32) -> (i32, i32) {
    %c0_i32 = arith.constant 0 : i32
    %c0_i32_0 = arith.constant 0 : i32
    return %c0_i32, %arg1 : i32, i32
  }
  func.func @transform_4(%arg0: i32, %arg1: i32, %arg2: i32) -> (i32, i32) {
    %c0_i32 = arith.constant 0 : i32
    return %arg0, %arg1 : i32, i32
  }
}

module attributes {stable_mosaic.version = 11 : i64} {
  func.func @_mm_bn_res_kernel(%arg0: i32, %arg1: i32, %arg2: i32, %arg3: memref<8x384xbf16, #tpu.memory_space<vmem>>, %arg4: memref<384x128xbf16, #tpu.memory_space<vmem>>, %arg5: memref<1x128xf32, #tpu.memory_space<vmem>>, %arg6: memref<1x128xf32, #tpu.memory_space<vmem>>, %arg7: memref<8x128xbf16, #tpu.memory_space<vmem>>, %arg8: memref<8x128xbf16, #tpu.memory_space<vmem>>, %arg9: memref<8x128xf32, #tpu.memory_space<vmem>>) attributes {dimension_semantics = [#tpu.dimension_semantics<parallel>, #tpu.dimension_semantics<parallel>, #tpu.dimension_semantics<arbitrary>], iteration_bounds = array<i64: 1, 2, 6>, scalar_prefetch = 0 : i64, scratch_operands = 1 : i64, tpu.core_type = #tpu.core_type<tc>, window_params = [{transform_indices = @transform_0, window_bounds = array<i64: 8, 384>}, {transform_indices = @transform_1, window_bounds = array<i64: 384, 128>}, {transform_indices = @transform_2, window_bounds = array<i64: 1, 128>}, {transform_indices = @transform_3, window_bounds = array<i64: 1, 128>}, {transform_indices = @transform_4, window_bounds = array<i64: 8, 128>}, {transform_indices = @transform_5, window_bounds = array<i64: 8, 128>}]} {
    %c0_i32 = arith.constant 0 : i32
    %0 = arith.cmpi eq, %arg2, %c0_i32 : i32
    %1 = arith.extui %0 : i1 to i32
    %c0_i32_0 = arith.constant 0 : i32
    %2 = arith.cmpi ne, %1, %c0_i32_0 : i32
    scf.if %2 {
      %cst_9 = arith.constant 0.000000e+00 : f32
      %12 = vector.broadcast %cst_9 : f32 to vector<8x128xf32>
      %c0_10 = arith.constant 0 : index
      %c0_11 = arith.constant 0 : index
      %13 = vector.load %arg9[%c0_10, %c0_11] : memref<8x128xf32, #tpu.memory_space<vmem>>, vector<8x128xf32>
      tpu.vector_store %arg9[%c0_10, %c0_11], %12 {strides = array<i32>} : memref<8x128xf32, #tpu.memory_space<vmem>>, vector<8x128xf32>,
    } else {
    }
    %c0 = arith.constant 0 : index
    %c0_1 = arith.constant 0 : index
    %3 = vector.load %arg9[%c0, %c0_1] : memref<8x128xf32, #tpu.memory_space<vmem>>, vector<8x128xf32>
    %c0_2 = arith.constant 0 : index
    %c0_3 = arith.constant 0 : index
    %4 = vector.load %arg3[%c0_2, %c0_3] : memref<8x384xbf16, #tpu.memory_space<vmem>>, vector<8x384xbf16>
    %c0_4 = arith.constant 0 : index
    %c0_5 = arith.constant 0 : index
    %5 = vector.load %arg4[%c0_4, %c0_5] : memref<384x128xbf16, #tpu.memory_space<vmem>>, vector<384x128xbf16>
    %cst = arith.constant dense<0.000000e+00> : vector<8x128xf32>
    %6 = tpu.matmul %4, %5, %cst {dimension_numbers = #tpu.dot_dimension_numbers<[1], [0], [0], [1], [0, 0, 1, 1], [], []>} : vector<8x384xbf16>, vector<384x128xbf16>, vector<8x128xf32> -> vector<8x128xf32>
    %7 = arith.addf %3, %6 : vector<8x128xf32>
    %c0_6 = arith.constant 0 : index
    %c0_7 = arith.constant 0 : index
    %8 = vector.load %arg9[%c0_6, %c0_7] : memref<8x128xf32, #tpu.memory_space<vmem>>, vector<8x128xf32>
    tpu.vector_store %arg9[%c0_6, %c0_7], %7 {strides = array<i32>} : memref<8x128xf32, #tpu.memory_space<vmem>>, vector<8x128xf32>,
    %c5_i32 = arith.constant 5 : i32
    %9 = arith.cmpi eq, %arg2, %c5_i32 : i32
    %10 = arith.extui %9 : i1 to i32
    %c0_i32_8 = arith.constant 0 : i32
    %11 = arith.cmpi ne, %10, %c0_i32_8 : i32
    scf.if %11 {
      %c0_9 = arith.constant 0 : index
      %c0_10 = arith.constant 0 : index
      %12 = vector.load %arg9[%c0_9, %c0_10] : memref<8x128xf32, #tpu.memory_space<vmem>>, vector<8x128xf32>
      %c0_11 = arith.constant 0 : index
      %c0_12 = arith.constant 0 : index
      %13 = vector.load %arg5[%c0_11, %c0_12] : memref<1x128xf32, #tpu.memory_space<vmem>>, vector<1x128xf32>
      %14 = vector.broadcast %13 : vector<1x128xf32> to vector<8x128xf32>
      %15 = arith.mulf %12, %14 : vector<8x128xf32>
      %c0_13 = arith.constant 0 : index
      %c0_14 = arith.constant 0 : index
      %16 = vector.load %arg6[%c0_13, %c0_14] : memref<1x128xf32, #tpu.memory_space<vmem>>, vector<1x128xf32>
      %17 = vector.broadcast %16 : vector<1x128xf32> to vector<8x128xf32>
      %18 = arith.addf %15, %17 : vector<8x128xf32>
      %c0_15 = arith.constant 0 : index
      %c0_16 = arith.constant 0 : index
      %19 = vector.load %arg7[%c0_15, %c0_16] : memref<8x128xbf16, #tpu.memory_space<vmem>>, vector<8x128xbf16>
      %20 = arith.extf %19 : vector<8x128xbf16> to vector<8x128xf32>
      %21 = arith.addf %18, %20 : vector<8x128xf32>
      %cst_17 = arith.constant 0.000000e+00 : f32
      %22 = vector.broadcast %cst_17 : f32 to vector<8x128xf32>
      %23 = arith.maximumf %21, %22 : vector<8x128xf32>
      %24 = arith.truncf %23 : vector<8x128xf32> to vector<8x128xbf16>
      %c0_18 = arith.constant 0 : index
      %c0_19 = arith.constant 0 : index
      %25 = vector.load %arg8[%c0_18, %c0_19] : memref<8x128xbf16, #tpu.memory_space<vmem>>, vector<8x128xbf16>
      tpu.vector_store %arg8[%c0_18, %c0_19], %24 {strides = array<i32>} : memref<8x128xbf16, #tpu.memory_space<vmem>>, vector<8x128xbf16>,
    } else {
    }
    return
  }
  func.func @transform_0(%arg0: i32, %arg1: i32, %arg2: i32) -> (i32, i32) {
    %c0_i32 = arith.constant 0 : i32
    return %arg0, %arg2 : i32, i32
  }
  func.func @transform_1(%arg0: i32, %arg1: i32, %arg2: i32) -> (i32, i32) {
    %c0_i32 = arith.constant 0 : i32
    return %arg2, %arg1 : i32, i32
  }
  func.func @transform_2(%arg0: i32, %arg1: i32, %arg2: i32) -> (i32, i32) {
    %c0_i32 = arith.constant 0 : i32
    %c0_i32_0 = arith.constant 0 : i32
    return %c0_i32, %arg1 : i32, i32
  }
  func.func @transform_3(%arg0: i32, %arg1: i32, %arg2: i32) -> (i32, i32) {
    %c0_i32 = arith.constant 0 : i32
    %c0_i32_0 = arith.constant 0 : i32
    return %c0_i32, %arg1 : i32, i32
  }
  func.func @transform_4(%arg0: i32, %arg1: i32, %arg2: i32) -> (i32, i32) {
    %c0_i32 = arith.constant 0 : i32
    return %arg0, %arg1 : i32, i32
  }
  func.func @transform_5(%arg0: i32, %arg1: i32, %arg2: i32) -> (i32, i32) {
    %c0_i32 = arith.constant 0 : i32
    return %arg0, %arg1 : i32, i32
  }
}

module attributes {stable_mosaic.version = 11 : i64} {
  func.func @_mm_bn_kernel(%arg0: i32, %arg1: i32, %arg2: i32, %arg3: memref<8x128xbf16, #tpu.memory_space<vmem>>, %arg4: memref<128x128xbf16, #tpu.memory_space<vmem>>, %arg5: memref<1x128xf32, #tpu.memory_space<vmem>>, %arg6: memref<1x128xf32, #tpu.memory_space<vmem>>, %arg7: memref<8x128xbf16, #tpu.memory_space<vmem>>, %arg8: memref<8x128xf32, #tpu.memory_space<vmem>>) attributes {dimension_semantics = [#tpu.dimension_semantics<parallel>, #tpu.dimension_semantics<parallel>, #tpu.dimension_semantics<arbitrary>], iteration_bounds = array<i64: 1, 2, 1>, scalar_prefetch = 0 : i64, scratch_operands = 1 : i64, tpu.core_type = #tpu.core_type<tc>, window_params = [{transform_indices = @transform_0, window_bounds = array<i64: 8, 128>}, {transform_indices = @transform_1, window_bounds = array<i64: 128, 128>}, {transform_indices = @transform_2, window_bounds = array<i64: 1, 128>}, {transform_indices = @transform_3, window_bounds = array<i64: 1, 128>}, {transform_indices = @transform_4, window_bounds = array<i64: 8, 128>}]} {
    %c0_i32 = arith.constant 0 : i32
    %0 = arith.cmpi eq, %arg2, %c0_i32 : i32
    %1 = arith.extui %0 : i1 to i32
    %c0_i32_0 = arith.constant 0 : i32
    %2 = arith.cmpi ne, %1, %c0_i32_0 : i32
    scf.if %2 {
      %cst_10 = arith.constant 0.000000e+00 : f32
      %12 = vector.broadcast %cst_10 : f32 to vector<8x128xf32>
      %c0_11 = arith.constant 0 : index
      %c0_12 = arith.constant 0 : index
      %13 = vector.load %arg8[%c0_11, %c0_12] : memref<8x128xf32, #tpu.memory_space<vmem>>, vector<8x128xf32>
      tpu.vector_store %arg8[%c0_11, %c0_12], %12 {strides = array<i32>} : memref<8x128xf32, #tpu.memory_space<vmem>>, vector<8x128xf32>,
    } else {
    }
    %c0 = arith.constant 0 : index
    %c0_1 = arith.constant 0 : index
    %3 = vector.load %arg8[%c0, %c0_1] : memref<8x128xf32, #tpu.memory_space<vmem>>, vector<8x128xf32>
    %c0_2 = arith.constant 0 : index
    %c0_3 = arith.constant 0 : index
    %4 = vector.load %arg3[%c0_2, %c0_3] : memref<8x128xbf16, #tpu.memory_space<vmem>>, vector<8x128xbf16>
    %c0_4 = arith.constant 0 : index
    %c0_5 = arith.constant 0 : index
    %5 = vector.load %arg4[%c0_4, %c0_5] : memref<128x128xbf16, #tpu.memory_space<vmem>>, vector<128x128xbf16>
    %cst = arith.constant dense<0.000000e+00> : vector<8x128xf32>
    %6 = tpu.matmul %4, %5, %cst {dimension_numbers = #tpu.dot_dimension_numbers<[1], [0], [0], [1], [0, 0, 1, 1], [], []>} : vector<8x128xbf16>, vector<128x128xbf16>, vector<8x128xf32> -> vector<8x128xf32>
    %7 = arith.addf %3, %6 : vector<8x128xf32>
    %c0_6 = arith.constant 0 : index
    %c0_7 = arith.constant 0 : index
    %8 = vector.load %arg8[%c0_6, %c0_7] : memref<8x128xf32, #tpu.memory_space<vmem>>, vector<8x128xf32>
    tpu.vector_store %arg8[%c0_6, %c0_7], %7 {strides = array<i32>} : memref<8x128xf32, #tpu.memory_space<vmem>>, vector<8x128xf32>,
    %c0_i32_8 = arith.constant 0 : i32
    %9 = arith.cmpi eq, %arg2, %c0_i32_8 : i32
    %10 = arith.extui %9 : i1 to i32
    %c0_i32_9 = arith.constant 0 : i32
    %11 = arith.cmpi ne, %10, %c0_i32_9 : i32
    scf.if %11 {
      %c0_10 = arith.constant 0 : index
      %c0_11 = arith.constant 0 : index
      %12 = vector.load %arg8[%c0_10, %c0_11] : memref<8x128xf32, #tpu.memory_space<vmem>>, vector<8x128xf32>
      %c0_12 = arith.constant 0 : index
      %c0_13 = arith.constant 0 : index
      %13 = vector.load %arg5[%c0_12, %c0_13] : memref<1x128xf32, #tpu.memory_space<vmem>>, vector<1x128xf32>
      %14 = vector.broadcast %13 : vector<1x128xf32> to vector<8x128xf32>
      %15 = arith.mulf %12, %14 : vector<8x128xf32>
      %c0_14 = arith.constant 0 : index
      %c0_15 = arith.constant 0 : index
      %16 = vector.load %arg6[%c0_14, %c0_15] : memref<1x128xf32, #tpu.memory_space<vmem>>, vector<1x128xf32>
      %17 = vector.broadcast %16 : vector<1x128xf32> to vector<8x128xf32>
      %18 = arith.addf %15, %17 : vector<8x128xf32>
      %19 = arith.truncf %18 : vector<8x128xf32> to vector<8x128xbf16>
      %c0_16 = arith.constant 0 : index
      %c0_17 = arith.constant 0 : index
      %20 = vector.load %arg7[%c0_16, %c0_17] : memref<8x128xbf16, #tpu.memory_space<vmem>>, vector<8x128xbf16>
      tpu.vector_store %arg7[%c0_16, %c0_17], %19 {strides = array<i32>} : memref<8x128xbf16, #tpu.memory_space<vmem>>, vector<8x128xbf16>,
    } else {
    }
    return
  }
  func.func @transform_0(%arg0: i32, %arg1: i32, %arg2: i32) -> (i32, i32) {
    %c0_i32 = arith.constant 0 : i32
    return %arg0, %arg2 : i32, i32
  }
  func.func @transform_1(%arg0: i32, %arg1: i32, %arg2: i32) -> (i32, i32) {
    %c0_i32 = arith.constant 0 : i32
    return %arg2, %arg1 : i32, i32
  }
  func.func @transform_2(%arg0: i32, %arg1: i32, %arg2: i32) -> (i32, i32) {
    %c0_i32 = arith.constant 0 : i32
    %c0_i32_0 = arith.constant 0 : i32
    return %c0_i32, %arg1 : i32, i32
  }
  func.func @transform_3(%arg0: i32, %arg1: i32, %arg2: i32) -> (i32, i32) {
    %c0_i32 = arith.constant 0 : i32
    %c0_i32_0 = arith.constant 0 : i32
    return %c0_i32, %arg1 : i32, i32
  }
  func.func @transform_4(%arg0: i32, %arg1: i32, %arg2: i32) -> (i32, i32) {
    %c0_i32 = arith.constant 0 : i32
    return %arg0, %arg1 : i32, i32
  }
}

module attributes {stable_mosaic.version = 11 : i64} {
  func.func @_mm_bn_kernel(%arg0: i32, %arg1: i32, %arg2: i32, %arg3: memref<8x384xbf16, #tpu.memory_space<vmem>>, %arg4: memref<384x128xbf16, #tpu.memory_space<vmem>>, %arg5: memref<1x128xf32, #tpu.memory_space<vmem>>, %arg6: memref<1x128xf32, #tpu.memory_space<vmem>>, %arg7: memref<8x128xbf16, #tpu.memory_space<vmem>>, %arg8: memref<8x128xf32, #tpu.memory_space<vmem>>) attributes {dimension_semantics = [#tpu.dimension_semantics<parallel>, #tpu.dimension_semantics<parallel>, #tpu.dimension_semantics<arbitrary>], iteration_bounds = array<i64: 1, 2, 6>, scalar_prefetch = 0 : i64, scratch_operands = 1 : i64, tpu.core_type = #tpu.core_type<tc>, window_params = [{transform_indices = @transform_0, window_bounds = array<i64: 8, 384>}, {transform_indices = @transform_1, window_bounds = array<i64: 384, 128>}, {transform_indices = @transform_2, window_bounds = array<i64: 1, 128>}, {transform_indices = @transform_3, window_bounds = array<i64: 1, 128>}, {transform_indices = @transform_4, window_bounds = array<i64: 8, 128>}]} {
    %c0_i32 = arith.constant 0 : i32
    %0 = arith.cmpi eq, %arg2, %c0_i32 : i32
    %1 = arith.extui %0 : i1 to i32
    %c0_i32_0 = arith.constant 0 : i32
    %2 = arith.cmpi ne, %1, %c0_i32_0 : i32
    scf.if %2 {
      %cst_9 = arith.constant 0.000000e+00 : f32
      %12 = vector.broadcast %cst_9 : f32 to vector<8x128xf32>
      %c0_10 = arith.constant 0 : index
      %c0_11 = arith.constant 0 : index
      %13 = vector.load %arg8[%c0_10, %c0_11] : memref<8x128xf32, #tpu.memory_space<vmem>>, vector<8x128xf32>
      tpu.vector_store %arg8[%c0_10, %c0_11], %12 {strides = array<i32>} : memref<8x128xf32, #tpu.memory_space<vmem>>, vector<8x128xf32>,
    } else {
    }
    %c0 = arith.constant 0 : index
    %c0_1 = arith.constant 0 : index
    %3 = vector.load %arg8[%c0, %c0_1] : memref<8x128xf32, #tpu.memory_space<vmem>>, vector<8x128xf32>
    %c0_2 = arith.constant 0 : index
    %c0_3 = arith.constant 0 : index
    %4 = vector.load %arg3[%c0_2, %c0_3] : memref<8x384xbf16, #tpu.memory_space<vmem>>, vector<8x384xbf16>
    %c0_4 = arith.constant 0 : index
    %c0_5 = arith.constant 0 : index
    %5 = vector.load %arg4[%c0_4, %c0_5] : memref<384x128xbf16, #tpu.memory_space<vmem>>, vector<384x128xbf16>
    %cst = arith.constant dense<0.000000e+00> : vector<8x128xf32>
    %6 = tpu.matmul %4, %5, %cst {dimension_numbers = #tpu.dot_dimension_numbers<[1], [0], [0], [1], [0, 0, 1, 1], [], []>} : vector<8x384xbf16>, vector<384x128xbf16>, vector<8x128xf32> -> vector<8x128xf32>
    %7 = arith.addf %3, %6 : vector<8x128xf32>
    %c0_6 = arith.constant 0 : index
    %c0_7 = arith.constant 0 : index
    %8 = vector.load %arg8[%c0_6, %c0_7] : memref<8x128xf32, #tpu.memory_space<vmem>>, vector<8x128xf32>
    tpu.vector_store %arg8[%c0_6, %c0_7], %7 {strides = array<i32>} : memref<8x128xf32, #tpu.memory_space<vmem>>, vector<8x128xf32>,
    %c5_i32 = arith.constant 5 : i32
    %9 = arith.cmpi eq, %arg2, %c5_i32 : i32
    %10 = arith.extui %9 : i1 to i32
    %c0_i32_8 = arith.constant 0 : i32
    %11 = arith.cmpi ne, %10, %c0_i32_8 : i32
    scf.if %11 {
      %c0_9 = arith.constant 0 : index
      %c0_10 = arith.constant 0 : index
      %12 = vector.load %arg8[%c0_9, %c0_10] : memref<8x128xf32, #tpu.memory_space<vmem>>, vector<8x128xf32>
      %c0_11 = arith.constant 0 : index
      %c0_12 = arith.constant 0 : index
      %13 = vector.load %arg5[%c0_11, %c0_12] : memref<1x128xf32, #tpu.memory_space<vmem>>, vector<1x128xf32>
      %14 = vector.broadcast %13 : vector<1x128xf32> to vector<8x128xf32>
      %15 = arith.mulf %12, %14 : vector<8x128xf32>
      %c0_13 = arith.constant 0 : index
      %c0_14 = arith.constant 0 : index
      %16 = vector.load %arg6[%c0_13, %c0_14] : memref<1x128xf32, #tpu.memory_space<vmem>>, vector<1x128xf32>
      %17 = vector.broadcast %16 : vector<1x128xf32> to vector<8x128xf32>
      %18 = arith.addf %15, %17 : vector<8x128xf32>
      %cst_15 = arith.constant 0.000000e+00 : f32
      %19 = vector.broadcast %cst_15 : f32 to vector<8x128xf32>
      %20 = arith.maximumf %18, %19 : vector<8x128xf32>
      %21 = arith.truncf %20 : vector<8x128xf32> to vector<8x128xbf16>
      %c0_16 = arith.constant 0 : index
      %c0_17 = arith.constant 0 : index
      %22 = vector.load %arg7[%c0_16, %c0_17] : memref<8x128xbf16, #tpu.memory_space<vmem>>, vector<8x128xbf16>
      tpu.vector_store %arg7[%c0_16, %c0_17], %21 {strides = array<i32>} : memref<8x128xbf16, #tpu.memory_space<vmem>>, vector<8x128xbf16>,
    } else {
    }
    return
  }
  func.func @transform_0(%arg0: i32, %arg1: i32, %arg2: i32) -> (i32, i32) {
    %c0_i32 = arith.constant 0 : i32
    return %arg0, %arg2 : i32, i32
  }
  func.func @transform_1(%arg0: i32, %arg1: i32, %arg2: i32) -> (i32, i32) {
    %c0_i32 = arith.constant 0 : i32
    return %arg2, %arg1 : i32, i32
  }
  func.func @transform_2(%arg0: i32, %arg1: i32, %arg2: i32) -> (i32, i32) {
    %c0_i32 = arith.constant 0 : i32
    %c0_i32_0 = arith.constant 0 : i32
    return %c0_i32, %arg1 : i32, i32
  }
  func.func @transform_3(%arg0: i32, %arg1: i32, %arg2: i32) -> (i32, i32) {
    %c0_i32 = arith.constant 0 : i32
    %c0_i32_0 = arith.constant 0 : i32
    return %c0_i32, %arg1 : i32, i32
  }
  func.func @transform_4(%arg0: i32, %arg1: i32, %arg2: i32) -> (i32, i32) {
    %c0_i32 = arith.constant 0 : i32
    return %arg0, %arg1 : i32, i32
  }
}

module attributes {stable_mosaic.version = 11 : i64} {
  func.func @_mm_bn_kernel(%arg0: i32, %arg1: i32, %arg2: i32, %arg3: memref<8x384xbf16, #tpu.memory_space<vmem>>, %arg4: memref<384x128xbf16, #tpu.memory_space<vmem>>, %arg5: memref<1x128xf32, #tpu.memory_space<vmem>>, %arg6: memref<1x128xf32, #tpu.memory_space<vmem>>, %arg7: memref<8x128xbf16, #tpu.memory_space<vmem>>, %arg8: memref<8x128xf32, #tpu.memory_space<vmem>>) attributes {dimension_semantics = [#tpu.dimension_semantics<parallel>, #tpu.dimension_semantics<parallel>, #tpu.dimension_semantics<arbitrary>], iteration_bounds = array<i64: 1, 4, 6>, scalar_prefetch = 0 : i64, scratch_operands = 1 : i64, tpu.core_type = #tpu.core_type<tc>, window_params = [{transform_indices = @transform_0, window_bounds = array<i64: 8, 384>}, {transform_indices = @transform_1, window_bounds = array<i64: 384, 128>}, {transform_indices = @transform_2, window_bounds = array<i64: 1, 128>}, {transform_indices = @transform_3, window_bounds = array<i64: 1, 128>}, {transform_indices = @transform_4, window_bounds = array<i64: 8, 128>}]} {
    %c0_i32 = arith.constant 0 : i32
    %0 = arith.cmpi eq, %arg2, %c0_i32 : i32
    %1 = arith.extui %0 : i1 to i32
    %c0_i32_0 = arith.constant 0 : i32
    %2 = arith.cmpi ne, %1, %c0_i32_0 : i32
    scf.if %2 {
      %cst_9 = arith.constant 0.000000e+00 : f32
      %12 = vector.broadcast %cst_9 : f32 to vector<8x128xf32>
      %c0_10 = arith.constant 0 : index
      %c0_11 = arith.constant 0 : index
      %13 = vector.load %arg8[%c0_10, %c0_11] : memref<8x128xf32, #tpu.memory_space<vmem>>, vector<8x128xf32>
      tpu.vector_store %arg8[%c0_10, %c0_11], %12 {strides = array<i32>} : memref<8x128xf32, #tpu.memory_space<vmem>>, vector<8x128xf32>,
    } else {
    }
    %c0 = arith.constant 0 : index
    %c0_1 = arith.constant 0 : index
    %3 = vector.load %arg8[%c0, %c0_1] : memref<8x128xf32, #tpu.memory_space<vmem>>, vector<8x128xf32>
    %c0_2 = arith.constant 0 : index
    %c0_3 = arith.constant 0 : index
    %4 = vector.load %arg3[%c0_2, %c0_3] : memref<8x384xbf16, #tpu.memory_space<vmem>>, vector<8x384xbf16>
    %c0_4 = arith.constant 0 : index
    %c0_5 = arith.constant 0 : index
    %5 = vector.load %arg4[%c0_4, %c0_5] : memref<384x128xbf16, #tpu.memory_space<vmem>>, vector<384x128xbf16>
    %cst = arith.constant dense<0.000000e+00> : vector<8x128xf32>
    %6 = tpu.matmul %4, %5, %cst {dimension_numbers = #tpu.dot_dimension_numbers<[1], [0], [0], [1], [0, 0, 1, 1], [], []>} : vector<8x384xbf16>, vector<384x128xbf16>, vector<8x128xf32> -> vector<8x128xf32>
    %7 = arith.addf %3, %6 : vector<8x128xf32>
    %c0_6 = arith.constant 0 : index
    %c0_7 = arith.constant 0 : index
    %8 = vector.load %arg8[%c0_6, %c0_7] : memref<8x128xf32, #tpu.memory_space<vmem>>, vector<8x128xf32>
    tpu.vector_store %arg8[%c0_6, %c0_7], %7 {strides = array<i32>} : memref<8x128xf32, #tpu.memory_space<vmem>>, vector<8x128xf32>,
    %c5_i32 = arith.constant 5 : i32
    %9 = arith.cmpi eq, %arg2, %c5_i32 : i32
    %10 = arith.extui %9 : i1 to i32
    %c0_i32_8 = arith.constant 0 : i32
    %11 = arith.cmpi ne, %10, %c0_i32_8 : i32
    scf.if %11 {
      %c0_9 = arith.constant 0 : index
      %c0_10 = arith.constant 0 : index
      %12 = vector.load %arg8[%c0_9, %c0_10] : memref<8x128xf32, #tpu.memory_space<vmem>>, vector<8x128xf32>
      %c0_11 = arith.constant 0 : index
      %c0_12 = arith.constant 0 : index
      %13 = vector.load %arg5[%c0_11, %c0_12] : memref<1x128xf32, #tpu.memory_space<vmem>>, vector<1x128xf32>
      %14 = vector.broadcast %13 : vector<1x128xf32> to vector<8x128xf32>
      %15 = arith.mulf %12, %14 : vector<8x128xf32>
      %c0_13 = arith.constant 0 : index
      %c0_14 = arith.constant 0 : index
      %16 = vector.load %arg6[%c0_13, %c0_14] : memref<1x128xf32, #tpu.memory_space<vmem>>, vector<1x128xf32>
      %17 = vector.broadcast %16 : vector<1x128xf32> to vector<8x128xf32>
      %18 = arith.addf %15, %17 : vector<8x128xf32>
      %cst_15 = arith.constant 0.000000e+00 : f32
      %19 = vector.broadcast %cst_15 : f32 to vector<8x128xf32>
      %20 = arith.maximumf %18, %19 : vector<8x128xf32>
      %21 = arith.truncf %20 : vector<8x128xf32> to vector<8x128xbf16>
      %c0_16 = arith.constant 0 : index
      %c0_17 = arith.constant 0 : index
      %22 = vector.load %arg7[%c0_16, %c0_17] : memref<8x128xbf16, #tpu.memory_space<vmem>>, vector<8x128xbf16>
      tpu.vector_store %arg7[%c0_16, %c0_17], %21 {strides = array<i32>} : memref<8x128xbf16, #tpu.memory_space<vmem>>, vector<8x128xbf16>,
    } else {
    }
    return
  }
  func.func @transform_0(%arg0: i32, %arg1: i32, %arg2: i32) -> (i32, i32) {
    %c0_i32 = arith.constant 0 : i32
    return %arg0, %arg2 : i32, i32
  }
  func.func @transform_1(%arg0: i32, %arg1: i32, %arg2: i32) -> (i32, i32) {
    %c0_i32 = arith.constant 0 : i32
    return %arg2, %arg1 : i32, i32
  }
  func.func @transform_2(%arg0: i32, %arg1: i32, %arg2: i32) -> (i32, i32) {
    %c0_i32 = arith.constant 0 : i32
    %c0_i32_0 = arith.constant 0 : i32
    return %c0_i32, %arg1 : i32, i32
  }
  func.func @transform_3(%arg0: i32, %arg1: i32, %arg2: i32) -> (i32, i32) {
    %c0_i32 = arith.constant 0 : i32
    %c0_i32_0 = arith.constant 0 : i32
    return %c0_i32, %arg1 : i32, i32
  }
  func.func @transform_4(%arg0: i32, %arg1: i32, %arg2: i32) -> (i32, i32) {
    %c0_i32 = arith.constant 0 : i32
    return %arg0, %arg1 : i32, i32
  }
}

module attributes {stable_mosaic.version = 11 : i64} {
  func.func @_mm_bn_res_kernel(%arg0: i32, %arg1: i32, %arg2: i32, %arg3: memref<8x512xbf16, #tpu.memory_space<vmem>>, %arg4: memref<512x128xbf16, #tpu.memory_space<vmem>>, %arg5: memref<1x128xf32, #tpu.memory_space<vmem>>, %arg6: memref<1x128xf32, #tpu.memory_space<vmem>>, %arg7: memref<8x128xbf16, #tpu.memory_space<vmem>>, %arg8: memref<8x128xbf16, #tpu.memory_space<vmem>>, %arg9: memref<8x128xf32, #tpu.memory_space<vmem>>) attributes {dimension_semantics = [#tpu.dimension_semantics<parallel>, #tpu.dimension_semantics<parallel>, #tpu.dimension_semantics<arbitrary>], iteration_bounds = array<i64: 1, 4, 9>, scalar_prefetch = 0 : i64, scratch_operands = 1 : i64, tpu.core_type = #tpu.core_type<tc>, window_params = [{transform_indices = @transform_0, window_bounds = array<i64: 8, 512>}, {transform_indices = @transform_1, window_bounds = array<i64: 512, 128>}, {transform_indices = @transform_2, window_bounds = array<i64: 1, 128>}, {transform_indices = @transform_3, window_bounds = array<i64: 1, 128>}, {transform_indices = @transform_4, window_bounds = array<i64: 8, 128>}, {transform_indices = @transform_5, window_bounds = array<i64: 8, 128>}]} {
    %c0_i32 = arith.constant 0 : i32
    %0 = arith.cmpi eq, %arg2, %c0_i32 : i32
    %1 = arith.extui %0 : i1 to i32
    %c0_i32_0 = arith.constant 0 : i32
    %2 = arith.cmpi ne, %1, %c0_i32_0 : i32
    scf.if %2 {
      %cst_9 = arith.constant 0.000000e+00 : f32
      %12 = vector.broadcast %cst_9 : f32 to vector<8x128xf32>
      %c0_10 = arith.constant 0 : index
      %c0_11 = arith.constant 0 : index
      %13 = vector.load %arg9[%c0_10, %c0_11] : memref<8x128xf32, #tpu.memory_space<vmem>>, vector<8x128xf32>
      tpu.vector_store %arg9[%c0_10, %c0_11], %12 {strides = array<i32>} : memref<8x128xf32, #tpu.memory_space<vmem>>, vector<8x128xf32>,
    } else {
    }
    %c0 = arith.constant 0 : index
    %c0_1 = arith.constant 0 : index
    %3 = vector.load %arg9[%c0, %c0_1] : memref<8x128xf32, #tpu.memory_space<vmem>>, vector<8x128xf32>
    %c0_2 = arith.constant 0 : index
    %c0_3 = arith.constant 0 : index
    %4 = vector.load %arg3[%c0_2, %c0_3] : memref<8x512xbf16, #tpu.memory_space<vmem>>, vector<8x512xbf16>
    %c0_4 = arith.constant 0 : index
    %c0_5 = arith.constant 0 : index
    %5 = vector.load %arg4[%c0_4, %c0_5] : memref<512x128xbf16, #tpu.memory_space<vmem>>, vector<512x128xbf16>
    %cst = arith.constant dense<0.000000e+00> : vector<8x128xf32>
    %6 = tpu.matmul %4, %5, %cst {dimension_numbers = #tpu.dot_dimension_numbers<[1], [0], [0], [1], [0, 0, 1, 1], [], []>} : vector<8x512xbf16>, vector<512x128xbf16>, vector<8x128xf32> -> vector<8x128xf32>
    %7 = arith.addf %3, %6 : vector<8x128xf32>
    %c0_6 = arith.constant 0 : index
    %c0_7 = arith.constant 0 : index
    %8 = vector.load %arg9[%c0_6, %c0_7] : memref<8x128xf32, #tpu.memory_space<vmem>>, vector<8x128xf32>
    tpu.vector_store %arg9[%c0_6, %c0_7], %7 {strides = array<i32>} : memref<8x128xf32, #tpu.memory_space<vmem>>, vector<8x128xf32>,
    %c8_i32 = arith.constant 8 : i32
    %9 = arith.cmpi eq, %arg2, %c8_i32 : i32
    %10 = arith.extui %9 : i1 to i32
    %c0_i32_8 = arith.constant 0 : i32
    %11 = arith.cmpi ne, %10, %c0_i32_8 : i32
    scf.if %11 {
      %c0_9 = arith.constant 0 : index
      %c0_10 = arith.constant 0 : index
      %12 = vector.load %arg9[%c0_9, %c0_10] : memref<8x128xf32, #tpu.memory_space<vmem>>, vector<8x128xf32>
      %c0_11 = arith.constant 0 : index
      %c0_12 = arith.constant 0 : index
      %13 = vector.load %arg5[%c0_11, %c0_12] : memref<1x128xf32, #tpu.memory_space<vmem>>, vector<1x128xf32>
      %14 = vector.broadcast %13 : vector<1x128xf32> to vector<8x128xf32>
      %15 = arith.mulf %12, %14 : vector<8x128xf32>
      %c0_13 = arith.constant 0 : index
      %c0_14 = arith.constant 0 : index
      %16 = vector.load %arg6[%c0_13, %c0_14] : memref<1x128xf32, #tpu.memory_space<vmem>>, vector<1x128xf32>
      %17 = vector.broadcast %16 : vector<1x128xf32> to vector<8x128xf32>
      %18 = arith.addf %15, %17 : vector<8x128xf32>
      %c0_15 = arith.constant 0 : index
      %c0_16 = arith.constant 0 : index
      %19 = vector.load %arg7[%c0_15, %c0_16] : memref<8x128xbf16, #tpu.memory_space<vmem>>, vector<8x128xbf16>
      %20 = arith.extf %19 : vector<8x128xbf16> to vector<8x128xf32>
      %21 = arith.addf %18, %20 : vector<8x128xf32>
      %cst_17 = arith.constant 0.000000e+00 : f32
      %22 = vector.broadcast %cst_17 : f32 to vector<8x128xf32>
      %23 = arith.maximumf %21, %22 : vector<8x128xf32>
      %24 = arith.truncf %23 : vector<8x128xf32> to vector<8x128xbf16>
      %c0_18 = arith.constant 0 : index
      %c0_19 = arith.constant 0 : index
      %25 = vector.load %arg8[%c0_18, %c0_19] : memref<8x128xbf16, #tpu.memory_space<vmem>>, vector<8x128xbf16>
      tpu.vector_store %arg8[%c0_18, %c0_19], %24 {strides = array<i32>} : memref<8x128xbf16, #tpu.memory_space<vmem>>, vector<8x128xbf16>,
    } else {
    }
    return
  }
  func.func @transform_0(%arg0: i32, %arg1: i32, %arg2: i32) -> (i32, i32) {
    %c0_i32 = arith.constant 0 : i32
    return %arg0, %arg2 : i32, i32
  }
  func.func @transform_1(%arg0: i32, %arg1: i32, %arg2: i32) -> (i32, i32) {
    %c0_i32 = arith.constant 0 : i32
    return %arg2, %arg1 : i32, i32
  }
  func.func @transform_2(%arg0: i32, %arg1: i32, %arg2: i32) -> (i32, i32) {
    %c0_i32 = arith.constant 0 : i32
    %c0_i32_0 = arith.constant 0 : i32
    return %c0_i32, %arg1 : i32, i32
  }
  func.func @transform_3(%arg0: i32, %arg1: i32, %arg2: i32) -> (i32, i32) {
    %c0_i32 = arith.constant 0 : i32
    %c0_i32_0 = arith.constant 0 : i32
    return %c0_i32, %arg1 : i32, i32
  }
  func.func @transform_4(%arg0: i32, %arg1: i32, %arg2: i32) -> (i32, i32) {
    %c0_i32 = arith.constant 0 : i32
    return %arg0, %arg1 : i32, i32
  }
  func.func @transform_5(%arg0: i32, %arg1: i32, %arg2: i32) -> (i32, i32) {
    %c0_i32 = arith.constant 0 : i32
    return %arg0, %arg1 : i32, i32
  }
}

module attributes {stable_mosaic.version = 11 : i64} {
  func.func @_mm_bn_kernel(%arg0: i32, %arg1: i32, %arg2: i32, %arg3: memref<8x256xbf16, #tpu.memory_space<vmem>>, %arg4: memref<256x128xbf16, #tpu.memory_space<vmem>>, %arg5: memref<1x128xf32, #tpu.memory_space<vmem>>, %arg6: memref<1x128xf32, #tpu.memory_space<vmem>>, %arg7: memref<8x128xbf16, #tpu.memory_space<vmem>>, %arg8: memref<8x128xf32, #tpu.memory_space<vmem>>) attributes {dimension_semantics = [#tpu.dimension_semantics<parallel>, #tpu.dimension_semantics<parallel>, #tpu.dimension_semantics<arbitrary>], iteration_bounds = array<i64: 1, 4, 1>, scalar_prefetch = 0 : i64, scratch_operands = 1 : i64, tpu.core_type = #tpu.core_type<tc>, window_params = [{transform_indices = @transform_0, window_bounds = array<i64: 8, 256>}, {transform_indices = @transform_1, window_bounds = array<i64: 256, 128>}, {transform_indices = @transform_2, window_bounds = array<i64: 1, 128>}, {transform_indices = @transform_3, window_bounds = array<i64: 1, 128>}, {transform_indices = @transform_4, window_bounds = array<i64: 8, 128>}]} {
    %c0_i32 = arith.constant 0 : i32
    %0 = arith.cmpi eq, %arg2, %c0_i32 : i32
    %1 = arith.extui %0 : i1 to i32
    %c0_i32_0 = arith.constant 0 : i32
    %2 = arith.cmpi ne, %1, %c0_i32_0 : i32
    scf.if %2 {
      %cst_10 = arith.constant 0.000000e+00 : f32
      %12 = vector.broadcast %cst_10 : f32 to vector<8x128xf32>
      %c0_11 = arith.constant 0 : index
      %c0_12 = arith.constant 0 : index
      %13 = vector.load %arg8[%c0_11, %c0_12] : memref<8x128xf32, #tpu.memory_space<vmem>>, vector<8x128xf32>
      tpu.vector_store %arg8[%c0_11, %c0_12], %12 {strides = array<i32>} : memref<8x128xf32, #tpu.memory_space<vmem>>, vector<8x128xf32>,
    } else {
    }
    %c0 = arith.constant 0 : index
    %c0_1 = arith.constant 0 : index
    %3 = vector.load %arg8[%c0, %c0_1] : memref<8x128xf32, #tpu.memory_space<vmem>>, vector<8x128xf32>
    %c0_2 = arith.constant 0 : index
    %c0_3 = arith.constant 0 : index
    %4 = vector.load %arg3[%c0_2, %c0_3] : memref<8x256xbf16, #tpu.memory_space<vmem>>, vector<8x256xbf16>
    %c0_4 = arith.constant 0 : index
    %c0_5 = arith.constant 0 : index
    %5 = vector.load %arg4[%c0_4, %c0_5] : memref<256x128xbf16, #tpu.memory_space<vmem>>, vector<256x128xbf16>
    %cst = arith.constant dense<0.000000e+00> : vector<8x128xf32>
    %6 = tpu.matmul %4, %5, %cst {dimension_numbers = #tpu.dot_dimension_numbers<[1], [0], [0], [1], [0, 0, 1, 1], [], []>} : vector<8x256xbf16>, vector<256x128xbf16>, vector<8x128xf32> -> vector<8x128xf32>
    %7 = arith.addf %3, %6 : vector<8x128xf32>
    %c0_6 = arith.constant 0 : index
    %c0_7 = arith.constant 0 : index
    %8 = vector.load %arg8[%c0_6, %c0_7] : memref<8x128xf32, #tpu.memory_space<vmem>>, vector<8x128xf32>
    tpu.vector_store %arg8[%c0_6, %c0_7], %7 {strides = array<i32>} : memref<8x128xf32, #tpu.memory_space<vmem>>, vector<8x128xf32>,
    %c0_i32_8 = arith.constant 0 : i32
    %9 = arith.cmpi eq, %arg2, %c0_i32_8 : i32
    %10 = arith.extui %9 : i1 to i32
    %c0_i32_9 = arith.constant 0 : i32
    %11 = arith.cmpi ne, %10, %c0_i32_9 : i32
    scf.if %11 {
      %c0_10 = arith.constant 0 : index
      %c0_11 = arith.constant 0 : index
      %12 = vector.load %arg8[%c0_10, %c0_11] : memref<8x128xf32, #tpu.memory_space<vmem>>, vector<8x128xf32>
      %c0_12 = arith.constant 0 : index
      %c0_13 = arith.constant 0 : index
      %13 = vector.load %arg5[%c0_12, %c0_13] : memref<1x128xf32, #tpu.memory_space<vmem>>, vector<1x128xf32>
      %14 = vector.broadcast %13 : vector<1x128xf32> to vector<8x128xf32>
      %15 = arith.mulf %12, %14 : vector<8x128xf32>
      %c0_14 = arith.constant 0 : index
      %c0_15 = arith.constant 0 : index
      %16 = vector.load %arg6[%c0_14, %c0_15] : memref<1x128xf32, #tpu.memory_space<vmem>>, vector<1x128xf32>
      %17 = vector.broadcast %16 : vector<1x128xf32> to vector<8x128xf32>
      %18 = arith.addf %15, %17 : vector<8x128xf32>
      %19 = arith.truncf %18 : vector<8x128xf32> to vector<8x128xbf16>
      %c0_16 = arith.constant 0 : index
      %c0_17 = arith.constant 0 : index
      %20 = vector.load %arg7[%c0_16, %c0_17] : memref<8x128xbf16, #tpu.memory_space<vmem>>, vector<8x128xbf16>
      tpu.vector_store %arg7[%c0_16, %c0_17], %19 {strides = array<i32>} : memref<8x128xbf16, #tpu.memory_space<vmem>>, vector<8x128xbf16>,
    } else {
    }
    return
  }
  func.func @transform_0(%arg0: i32, %arg1: i32, %arg2: i32) -> (i32, i32) {
    %c0_i32 = arith.constant 0 : i32
    return %arg0, %arg2 : i32, i32
  }
  func.func @transform_1(%arg0: i32, %arg1: i32, %arg2: i32) -> (i32, i32) {
    %c0_i32 = arith.constant 0 : i32
    return %arg2, %arg1 : i32, i32
  }
  func.func @transform_2(%arg0: i32, %arg1: i32, %arg2: i32) -> (i32, i32) {
    %c0_i32 = arith.constant 0 : i32
    %c0_i32_0 = arith.constant 0 : i32
    return %c0_i32, %arg1 : i32, i32
  }
  func.func @transform_3(%arg0: i32, %arg1: i32, %arg2: i32) -> (i32, i32) {
    %c0_i32 = arith.constant 0 : i32
    %c0_i32_0 = arith.constant 0 : i32
    return %c0_i32, %arg1 : i32, i32
  }
  func.func @transform_4(%arg0: i32, %arg1: i32, %arg2: i32) -> (i32, i32) {
    %c0_i32 = arith.constant 0 : i32
    return %arg0, %arg1 : i32, i32
  }
}

module attributes {stable_mosaic.version = 11 : i64} {
  func.func @_mm_bn_kernel(%arg0: i32, %arg1: i32, %arg2: i32, %arg3: memref<8x512xbf16, #tpu.memory_space<vmem>>, %arg4: memref<512x128xbf16, #tpu.memory_space<vmem>>, %arg5: memref<1x128xf32, #tpu.memory_space<vmem>>, %arg6: memref<1x128xf32, #tpu.memory_space<vmem>>, %arg7: memref<8x128xbf16, #tpu.memory_space<vmem>>, %arg8: memref<8x128xf32, #tpu.memory_space<vmem>>) attributes {dimension_semantics = [#tpu.dimension_semantics<parallel>, #tpu.dimension_semantics<parallel>, #tpu.dimension_semantics<arbitrary>], iteration_bounds = array<i64: 1, 4, 9>, scalar_prefetch = 0 : i64, scratch_operands = 1 : i64, tpu.core_type = #tpu.core_type<tc>, window_params = [{transform_indices = @transform_0, window_bounds = array<i64: 8, 512>}, {transform_indices = @transform_1, window_bounds = array<i64: 512, 128>}, {transform_indices = @transform_2, window_bounds = array<i64: 1, 128>}, {transform_indices = @transform_3, window_bounds = array<i64: 1, 128>}, {transform_indices = @transform_4, window_bounds = array<i64: 8, 128>}]} {
    %c0_i32 = arith.constant 0 : i32
    %0 = arith.cmpi eq, %arg2, %c0_i32 : i32
    %1 = arith.extui %0 : i1 to i32
    %c0_i32_0 = arith.constant 0 : i32
    %2 = arith.cmpi ne, %1, %c0_i32_0 : i32
    scf.if %2 {
      %cst_9 = arith.constant 0.000000e+00 : f32
      %12 = vector.broadcast %cst_9 : f32 to vector<8x128xf32>
      %c0_10 = arith.constant 0 : index
      %c0_11 = arith.constant 0 : index
      %13 = vector.load %arg8[%c0_10, %c0_11] : memref<8x128xf32, #tpu.memory_space<vmem>>, vector<8x128xf32>
      tpu.vector_store %arg8[%c0_10, %c0_11], %12 {strides = array<i32>} : memref<8x128xf32, #tpu.memory_space<vmem>>, vector<8x128xf32>,
    } else {
    }
    %c0 = arith.constant 0 : index
    %c0_1 = arith.constant 0 : index
    %3 = vector.load %arg8[%c0, %c0_1] : memref<8x128xf32, #tpu.memory_space<vmem>>, vector<8x128xf32>
    %c0_2 = arith.constant 0 : index
    %c0_3 = arith.constant 0 : index
    %4 = vector.load %arg3[%c0_2, %c0_3] : memref<8x512xbf16, #tpu.memory_space<vmem>>, vector<8x512xbf16>
    %c0_4 = arith.constant 0 : index
    %c0_5 = arith.constant 0 : index
    %5 = vector.load %arg4[%c0_4, %c0_5] : memref<512x128xbf16, #tpu.memory_space<vmem>>, vector<512x128xbf16>
    %cst = arith.constant dense<0.000000e+00> : vector<8x128xf32>
    %6 = tpu.matmul %4, %5, %cst {dimension_numbers = #tpu.dot_dimension_numbers<[1], [0], [0], [1], [0, 0, 1, 1], [], []>} : vector<8x512xbf16>, vector<512x128xbf16>, vector<8x128xf32> -> vector<8x128xf32>
    %7 = arith.addf %3, %6 : vector<8x128xf32>
    %c0_6 = arith.constant 0 : index
    %c0_7 = arith.constant 0 : index
    %8 = vector.load %arg8[%c0_6, %c0_7] : memref<8x128xf32, #tpu.memory_space<vmem>>, vector<8x128xf32>
    tpu.vector_store %arg8[%c0_6, %c0_7], %7 {strides = array<i32>} : memref<8x128xf32, #tpu.memory_space<vmem>>, vector<8x128xf32>,
    %c8_i32 = arith.constant 8 : i32
    %9 = arith.cmpi eq, %arg2, %c8_i32 : i32
    %10 = arith.extui %9 : i1 to i32
    %c0_i32_8 = arith.constant 0 : i32
    %11 = arith.cmpi ne, %10, %c0_i32_8 : i32
    scf.if %11 {
      %c0_9 = arith.constant 0 : index
      %c0_10 = arith.constant 0 : index
      %12 = vector.load %arg8[%c0_9, %c0_10] : memref<8x128xf32, #tpu.memory_space<vmem>>, vector<8x128xf32>
      %c0_11 = arith.constant 0 : index
      %c0_12 = arith.constant 0 : index
      %13 = vector.load %arg5[%c0_11, %c0_12] : memref<1x128xf32, #tpu.memory_space<vmem>>, vector<1x128xf32>
      %14 = vector.broadcast %13 : vector<1x128xf32> to vector<8x128xf32>
      %15 = arith.mulf %12, %14 : vector<8x128xf32>
      %c0_13 = arith.constant 0 : index
      %c0_14 = arith.constant 0 : index
      %16 = vector.load %arg6[%c0_13, %c0_14] : memref<1x128xf32, #tpu.memory_space<vmem>>, vector<1x128xf32>
      %17 = vector.broadcast %16 : vector<1x128xf32> to vector<8x128xf32>
      %18 = arith.addf %15, %17 : vector<8x128xf32>
      %cst_15 = arith.constant 0.000000e+00 : f32
      %19 = vector.broadcast %cst_15 : f32 to vector<8x128xf32>
      %20 = arith.maximumf %18, %19 : vector<8x128xf32>
      %21 = arith.truncf %20 : vector<8x128xf32> to vector<8x128xbf16>
      %c0_16 = arith.constant 0 : index
      %c0_17 = arith.constant 0 : index
      %22 = vector.load %arg7[%c0_16, %c0_17] : memref<8x128xbf16, #tpu.memory_space<vmem>>, vector<8x128xbf16>
      tpu.vector_store %arg7[%c0_16, %c0_17], %21 {strides = array<i32>} : memref<8x128xbf16, #tpu.memory_space<vmem>>, vector<8x128xbf16>,
    } else {
    }
    return
  }
  func.func @transform_0(%arg0: i32, %arg1: i32, %arg2: i32) -> (i32, i32) {
    %c0_i32 = arith.constant 0 : i32
    return %arg0, %arg2 : i32, i32
  }
  func.func @transform_1(%arg0: i32, %arg1: i32, %arg2: i32) -> (i32, i32) {
    %c0_i32 = arith.constant 0 : i32
    return %arg2, %arg1 : i32, i32
  }
  func.func @transform_2(%arg0: i32, %arg1: i32, %arg2: i32) -> (i32, i32) {
    %c0_i32 = arith.constant 0 : i32
    %c0_i32_0 = arith.constant 0 : i32
    return %c0_i32, %arg1 : i32, i32
  }
  func.func @transform_3(%arg0: i32, %arg1: i32, %arg2: i32) -> (i32, i32) {
    %c0_i32 = arith.constant 0 : i32
    %c0_i32_0 = arith.constant 0 : i32
    return %c0_i32, %arg1 : i32, i32
  }
  func.func @transform_4(%arg0: i32, %arg1: i32, %arg2: i32) -> (i32, i32) {
    %c0_i32 = arith.constant 0 : i32
    return %arg0, %arg1 : i32, i32
  }
}

module attributes {stable_mosaic.version = 11 : i64} {
  func.func @_head_kernel(%arg0: i32, %arg1: memref<2x1x512xbf16, #tpu.memory_space<vmem>>, %arg2: memref<512x128xf32, #tpu.memory_space<vmem>>, %arg3: memref<1x128xf32, #tpu.memory_space<vmem>>, %arg4: memref<2x128xf32, #tpu.memory_space<vmem>>) attributes {dimension_semantics = [#tpu.dimension_semantics<arbitrary>], iteration_bounds = array<i64: 1>, scalar_prefetch = 0 : i64, scratch_operands = 0 : i64, tpu.core_type = #tpu.core_type<tc>, window_params = [{pipeline_mode = #tpu.pipeline_mode<synchronous>, transform_indices = @transform_0, window_bounds = array<i64: 2, 1, 512>}, {pipeline_mode = #tpu.pipeline_mode<synchronous>, transform_indices = @transform_1, window_bounds = array<i64: 512, 128>}, {pipeline_mode = #tpu.pipeline_mode<synchronous>, transform_indices = @transform_2, window_bounds = array<i64: 1, 128>}, {pipeline_mode = #tpu.pipeline_mode<synchronous>, transform_indices = @transform_3, window_bounds = array<i64: 2, 128>}]} {
    %c0 = arith.constant 0 : index
    %c0_0 = arith.constant 0 : index
    %c0_1 = arith.constant 0 : index
    %0 = vector.load %arg1[%c0, %c0_0, %c0_1] : memref<2x1x512xbf16, #tpu.memory_space<vmem>>, vector<2x1x512xbf16>
    %1 = arith.extf %0 : vector<2x1x512xbf16> to vector<2x1x512xf32>
    %cst = arith.constant dense<0.000000e+00> : vector<2x512xf32>
    %2 = vector.multi_reduction <add>, %1, %cst [1] : vector<2x1x512xf32> to vector<2x512xf32>
    %cst_2 = arith.constant 1.000000e+00 : f32
    %3 = vector.broadcast %cst_2 : f32 to vector<2x512xf32>
    %4 = arith.divf %2, %3 : vector<2x512xf32>
    %c0_3 = arith.constant 0 : index
    %c0_4 = arith.constant 0 : index
    %5 = vector.load %arg2[%c0_3, %c0_4] : memref<512x128xf32, #tpu.memory_space<vmem>>, vector<512x128xf32>
    %cst_5 = arith.constant dense<0.000000e+00> : vector<2x128xf32>
    %6 = tpu.matmul %4, %5, %cst_5 {dimension_numbers = #tpu.dot_dimension_numbers<[1], [0], [0], [1], [0, 0, 1, 1], [], []>} : vector<2x512xf32>, vector<512x128xf32>, vector<2x128xf32> -> vector<2x128xf32>
    %c0_6 = arith.constant 0 : index
    %c0_7 = arith.constant 0 : index
    %7 = vector.load %arg3[%c0_6, %c0_7] : memref<1x128xf32, #tpu.memory_space<vmem>>, vector<1x128xf32>
    %8 = vector.broadcast %7 : vector<1x128xf32> to vector<2x128xf32>
    %9 = arith.addf %6, %8 : vector<2x128xf32>
    %c0_8 = arith.constant 0 : index
    %c0_9 = arith.constant 0 : index
    %10 = vector.load %arg4[%c0_8, %c0_9] : memref<2x128xf32, #tpu.memory_space<vmem>>, vector<2x128xf32>
    tpu.vector_store %arg4[%c0_8, %c0_9], %9 {strides = array<i32>} : memref<2x128xf32, #tpu.memory_space<vmem>>, vector<2x128xf32>,
    return
  }
  func.func @transform_0(%arg0: i32) -> (i32, i32, i32) {
    %c0_i32 = arith.constant 0 : i32
    %c0_i32_0 = arith.constant 0 : i32
    %c0_i32_1 = arith.constant 0 : i32
    %c0_i32_2 = arith.constant 0 : i32
    return %c0_i32, %c0_i32_0, %c0_i32_1 : i32, i32, i32
  }
  func.func @transform_1(%arg0: i32) -> (i32, i32) {
    %c0_i32 = arith.constant 0 : i32
    %c0_i32_0 = arith.constant 0 : i32
    %c0_i32_1 = arith.constant 0 : i32
    return %c0_i32, %c0_i32_0 : i32, i32
  }
  func.func @transform_2(%arg0: i32) -> (i32, i32) {
    %c0_i32 = arith.constant 0 : i32
    %c0_i32_0 = arith.constant 0 : i32
    %c0_i32_1 = arith.constant 0 : i32
    return %c0_i32, %c0_i32_0 : i32, i32
  }
  func.func @transform_3(%arg0: i32) -> (i32, i32) {
    %c0_i32 = arith.constant 0 : i32
    %c0_i32_0 = arith.constant 0 : i32
    %c0_i32_1 = arith.constant 0 : i32
    return %c0_i32, %c0_i32_0 : i32, i32
  }
}

</mosaic_0001>

<bundles_post_ra>
// kernel: resnet18_forward.22
= control target key start
LH: loop header
LB: loop body
LE: loop exit
PB: predicated region body
PF: predicated region fallthrough
CT: control target
= control target key end

     0   :  { %s2820_s1 = inlined_call_operand.vmem [shape: bf16[256,128], index: 1, kind: input, shape index: {}]   ;;  %s2821_s0 = inlined_call_operand.vmem [shape: bf16[512,256], index: 0, kind: input, shape index: {}]   ;;  %s2822_s2 = inlined_call_operand.vmem [shape: f32[1,128], index: 2, kind: input, shape index: {}]   ;;  %s2823_s3 = inlined_call_operand.vmem [shape: f32[1,128], index: 3, kind: input, shape index: {}]   ;;  %s2824_s4 = inlined_call_operand.vmem [shape: bf16[512,128], index: 4, kind: output, shape index: {}]  }
   0x1   :  { %v1917_v0 = vld [vmem:[%s2820_s1 + $0x38] sm:$0xff]  ;;  %v1916_v2 = vld [vmem:[%s2820_s1 + $0x30] sm:$0xff]  ;;  %v1915_v4 = vld [vmem:[%s2820_s1 + $0x28] sm:$0xff] }
   0x2   :  { %v1925_v1 = vld [vmem:[%s2820_s1 + $0x78] sm:$0xff]  ;;  %661 = vmatpush.bf16.msra.mxu0 %v1917_v0  ;;  %2117 = vmatpush.bf16.msra.mxu2 %v1917_v0  ;;  %v1924_v3 = vld [vmem:[%s2820_s1 + $0x70] sm:$0xff]  ;;  %v1923_v5 = vld [vmem:[%s2820_s1 + $0x68] sm:$0xff] }
   0x3   :  { %830 = vmatpush.bf16.msra.mxu1 %v1925_v1  ;;  %2125 = vmatpush.bf16.msra.mxu3 %v1925_v1  ;;  %v1914_v6 = vld [vmem:[%s2820_s1 + $0x20] sm:$0xff]  ;;  %v1913_v8 = vld [vmem:[%s2820_s1 + $0x18] sm:$0xff]  ;;  %v1912_v10 = vld [vmem:[%s2820_s1 + $0x10] sm:$0xff] }
   0x4   :  { %v1922_v7 = vld [vmem:[%s2820_s1 + $0x60] sm:$0xff]  ;;  %v1921_v9 = vld [vmem:[%s2820_s1 + $0x58] sm:$0xff]  ;;  %v1920_v11 = vld [vmem:[%s2820_s1 + $0x50] sm:$0xff] }
   0x5   :  { %v1911_v12 = vld [vmem:[%s2820_s1 + $0x8] sm:$0xff]  ;;  %v1910_v14 = vld [vmem:[%s2820_s1] sm:$0xff]  ;;  %v1536_v28 = vld [vmem:[%s2821_s0 + $0x10] sm:$0xf] }
   0x6   :  { %662 = vmatpush.bf16.msra.mxu0 %v1916_v2  ;;  %2118 = vmatpush.bf16.msra.mxu2 %v1916_v2  ;;  %v1919_v13 = vld [vmem:[%s2820_s1 + $0x48] sm:$0xff]  ;;  %v1918_v15 = vld [vmem:[%s2820_s1 + $0x40] sm:$0xff]  ;;  %v1849_v29 = vld [vmem:[%s2821_s0 + $0x14] sm:$0xf0] }
   0x7   :  { %831 = vmatpush.bf16.msra.mxu1 %v1924_v3  ;;  %2126 = vmatpush.bf16.msra.mxu3 %v1924_v3  ;;  %v1528_v16 = vld [vmem:[%s2821_s0] sm:$0xf]  ;;  %v1847_v17 = vld [vmem:[%s2821_s0 + $0x4] sm:$0xf0]  ;;  %v1846_v20 = vld [vmem:[%s2821_s0 + $0x4] sm:$0xf]  ;;  %v1537_v36 = vor.u32 %v1849_v29, %v1536_v28 }
   0x8   :  { %v1656_v18 = vld [vmem:[%s2821_s0 + $0x100] sm:$0xf]  ;;  %v1879_v19 = vld [vmem:[%s2821_s0 + $0x104] sm:$0xf0]  ;;  %v1530_v21 = vld [vmem:[%s2821_s0 + $0x8] sm:$0xf0]  ;;  %v1529_v24 = vor.u32 %v1847_v17, %v1528_v16 }
   0x9   :  { %v1878_v22 = vld [vmem:[%s2821_s0 + $0x104] sm:$0xf]  ;;  %v1658_v23 = vld [vmem:[%s2821_s0 + $0x108] sm:$0xf0]  ;;  %v1657_v25 = vor.u32 %v1879_v19, %v1656_v18  ;;  %v1533_v26 = vor.u32 %v1846_v20, %v1530_v21  ;;  %v1664_v30 = vld [vmem:[%s2821_s0 + $0x110] sm:$0xf] }
   0xa   :  { %663 = vmatpush.bf16.msra.mxu0 %v1915_v4  ;;  %2119 = vmatpush.bf16.msra.mxu2 %v1915_v4  ;;  %v1661_v27 = vor.u32 %v1878_v22, %v1658_v23  ;;  %v1881_v31 = vld [vmem:[%s2821_s0 + $0x114] sm:$0xf0]  ;;  %v1848_v32 = vld [vmem:[%s2821_s0 + $0x14] sm:$0xf]  ;;  %v1538_v33 = vld [vmem:[%s2821_s0 + $0x18] sm:$0xf0] }
   0xb   :  { %832 = vmatpush.bf16.msra.mxu1 %v1923_v5  ;;  %2127 = vmatpush.bf16.msra.mxu3 %v1923_v5  ;;  %v1880_v34 = vld [vmem:[%s2821_s0 + $0x114] sm:$0xf]  ;;  %v1666_v35 = vld [vmem:[%s2821_s0 + $0x118] sm:$0xf0]  ;;  %v1665_v37 = vor.u32 %v1881_v31, %v1664_v30  ;;  %v1541_v38 = vor.u32 %v1848_v32, %v1538_v33  ;;  %v1544_v40 = vld [vmem:[%s2821_s0 + $0x20] sm:$0xf] }
   0xc   :  { %v1669_v39 = vor.u32 %v1880_v34, %v1666_v35  ;;  %v1851_v41 = vld [vmem:[%s2821_s0 + $0x24] sm:$0xf0]  ;;  %v1672_v42 = vld [vmem:[%s2821_s0 + $0x120] sm:$0xf]  ;;  %v1850_v44 = vld [vmem:[%s2821_s0 + $0x24] sm:$0xf] }
   0xd   :  { %v1883_v43 = vld [vmem:[%s2821_s0 + $0x124] sm:$0xf0]  ;;  %v1546_v45 = vld [vmem:[%s2821_s0 + $0x28] sm:$0xf0]  ;;  %v1882_v46 = vld [vmem:[%s2821_s0 + $0x124] sm:$0xf]  ;;  %v1545_v48 = vor.u32 %v1851_v41, %v1544_v40 }
   0xe   :  { %664 = vmatpush.bf16.msra.mxu0 %v1914_v6  ;;  %2120 = vmatpush.bf16.msra.mxu2 %v1914_v6  ;;  %v1674_v47 = vld [vmem:[%s2821_s0 + $0x128] sm:$0xf0]  ;;  %v1673_v49 = vor.u32 %v1883_v43, %v1672_v42  ;;  %v1549_v50 = vor.u32 %v1850_v44, %v1546_v45  ;;  %v1552_v52 = vld [vmem:[%s2821_s0 + $0x30] sm:$0xf]  ;;  %v1853_v53 = vld [vmem:[%s2821_s0 + $0x34] sm:$0xf0] }
   0xf   :  { %833 = vmatpush.bf16.msra.mxu1 %v1922_v7  ;;  %2128 = vmatpush.bf16.msra.mxu3 %v1922_v7  ;;  %v1677_v51 = vor.u32 %v1882_v46, %v1674_v47  ;;  %v1680_v54 = vld [vmem:[%s2821_s0 + $0x130] sm:$0xf]  ;;  %v1885_v55 = vld [vmem:[%s2821_s0 + $0x134] sm:$0xf0]  ;;  %v1852_v56 = vld [vmem:[%s2821_s0 + $0x34] sm:$0xf]  ;;  %v1553_v60 = vor.u32 %v1853_v53, %v1552_v52 }
  0x10   :  { %v1554_v57 = vld [vmem:[%s2821_s0 + $0x38] sm:$0xf0]  ;;  %v1884_v58 = vld [vmem:[%s2821_s0 + $0x134] sm:$0xf]  ;;  %v1681_v61 = vor.u32 %v1885_v55, %v1680_v54  ;;  %v1560_v0 = vld [vmem:[%s2821_s0 + $0x40] sm:$0xf] }
  0x11   :  { %v1682_v59 = vld [vmem:[%s2821_s0 + $0x138] sm:$0xf0]  ;;  %v1557_v62 = vor.u32 %v1852_v56, %v1554_v57  ;;  %v1855_v1 = vld [vmem:[%s2821_s0 + $0x44] sm:$0xf0]  ;;  %v1688_v2 = vld [vmem:[%s2821_s0 + $0x140] sm:$0xf] }
  0x12   :  { %665 = vmatpush.bf16.msra.mxu0 %v1913_v8  ;;  %2121 = vmatpush.bf16.msra.mxu2 %v1913_v8  ;;  %v1685_v63 = vor.u32 %v1884_v58, %v1682_v59  ;;  %v1887_v3 = vld [vmem:[%s2821_s0 + $0x144] sm:$0xf0]  ;;  %v1854_v4 = vld [vmem:[%s2821_s0 + $0x44] sm:$0xf]  ;;  %v1562_v5 = vld [vmem:[%s2821_s0 + $0x48] sm:$0xf0]  ;;  %v1561_v8 = vor.u32 %v1855_v1, %v1560_v0 }
  0x13   :  { %834 = vmatpush.bf16.msra.mxu1 %v1921_v9  ;;  %2129 = vmatpush.bf16.msra.mxu3 %v1921_v9  ;;  %v1886_v6 = vld [vmem:[%s2821_s0 + $0x144] sm:$0xf]  ;;  %v1690_v7 = vld [vmem:[%s2821_s0 + $0x148] sm:$0xf0]  ;;  %v1689_v9 = vor.u32 %v1887_v3, %v1688_v2  ;;  %v1856_v16 = vld [vmem:[%s2821_s0 + $0x54] sm:$0xf] }
  0x14   :  { %v1570_v17 = vld [vmem:[%s2821_s0 + $0x58] sm:$0xf0]  ;;  %v1888_v18 = vld [vmem:[%s2821_s0 + $0x154] sm:$0xf]  ;;  %v1858_v28 = vld [vmem:[%s2821_s0 + $0x64] sm:$0xf] }
  0x15   :  { %v1698_v19 = vld [vmem:[%s2821_s0 + $0x158] sm:$0xf0]  ;;  %v1573_v22 = vor.u32 %v1856_v16, %v1570_v17  ;;  %v1578_v29 = vld [vmem:[%s2821_s0 + $0x68] sm:$0xf0]  ;;  %v1890_v30 = vld [vmem:[%s2821_s0 + $0x164] sm:$0xf] }
  0x16   :  { %666 = vmatpush.bf16.msra.mxu0 %v1912_v10  ;;  %2122 = vmatpush.bf16.msra.mxu2 %v1912_v10  ;;  %v1565_v10 = vor.u32 %v1854_v4, %v1562_v5  ;;  %v1701_v23 = vor.u32 %v1888_v18, %v1698_v19  ;;  %v1706_v31 = vld [vmem:[%s2821_s0 + $0x168] sm:$0xf0]  ;;  %v1581_v34 = vor.u32 %v1858_v28, %v1578_v29  ;;  %v1860_v40 = vld [vmem:[%s2821_s0 + $0x74] sm:$0xf]  ;;  %v1586_v41 = vld [vmem:[%s2821_s0 + $0x78] sm:$0xf0] }
  0x17   :  { %835 = vmatpush.bf16.msra.mxu1 %v1920_v11  ;;  %2130 = vmatpush.bf16.msra.mxu3 %v1920_v11  ;;  %v1693_v11 = vor.u32 %v1886_v6, %v1690_v7  ;;  %v1709_v35 = vor.u32 %v1890_v30, %v1706_v31  ;;  %v1892_v42 = vld [vmem:[%s2821_s0 + $0x174] sm:$0xf]  ;;  %v1714_v43 = vld [vmem:[%s2821_s0 + $0x178] sm:$0xf0]  ;;  %v1589_v46 = vor.u32 %v1860_v40, %v1586_v41  ;;  %v1862_v52 = vld [vmem:[%s2821_s0 + $0x84] sm:$0xf] }
  0x18   :  { %v1717_v47 = vor.u32 %v1892_v42, %v1714_v43  ;;  %v1594_v53 = vld [vmem:[%s2821_s0 + $0x88] sm:$0xf0]  ;;  %v1894_v54 = vld [vmem:[%s2821_s0 + $0x184] sm:$0xf]  ;;  %v2435_v3 = vld [vmem:[%s2823_s3] ss:$0 sm:$0xff] }
  0x19   :  { %v1722_v55 = vld [vmem:[%s2821_s0 + $0x188] sm:$0xf0]  ;;  %v1597_v59 = vor.u32 %v1862_v52, %v1594_v53  ;;  %v1896_v16 = vld [vmem:[%s2821_s0 + $0x194] sm:$0xf]  ;;  %v1730_v17 = vld [vmem:[%s2821_s0 + $0x198] sm:$0xf0] }
  0x1a   :  { %667 = vmatpush.bf16.msra.mxu0 %v1911_v12  ;;  %2123 = vmatpush.bf16.msra.mxu2 %v1911_v12  ;;  %v1568_v12 = vld [vmem:[%s2821_s0 + $0x50] sm:$0xf]  ;;  %v1733_v29 = vor.u32 %v1896_v16, %v1730_v17  ;;  %v1866_v52 = vld [vmem:[%s2821_s0 + $0xa4] sm:$0xf]  ;;  %v1610_v53 = vld [vmem:[%s2821_s0 + $0xa8] sm:$0xf0] }
  0x1b   :  { %836 = vmatpush.bf16.msra.mxu1 %v1919_v13  ;;  %2131 = vmatpush.bf16.msra.mxu3 %v1919_v13  ;;  %v1857_v13 = vld [vmem:[%s2821_s0 + $0x54] sm:$0xf0] }
  0x1c   :  { %v1569_v20 = vor.u32 %v1857_v13, %v1568_v12  ;;  %v1897_v13 = vld [vmem:[%s2821_s0 + $0x194] sm:$0xf0] }
  0x1e   :  { %668 = vmatpush.bf16.msra.mxu0 %v1910_v14  ;;  %2124 = vmatpush.bf16.msra.mxu2 %v1910_v14  ;;  %v1696_v14 = vld [vmem:[%s2821_s0 + $0x150] sm:$0xf] }
  0x1f   :  { %837 = vmatpush.bf16.msra.mxu1 %v1918_v15  ;;  %2132 = vmatpush.bf16.msra.mxu3 %v1918_v15  ;;  %v1889_v15 = vld [vmem:[%s2821_s0 + $0x154] sm:$0xf0] }
  0x20   :  { %v1697_v21 = vor.u32 %v1889_v15, %v1696_v14  ;;  %v1864_v14 = vld [vmem:[%s2821_s0 + $0x94] sm:$0xf]  ;;  %v1602_v15 = vld [vmem:[%s2821_s0 + $0x98] sm:$0xf0] }
  0x21   :  { %669 = vmatmul.bf16.vlgmr.msra.gmra.mxu0 %v1529_v24  ;;  %749 = vmatmul.bf16.vlgmr.msra.gmra.mxu2 %v1657_v25  ;;  %v1576_v24 = vld [vmem:[%s2821_s0 + $0x60] sm:$0xf]  ;;  %v1859_v25 = vld [vmem:[%s2821_s0 + $0x64] sm:$0xf0] }
  0x22   :  { %838 = vmatmul.bf16.vlgmr.msra.gmra.mxu1 %v1533_v26  ;;  %918 = vmatmul.bf16.vlgmr.msra.gmra.mxu3 %v1661_v27  ;;  %v1704_v26 = vld [vmem:[%s2821_s0 + $0x160] sm:$0xf]  ;;  %v1891_v27 = vld [vmem:[%s2821_s0 + $0x164] sm:$0xf0]  ;;  %v1577_v32 = vor.u32 %v1859_v25, %v1576_v24  ;;  %v1605_v24 = vor.u32 %v1864_v14, %v1602_v15 }
  0x23   :  { %v1705_v33 = vor.u32 %v1891_v27, %v1704_v26 }
  0x31   :  { %674 = vmatmul.bf16.gmra.mxu0 %v1537_v36  ;;  %754 = vmatmul.bf16.gmra.mxu2 %v1665_v37  ;;  %v1584_v36 = vld [vmem:[%s2821_s0 + $0x70] sm:$0xf]  ;;  %v1861_v37 = vld [vmem:[%s2821_s0 + $0x74] sm:$0xf0] }
  0x32   :  { %843 = vmatmul.bf16.gmra.mxu1 %v1541_v38  ;;  %923 = vmatmul.bf16.gmra.mxu3 %v1669_v39  ;;  %v1712_v38 = vld [vmem:[%s2821_s0 + $0x170] sm:$0xf]  ;;  %v1893_v39 = vld [vmem:[%s2821_s0 + $0x174] sm:$0xf0]  ;;  %v1585_v44 = vor.u32 %v1861_v37, %v1584_v36 }
  0x33   :  { %v1713_v45 = vor.u32 %v1893_v39, %v1712_v38 }
  0x41   :  { %679 = vmatmul.bf16.gmra.mxu0 %v1545_v48  ;;  %759 = vmatmul.bf16.gmra.mxu2 %v1673_v49  ;;  %v1592_v48 = vld [vmem:[%s2821_s0 + $0x80] sm:$0xf]  ;;  %v1863_v49 = vld [vmem:[%s2821_s0 + $0x84] sm:$0xf0] }
  0x42   :  { %848 = vmatmul.bf16.gmra.mxu1 %v1549_v50  ;;  %928 = vmatmul.bf16.gmra.mxu3 %v1677_v51  ;;  %v1720_v50 = vld [vmem:[%s2821_s0 + $0x180] sm:$0xf]  ;;  %v1895_v51 = vld [vmem:[%s2821_s0 + $0x184] sm:$0xf0]  ;;  %v1593_v56 = vor.u32 %v1863_v49, %v1592_v48 }
  0x43   :  { %v1721_v57 = vor.u32 %v1895_v51, %v1720_v50  ;;  %v1736_v48 = vld [vmem:[%s2821_s0 + $0x1a0] sm:$0xf]  ;;  %v1899_v51 = vld [vmem:[%s2821_s0 + $0x1a4] sm:$0xf0] }
  0x51   :  { %684 = vmatmul.bf16.gmra.mxu0 %v1553_v60  ;;  %764 = vmatmul.bf16.gmra.mxu2 %v1681_v61  ;;  %v1725_v60 = vor.u32 %v1894_v54, %v1722_v55  ;;  %v1898_v54 = vld [vmem:[%s2821_s0 + $0x1a4] sm:$0xf]  ;;  %v1738_v55 = vld [vmem:[%s2821_s0 + $0x1a8] sm:$0xf0] }
  0x52   :  { %853 = vmatmul.bf16.gmra.mxu1 %v1557_v62  ;;  %933 = vmatmul.bf16.gmra.mxu3 %v1685_v63  ;;  %v2429_v63 = vld [vmem:[%s2822_s2] ss:$0 sm:$0xff] }
  0x61   :  { %689 = vmatmul.bf16.gmra.mxu0 %v1561_v8  ;;  %769 = vmatmul.bf16.gmra.mxu2 %v1689_v9  ;;  %v1600_v8 = vld [vmem:[%s2821_s0 + $0x90] sm:$0xf]  ;;  %v1865_v9 = vld [vmem:[%s2821_s0 + $0x94] sm:$0xf0] }
  0x62   :  { %858 = vmatmul.bf16.gmra.mxu1 %v1565_v10  ;;  %938 = vmatmul.bf16.gmra.mxu3 %v1693_v11  ;;  %v1728_v10 = vld [vmem:[%s2821_s0 + $0x190] sm:$0xf] }
  0x71   :  { %694 = vmatmul.bf16.gmra.mxu0 %v1569_v20  ;;  %774 = vmatmul.bf16.gmra.mxu2 %v1697_v21 }
  0x72   :  { %863 = vmatmul.bf16.gmra.mxu1 %v1573_v22  ;;  %943 = vmatmul.bf16.gmra.mxu3 %v1701_v23  ;;  %v1601_v22 = vor.u32 %v1865_v9, %v1600_v8  ;;  %v1729_v23 = vor.u32 %v1897_v13, %v1728_v10 }
  0x81   :  { %699 = vmatmul.bf16.gmra.mxu0 %v1577_v32  ;;  %779 = vmatmul.bf16.gmra.mxu2 %v1705_v33 }
  0x82   :  { %868 = vmatmul.bf16.gmra.mxu1 %v1581_v34  ;;  %948 = vmatmul.bf16.gmra.mxu3 %v1709_v35 }
  0x91   :  { %704 = vmatmul.bf16.gmra.mxu0 %v1585_v44  ;;  %784 = vmatmul.bf16.gmra.mxu2 %v1713_v45 }
  0x92   :  { %873 = vmatmul.bf16.gmra.mxu1 %v1589_v46  ;;  %953 = vmatmul.bf16.gmra.mxu3 %v1717_v47  ;;  %v1608_v46 = vld [vmem:[%s2821_s0 + $0xa0] sm:$0xf]  ;;  %v1867_v47 = vld [vmem:[%s2821_s0 + $0xa4] sm:$0xf0] }
  0x9e   :  { %v670_v58 = vpop.f32.mrf.mxu0 }
  0x9f   :  { %v839_v61 = vpop.f32.mrf.mxu1 }
  0xa0   :  { %v840_v62 = vadd.f32 %v839_v61, %v670_v58  ;;  %v1737_v61 = vor.u32 %v1899_v51, %v1736_v48 }
  0xa1   :  { %709 = vmatmul.bf16.gmra.mxu0 %v1593_v56  ;;  %789 = vmatmul.bf16.gmra.mxu2 %v1721_v57 }
  0xa2   :  { %878 = vmatmul.bf16.gmra.mxu1 %v1597_v59  ;;  %958 = vmatmul.bf16.gmra.mxu3 %v1725_v60  ;;  %v1198_v2 = vmul.f32 %v2429_v63, %v840_v62  ;;  %v1609_v60 = vor.u32 %v1867_v47, %v1608_v46  ;;  %v1613_v62 = vor.u32 %v1866_v52, %v1610_v53 }
  0xa4   :  { %v750_v0 = vpop.f32.mrf.mxu2  ;;  %v1266_v11 = vadd.f32 %v2435_v3, %v1198_v2 }
  0xa5   :  { %v919_v1 = vpop.f32.mrf.mxu3 }
  0xa6   :  { %v672_v4 = vpop.f32.mrf.mxu0  ;;  %v920_v6 = vadd.f32 %v919_v1, %v750_v0  ;;  %v1330_v25 = vmax.f32 %v1266_v11, 0.0 }
  0xa7   :  { %v841_v5 = vpop.f32.mrf.mxu1 }
  0xa8   :  { %v842_v7 = vadd.f32 %v841_v5, %v672_v4  ;;  %v1230_v18 = vmul.f32 %v2429_v63, %v920_v6  ;;  %v1741_v5 = vor.u32 %v1898_v54, %v1738_v55 }
  0xaa   :  { %v1199_v12 = vmul.f32 %v2429_v63, %v842_v7  ;;  %v1298_v31 = vadd.f32 %v2435_v3, %v1230_v18 }
  0xac   :  { %v1267_v19 = vadd.f32 %v2435_v3, %v1199_v12  ;;  %v752_v20 = vpop.f32.mrf.mxu2  ;;  %v1362_v36 = vmax.f32 %v1298_v31, 0.0  ;;  %v1746_v31 = vld [vmem:[%s2821_s0 + $0x1b8] sm:$0xf0] }
  0xad   :  { %v921_v21 = vpop.f32.mrf.mxu3 }
  0xae   :  { %v1331_v26 = vmax.f32 %v1267_v19, 0.0  ;;  %v922_v27 = vadd.f32 %v921_v21, %v752_v20  ;;  %v675_v28 = vpop.f32.mrf.mxu0 }
  0xaf   :  { %v844_v30 = vpop.f32.mrf.mxu1 }
  0xb0   :  { %v1929_v32 = vpack.c.bf16 %v1331_v26, %v1330_v25  ;;  %v1231_v33 = vmul.f32 %v2429_v63, %v922_v27  ;;  %v845_v35 = vadd.f32 %v844_v30, %v675_v28  ;;  %v1901_v27 = vld [vmem:[%s2821_s0 + $0x1b4] sm:$0xf0]  ;;  %v1868_v28 = vld [vmem:[%s2821_s0 + $0xb4] sm:$0xf] }
  0xb1   :  { %714 = vmatmul.bf16.gmra.mxu0 %v1601_v22  ;;  %794 = vmatmul.bf16.gmra.mxu2 %v1729_v23  ;;  %v1616_v22 = vld [vmem:[%s2821_s0 + $0xb0] sm:$0xf]  ;;  %v1869_v23 = vld [vmem:[%s2821_s0 + $0xb4] sm:$0xf0]  ;;  %v1900_v30 = vld [vmem:[%s2821_s0 + $0x1b4] sm:$0xf] }
  0xb2   :  { %1930 = vst [vmem:[%s2824_s4] sm:$0xff] %v1929_v32   ;;  %v1299_v34 = vadd.f32 %v2435_v3, %v1231_v33  ;;  %883 = vmatmul.bf16.gmra.mxu1 %v1605_v24  ;;  %963 = vmatmul.bf16.gmra.mxu3 %v1733_v29  ;;  %v1200_v41 = vmul.f32 %v2429_v63, %v845_v35  ;;  %v1744_v24 = vld [vmem:[%s2821_s0 + $0x1b0] sm:$0xf]  ;;  %v1618_v29 = vld [vmem:[%s2821_s0 + $0xb8] sm:$0xf0] }
  0xb4   :  { %v1363_v37 = vmax.f32 %v1299_v34, 0.0  ;;  %v755_v38 = vpop.f32.mrf.mxu2  ;;  %v1268_v49 = vadd.f32 %v2435_v3, %v1200_v41 }
  0xb5   :  { %v924_v39 = vpop.f32.mrf.mxu3 }
  0xb6   :  { %v2009_v40 = vpack.c.bf16 %v1363_v37, %v1362_v36  ;;  %v677_v42 = vpop.f32.mrf.mxu0  ;;  %v925_v44 = vadd.f32 %v924_v39, %v755_v38  ;;  %v1332_v0 = vmax.f32 %v1268_v49, 0.0  ;;  %v1617_v36 = vor.u32 %v1869_v23, %v1616_v22 }
  0xb7   :  { %v846_v43 = vpop.f32.mrf.mxu1  ;;  %v1745_v37 = vor.u32 %v1901_v27, %v1744_v24  ;;  %v1621_v38 = vor.u32 %v1868_v28, %v1618_v29 }
  0xb8   :  { %2101 = vst [vmem:[%s2824_s4 + $0x80] sm:$0xff] %v2009_v40   ;;  %v847_v45 = vadd.f32 %v846_v43, %v677_v42  ;;  %v1232_v56 = vmul.f32 %v2429_v63, %v925_v44  ;;  %v1749_v43 = vor.u32 %v1900_v30, %v1746_v31 }
  0xba   :  { %v1201_v50 = vmul.f32 %v2429_v63, %v847_v45  ;;  %v1300_v7 = vadd.f32 %v2435_v3, %v1232_v56 }
  0xbc   :  { %v1269_v57 = vadd.f32 %v2435_v3, %v1201_v50  ;;  %v757_v58 = vpop.f32.mrf.mxu2  ;;  %v1364_v12 = vmax.f32 %v1300_v7, 0.0  ;;  %v1754_v7 = vld [vmem:[%s2821_s0 + $0x1c8] sm:$0xf0] }
  0xbd   :  { %v926_v59 = vpop.f32.mrf.mxu3 }
  0xbe   :  { %v1333_v1 = vmax.f32 %v1269_v57, 0.0  ;;  %v927_v2 = vadd.f32 %v926_v59, %v757_v58  ;;  %v680_v4 = vpop.f32.mrf.mxu0 }
  0xbf   :  { %v849_v6 = vpop.f32.mrf.mxu1 }
  0xc0   :  { %v1934_v8 = vpack.c.bf16 %v1333_v1, %v1332_v0  ;;  %v1233_v9 = vmul.f32 %v2429_v63, %v927_v2  ;;  %v850_v11 = vadd.f32 %v849_v6, %v680_v4  ;;  %v1903_v2 = vld [vmem:[%s2821_s0 + $0x1c4] sm:$0xf0]  ;;  %v1870_v4 = vld [vmem:[%s2821_s0 + $0xc4] sm:$0xf] }
  0xc1   :  { %719 = vmatmul.bf16.gmra.mxu0 %v1609_v60  ;;  %799 = vmatmul.bf16.gmra.mxu2 %v1737_v61  ;;  %v1624_v60 = vld [vmem:[%s2821_s0 + $0xc0] sm:$0xf]  ;;  %v1871_v61 = vld [vmem:[%s2821_s0 + $0xc4] sm:$0xf0]  ;;  %v1902_v6 = vld [vmem:[%s2821_s0 + $0x1c4] sm:$0xf] }
  0xc2   :  { %2086 = vst [vmem:[%s2824_s4 + $0x8] sm:$0xff] %v1934_v8   ;;  %v1301_v10 = vadd.f32 %v2435_v3, %v1233_v9  ;;  %888 = vmatmul.bf16.gmra.mxu1 %v1613_v62  ;;  %968 = vmatmul.bf16.gmra.mxu3 %v1741_v5  ;;  %v1202_v17 = vmul.f32 %v2429_v63, %v850_v11  ;;  %v1752_v62 = vld [vmem:[%s2821_s0 + $0x1c0] sm:$0xf]  ;;  %v1626_v5 = vld [vmem:[%s2821_s0 + $0xc8] sm:$0xf0] }
  0xc4   :  { %v1365_v13 = vmax.f32 %v1301_v10, 0.0  ;;  %v760_v14 = vpop.f32.mrf.mxu2  ;;  %v1270_v25 = vadd.f32 %v2435_v3, %v1202_v17 }
  0xc5   :  { %v929_v15 = vpop.f32.mrf.mxu3 }
  0xc6   :  { %v2014_v16 = vpack.c.bf16 %v1365_v13, %v1364_v12  ;;  %v682_v18 = vpop.f32.mrf.mxu0  ;;  %v930_v20 = vadd.f32 %v929_v15, %v760_v14  ;;  %v1334_v39 = vmax.f32 %v1270_v25, 0.0  ;;  %v1625_v12 = vor.u32 %v1871_v61, %v1624_v60 }
  0xc7   :  { %v851_v19 = vpop.f32.mrf.mxu1  ;;  %v1753_v13 = vor.u32 %v1903_v2, %v1752_v62  ;;  %v1629_v14 = vor.u32 %v1870_v4, %v1626_v5 }
  0xc8   :  { %2102 = vst [vmem:[%s2824_s4 + $0x88] sm:$0xff] %v2014_v16   ;;  %v852_v21 = vadd.f32 %v851_v19, %v682_v18  ;;  %v1234_v32 = vmul.f32 %v2429_v63, %v930_v20  ;;  %v1757_v19 = vor.u32 %v1902_v6, %v1754_v7 }
  0xca   :  { %v1203_v26 = vmul.f32 %v2429_v63, %v852_v21  ;;  %v1302_v45 = vadd.f32 %v2435_v3, %v1234_v32 }
  0xcc   :  { %v1271_v33 = vadd.f32 %v2435_v3, %v1203_v26  ;;  %v762_v34 = vpop.f32.mrf.mxu2  ;;  %v1366_v50 = vmax.f32 %v1302_v45, 0.0  ;;  %v1762_v45 = vld [vmem:[%s2821_s0 + $0x1d8] sm:$0xf0] }
  0xcd   :  { %v931_v35 = vpop.f32.mrf.mxu3 }
  0xce   :  { %v1335_v40 = vmax.f32 %v1271_v33, 0.0  ;;  %v932_v41 = vadd.f32 %v931_v35, %v762_v34  ;;  %v685_v42 = vpop.f32.mrf.mxu0 }
  0xcf   :  { %v854_v44 = vpop.f32.mrf.mxu1 }
  0xd0   :  { %v1939_v46 = vpack.c.bf16 %v1335_v40, %v1334_v39  ;;  %v1235_v47 = vmul.f32 %v2429_v63, %v932_v41  ;;  %v855_v49 = vadd.f32 %v854_v44, %v685_v42  ;;  %v1905_v41 = vld [vmem:[%s2821_s0 + $0x1d4] sm:$0xf0]  ;;  %v1872_v42 = vld [vmem:[%s2821_s0 + $0xd4] sm:$0xf] }
  0xd1   :  { %724 = vmatmul.bf16.gmra.mxu0 %v1617_v36  ;;  %804 = vmatmul.bf16.gmra.mxu2 %v1745_v37  ;;  %v1632_v36 = vld [vmem:[%s2821_s0 + $0xd0] sm:$0xf]  ;;  %v1873_v37 = vld [vmem:[%s2821_s0 + $0xd4] sm:$0xf0]  ;;  %v1904_v44 = vld [vmem:[%s2821_s0 + $0x1d4] sm:$0xf] }
  0xd2   :  { %2087 = vst [vmem:[%s2824_s4 + $0x10] sm:$0xff] %v1939_v46   ;;  %v1303_v48 = vadd.f32 %v2435_v3, %v1235_v47  ;;  %893 = vmatmul.bf16.gmra.mxu1 %v1621_v38  ;;  %973 = vmatmul.bf16.gmra.mxu3 %v1749_v43  ;;  %v1204_v55 = vmul.f32 %v2429_v63, %v855_v49  ;;  %v1760_v38 = vld [vmem:[%s2821_s0 + $0x1d0] sm:$0xf]  ;;  %v1634_v43 = vld [vmem:[%s2821_s0 + $0xd8] sm:$0xf0] }
  0xd4   :  { %v1367_v51 = vmax.f32 %v1303_v48, 0.0  ;;  %v765_v52 = vpop.f32.mrf.mxu2  ;;  %v1272_v0 = vadd.f32 %v2435_v3, %v1204_v55 }
  0xd5   :  { %v934_v53 = vpop.f32.mrf.mxu3 }
  0xd6   :  { %v2019_v54 = vpack.c.bf16 %v1367_v51, %v1366_v50  ;;  %v687_v56 = vpop.f32.mrf.mxu0  ;;  %v935_v58 = vadd.f32 %v934_v53, %v765_v52  ;;  %v1336_v15 = vmax.f32 %v1272_v0, 0.0  ;;  %v1633_v50 = vor.u32 %v1873_v37, %v1632_v36 }
  0xd7   :  { %v856_v57 = vpop.f32.mrf.mxu1  ;;  %v1761_v51 = vor.u32 %v1905_v41, %v1760_v38  ;;  %v1637_v52 = vor.u32 %v1872_v42, %v1634_v43 }
  0xd8   :  { %2103 = vst [vmem:[%s2824_s4 + $0x90] sm:$0xff] %v2019_v54   ;;  %v857_v59 = vadd.f32 %v856_v57, %v687_v56  ;;  %v1236_v8 = vmul.f32 %v2429_v63, %v935_v58  ;;  %v1765_v57 = vor.u32 %v1904_v44, %v1762_v45 }
  0xda   :  { %v1205_v1 = vmul.f32 %v2429_v63, %v857_v59  ;;  %v1304_v21 = vadd.f32 %v2435_v3, %v1236_v8 }
  0xdc   :  { %v1273_v9 = vadd.f32 %v2435_v3, %v1205_v1  ;;  %v767_v10 = vpop.f32.mrf.mxu2  ;;  %v1368_v26 = vmax.f32 %v1304_v21, 0.0  ;;  %v1770_v21 = vld [vmem:[%s2821_s0 + $0x1e8] sm:$0xf0] }
  0xdd   :  { %v936_v11 = vpop.f32.mrf.mxu3 }
  0xde   :  { %v1337_v16 = vmax.f32 %v1273_v9, 0.0  ;;  %v937_v17 = vadd.f32 %v936_v11, %v767_v10  ;;  %v690_v18 = vpop.f32.mrf.mxu0 }
  0xdf   :  { %v859_v20 = vpop.f32.mrf.mxu1 }
  0xe0   :  { %v1944_v22 = vpack.c.bf16 %v1337_v16, %v1336_v15  ;;  %v1237_v23 = vmul.f32 %v2429_v63, %v937_v17  ;;  %v860_v25 = vadd.f32 %v859_v20, %v690_v18  ;;  %v1907_v17 = vld [vmem:[%s2821_s0 + $0x1e4] sm:$0xf0]  ;;  %v1874_v18 = vld [vmem:[%s2821_s0 + $0xe4] sm:$0xf] }
  0xe1   :  { %729 = vmatmul.bf16.gmra.mxu0 %v1625_v12  ;;  %809 = vmatmul.bf16.gmra.mxu2 %v1753_v13  ;;  %v1640_v12 = vld [vmem:[%s2821_s0 + $0xe0] sm:$0xf]  ;;  %v1875_v13 = vld [vmem:[%s2821_s0 + $0xe4] sm:$0xf0]  ;;  %v1906_v20 = vld [vmem:[%s2821_s0 + $0x1e4] sm:$0xf] }
  0xe2   :  { %2088 = vst [vmem:[%s2824_s4 + $0x18] sm:$0xff] %v1944_v22   ;;  %v1305_v24 = vadd.f32 %v2435_v3, %v1237_v23  ;;  %898 = vmatmul.bf16.gmra.mxu1 %v1629_v14  ;;  %978 = vmatmul.bf16.gmra.mxu3 %v1757_v19  ;;  %v1206_v31 = vmul.f32 %v2429_v63, %v860_v25  ;;  %v1768_v14 = vld [vmem:[%s2821_s0 + $0x1e0] sm:$0xf]  ;;  %v1642_v19 = vld [vmem:[%s2821_s0 + $0xe8] sm:$0xf0] }
  0xe4   :  { %v1369_v27 = vmax.f32 %v1305_v24, 0.0  ;;  %v770_v28 = vpop.f32.mrf.mxu2  ;;  %v1274_v39 = vadd.f32 %v2435_v3, %v1206_v31 }
  0xe5   :  { %v939_v29 = vpop.f32.mrf.mxu3 }
  0xe6   :  { %v2024_v30 = vpack.c.bf16 %v1369_v27, %v1368_v26  ;;  %v692_v32 = vpop.f32.mrf.mxu0  ;;  %v940_v34 = vadd.f32 %v939_v29, %v770_v28  ;;  %v1338_v53 = vmax.f32 %v1274_v39, 0.0  ;;  %v1641_v26 = vor.u32 %v1875_v13, %v1640_v12 }
  0xe7   :  { %v861_v33 = vpop.f32.mrf.mxu1  ;;  %v1769_v27 = vor.u32 %v1907_v17, %v1768_v14  ;;  %v1645_v28 = vor.u32 %v1874_v18, %v1642_v19 }
  0xe8   :  { %2104 = vst [vmem:[%s2824_s4 + $0x98] sm:$0xff] %v2024_v30   ;;  %v862_v35 = vadd.f32 %v861_v33, %v692_v32  ;;  %v1238_v46 = vmul.f32 %v2429_v63, %v940_v34  ;;  %v1773_v33 = vor.u32 %v1906_v20, %v1770_v21 }
  0xea   :  { %v1207_v40 = vmul.f32 %v2429_v63, %v862_v35  ;;  %v1306_v59 = vadd.f32 %v2435_v3, %v1238_v46 }
  0xec   :  { %v1275_v47 = vadd.f32 %v2435_v3, %v1207_v40  ;;  %v772_v48 = vpop.f32.mrf.mxu2  ;;  %v1370_v1 = vmax.f32 %v1306_v59, 0.0  ;;  %v1778_v59 = vld [vmem:[%s2821_s0 + $0x1f8] sm:$0xf0] }
  0xed   :  { %v941_v49 = vpop.f32.mrf.mxu3 }
  0xee   :  { %v1339_v54 = vmax.f32 %v1275_v47, 0.0  ;;  %v942_v55 = vadd.f32 %v941_v49, %v772_v48  ;;  %v695_v56 = vpop.f32.mrf.mxu0 }
  0xef   :  { %v864_v58 = vpop.f32.mrf.mxu1 }
  0xf0   :  { %v1949_v60 = vpack.c.bf16 %v1339_v54, %v1338_v53  ;;  %v1239_v61 = vmul.f32 %v2429_v63, %v942_v55  ;;  %v865_v0 = vadd.f32 %v864_v58, %v695_v56  ;;  %v1909_v55 = vld [vmem:[%s2821_s0 + $0x1f4] sm:$0xf0]  ;;  %v1876_v56 = vld [vmem:[%s2821_s0 + $0xf4] sm:$0xf] }
  0xf1   :  { %734 = vmatmul.bf16.gmra.mxu0 %v1633_v50  ;;  %814 = vmatmul.bf16.gmra.mxu2 %v1761_v51  ;;  %v1648_v50 = vld [vmem:[%s2821_s0 + $0xf0] sm:$0xf]  ;;  %v1877_v51 = vld [vmem:[%s2821_s0 + $0xf4] sm:$0xf0]  ;;  %v1908_v58 = vld [vmem:[%s2821_s0 + $0x1f4] sm:$0xf] }
  0xf2   :  { %2089 = vst [vmem:[%s2824_s4 + $0x20] sm:$0xff] %v1949_v60   ;;  %v1307_v62 = vadd.f32 %v2435_v3, %v1239_v61  ;;  %903 = vmatmul.bf16.gmra.mxu1 %v1637_v52  ;;  %983 = vmatmul.bf16.gmra.mxu3 %v1765_v57  ;;  %v1208_v7 = vmul.f32 %v2429_v63, %v865_v0  ;;  %v1776_v52 = vld [vmem:[%s2821_s0 + $0x1f0] sm:$0xf]  ;;  %v1650_v57 = vld [vmem:[%s2821_s0 + $0xf8] sm:$0xf0] }
  0xf4   :  { %v1371_v2 = vmax.f32 %v1307_v62, 0.0  ;;  %v775_v4 = vpop.f32.mrf.mxu2  ;;  %v1276_v15 = vadd.f32 %v2435_v3, %v1208_v7 }
  0xf5   :  { %v944_v5 = vpop.f32.mrf.mxu3 }
  0xf6   :  { %v2029_v6 = vpack.c.bf16 %v1371_v2, %v1370_v1  ;;  %v697_v8 = vpop.f32.mrf.mxu0  ;;  %v945_v10 = vadd.f32 %v944_v5, %v775_v4  ;;  %v1340_v29 = vmax.f32 %v1276_v15, 0.0  ;;  %v1649_v1 = vor.u32 %v1877_v51, %v1648_v50 }
  0xf7   :  { %v866_v9 = vpop.f32.mrf.mxu1  ;;  %v1777_v2 = vor.u32 %v1909_v55, %v1776_v52  ;;  %v1653_v4 = vor.u32 %v1876_v56, %v1650_v57 }
  0xf8   :  { %2105 = vst [vmem:[%s2824_s4 + $0xa0] sm:$0xff] %v2029_v6   ;;  %v867_v11 = vadd.f32 %v866_v9, %v697_v8  ;;  %v1240_v22 = vmul.f32 %v2429_v63, %v945_v10  ;;  %v1781_v9 = vor.u32 %v1908_v58, %v1778_v59 }
  0xfa   :  { %v1209_v16 = vmul.f32 %v2429_v63, %v867_v11  ;;  %v1308_v35 = vadd.f32 %v2435_v3, %v1240_v22 }
  0xfc   :  { %v1277_v23 = vadd.f32 %v2435_v3, %v1209_v16  ;;  %v777_v24 = vpop.f32.mrf.mxu2  ;;  %v1372_v40 = vmax.f32 %v1308_v35, 0.0 }
  0xfd   :  { %v946_v25 = vpop.f32.mrf.mxu3 }
  0xfe   :  { %v1341_v30 = vmax.f32 %v1277_v23, 0.0  ;;  %v947_v31 = vadd.f32 %v946_v25, %v777_v24  ;;  %v700_v32 = vpop.f32.mrf.mxu0 }
  0xff   :  { %v869_v34 = vpop.f32.mrf.mxu1 }
 0x100   :  { %v1954_v36 = vpack.c.bf16 %v1341_v30, %v1340_v29  ;;  %v1241_v37 = vmul.f32 %v2429_v63, %v947_v31  ;;  %v870_v39 = vadd.f32 %v869_v34, %v700_v32 }
 0x101   :  { %739 = vmatmul.bf16.gmra.mxu0 %v1641_v26  ;;  %819 = vmatmul.bf16.gmra.mxu2 %v1769_v27 }
 0x102   :  { %2090 = vst [vmem:[%s2824_s4 + $0x28] sm:$0xff] %v1954_v36   ;;  %v1309_v38 = vadd.f32 %v2435_v3, %v1241_v37  ;;  %908 = vmatmul.bf16.gmra.mxu1 %v1645_v28  ;;  %988 = vmatmul.bf16.gmra.mxu3 %v1773_v33  ;;  %v1210_v45 = vmul.f32 %v2429_v63, %v870_v39 }
 0x104   :  { %v1373_v41 = vmax.f32 %v1309_v38, 0.0  ;;  %v780_v42 = vpop.f32.mrf.mxu2  ;;  %v1278_v53 = vadd.f32 %v2435_v3, %v1210_v45 }
 0x105   :  { %v949_v43 = vpop.f32.mrf.mxu3 }
 0x106   :  { %v2034_v44 = vpack.c.bf16 %v1373_v41, %v1372_v40  ;;  %v702_v46 = vpop.f32.mrf.mxu0  ;;  %v950_v48 = vadd.f32 %v949_v43, %v780_v42  ;;  %v1342_v5 = vmax.f32 %v1278_v53, 0.0 }
 0x107   :  { %v871_v47 = vpop.f32.mrf.mxu1 }
 0x108   :  { %2106 = vst [vmem:[%s2824_s4 + $0xa8] sm:$0xff] %v2034_v44   ;;  %v872_v49 = vadd.f32 %v871_v47, %v702_v46  ;;  %v1242_v60 = vmul.f32 %v2429_v63, %v950_v48 }
 0x10a   :  { %v1211_v54 = vmul.f32 %v2429_v63, %v872_v49  ;;  %v1310_v11 = vadd.f32 %v2435_v3, %v1242_v60 }
 0x10c   :  { %v1279_v61 = vadd.f32 %v2435_v3, %v1211_v54  ;;  %v782_v62 = vpop.f32.mrf.mxu2  ;;  %v1374_v16 = vmax.f32 %v1310_v11, 0.0 }
 0x10d   :  { %v951_v0 = vpop.f32.mrf.mxu3 }
 0x10e   :  { %v1343_v6 = vmax.f32 %v1279_v61, 0.0  ;;  %v952_v7 = vadd.f32 %v951_v0, %v782_v62  ;;  %v705_v8 = vpop.f32.mrf.mxu0 }
 0x10f   :  { %v874_v10 = vpop.f32.mrf.mxu1 }
 0x110   :  { %v1959_v12 = vpack.c.bf16 %v1343_v6, %v1342_v5  ;;  %v1243_v13 = vmul.f32 %v2429_v63, %v952_v7  ;;  %v875_v15 = vadd.f32 %v874_v10, %v705_v8 }
 0x111   :  { %744 = vmatmul.bf16.gmra.mxu0 %v1649_v1  ;;  %824 = vmatmul.bf16.gmra.mxu2 %v1777_v2 }
 0x112   :  { %2091 = vst [vmem:[%s2824_s4 + $0x30] sm:$0xff] %v1959_v12   ;;  %v1311_v14 = vadd.f32 %v2435_v3, %v1243_v13  ;;  %913 = vmatmul.bf16.gmra.mxu1 %v1653_v4  ;;  %993 = vmatmul.bf16.gmra.mxu3 %v1781_v9  ;;  %v1212_v21 = vmul.f32 %v2429_v63, %v875_v15 }
 0x114   :  { %v1375_v17 = vmax.f32 %v1311_v14, 0.0  ;;  %v785_v18 = vpop.f32.mrf.mxu2  ;;  %v1280_v26 = vadd.f32 %v2435_v3, %v1212_v21 }
 0x115   :  { %v954_v19 = vpop.f32.mrf.mxu3 }
 0x116   :  { %v2039_v20 = vpack.c.bf16 %v1375_v17, %v1374_v16  ;;  %v707_v22 = vpop.f32.mrf.mxu0  ;;  %v955_v24 = vadd.f32 %v954_v19, %v785_v18  ;;  %v1344_v32 = vmax.f32 %v1280_v26, 0.0 }
 0x117   :  { %v876_v23 = vpop.f32.mrf.mxu1 }
 0x118   :  { %2107 = vst [vmem:[%s2824_s4 + $0xb0] sm:$0xff] %v2039_v20   ;;  %v877_v25 = vadd.f32 %v876_v23, %v707_v22  ;;  %v1244_v28 = vmul.f32 %v2429_v63, %v955_v24 }
 0x11a   :  { %v1213_v27 = vmul.f32 %v2429_v63, %v877_v25  ;;  %v1312_v37 = vadd.f32 %v2435_v3, %v1244_v28 }
 0x11c   :  { %v1281_v29 = vadd.f32 %v2435_v3, %v1213_v27  ;;  %v787_v30 = vpop.f32.mrf.mxu2  ;;  %v1376_v42 = vmax.f32 %v1312_v37, 0.0 }
 0x11d   :  { %v956_v31 = vpop.f32.mrf.mxu3 }
 0x11e   :  { %v1345_v33 = vmax.f32 %v1281_v29, 0.0  ;;  %v957_v34 = vadd.f32 %v956_v31, %v787_v30  ;;  %v710_v35 = vpop.f32.mrf.mxu0 }
 0x11f   :  { %v879_v36 = vpop.f32.mrf.mxu1 }
 0x120   :  { %v1964_v38 = vpack.c.bf16 %v1345_v33, %v1344_v32  ;;  %v1245_v39 = vmul.f32 %v2429_v63, %v957_v34  ;;  %v880_v41 = vadd.f32 %v879_v36, %v710_v35 }
 0x122   :  { %2092 = vst [vmem:[%s2824_s4 + $0x38] sm:$0xff] %v1964_v38   ;;  %v1313_v40 = vadd.f32 %v2435_v3, %v1245_v39  ;;  %v1214_v47 = vmul.f32 %v2429_v63, %v880_v41 }
 0x124   :  { %v1377_v43 = vmax.f32 %v1313_v40, 0.0  ;;  %v790_v44 = vpop.f32.mrf.mxu2  ;;  %v1282_v52 = vadd.f32 %v2435_v3, %v1214_v47 }
 0x125   :  { %v959_v45 = vpop.f32.mrf.mxu3 }
 0x126   :  { %v2044_v46 = vpack.c.bf16 %v1377_v43, %v1376_v42  ;;  %v712_v48 = vpop.f32.mrf.mxu0  ;;  %v960_v50 = vadd.f32 %v959_v45, %v790_v44  ;;  %v1346_v58 = vmax.f32 %v1282_v52, 0.0 }
 0x127   :  { %v881_v49 = vpop.f32.mrf.mxu1 }
 0x128   :  { %2108 = vst [vmem:[%s2824_s4 + $0xb8] sm:$0xff] %v2044_v46   ;;  %v882_v51 = vadd.f32 %v881_v49, %v712_v48  ;;  %v1246_v54 = vmul.f32 %v2429_v63, %v960_v50 }
 0x12a   :  { %v1215_v53 = vmul.f32 %v2429_v63, %v882_v51  ;;  %v1314_v0 = vadd.f32 %v2435_v3, %v1246_v54 }
 0x12c   :  { %v1283_v55 = vadd.f32 %v2435_v3, %v1215_v53  ;;  %v792_v56 = vpop.f32.mrf.mxu2  ;;  %v1378_v6 = vmax.f32 %v1314_v0, 0.0 }
 0x12d   :  { %v961_v57 = vpop.f32.mrf.mxu3 }
 0x12e   :  { %v1347_v59 = vmax.f32 %v1283_v55, 0.0  ;;  %v962_v60 = vadd.f32 %v961_v57, %v792_v56  ;;  %v715_v61 = vpop.f32.mrf.mxu0 }
 0x12f   :  { %v884_v62 = vpop.f32.mrf.mxu1 }
 0x130   :  { %v1969_v1 = vpack.c.bf16 %v1347_v59, %v1346_v58  ;;  %v1247_v2 = vmul.f32 %v2429_v63, %v962_v60  ;;  %v885_v5 = vadd.f32 %v884_v62, %v715_v61 }
 0x132   :  { %2093 = vst [vmem:[%s2824_s4 + $0x40] sm:$0xff] %v1969_v1   ;;  %v1315_v4 = vadd.f32 %v2435_v3, %v1247_v2  ;;  %v1216_v11 = vmul.f32 %v2429_v63, %v885_v5 }
 0x134   :  { %v1379_v7 = vmax.f32 %v1315_v4, 0.0  ;;  %v795_v8 = vpop.f32.mrf.mxu2  ;;  %v1284_v16 = vadd.f32 %v2435_v3, %v1216_v11 }
 0x135   :  { %v964_v9 = vpop.f32.mrf.mxu3 }
 0x136   :  { %v2049_v10 = vpack.c.bf16 %v1379_v7, %v1378_v6  ;;  %v717_v12 = vpop.f32.mrf.mxu0  ;;  %v965_v14 = vadd.f32 %v964_v9, %v795_v8  ;;  %v1348_v22 = vmax.f32 %v1284_v16, 0.0 }
 0x137   :  { %v886_v13 = vpop.f32.mrf.mxu1 }
 0x138   :  { %2109 = vst [vmem:[%s2824_s4 + $0xc0] sm:$0xff] %v2049_v10   ;;  %v887_v15 = vadd.f32 %v886_v13, %v717_v12  ;;  %v1248_v18 = vmul.f32 %v2429_v63, %v965_v14 }
 0x13a   :  { %v1217_v17 = vmul.f32 %v2429_v63, %v887_v15  ;;  %v1316_v27 = vadd.f32 %v2435_v3, %v1248_v18 }
 0x13c   :  { %v1285_v19 = vadd.f32 %v2435_v3, %v1217_v17  ;;  %v797_v20 = vpop.f32.mrf.mxu2  ;;  %v1380_v32 = vmax.f32 %v1316_v27, 0.0 }
 0x13d   :  { %v966_v21 = vpop.f32.mrf.mxu3 }
 0x13e   :  { %v1349_v23 = vmax.f32 %v1285_v19, 0.0  ;;  %v967_v24 = vadd.f32 %v966_v21, %v797_v20  ;;  %v720_v25 = vpop.f32.mrf.mxu0 }
 0x13f   :  { %v889_v26 = vpop.f32.mrf.mxu1 }
 0x140   :  { %v1974_v28 = vpack.c.bf16 %v1349_v23, %v1348_v22  ;;  %v1249_v29 = vmul.f32 %v2429_v63, %v967_v24  ;;  %v890_v31 = vadd.f32 %v889_v26, %v720_v25 }
 0x142   :  { %2094 = vst [vmem:[%s2824_s4 + $0x48] sm:$0xff] %v1974_v28   ;;  %v1317_v30 = vadd.f32 %v2435_v3, %v1249_v29  ;;  %v1218_v37 = vmul.f32 %v2429_v63, %v890_v31 }
 0x144   :  { %v1381_v33 = vmax.f32 %v1317_v30, 0.0  ;;  %v800_v34 = vpop.f32.mrf.mxu2  ;;  %v1286_v42 = vadd.f32 %v2435_v3, %v1218_v37 }
 0x145   :  { %v969_v35 = vpop.f32.mrf.mxu3 }
 0x146   :  { %v2054_v36 = vpack.c.bf16 %v1381_v33, %v1380_v32  ;;  %v722_v38 = vpop.f32.mrf.mxu0  ;;  %v970_v40 = vadd.f32 %v969_v35, %v800_v34  ;;  %v1350_v48 = vmax.f32 %v1286_v42, 0.0 }
 0x147   :  { %v891_v39 = vpop.f32.mrf.mxu1 }
 0x148   :  { %2110 = vst [vmem:[%s2824_s4 + $0xc8] sm:$0xff] %v2054_v36   ;;  %v892_v41 = vadd.f32 %v891_v39, %v722_v38  ;;  %v1250_v44 = vmul.f32 %v2429_v63, %v970_v40 }
 0x14a   :  { %v1219_v43 = vmul.f32 %v2429_v63, %v892_v41  ;;  %v1318_v53 = vadd.f32 %v2435_v3, %v1250_v44 }
 0x14c   :  { %v1287_v45 = vadd.f32 %v2435_v3, %v1219_v43  ;;  %v802_v46 = vpop.f32.mrf.mxu2  ;;  %v1382_v58 = vmax.f32 %v1318_v53, 0.0 }
 0x14d   :  { %v971_v47 = vpop.f32.mrf.mxu3 }
 0x14e   :  { %v1351_v49 = vmax.f32 %v1287_v45, 0.0  ;;  %v972_v50 = vadd.f32 %v971_v47, %v802_v46  ;;  %v725_v51 = vpop.f32.mrf.mxu0 }
 0x14f   :  { %v894_v52 = vpop.f32.mrf.mxu1 }
 0x150   :  { %v1979_v54 = vpack.c.bf16 %v1351_v49, %v1350_v48  ;;  %v1251_v55 = vmul.f32 %v2429_v63, %v972_v50  ;;  %v895_v57 = vadd.f32 %v894_v52, %v725_v51 }
 0x152   :  { %2095 = vst [vmem:[%s2824_s4 + $0x50] sm:$0xff] %v1979_v54   ;;  %v1319_v56 = vadd.f32 %v2435_v3, %v1251_v55  ;;  %v1220_v0 = vmul.f32 %v2429_v63, %v895_v57 }
 0x154   :  { %v1383_v59 = vmax.f32 %v1319_v56, 0.0  ;;  %v805_v60 = vpop.f32.mrf.mxu2  ;;  %v1288_v6 = vadd.f32 %v2435_v3, %v1220_v0 }
 0x155   :  { %v974_v61 = vpop.f32.mrf.mxu3 }
 0x156   :  { %v2059_v62 = vpack.c.bf16 %v1383_v59, %v1382_v58  ;;  %v727_v1 = vpop.f32.mrf.mxu0  ;;  %v975_v4 = vadd.f32 %v974_v61, %v805_v60  ;;  %v1352_v12 = vmax.f32 %v1288_v6, 0.0 }
 0x157   :  { %v896_v2 = vpop.f32.mrf.mxu1 }
 0x158   :  { %2111 = vst [vmem:[%s2824_s4 + $0xd0] sm:$0xff] %v2059_v62   ;;  %v897_v5 = vadd.f32 %v896_v2, %v727_v1  ;;  %v1252_v8 = vmul.f32 %v2429_v63, %v975_v4 }
 0x15a   :  { %v1221_v7 = vmul.f32 %v2429_v63, %v897_v5  ;;  %v1320_v17 = vadd.f32 %v2435_v3, %v1252_v8 }
 0x15c   :  { %v1289_v9 = vadd.f32 %v2435_v3, %v1221_v7  ;;  %v807_v10 = vpop.f32.mrf.mxu2  ;;  %v1384_v22 = vmax.f32 %v1320_v17, 0.0 }
 0x15d   :  { %v976_v11 = vpop.f32.mrf.mxu3 }
 0x15e   :  { %v1353_v13 = vmax.f32 %v1289_v9, 0.0  ;;  %v977_v14 = vadd.f32 %v976_v11, %v807_v10  ;;  %v730_v15 = vpop.f32.mrf.mxu0 }
 0x15f   :  { %v899_v16 = vpop.f32.mrf.mxu1 }
 0x160   :  { %v1984_v18 = vpack.c.bf16 %v1353_v13, %v1352_v12  ;;  %v1253_v19 = vmul.f32 %v2429_v63, %v977_v14  ;;  %v900_v21 = vadd.f32 %v899_v16, %v730_v15 }
 0x162   :  { %2096 = vst [vmem:[%s2824_s4 + $0x58] sm:$0xff] %v1984_v18   ;;  %v1321_v20 = vadd.f32 %v2435_v3, %v1253_v19  ;;  %v1222_v27 = vmul.f32 %v2429_v63, %v900_v21 }
 0x164   :  { %v1385_v23 = vmax.f32 %v1321_v20, 0.0  ;;  %v810_v24 = vpop.f32.mrf.mxu2  ;;  %v1290_v32 = vadd.f32 %v2435_v3, %v1222_v27 }
 0x165   :  { %v979_v25 = vpop.f32.mrf.mxu3 }
 0x166   :  { %v2064_v26 = vpack.c.bf16 %v1385_v23, %v1384_v22  ;;  %v732_v28 = vpop.f32.mrf.mxu0  ;;  %v980_v30 = vadd.f32 %v979_v25, %v810_v24  ;;  %v1354_v38 = vmax.f32 %v1290_v32, 0.0  ;;  %v2135_v23 = vld [vmem:[%s2822_s2] ss:$0 sm:$0xff] }
 0x167   :  { %v901_v29 = vpop.f32.mrf.mxu1 }
 0x168   :  { %2112 = vst [vmem:[%s2824_s4 + $0xd8] sm:$0xff] %v2064_v26   ;;  %v902_v31 = vadd.f32 %v901_v29, %v732_v28  ;;  %v1254_v34 = vmul.f32 %v2429_v63, %v980_v30 }
 0x16a   :  { %v1223_v33 = vmul.f32 %v2429_v63, %v902_v31  ;;  %v1322_v43 = vadd.f32 %v2435_v3, %v1254_v34 }
 0x16c   :  { %v1291_v35 = vadd.f32 %v2435_v3, %v1223_v33  ;;  %v812_v36 = vpop.f32.mrf.mxu2  ;;  %v1386_v48 = vmax.f32 %v1322_v43, 0.0 }
 0x16d   :  { %v981_v37 = vpop.f32.mrf.mxu3 }
 0x16e   :  { %v1355_v39 = vmax.f32 %v1291_v35, 0.0  ;;  %v982_v40 = vadd.f32 %v981_v37, %v812_v36  ;;  %v735_v41 = vpop.f32.mrf.mxu0 }
 0x16f   :  { %v904_v42 = vpop.f32.mrf.mxu1 }
 0x170   :  { %v1989_v44 = vpack.c.bf16 %v1355_v39, %v1354_v38  ;;  %v1255_v45 = vmul.f32 %v2429_v63, %v982_v40  ;;  %v905_v47 = vadd.f32 %v904_v42, %v735_v41 }
 0x172   :  { %2097 = vst [vmem:[%s2824_s4 + $0x60] sm:$0xff] %v1989_v44   ;;  %v1323_v46 = vadd.f32 %v2435_v3, %v1255_v45  ;;  %v1224_v53 = vmul.f32 %v2429_v63, %v905_v47 }
 0x174   :  { %v1387_v49 = vmax.f32 %v1323_v46, 0.0  ;;  %v815_v50 = vpop.f32.mrf.mxu2  ;;  %v1292_v58 = vadd.f32 %v2435_v3, %v1224_v53 }
 0x175   :  { %v984_v51 = vpop.f32.mrf.mxu3 }
 0x176   :  { %v2069_v52 = vpack.c.bf16 %v1387_v49, %v1386_v48  ;;  %v737_v54 = vpop.f32.mrf.mxu0  ;;  %v985_v56 = vadd.f32 %v984_v51, %v815_v50  ;;  %v1356_v1 = vmax.f32 %v1292_v58, 0.0 }
 0x177   :  { %v906_v55 = vpop.f32.mrf.mxu1 }
 0x178   :  { %2113 = vst [vmem:[%s2824_s4 + $0xe0] sm:$0xff] %v2069_v52   ;;  %v907_v57 = vadd.f32 %v906_v55, %v737_v54  ;;  %v1256_v60 = vmul.f32 %v2429_v63, %v985_v56 }
 0x17a   :  { %v1225_v59 = vmul.f32 %v2429_v63, %v907_v57  ;;  %v1324_v7 = vadd.f32 %v2435_v3, %v1256_v60 }
 0x17c   :  { %v1293_v61 = vadd.f32 %v2435_v3, %v1225_v59  ;;  %v817_v62 = vpop.f32.mrf.mxu2  ;;  %v1388_v12 = vmax.f32 %v1324_v7, 0.0 }
 0x17d   :  { %v986_v0 = vpop.f32.mrf.mxu3 }
 0x17e   :  { %v1357_v2 = vmax.f32 %v1293_v61, 0.0  ;;  %v987_v4 = vadd.f32 %v986_v0, %v817_v62  ;;  %v740_v5 = vpop.f32.mrf.mxu0 }
 0x17f   :  { %v909_v6 = vpop.f32.mrf.mxu1 }
 0x180   :  { %v1994_v8 = vpack.c.bf16 %v1357_v2, %v1356_v1  ;;  %v1257_v9 = vmul.f32 %v2429_v63, %v987_v4  ;;  %v910_v11 = vadd.f32 %v909_v6, %v740_v5 }
 0x182   :  { %2098 = vst [vmem:[%s2824_s4 + $0x68] sm:$0xff] %v1994_v8   ;;  %v1325_v10 = vadd.f32 %v2435_v3, %v1257_v9  ;;  %v1226_v17 = vmul.f32 %v2429_v63, %v910_v11  ;;  %v2136_v63 = vld [vmem:[%s2823_s3] ss:$0 sm:$0xff] }
 0x184   :  { %v1389_v13 = vmax.f32 %v1325_v10, 0.0  ;;  %v820_v14 = vpop.f32.mrf.mxu2  ;;  %v1294_v22 = vadd.f32 %v2435_v3, %v1226_v17 }
 0x185   :  { %v989_v15 = vpop.f32.mrf.mxu3 }
 0x186   :  { %v2074_v16 = vpack.c.bf16 %v1389_v13, %v1388_v12  ;;  %v742_v18 = vpop.f32.mrf.mxu0  ;;  %v990_v20 = vadd.f32 %v989_v15, %v820_v14  ;;  %v1358_v29 = vmax.f32 %v1294_v22, 0.0 }
 0x187   :  { %v911_v19 = vpop.f32.mrf.mxu1 }
 0x188   :  { %2114 = vst [vmem:[%s2824_s4 + $0xe8] sm:$0xff] %v2074_v16   ;;  %v912_v21 = vadd.f32 %v911_v19, %v742_v18  ;;  %v1258_v25 = vmul.f32 %v2135_v23, %v990_v20 }
 0x18a   :  { %v1227_v24 = vmul.f32 %v2135_v23, %v912_v21  ;;  %v1326_v34 = vadd.f32 %v2136_v63, %v1258_v25 }
 0x18c   :  { %v1295_v26 = vadd.f32 %v2136_v63, %v1227_v24  ;;  %v822_v27 = vpop.f32.mrf.mxu2  ;;  %v1390_v38 = vmax.f32 %v1326_v34, 0.0 }
 0x18d   :  { %v991_v28 = vpop.f32.mrf.mxu3 }
 0x18e   :  { %v1359_v30 = vmax.f32 %v1295_v26, 0.0  ;;  %v992_v31 = vadd.f32 %v991_v28, %v822_v27  ;;  %v745_v32 = vpop.f32.mrf.mxu0 }
 0x18f   :  { %v914_v33 = vpop.f32.mrf.mxu1 }
 0x190   :  { %v1999_v3 = vpack.c.bf16 %v1359_v30, %v1358_v29  ;;  %v1259_v35 = vmul.f32 %v2135_v23, %v992_v31  ;;  %v915_v37 = vadd.f32 %v914_v33, %v745_v32 }
 0x192   :  { %2099 = vst [vmem:[%s2824_s4 + $0x70] sm:$0xff] %v1999_v3   ;;  %v1327_v36 = vadd.f32 %v2136_v63, %v1259_v35  ;;  %v1228_v43 = vmul.f32 %v2135_v23, %v915_v37 }
 0x194   :  { %v1391_v39 = vmax.f32 %v1327_v36, 0.0  ;;  %v825_v40 = vpop.f32.mrf.mxu2  ;;  %v1296_v48 = vadd.f32 %v2136_v63, %v1228_v43 }
 0x195   :  { %v994_v41 = vpop.f32.mrf.mxu3 }
 0x196   :  { %v2079_v42 = vpack.c.bf16 %v1391_v39, %v1390_v38  ;;  %v747_v44 = vpop.f32.mrf.mxu0  ;;  %v995_v46 = vadd.f32 %v994_v41, %v825_v40  ;;  %v1360_v54 = vmax.f32 %v1296_v48, 0.0 }
 0x197   :  { %v916_v45 = vpop.f32.mrf.mxu1 }
 0x198   :  { %2115 = vst [vmem:[%s2824_s4 + $0xf0] sm:$0xff] %v2079_v42   ;;  %v917_v47 = vadd.f32 %v916_v45, %v747_v44  ;;  %v1260_v50 = vmul.f32 %v2135_v23, %v995_v46 }
 0x19a   :  { %v1229_v49 = vmul.f32 %v2135_v23, %v917_v47  ;;  %v1328_v57 = vadd.f32 %v2136_v63, %v1260_v50 }
 0x19c   :  { %v1297_v51 = vadd.f32 %v2136_v63, %v1229_v49  ;;  %v827_v52 = vpop.f32.mrf.mxu2  ;;  %v1392_v61 = vmax.f32 %v1328_v57, 0.0 }
 0x19d   :  { %v996_v53 = vpop.f32.mrf.mxu3 }
 0x19e   :  { %v1361_v55 = vmax.f32 %v1297_v51, 0.0  ;;  %v997_v56 = vadd.f32 %v996_v53, %v827_v52 }
 0x1a0   :  { %v2004_v58 = vpack.c.bf16 %v1361_v55, %v1360_v54  ;;  %v1261_v59 = vmul.f32 %v2135_v23, %v997_v56 }
 0x1a2   :  { %2100 = vst [vmem:[%s2824_s4 + $0x78] sm:$0xff] %v2004_v58   ;;  %v1329_v60 = vadd.f32 %v2136_v63, %v1261_v59 }
 0x1a4   :  { %v1393_v62 = vmax.f32 %v1329_v60, 0.0 }
 0x1a6   :  { %v2084_v0 = vpack.c.bf16 %v1393_v62, %v1392_v61 }
 0x1a8   :  { %2116 = vst [vmem:[%s2824_s4 + $0xf8] sm:$0xff] %v2084_v0  }

// kernel: resnet18_forward.23
= control target key start
LH: loop header
LB: loop body
LE: loop exit
PB: predicated region body
PF: predicated region fallthrough
CT: control target
= control target key end

     0   :  { %vm296_vm0 = vcmask 523264   ;;  %vm585_vm1 = vcmask 519168   ;;  %s1539_s0 = inlined_call_operand.vmem [shape: bf16[9,128,64], index: 0, kind: input, shape index: {}]   ;;  %s1540_s1 = inlined_call_operand.vmem [shape: bf16[128,64], index: 1, kind: output, shape index: {}]  }
   0x1   :  { %v607_v0 = vld [vmem:[%s1539_s0] sm:$0xff]   ;;  %v1018_v35 = vld [vmem:[%s1539_s0 + $0x8] sm:$0xff]  }
   0x2   :  { %v901_v1 = vld [vmem:[%s1539_s0 + $0x40] sm:$0xff]   ;;  %v608_v3 = vunpack.c.l.bf16 %v607_v0  ;;  %v609_v19 = vunpack.c.h.bf16 %v607_v0  ;;  %v1023_v36 = vld [vmem:[%s1539_s0 + $0x48] sm:$0xff]   ;;  %v612_v49 = vunpack.c.l.bf16 %v1018_v35 }
   0x3   :  { %v909_v2 = vld [vmem:[%s1539_s0 + $0x80] sm:$0xff]   ;;  %v640_v4 = vunpack.c.l.bf16 %v901_v1  ;;  %v641_v20 = vunpack.c.h.bf16 %v901_v1  ;;  %v910_v41 = vld [vmem:[%s1539_s0 + $0x88] sm:$0xff]   ;;  %v644_v50 = vunpack.c.l.bf16 %v1023_v36 }
   0x4   :  { %v672_v5 = vunpack.c.l.bf16 %v909_v2  ;;  %v917_v6 = vld [vmem:[%s1539_s0 + $0xc0] sm:$0xff]   ;;  %v297_v16 = vsel %vm296_vm0, %v608_v3, -inf  ;;  %v673_v25 = vunpack.c.h.bf16 %v909_v2  ;;  %v314_v32 = vsel %vm296_vm0, %v609_v19, -inf  ;;  %v1031_v42 = vld [vmem:[%s1539_s0 + $0xc8] sm:$0xff]  }
   0x5   :  { %v925_v7 = vld [vmem:[%s1539_s0 + $0x100] sm:$0xff]   ;;  %v704_v9 = vunpack.c.l.bf16 %v917_v6  ;;  %v298_v17 = vsel %vm296_vm0, %v640_v4, -inf  ;;  %v705_v26 = vunpack.c.h.bf16 %v917_v6  ;;  %v315_v33 = vsel %vm296_vm0, %v641_v20, -inf  ;;  %v1041_v51 = vld [vmem:[%s1539_s0 + $0x108] sm:$0xff]  }
   0x6   :  { %v933_v8 = vld [vmem:[%s1539_s0 + $0x140] sm:$0xff]   ;;  %v736_v12 = vunpack.c.l.bf16 %v925_v7  ;;  %v300_v18 = vsel %vm296_vm0, %v672_v5, -inf  ;;  %v299_v22 = vmax.f32 %v297_v16, %v298_v17  ;;  %v737_v31 = vunpack.c.h.bf16 %v925_v7  ;;  %v1051_v60 = vld [vmem:[%s1539_s0 + $0x148] sm:$0xff]  }
   0x7   :  { %v941_v10 = vld [vmem:[%s1539_s0 + $0x180] sm:$0xff]   ;;  %v768_v13 = vunpack.c.l.bf16 %v933_v8  ;;  %v302_v24 = vsel %vm296_vm0, %v704_v9, -inf  ;;  %v317_v34 = vsel %vm296_vm0, %v673_v25, -inf  ;;  %v769_v38 = vunpack.c.h.bf16 %v933_v8  ;;  %v1056_v61 = vld [vmem:[%s1539_s0 + $0x188] sm:$0xff]  }
   0x8   :  { %v949_v11 = vld [vmem:[%s1539_s0 + $0x1c0] sm:$0xff]   ;;  %v800_v14 = vunpack.c.l.bf16 %v941_v10  ;;  %v301_v27 = vmax.f32 %v299_v22, %v300_v18  ;;  %v304_v28 = vsel %vm296_vm0, %v736_v12, -inf  ;;  %v801_v39 = vunpack.c.h.bf16 %v941_v10  ;;  %v1061_v62 = vld [vmem:[%s1539_s0 + $0x1c8] sm:$0xff]  }
   0x9   :  { %v1002_v15 = vld [vmem:[%s1539_s0 + $0x200] sm:$0xff]   ;;  %v832_v21 = vunpack.c.l.bf16 %v949_v11  ;;  %v306_v29 = vsel %vm296_vm0, %v768_v13, -inf  ;;  %v316_v40 = vmax.f32 %v314_v32, %v315_v33  ;;  %v833_v45 = vunpack.c.h.bf16 %v949_v11  ;;  %v1074_v10 = vld [vmem:[%s1539_s0 + $0x208] sm:$0xff]   ;;  %v1090_v32 = vld [vmem:[%s1539_s0 + $0x10] sm:$0xff]  }
   0xa   :  { %v864_v23 = vunpack.c.l.bf16 %v1002_v15  ;;  %v308_v30 = vsel %vm296_vm0, %v800_v14, -inf  ;;  %v303_v37 = vmax.f32 %v301_v27, %v302_v24  ;;  %v319_v46 = vsel %vm296_vm0, %v705_v26, -inf }
   0xb   :  { %v310_v43 = vsel %vm296_vm0, %v832_v21, -inf  ;;  %v318_v48 = vmax.f32 %v316_v40, %v317_v34  ;;  %v865_v52 = vunpack.c.h.bf16 %v1002_v15  ;;  %v321_v53 = vsel %vm296_vm0, %v737_v31, -inf }
   0xc   :  { %v312_v44 = vsel %vm296_vm0, %v864_v23, -inf  ;;  %v305_v47 = vmax.f32 %v303_v37, %v304_v28  ;;  %v676_v54 = vunpack.c.l.bf16 %v910_v41  ;;  %v708_v55 = vunpack.c.l.bf16 %v1031_v42  ;;  %v903_v37 = vld [vmem:[%s1539_s0 + $0x50] sm:$0xff]  }
   0xd   :  { %v320_v57 = vmax.f32 %v318_v48, %v319_v46  ;;  %v323_v58 = vsel %vm296_vm0, %v769_v38, -inf  ;;  %v325_v59 = vsel %vm296_vm0, %v801_v39, -inf  ;;  %v740_v63 = vunpack.c.l.bf16 %v1041_v51 }
   0xe   :  { %v307_v56 = vmax.f32 %v305_v47, %v306_v29  ;;  %v331_v0 = vsel %vm296_vm0, %v612_v49, -inf  ;;  %v332_v1 = vsel %vm296_vm0, %v644_v50, -inf  ;;  %v334_v2 = vsel %vm296_vm0, %v676_v54, -inf }
   0xf   :  { %v322_v4 = vmax.f32 %v320_v57, %v321_v53  ;;  %v327_v5 = vsel %vm296_vm0, %v833_v45, -inf  ;;  %v333_v6 = vmax.f32 %v331_v0, %v332_v1  ;;  %v772_v7 = vunpack.c.l.bf16 %v1051_v60  ;;  %v1142_v0 = vld [vmem:[%s1539_s0 + $0x1d0] sm:$0xff]  }
  0x10   :  { %v309_v3 = vmax.f32 %v307_v56, %v308_v30  ;;  %v804_v8 = vunpack.c.l.bf16 %v1056_v61  ;;  %v836_v9 = vunpack.c.l.bf16 %v1061_v62  ;;  %v336_v11 = vsel %vm296_vm0, %v708_v55, -inf }
  0x11   :  { %v324_v13 = vmax.f32 %v322_v4, %v323_v58  ;;  %v329_v14 = vsel %vm296_vm0, %v865_v52, -inf  ;;  %v335_v15 = vmax.f32 %v333_v6, %v334_v2  ;;  %v338_v16 = vsel %vm296_vm0, %v740_v63, -inf  ;;  %v1119_v52 = vld [vmem:[%s1539_s0 + $0x110] sm:$0xff]  }
  0x12   :  { %v311_v12 = vmax.f32 %v309_v3, %v310_v43  ;;  %v613_v17 = vunpack.c.h.bf16 %v1018_v35  ;;  %v645_v18 = vunpack.c.h.bf16 %v1023_v36  ;;  %v677_v19 = vunpack.c.h.bf16 %v910_v41  ;;  %v1110_v43 = vld [vmem:[%s1539_s0 + $0xd0] sm:$0xff]  }
  0x13   :  { %v326_v21 = vmax.f32 %v324_v13, %v325_v59  ;;  %v868_v22 = vunpack.c.l.bf16 %v1074_v10  ;;  %v337_v23 = vmax.f32 %v335_v15, %v336_v11  ;;  %v340_v24 = vsel %vm296_vm0, %v772_v7, -inf  ;;  %v959_v11 = vld [vmem:[%s1539_s0 + $0x210] sm:$0xff]  }
  0x14   :  { %v313_v20 = vmax.f32 %v311_v12, %v312_v44  ;;  %v342_v25 = vsel %vm296_vm0, %v804_v8, -inf  ;;  %v344_v26 = vsel %vm296_vm0, %v836_v9, -inf  ;;  %v709_v27 = vunpack.c.h.bf16 %v1031_v42  ;;  %v911_v42 = vld [vmem:[%s1539_s0 + $0x90] sm:$0xff]  }
  0x15   :  { %v328_v29 = vmax.f32 %v326_v21, %v327_v5  ;;  %v339_v30 = vmax.f32 %v337_v23, %v338_v16  ;;  %v348_v31 = vsel %vm296_vm0, %v613_v17, -inf  ;;  %v741_v33 = vunpack.c.h.bf16 %v1041_v51 }
  0x16   :  { %v569_v28 = vpack.c.bf16 %v313_v20, %v313_v20  ;;  %v773_v34 = vunpack.c.h.bf16 %v1051_v60  ;;  %v349_v35 = vsel %vm296_vm0, %v645_v18, -inf  ;;  %v351_v36 = vsel %vm296_vm0, %v677_v19, -inf }
  0x17   :  { %v330_v38 = vmax.f32 %v328_v29, %v329_v14  ;;  %v341_v39 = vmax.f32 %v339_v30, %v340_v24  ;;  %v805_v40 = vunpack.c.h.bf16 %v1056_v61  ;;  %v350_v41 = vmax.f32 %v348_v31, %v349_v35  ;;  %v935_v61 = vld [vmem:[%s1539_s0 + $0x150] sm:$0xff]  }
  0x18   :  { %586 = vst.msk [vmem:[%s1540_s1] sm:$0xf] %vm585_vm1, %v569_v28  ;;  %v346_v44 = vsel %vm296_vm0, %v868_v22, -inf  ;;  %v837_v45 = vunpack.c.h.bf16 %v1061_v62  ;;  %v353_v46 = vsel %vm296_vm0, %v709_v27, -inf  ;;  %v616_v47 = vunpack.c.l.bf16 %v1090_v32  ;;  %v1136_v62 = vld [vmem:[%s1539_s0 + $0x190] sm:$0xff]  }
  0x19   :  { %v570_v48 = vpack.c.bf16 %v330_v38, %v330_v38  ;;  %v343_v49 = vmax.f32 %v341_v39, %v342_v25  ;;  %v352_v50 = vmax.f32 %v350_v41, %v351_v36  ;;  %v648_v51 = vunpack.c.l.bf16 %v903_v37  ;;  %v912_v39 = vld [vmem:[%s1539_s0 + $0x98] sm:$0xff]  }
  0x1a   :  { %v869_v53 = vunpack.c.h.bf16 %v1074_v10  ;;  %v355_v54 = vsel %vm296_vm0, %v741_v33, -inf  ;;  %v680_v55 = vunpack.c.l.bf16 %v911_v42  ;;  %v712_v56 = vunpack.c.l.bf16 %v1110_v43  ;;  %v896_v33 = vld [vmem:[%s1539_s0 + $0x18] sm:$0xff]  }
  0x1b   :  { %587 = vst.msk [vmem:[%s1540_s1 + $0x4] sm:$0xf] %vm585_vm1, %v570_v48  ;;  %v345_v57 = vmax.f32 %v343_v49, %v344_v26  ;;  %v354_v58 = vmax.f32 %v352_v50, %v353_v46  ;;  %v357_v59 = vsel %vm296_vm0, %v773_v34, -inf  ;;  %v359_v60 = vsel %vm296_vm0, %v805_v40, -inf  ;;  %v904_v34 = vld [vmem:[%s1539_s0 + $0x58] sm:$0xff]  }
  0x1c   :  { %v744_v63 = vunpack.c.l.bf16 %v1119_v52  ;;  %v365_v1 = vsel %vm296_vm0, %v616_v47, -inf  ;;  %v366_v2 = vsel %vm296_vm0, %v648_v51, -inf  ;;  %v368_v3 = vsel %vm296_vm0, %v680_v55, -inf }
  0x1d   :  { %v347_v4 = vmax.f32 %v345_v57, %v346_v44  ;;  %v356_v5 = vmax.f32 %v354_v58, %v355_v54  ;;  %v361_v6 = vsel %vm296_vm0, %v837_v45, -inf  ;;  %v367_v7 = vmax.f32 %v365_v1, %v366_v2  ;;  %v1184_v44 = vld [vmem:[%s1539_s0 + $0xd8] sm:$0xff]  }
  0x1e   :  { %v363_v8 = vsel %vm296_vm0, %v869_v53, -inf  ;;  %v776_v9 = vunpack.c.l.bf16 %v935_v61  ;;  %v808_v10 = vunpack.c.l.bf16 %v1136_v62  ;;  %v370_v12 = vsel %vm296_vm0, %v712_v56, -inf  ;;  %v928_v53 = vld [vmem:[%s1539_s0 + $0x118] sm:$0xff]  }
  0x1f   :  { %v571_v13 = vpack.c.bf16 %v347_v4, %v347_v4  ;;  %v358_v14 = vmax.f32 %v356_v5, %v357_v59  ;;  %v840_v15 = vunpack.c.l.bf16 %v1142_v0  ;;  %v369_v16 = vmax.f32 %v367_v7, %v368_v3  ;;  %v1196_v58 = vld [vmem:[%s1539_s0 + $0x158] sm:$0xff]  }
  0x20   :  { %v372_v17 = vsel %vm296_vm0, %v744_v63, -inf  ;;  %v617_v18 = vunpack.c.h.bf16 %v1090_v32  ;;  %v649_v19 = vunpack.c.h.bf16 %v903_v37  ;;  %v681_v20 = vunpack.c.h.bf16 %v911_v42  ;;  %v1201_v59 = vld [vmem:[%s1539_s0 + $0x198] sm:$0xff]  }
  0x21   :  { %588 = vst.msk [vmem:[%s1540_s1 + $0x8] sm:$0xf] %vm585_vm1, %v571_v13  ;;  %v360_v21 = vmax.f32 %v358_v14, %v359_v60  ;;  %v872_v22 = vunpack.c.l.bf16 %v959_v11  ;;  %v371_v23 = vmax.f32 %v369_v16, %v370_v12  ;;  %v713_v24 = vunpack.c.h.bf16 %v1110_v43  ;;  %v1212_v63 = vld [vmem:[%s1539_s0 + $0x1d8] sm:$0xff]  }
  0x22   :  { %v374_v25 = vsel %vm296_vm0, %v776_v9, -inf  ;;  %v376_v26 = vsel %vm296_vm0, %v808_v10, -inf  ;;  %v745_v27 = vunpack.c.h.bf16 %v1119_v52  ;;  %v382_v28 = vsel %vm296_vm0, %v617_v18, -inf  ;;  %v1224_v12 = vld [vmem:[%s1539_s0 + $0x218] sm:$0xff]  }
  0x23   :  { %v362_v29 = vmax.f32 %v360_v21, %v361_v6  ;;  %v373_v30 = vmax.f32 %v371_v23, %v372_v17  ;;  %v383_v31 = vsel %vm296_vm0, %v649_v19, -inf  ;;  %v385_v32 = vsel %vm296_vm0, %v681_v20, -inf }
  0x24   :  { %v378_v35 = vsel %vm296_vm0, %v840_v15, -inf  ;;  %v777_v36 = vunpack.c.h.bf16 %v935_v61  ;;  %v809_v37 = vunpack.c.h.bf16 %v1136_v62  ;;  %v384_v38 = vmax.f32 %v382_v28, %v383_v31 }
  0x25   :  { %v364_v40 = vmax.f32 %v362_v29, %v363_v8  ;;  %v375_v41 = vmax.f32 %v373_v30, %v374_v25  ;;  %v841_v42 = vunpack.c.h.bf16 %v1142_v0  ;;  %v387_v43 = vsel %vm296_vm0, %v713_v24, -inf }
  0x26   :  { %v873_v45 = vunpack.c.h.bf16 %v959_v11  ;;  %v386_v46 = vmax.f32 %v384_v38, %v385_v32  ;;  %v620_v47 = vunpack.c.l.bf16 %v896_v33  ;;  %v652_v48 = vunpack.c.l.bf16 %v904_v34 }
  0x27   :  { %v572_v49 = vpack.c.bf16 %v364_v40, %v364_v40  ;;  %v377_v50 = vmax.f32 %v375_v41, %v376_v26  ;;  %v389_v51 = vsel %vm296_vm0, %v745_v27, -inf  ;;  %v684_v52 = vunpack.c.l.bf16 %v912_v39  ;;  %v1255_v41 = vld [vmem:[%s1539_s0 + $0xe0] sm:$0xff]  }
  0x28   :  { %v380_v54 = vsel %vm296_vm0, %v872_v22, -inf  ;;  %v388_v55 = vmax.f32 %v386_v46, %v387_v43  ;;  %v391_v56 = vsel %vm296_vm0, %v777_v36, -inf  ;;  %v716_v57 = vunpack.c.l.bf16 %v1184_v44  ;;  %v913_v36 = vld [vmem:[%s1539_s0 + $0xa0] sm:$0xff]  }
  0x29   :  { %589 = vst.msk [vmem:[%s1540_s1 + $0xc] sm:$0xf] %vm585_vm1, %v572_v49  ;;  %v379_v60 = vmax.f32 %v377_v50, %v378_v35  ;;  %v393_v61 = vsel %vm296_vm0, %v809_v37, -inf  ;;  %v395_v62 = vsel %vm296_vm0, %v841_v42, -inf  ;;  %v399_v0 = vsel %vm296_vm0, %v620_v47, -inf  ;;  %v905_v35 = vld [vmem:[%s1539_s0 + $0x60] sm:$0xff]  }
  0x2a   :  { %v390_v1 = vmax.f32 %v388_v55, %v389_v51  ;;  %v748_v2 = vunpack.c.l.bf16 %v928_v53  ;;  %v400_v3 = vsel %vm296_vm0, %v652_v48, -inf  ;;  %v402_v4 = vsel %vm296_vm0, %v684_v52, -inf  ;;  %v1262_v46 = vld [vmem:[%s1539_s0 + $0x120] sm:$0xff]  }
  0x2b   :  { %v381_v5 = vmax.f32 %v379_v60, %v380_v54  ;;  %v397_v6 = vsel %vm296_vm0, %v873_v45, -inf  ;;  %v780_v7 = vunpack.c.l.bf16 %v1196_v58  ;;  %v401_v8 = vmax.f32 %v399_v0, %v400_v3  ;;  %v1269_v55 = vld [vmem:[%s1539_s0 + $0x160] sm:$0xff]  }
  0x2c   :  { %v392_v9 = vmax.f32 %v390_v1, %v391_v56  ;;  %v812_v10 = vunpack.c.l.bf16 %v1201_v59  ;;  %v844_v11 = vunpack.c.l.bf16 %v1212_v63  ;;  %v404_v13 = vsel %vm296_vm0, %v716_v57, -inf  ;;  %v1282_v60 = vld [vmem:[%s1539_s0 + $0x1a0] sm:$0xff]  }
  0x2d   :  { %v573_v14 = vpack.c.bf16 %v381_v5, %v381_v5  ;;  %v403_v15 = vmax.f32 %v401_v8, %v402_v4  ;;  %v621_v16 = vunpack.c.h.bf16 %v896_v33  ;;  %v653_v17 = vunpack.c.h.bf16 %v904_v34  ;;  %v897_v34 = vld [vmem:[%s1539_s0 + $0x20] sm:$0xff]  }
  0x2e   :  { %v394_v18 = vmax.f32 %v392_v9, %v393_v61  ;;  %v406_v19 = vsel %vm296_vm0, %v748_v2, -inf  ;;  %v685_v20 = vunpack.c.h.bf16 %v912_v39  ;;  %v717_v21 = vunpack.c.h.bf16 %v1184_v44  ;;  %v961_v9 = vld [vmem:[%s1539_s0 + $0x220] sm:$0xff]  }
  0x2f   :  { %590 = vst.msk [vmem:[%s1540_s1 + $0x10] sm:$0xf] %vm585_vm1, %v573_v14  ;;  %v876_v22 = vunpack.c.l.bf16 %v1224_v12  ;;  %v405_v23 = vmax.f32 %v403_v15, %v404_v13  ;;  %v408_v24 = vsel %vm296_vm0, %v780_v7, -inf  ;;  %v749_v25 = vunpack.c.h.bf16 %v928_v53 }
  0x30   :  { %v396_v26 = vmax.f32 %v394_v18, %v395_v62  ;;  %v410_v27 = vsel %vm296_vm0, %v812_v10, -inf  ;;  %v416_v28 = vsel %vm296_vm0, %v621_v16, -inf  ;;  %v417_v29 = vsel %vm296_vm0, %v653_v17, -inf }
  0x31   :  { %v407_v30 = vmax.f32 %v405_v23, %v406_v19  ;;  %v412_v31 = vsel %vm296_vm0, %v844_v11, -inf  ;;  %v418_v32 = vmax.f32 %v416_v28, %v417_v29  ;;  %v419_v33 = vsel %vm296_vm0, %v685_v20, -inf }
  0x32   :  { %v398_v37 = vmax.f32 %v396_v26, %v397_v6  ;;  %v781_v38 = vunpack.c.h.bf16 %v1196_v58  ;;  %v813_v39 = vunpack.c.h.bf16 %v1201_v59  ;;  %v421_v40 = vsel %vm296_vm0, %v717_v21, -inf }
  0x33   :  { %v409_v42 = vmax.f32 %v407_v30, %v408_v24  ;;  %v845_v43 = vunpack.c.h.bf16 %v1212_v63  ;;  %v420_v44 = vmax.f32 %v418_v32, %v419_v33  ;;  %v423_v45 = vsel %vm296_vm0, %v749_v25, -inf  ;;  %v1287_v63 = vld [vmem:[%s1539_s0 + $0x1e0] sm:$0xff]  }
  0x34   :  { %v574_v47 = vpack.c.bf16 %v398_v37, %v398_v37  ;;  %v624_v48 = vunpack.c.l.bf16 %v897_v34  ;;  %v656_v49 = vunpack.c.l.bf16 %v905_v35  ;;  %v688_v50 = vunpack.c.l.bf16 %v913_v36  ;;  %v914_v37 = vld [vmem:[%s1539_s0 + $0xa8] sm:$0xff]  }
  0x35   :  { %v411_v51 = vmax.f32 %v409_v42, %v410_v27  ;;  %v414_v52 = vsel %vm296_vm0, %v876_v22, -inf  ;;  %v422_v53 = vmax.f32 %v420_v44, %v421_v40  ;;  %v720_v54 = vunpack.c.l.bf16 %v1255_v41  ;;  %v1330_v42 = vld [vmem:[%s1539_s0 + $0xe8] sm:$0xff]  }
  0x36   :  { %591 = vst.msk [vmem:[%s1540_s1 + $0x14] sm:$0xf] %vm585_vm1, %v574_v47  ;;  %v877_v56 = vunpack.c.h.bf16 %v1224_v12  ;;  %v425_v57 = vsel %vm296_vm0, %v781_v38, -inf  ;;  %v427_v58 = vsel %vm296_vm0, %v813_v39, -inf  ;;  %v752_v59 = vunpack.c.l.bf16 %v1262_v46 }
  0x37   :  { %v413_v61 = vmax.f32 %v411_v51, %v412_v31  ;;  %v424_v62 = vmax.f32 %v422_v53, %v423_v45  ;;  %v433_v0 = vsel %vm296_vm0, %v624_v48, -inf  ;;  %v434_v1 = vsel %vm296_vm0, %v656_v49, -inf  ;;  %v898_v31 = vld [vmem:[%s1539_s0 + $0x28] sm:$0xff]  }
  0x38   :  { %v429_v2 = vsel %vm296_vm0, %v845_v43, -inf  ;;  %v784_v3 = vunpack.c.l.bf16 %v1269_v55  ;;  %v435_v4 = vmax.f32 %v433_v0, %v434_v1  ;;  %v436_v5 = vsel %vm296_vm0, %v688_v50, -inf  ;;  %v930_v51 = vld [vmem:[%s1539_s0 + $0x128] sm:$0xff]  }
  0x39   :  { %v415_v6 = vmax.f32 %v413_v61, %v414_v52  ;;  %v426_v7 = vmax.f32 %v424_v62, %v425_v57  ;;  %v816_v8 = vunpack.c.l.bf16 %v1282_v60  ;;  %v438_v10 = vsel %vm296_vm0, %v720_v54, -inf  ;;  %v1358_v61 = vld [vmem:[%s1539_s0 + $0x1e8] sm:$0xff]  }
  0x3a   :  { %v848_v11 = vunpack.c.l.bf16 %v1287_v63  ;;  %v437_v12 = vmax.f32 %v435_v4, %v436_v5  ;;  %v440_v13 = vsel %vm296_vm0, %v752_v59, -inf  ;;  %v625_v14 = vunpack.c.h.bf16 %v897_v34 }
  0x3b   :  { %v575_v15 = vpack.c.bf16 %v415_v6, %v415_v6  ;;  %v428_v16 = vmax.f32 %v426_v7, %v427_v58  ;;  %v657_v17 = vunpack.c.h.bf16 %v905_v35  ;;  %v689_v18 = vunpack.c.h.bf16 %v913_v36  ;;  %v906_v36 = vld [vmem:[%s1539_s0 + $0x68] sm:$0xff]  }
  0x3c   :  { %v431_v19 = vsel %vm296_vm0, %v877_v56, -inf  ;;  %v880_v20 = vunpack.c.l.bf16 %v961_v9  ;;  %v439_v21 = vmax.f32 %v437_v12, %v438_v10  ;;  %v721_v22 = vunpack.c.h.bf16 %v1255_v41  ;;  %v1346_v56 = vld [vmem:[%s1539_s0 + $0x168] sm:$0xff]  }
  0x3d   :  { %592 = vst.msk [vmem:[%s1540_s1 + $0x18] sm:$0xf] %vm585_vm1, %v575_v15  ;;  %v430_v23 = vmax.f32 %v428_v16, %v429_v2  ;;  %v442_v24 = vsel %vm296_vm0, %v784_v3, -inf  ;;  %v444_v25 = vsel %vm296_vm0, %v816_v8, -inf  ;;  %v753_v26 = vunpack.c.h.bf16 %v1262_v46  ;;  %v1370_v10 = vld [vmem:[%s1539_s0 + $0x228] sm:$0xff]  }
  0x3e   :  { %v441_v27 = vmax.f32 %v439_v21, %v440_v13  ;;  %v450_v28 = vsel %vm296_vm0, %v625_v14, -inf  ;;  %v451_v29 = vsel %vm296_vm0, %v657_v17, -inf  ;;  %v453_v30 = vsel %vm296_vm0, %v689_v18, -inf }
  0x3f   :  { %v432_v32 = vmax.f32 %v430_v23, %v431_v19  ;;  %v446_v33 = vsel %vm296_vm0, %v848_v11, -inf  ;;  %v785_v34 = vunpack.c.h.bf16 %v1269_v55  ;;  %v452_v35 = vmax.f32 %v450_v28, %v451_v29 }
  0x40   :  { %v443_v38 = vmax.f32 %v441_v27, %v442_v24  ;;  %v817_v39 = vunpack.c.h.bf16 %v1282_v60  ;;  %v849_v40 = vunpack.c.h.bf16 %v1287_v63  ;;  %v455_v41 = vsel %vm296_vm0, %v721_v22, -inf  ;;  %v1353_v60 = vld [vmem:[%s1539_s0 + $0x1a8] sm:$0xff]  }
  0x41   :  { %v576_v43 = vpack.c.bf16 %v432_v32, %v432_v32  ;;  %v881_v44 = vunpack.c.h.bf16 %v961_v9  ;;  %v454_v45 = vmax.f32 %v452_v35, %v453_v30  ;;  %v628_v46 = vunpack.c.l.bf16 %v898_v31  ;;  %v899_v32 = vld [vmem:[%s1539_s0 + $0x30] sm:$0xff]  }
  0x42   :  { %v445_v47 = vmax.f32 %v443_v38, %v444_v25  ;;  %v457_v48 = vsel %vm296_vm0, %v753_v26, -inf  ;;  %v660_v49 = vunpack.c.l.bf16 %v906_v36  ;;  %v692_v50 = vunpack.c.l.bf16 %v914_v37 }
  0x43   :  { %593 = vst.msk [vmem:[%s1540_s1 + $0x1c] sm:$0xf] %vm585_vm1, %v576_v43  ;;  %v448_v52 = vsel %vm296_vm0, %v880_v20, -inf  ;;  %v456_v53 = vmax.f32 %v454_v45, %v455_v41  ;;  %v459_v54 = vsel %vm296_vm0, %v785_v34, -inf  ;;  %v724_v55 = vunpack.c.l.bf16 %v1330_v42  ;;  %v915_v34 = vld [vmem:[%s1539_s0 + $0xb0] sm:$0xff]  }
  0x44   :  { %v447_v57 = vmax.f32 %v445_v47, %v446_v33  ;;  %v461_v58 = vsel %vm296_vm0, %v817_v39, -inf  ;;  %v463_v59 = vsel %vm296_vm0, %v849_v40, -inf  ;;  %v467_v62 = vsel %vm296_vm0, %v628_v46, -inf  ;;  %v907_v33 = vld [vmem:[%s1539_s0 + $0x70] sm:$0xff]  }
  0x45   :  { %v458_v63 = vmax.f32 %v456_v53, %v457_v48  ;;  %v756_v0 = vunpack.c.l.bf16 %v930_v51  ;;  %v468_v1 = vsel %vm296_vm0, %v660_v49, -inf  ;;  %v470_v2 = vsel %vm296_vm0, %v692_v50, -inf  ;;  %v1401_v39 = vld [vmem:[%s1539_s0 + $0xf0] sm:$0xff]  }
  0x46   :  { %v449_v3 = vmax.f32 %v447_v57, %v448_v52  ;;  %v465_v4 = vsel %vm296_vm0, %v881_v44, -inf  ;;  %v788_v5 = vunpack.c.l.bf16 %v1346_v56  ;;  %v469_v6 = vmax.f32 %v467_v62, %v468_v1  ;;  %v1408_v44 = vld [vmem:[%s1539_s0 + $0x130] sm:$0xff]  }
  0x47   :  { %v460_v7 = vmax.f32 %v458_v63, %v459_v54  ;;  %v820_v8 = vunpack.c.l.bf16 %v1353_v60  ;;  %v852_v9 = vunpack.c.l.bf16 %v1358_v61  ;;  %v472_v11 = vsel %vm296_vm0, %v724_v55, -inf }
  0x48   :  { %v577_v12 = vpack.c.bf16 %v449_v3, %v449_v3  ;;  %v471_v13 = vmax.f32 %v469_v6, %v470_v2  ;;  %v629_v14 = vunpack.c.h.bf16 %v898_v31  ;;  %v661_v15 = vunpack.c.h.bf16 %v906_v36 }
  0x49   :  { %v462_v16 = vmax.f32 %v460_v7, %v461_v58  ;;  %v474_v17 = vsel %vm296_vm0, %v756_v0, -inf  ;;  %v693_v18 = vunpack.c.h.bf16 %v914_v37  ;;  %v725_v19 = vunpack.c.h.bf16 %v1330_v42 }
  0x4a   :  { %594 = vst.msk [vmem:[%s1540_s1 + $0x20] sm:$0xf] %vm585_vm1, %v577_v12  ;;  %v884_v20 = vunpack.c.l.bf16 %v1370_v10  ;;  %v473_v21 = vmax.f32 %v471_v13, %v472_v11  ;;  %v476_v22 = vsel %vm296_vm0, %v788_v5, -inf  ;;  %v757_v23 = vunpack.c.h.bf16 %v930_v51  ;;  %v1438_v5 = vld [vmem:[%s1539_s0 + $0x1f0] sm:$0xff]  }
  0x4b   :  { %v464_v24 = vmax.f32 %v462_v16, %v463_v59  ;;  %v478_v25 = vsel %vm296_vm0, %v820_v8, -inf  ;;  %v484_v26 = vsel %vm296_vm0, %v629_v14, -inf  ;;  %v485_v27 = vsel %vm296_vm0, %v661_v15, -inf  ;;  %v1427_v59 = vld [vmem:[%s1539_s0 + $0x1b0] sm:$0xff]  }
  0x4c   :  { %v475_v28 = vmax.f32 %v473_v21, %v474_v17  ;;  %v480_v29 = vsel %vm296_vm0, %v852_v9, -inf  ;;  %v486_v30 = vmax.f32 %v484_v26, %v485_v27  ;;  %v487_v31 = vsel %vm296_vm0, %v693_v18, -inf  ;;  %v1448_v17 = vld [vmem:[%s1539_s0 + $0x230] sm:$0xff]   ;;  %v900_v27 = vld [vmem:[%s1539_s0 + $0x38] sm:$0xff]  }
  0x4d   :  { %v466_v35 = vmax.f32 %v464_v24, %v465_v4  ;;  %v789_v36 = vunpack.c.h.bf16 %v1346_v56  ;;  %v821_v37 = vunpack.c.h.bf16 %v1353_v60  ;;  %v489_v38 = vsel %vm296_vm0, %v725_v19, -inf  ;;  %v1422_v56 = vld [vmem:[%s1539_s0 + $0x170] sm:$0xff]  }
  0x4e   :  { %v477_v40 = vmax.f32 %v475_v28, %v476_v22  ;;  %v853_v41 = vunpack.c.h.bf16 %v1358_v61  ;;  %v488_v42 = vmax.f32 %v486_v30, %v487_v31  ;;  %v491_v43 = vsel %vm296_vm0, %v757_v23, -inf }
  0x4f   :  { %v578_v45 = vpack.c.bf16 %v466_v35, %v466_v35  ;;  %v632_v46 = vunpack.c.l.bf16 %v899_v32  ;;  %v664_v47 = vunpack.c.l.bf16 %v907_v33  ;;  %v696_v48 = vunpack.c.l.bf16 %v915_v34 }
  0x50   :  { %v479_v49 = vmax.f32 %v477_v40, %v478_v25  ;;  %v490_v50 = vmax.f32 %v488_v42, %v489_v38  ;;  %v728_v51 = vunpack.c.l.bf16 %v1401_v39  ;;  %v482_v52 = vsel %vm296_vm0, %v884_v20, -inf  ;;  %v924_v38 = vld [vmem:[%s1539_s0 + $0xf8] sm:$0xff]  }
  0x51   :  { %595 = vst.msk [vmem:[%s1540_s1 + $0x24] sm:$0xf] %vm585_vm1, %v578_v45  ;;  %v885_v53 = vunpack.c.h.bf16 %v1370_v10  ;;  %v493_v54 = vsel %vm296_vm0, %v789_v36, -inf  ;;  %v760_v55 = vunpack.c.l.bf16 %v1408_v44  ;;  %v501_v60 = vsel %vm296_vm0, %v632_v46, -inf }
  0x52   :  { %v481_v57 = vmax.f32 %v479_v49, %v480_v29  ;;  %v492_v58 = vmax.f32 %v490_v50, %v491_v43  ;;  %v502_v61 = vsel %vm296_vm0, %v664_v47, -inf  ;;  %v495_v62 = vsel %vm296_vm0, %v821_v37, -inf  ;;  %v932_v47 = vld [vmem:[%s1539_s0 + $0x138] sm:$0xff]  }
  0x53   :  { %v497_v63 = vsel %vm296_vm0, %v853_v41, -inf  ;;  %v503_v0 = vmax.f32 %v501_v60, %v502_v61  ;;  %v504_v1 = vsel %vm296_vm0, %v696_v48, -inf  ;;  %v792_v4 = vunpack.c.l.bf16 %v1422_v56 }
  0x54   :  { %v483_v2 = vmax.f32 %v481_v57, %v482_v52  ;;  %v494_v3 = vmax.f32 %v492_v58, %v493_v54  ;;  %v506_v6 = vsel %vm296_vm0, %v728_v51, -inf  ;;  %v824_v7 = vunpack.c.l.bf16 %v1427_v59  ;;  %v940_v52 = vld [vmem:[%s1539_s0 + $0x178] sm:$0xff]  }
  0x55   :  { %v505_v8 = vmax.f32 %v503_v0, %v504_v1  ;;  %v508_v9 = vsel %vm296_vm0, %v760_v55, -inf  ;;  %v633_v10 = vunpack.c.h.bf16 %v899_v32  ;;  %v665_v13 = vunpack.c.h.bf16 %v907_v33  ;;  %v908_v32 = vld [vmem:[%s1539_s0 + $0x78] sm:$0xff]  }
  0x56   :  { %v579_v11 = vpack.c.bf16 %v483_v2, %v483_v2  ;;  %v496_v12 = vmax.f32 %v494_v3, %v495_v62  ;;  %v697_v14 = vunpack.c.h.bf16 %v915_v34  ;;  %v499_v15 = vsel %vm296_vm0, %v885_v53, -inf  ;;  %v916_v33 = vld [vmem:[%s1539_s0 + $0xb8] sm:$0xff]  }
  0x57   :  { %v856_v16 = vunpack.c.l.bf16 %v1438_v5  ;;  %v507_v18 = vmax.f32 %v505_v8, %v506_v6  ;;  %v729_v19 = vunpack.c.h.bf16 %v1401_v39  ;;  %v510_v21 = vsel %vm296_vm0, %v792_v4, -inf }
  0x58   :  { %596 = vst.msk [vmem:[%s1540_s1 + $0x28] sm:$0xf] %vm585_vm1, %v579_v11  ;;  %v498_v20 = vmax.f32 %v496_v12, %v497_v63  ;;  %v761_v22 = vunpack.c.h.bf16 %v1408_v44  ;;  %v518_v24 = vsel %vm296_vm0, %v633_v10, -inf  ;;  %v519_v25 = vsel %vm296_vm0, %v665_v13, -inf  ;;  %v964_v12 = vld [vmem:[%s1539_s0 + $0x238] sm:$0xff]  }
  0x59   :  { %v509_v23 = vmax.f32 %v507_v18, %v508_v9  ;;  %v521_v26 = vsel %vm296_vm0, %v697_v14, -inf  ;;  %v888_v29 = vunpack.c.l.bf16 %v1448_v17  ;;  %v512_v30 = vsel %vm296_vm0, %v824_v7, -inf }
  0x5a   :  { %v500_v28 = vmax.f32 %v498_v20, %v499_v15  ;;  %v520_v31 = vmax.f32 %v518_v24, %v519_v25  ;;  %v514_v35 = vsel %vm296_vm0, %v856_v16, -inf  ;;  %v793_v36 = vunpack.c.h.bf16 %v1422_v56  ;;  %v948_v56 = vld [vmem:[%s1539_s0 + $0x1b8] sm:$0xff]  }
  0x5b   :  { %v511_v34 = vmax.f32 %v509_v23, %v510_v21  ;;  %v523_v37 = vsel %vm296_vm0, %v729_v19, -inf  ;;  %v825_v40 = vunpack.c.h.bf16 %v1427_v59  ;;  %v636_v42 = vunpack.c.l.bf16 %v900_v27 }
  0x5c   :  { %v580_v39 = vpack.c.bf16 %v500_v28, %v500_v28  ;;  %v522_v41 = vmax.f32 %v520_v31, %v521_v26  ;;  %v525_v44 = vsel %vm296_vm0, %v761_v22, -inf  ;;  %v668_v45 = vunpack.c.l.bf16 %v908_v32 }
  0x5d   :  { %v513_v43 = vmax.f32 %v511_v34, %v512_v30  ;;  %v700_v46 = vunpack.c.l.bf16 %v916_v33  ;;  %v516_v48 = vsel %vm296_vm0, %v888_v29, -inf  ;;  %v857_v49 = vunpack.c.h.bf16 %v1438_v5  ;;  %v956_v5 = vld [vmem:[%s1539_s0 + $0x1f8] sm:$0xff]  }
  0x5e   :  { %597 = vst.msk [vmem:[%s1540_s1 + $0x2c] sm:$0xf] %vm585_vm1, %v580_v39  ;;  %v524_v50 = vmax.f32 %v522_v41, %v523_v37  ;;  %v732_v51 = vunpack.c.l.bf16 %v924_v38  ;;  %v889_v54 = vunpack.c.h.bf16 %v1448_v17  ;;  %v527_v55 = vsel %vm296_vm0, %v793_v36, -inf }
  0x5f   :  { %v515_v53 = vmax.f32 %v513_v43, %v514_v35  ;;  %v535_v57 = vsel %vm296_vm0, %v636_v42, -inf  ;;  %v764_v59 = vunpack.c.l.bf16 %v932_v47  ;;  %v536_v60 = vsel %vm296_vm0, %v668_v45, -inf }
  0x60   :  { %v526_v58 = vmax.f32 %v524_v50, %v525_v44  ;;  %v538_v61 = vsel %vm296_vm0, %v700_v46, -inf  ;;  %v529_v63 = vsel %vm296_vm0, %v825_v40, -inf  ;;  %v796_v0 = vunpack.c.l.bf16 %v940_v52 }
  0x61   :  { %v517_v62 = vmax.f32 %v515_v53, %v516_v48  ;;  %v537_v1 = vmax.f32 %v535_v57, %v536_v60  ;;  %v531_v3 = vsel %vm296_vm0, %v857_v49, -inf  ;;  %v828_v4 = vunpack.c.l.bf16 %v948_v56 }
  0x62   :  { %v528_v2 = vmax.f32 %v526_v58, %v527_v55  ;;  %v540_v6 = vsel %vm296_vm0, %v732_v51, -inf  ;;  %v637_v9 = vunpack.c.h.bf16 %v900_v27  ;;  %v669_v10 = vunpack.c.h.bf16 %v908_v32 }
  0x63   :  { %v581_v7 = vpack.c.bf16 %v517_v62, %v517_v62  ;;  %v539_v8 = vmax.f32 %v537_v1, %v538_v61  ;;  %v542_v13 = vsel %vm296_vm0, %v764_v59, -inf  ;;  %v701_v14 = vunpack.c.h.bf16 %v916_v33 }
  0x64   :  { %v530_v11 = vmax.f32 %v528_v2, %v529_v63  ;;  %v733_v15 = vunpack.c.h.bf16 %v924_v38  ;;  %v533_v16 = vsel %vm296_vm0, %v889_v54, -inf  ;;  %v860_v17 = vunpack.c.l.bf16 %v956_v5 }
  0x65   :  { %598 = vst.msk [vmem:[%s1540_s1 + $0x30] sm:$0xf] %vm585_vm1, %v581_v7  ;;  %v541_v18 = vmax.f32 %v539_v8, %v540_v6  ;;  %v544_v19 = vsel %vm296_vm0, %v796_v0, -inf  ;;  %v765_v21 = vunpack.c.h.bf16 %v932_v47  ;;  %v552_v22 = vsel %vm296_vm0, %v637_v9, -inf }
  0x66   :  { %v532_v20 = vmax.f32 %v530_v11, %v531_v3  ;;  %v553_v23 = vsel %vm296_vm0, %v669_v10, -inf  ;;  %v892_v24 = vunpack.c.l.bf16 %v964_v12  ;;  %v555_v27 = vsel %vm296_vm0, %v701_v14, -inf }
  0x67   :  { %v543_v25 = vmax.f32 %v541_v18, %v542_v13  ;;  %v554_v26 = vmax.f32 %v552_v22, %v553_v23  ;;  %v546_v29 = vsel %vm296_vm0, %v828_v4, -inf  ;;  %v797_v30 = vunpack.c.h.bf16 %v940_v52 }
  0x68   :  { %v534_v28 = vmax.f32 %v532_v20, %v533_v16  ;;  %v557_v31 = vsel %vm296_vm0, %v733_v15, -inf  ;;  %v548_v35 = vsel %vm296_vm0, %v860_v17, -inf  ;;  %v829_v36 = vunpack.c.h.bf16 %v948_v56 }
  0x69   :  { %v545_v32 = vmax.f32 %v543_v25, %v544_v19  ;;  %v556_v33 = vmax.f32 %v554_v26, %v555_v27  ;;  %v559_v37 = vsel %vm296_vm0, %v765_v21, -inf  ;;  %v550_v40 = vsel %vm296_vm0, %v892_v24, -inf }
  0x6a   :  { %v582_v34 = vpack.c.bf16 %v534_v28, %v534_v28  ;;  %v861_v41 = vunpack.c.h.bf16 %v956_v5  ;;  %v561_v42 = vsel %vm296_vm0, %v797_v30, -inf  ;;  %v893_v45 = vunpack.c.h.bf16 %v964_v12 }
  0x6b   :  { %v547_v38 = vmax.f32 %v545_v32, %v546_v29  ;;  %v558_v39 = vmax.f32 %v556_v33, %v557_v31  ;;  %v563_v46 = vsel %vm296_vm0, %v829_v36, -inf }
  0x6c   :  { %599 = vst.msk [vmem:[%s1540_s1 + $0x34] sm:$0xf] %vm585_vm1, %v582_v34  ;;  %v565_v49 = vsel %vm296_vm0, %v861_v41, -inf  ;;  %v567_v52 = vsel %vm296_vm0, %v893_v45, -inf }
  0x6d   :  { %v549_v43 = vmax.f32 %v547_v38, %v548_v35  ;;  %v560_v44 = vmax.f32 %v558_v39, %v559_v37 }
  0x6f   :  { %v551_v47 = vmax.f32 %v549_v43, %v550_v40  ;;  %v562_v48 = vmax.f32 %v560_v44, %v561_v42 }
  0x71   :  { %v583_v50 = vpack.c.bf16 %v551_v47, %v551_v47  ;;  %v564_v51 = vmax.f32 %v562_v48, %v563_v46 }
  0x73   :  { %600 = vst.msk [vmem:[%s1540_s1 + $0x38] sm:$0xf] %vm585_vm1, %v583_v50  ;;  %v566_v53 = vmax.f32 %v564_v51, %v565_v49 }
  0x75   :  { %v568_v54 = vmax.f32 %v566_v53, %v567_v52 }
  0x77   :  { %v584_v55 = vpack.c.bf16 %v568_v54, %v568_v54 }
  0x79   :  { %601 = vst.msk [vmem:[%s1540_s1 + $0x3c] sm:$0xf] %vm585_vm1, %v584_v55 }

// kernel: resnet18_forward.24
= control target key start
LH: loop header
LB: loop body
LE: loop exit
PB: predicated region body
PF: predicated region fallthrough
CT: control target
= control target key end

     0   :  { %s1148_s15 = smov 0   ;;  %s1150_s16 = smov 0   ;;  %s1301_s0 = inlined_call_operand.vmem [shape: bf16[128,640], index: 0, kind: input, shape index: {}]   ;;  %s1302_s1 = inlined_call_operand.vmem [shape: bf16[640,128], index: 1, kind: input, shape index: {}]   ;;  %s1303_s2 = inlined_call_operand.vmem [shape: f32[1,128], index: 2, kind: input, shape index: {}]   ;;  %s1304_s3 = inlined_call_operand.vmem [shape: f32[1,128], index: 3, kind: input, shape index: {}]   ;;  %s1305_s4 = inlined_call_operand.vmem [shape: bf16[128,128], index: 4, kind: output, shape index: {}]  }
   0x1   :  { %s1152_s17 = smov 0   ;;  %s1154_s18 = smov 0  }
   0x2   :  { %s1156_s19 = smov 0  }
   0x3 LB: > { %s26_s20 = sadd.s32 1, %s1116_s18  ;;  %p49_p1 = scmp.ne.s32.totalorder %s1108_s16, %s1104_s15  ;;  %s1120_s19 = sphi %s1156_s19, %s14_s19   ;;  %s1116_s18 = sphi %s1154_s18, %s1309_s18   ;;  %s1112_s17 = sphi %s1152_s17, %s1308_s17   ;;  %s1108_s16 = sphi %s1150_s16, %s1307_s16   ;;  %s1104_s15 = sphi %s1148_s15, %s1306_s15  }
   0x4   : > { %p27_p0 = scmp.ge.s32.totalorder %s26_s20, 5  ;;  %p50_p2 = scmp.eq.s32.totalorder %s1120_s19, 0 }
   0x5   : > { %s42_s22 = sadd.s32 1, %s1108_s16  ;;  %p875_p5 = scmp.ge.s32.totalorder %s1120_s19, 5 }
   0x6   : > { %s1311_s20 = smov (%p27_p0, %s26_s20), 0  ;;  %p51_p3 = por %p50_p2, %p49_p1 }
   0x7   : > { %s38_s21 = ssub.s32 %s1116_s18, %s1311_s20  ;;  %195 = sbr.rel (%p875_p5) target bundleno = 32 (0x20), region = 24 }
   0x8   : > { %p40_p4 = scmp.eq.s32.totalorder %s38_s21, 0 }
   0xa   : > { %s1183_s23 = scalar_select %p40_p4, %s1108_s16, %s42_s22  }
   0xc   : > { %198 = sbr.rel (!%p51_p3) target bundleno = 32 (0x20), region = 28  ;;  %s200_s24 = sand.u32 (%p51_p3), 1, %s1108_s16  }
   0xd   : > { %s877_s25 = sshll.u32 (%p51_p3), %s1116_s18, 2  ;;  %s876_s26 = sshll.u32 (%p51_p3), %s200_s24, 6 }
   0xe   : > { %s1191_s29 = scalar_lea.vmem (%p51_p3), %s1301_s0, %s877_s25  ;;  %s202_s30 = scalar_lea.vmem (%p51_p3), [#allocation3], %s876_s26 }
   0xf   : > { %v224_v0 = vld [vmem:[%s1191_s29] sm:$0xf] (%p51_p3)  ;;  %v226_v1 = vld [vmem:[%s1191_s29 + $0x14] sm:$0xf] (%p51_p3)  ;;  %v228_v2 = vld [vmem:[%s1191_s29 + $0x28] sm:$0xf] (%p51_p3) }
  0x10   : > { %225 = vst [vmem:[%s202_s30] sm:$0xf] (%p51_p3), %v224_v0  ;;  %v230_v3 = vld [vmem:[%s1191_s29 + $0x3c] sm:$0xf] (%p51_p3)  ;;  %v232_v4 = vld [vmem:[%s1191_s29 + $0x50] sm:$0xf] (%p51_p3) }
  0x11   : > { %227 = vst [vmem:[%s202_s30 + $0x4] sm:$0xf] %v226_v1  ;;  %v234_v5 = vld [vmem:[%s1191_s29 + $0x64] sm:$0xf]  ;;  %v236_v6 = vld [vmem:[%s1191_s29 + $0x78] sm:$0xf] }
  0x12   : > { %229 = vst [vmem:[%s202_s30 + $0x8] sm:$0xf] %v228_v2  ;;  %v238_v7 = vld [vmem:[%s1191_s29 + $0x8c] sm:$0xf]  ;;  %v240_v8 = vld [vmem:[%s1191_s29 + $0xa0] sm:$0xf] }
  0x13   : > { %231 = vst [vmem:[%s202_s30 + $0xc] sm:$0xf] %v230_v3  ;;  %v242_v9 = vld [vmem:[%s1191_s29 + $0xb4] sm:$0xf]  ;;  %v244_v10 = vld [vmem:[%s1191_s29 + $0xc8] sm:$0xf] }
  0x14   : > { %233 = vst [vmem:[%s202_s30 + $0x10] sm:$0xf] %v232_v4  ;;  %v246_v11 = vld [vmem:[%s1191_s29 + $0xdc] sm:$0xf]  ;;  %v248_v12 = vld [vmem:[%s1191_s29 + $0xf0] sm:$0xf] }
  0x15   : > { %235 = vst [vmem:[%s202_s30 + $0x14] sm:$0xf] %v234_v5  ;;  %v250_v13 = vld [vmem:[%s1191_s29 + $0x104] sm:$0xf]  ;;  %v252_v14 = vld [vmem:[%s1191_s29 + $0x118] sm:$0xf] }
  0x16   : > { %237 = vst [vmem:[%s202_s30 + $0x18] sm:$0xf] %v236_v6  ;;  %v254_v15 = vld [vmem:[%s1191_s29 + $0x12c] sm:$0xf] }
  0x17   : > { %239 = vst [vmem:[%s202_s30 + $0x1c] sm:$0xf] %v238_v7 }
  0x18   : > { %241 = vst [vmem:[%s202_s30 + $0x20] sm:$0xf] %v240_v8 }
  0x19   : > { %243 = vst [vmem:[%s202_s30 + $0x24] sm:$0xf] %v242_v9 }
  0x1a   : > { %245 = vst [vmem:[%s202_s30 + $0x28] sm:$0xf] %v244_v10 }
  0x1b   : > { %247 = vst [vmem:[%s202_s30 + $0x2c] sm:$0xf] %v246_v11 }
  0x1c   : > { %249 = vst [vmem:[%s202_s30 + $0x30] sm:$0xf] %v248_v12 }
  0x1d   : > { %251 = vst [vmem:[%s202_s30 + $0x34] sm:$0xf] %v250_v13 }
  0x1e   : > { %253 = vst [vmem:[%s202_s30 + $0x38] sm:$0xf] %v252_v14 }
  0x1f   : > { %255 = vst [vmem:[%s202_s30 + $0x3c] sm:$0xf] %v254_v15 }
  0x20 PF: > { %p878_p6 = scmp.ge.s32.totalorder %s1120_s19, 1  ;;  %p322_p7 = scmp.lt.s32.totalorder %s1120_s19, 6 }
  0x22   : > { %p323_p8 = pnand %p878_p6, %p322_p7 }
  0x23   : > { %s329_s5 = sand.u32 (!%p323_p8), 1, %s1104_s15   ;;  %s880_s6 = sshll.u32 (!%p323_p8), %s1112_s17, 4 }
  0x24   : > { %326 = sbr.rel (%p323_p8) target bundleno = 277 (0x115), region = 73  ;;  %s879_s7 = sshll.u32 (!%p323_p8), %s329_s5, 6 }
  0x25   : > { %p373_p9 = scmp.lt.s32.totalorder (!%p323_p8), %s880_s6, 79  ;;  %s1218_s12 = scalar_lea.vmem (!%p323_p8), [#allocation3], %s879_s7 }
  0x26   : > { %p882_p10 = scmp.ne.s32.totalorder (!%p323_p8), %s1112_s17, 0 }
  0x29   : > { %s1313_s6 = smov (!%p373_p9, %s880_s6), 79  ;;  %399 = sbr.rel (%p882_p10) target bundleno = 63 (0x3f), region = 81 }
  0x2a   : > { %s881_s8 = sshll.u32 %s1313_s6, 2 }
  0x2b   : > { %s1216_s11 = scalar_lea.vmem %s1302_s1, %s881_s8 }
  0x2e   : > { %v1122_v16 = vmov 0.0  }
  0x2f   : > { %400 = vst [vmem:[#allocation2 + $0x30] sm:$0xff] %v1122_v16 }
  0x30   : > { %401 = vst [vmem:[#allocation2] sm:$0xff] %v1122_v16 }
  0x31   : > { %402 = vst [vmem:[#allocation2 + $0x58] sm:$0xff] %v1122_v16 }
  0x32   : > { %403 = vst [vmem:[#allocation2 + $0x18] sm:$0xff] %v1122_v16 }
  0x33   : > { %404 = vst [vmem:[#allocation2 + $0x50] sm:$0xff] %v1122_v16 }
  0x34   : > { %405 = vst [vmem:[#allocation2 + $0x68] sm:$0xff] %v1122_v16 }
  0x35   : > { %406 = vst [vmem:[#allocation2 + $0x8] sm:$0xff] %v1122_v16 }
  0x36   : > { %407 = vst [vmem:[#allocation2 + $0x48] sm:$0xff] %v1122_v16 }
  0x37   : > { %408 = vst [vmem:[#allocation2 + $0x40] sm:$0xff] %v1122_v16 }
  0x38   : > { %409 = vst [vmem:[#allocation2 + $0x20] sm:$0xff] %v1122_v16 }
  0x39   : > { %410 = vst [vmem:[#allocation2 + $0x10] sm:$0xff] %v1122_v16 }
  0x3a   : > { %411 = vst [vmem:[#allocation2 + $0x38] sm:$0xff] %v1122_v16 }
  0x3b   : > { %412 = vst [vmem:[#allocation2 + $0x60] sm:$0xff] %v1122_v16 }
  0x3c   : > { %413 = vst [vmem:[#allocation2 + $0x70] sm:$0xff] %v1122_v16 }
  0x3d   : > { %414 = vst [vmem:[#allocation2 + $0x78] sm:$0xff] %v1122_v16 }
  0x3e   : > { %415 = vst [vmem:[#allocation2 + $0x28] sm:$0xff] %v1122_v16 }
  0x3f PF: > { %v967_v17 = vld [vmem:[%s1216_s11 + $0x38] sm:$0xff]  ;;  %v966_v18 = vld [vmem:[%s1216_s11 + $0x30] sm:$0xff]  ;;  %v965_v19 = vld [vmem:[%s1216_s11 + $0x28] sm:$0xff]  ;;  %p947_p11 = scmp.ne.s32.totalorder %s1112_s17, 4 }
  0x40   : > { %560 = vmatpush.bf16.msra.mxu0 %v967_v17  ;;  %1015 = vmatpush.bf16.msra.mxu1 %v967_v17  ;;  %v964_v20 = vld [vmem:[%s1216_s11 + $0x20] sm:$0xff]  ;;  %v963_v21 = vld [vmem:[%s1216_s11 + $0x18] sm:$0xff]  ;;  %v962_v22 = vld [vmem:[%s1216_s11 + $0x10] sm:$0xff] }
  0x41   : > { %1016 = vmatpush.bf16.msra.mxu2 %v967_v17  ;;  %1017 = vmatpush.bf16.msra.mxu3 %v967_v17  ;;  %v961_v23 = vld [vmem:[%s1216_s11 + $0x8] sm:$0xff]  ;;  %v960_v24 = vld [vmem:[%s1216_s11] sm:$0xff]  ;;  %v954_v26 = vld [vmem:[%s1218_s12 + $0x10] sm:$0xff] }
  0x42   : > { %v952_v25 = vld [vmem:[%s1218_s12] sm:$0xff]  ;;  %v958_v28 = vld [vmem:[%s1218_s12 + $0x30] sm:$0xff]  ;;  %v953_v29 = vld [vmem:[%s1218_s12 + $0x8] sm:$0xff] }
  0x43   : > { %v956_v27 = vld [vmem:[%s1218_s12 + $0x20] sm:$0xff]  ;;  %v955_v30 = vld [vmem:[%s1218_s12 + $0x18] sm:$0xff]  ;;  %v957_v31 = vld [vmem:[%s1218_s12 + $0x28] sm:$0xff] }
  0x44   : > { %561 = vmatpush.bf16.msra.mxu0 %v966_v18  ;;  %1018 = vmatpush.bf16.msra.mxu1 %v966_v18  ;;  %v959_v32 = vld [vmem:[%s1218_s12 + $0x38] sm:$0xff]  ;;  %v416_v33 = vld [vmem:[#allocation2 + $0x30] sm:$0xff]  ;;  %v424_v39 = vld [vmem:[#allocation2 + $0x40] sm:$0xff] }
  0x45   : > { %1019 = vmatpush.bf16.msra.mxu2 %v966_v18  ;;  %1020 = vmatpush.bf16.msra.mxu3 %v966_v18  ;;  %v420_v34 = vld [vmem:[#allocation2 + $0x50] sm:$0xff]  ;;  %v428_v40 = vld [vmem:[#allocation2 + $0x60] sm:$0xff]  ;;  %v421_v42 = vld [vmem:[#allocation2 + $0x68] sm:$0xff] }
  0x46   : > { %v417_v41 = vld [vmem:[#allocation2] sm:$0xff]  ;;  %v429_v52 = vld [vmem:[#allocation2 + $0x70] sm:$0xff]  ;;  %v418_v53 = vld [vmem:[#allocation2 + $0x58] sm:$0xff] }
  0x47   : > { %v425_v51 = vld [vmem:[#allocation2 + $0x20] sm:$0xff]  ;;  %v422_v54 = vld [vmem:[#allocation2 + $0x8] sm:$0xff]  ;;  %v426_v63 = vld [vmem:[#allocation2 + $0x10] sm:$0xff] }
  0x48   : > { %562 = vmatpush.bf16.msra.mxu0 %v965_v19  ;;  %1021 = vmatpush.bf16.msra.mxu1 %v965_v19  ;;  %v430_v0 = vld [vmem:[#allocation2 + $0x78] sm:$0xff]  ;;  %v423_v2 = vld [vmem:[#allocation2 + $0x48] sm:$0xff] }
  0x49   : > { %1022 = vmatpush.bf16.msra.mxu2 %v965_v19  ;;  %1023 = vmatpush.bf16.msra.mxu3 %v965_v19  ;;  %v419_v1 = vld [vmem:[#allocation2 + $0x18] sm:$0xff]  ;;  %v431_v12 = vld [vmem:[#allocation2 + $0x28] sm:$0xff] }
  0x4a   : > { %v427_v11 = vld [vmem:[#allocation2 + $0x38] sm:$0xff] }
  0x4c   : > { %563 = vmatpush.bf16.msra.mxu0 %v964_v20  ;;  %1024 = vmatpush.bf16.msra.mxu1 %v964_v20 }
  0x4d   : > { %1025 = vmatpush.bf16.msra.mxu2 %v964_v20  ;;  %1026 = vmatpush.bf16.msra.mxu3 %v964_v20 }
  0x50   : > { %564 = vmatpush.bf16.msra.mxu0 %v963_v21  ;;  %1027 = vmatpush.bf16.msra.mxu1 %v963_v21 }
  0x51   : > { %1028 = vmatpush.bf16.msra.mxu2 %v963_v21  ;;  %1029 = vmatpush.bf16.msra.mxu3 %v963_v21 }
  0x54   : > { %565 = vmatpush.bf16.msra.mxu0 %v962_v22  ;;  %1030 = vmatpush.bf16.msra.mxu1 %v962_v22 }
  0x55   : > { %1031 = vmatpush.bf16.msra.mxu2 %v962_v22  ;;  %1032 = vmatpush.bf16.msra.mxu3 %v962_v22 }
  0x58   : > { %566 = vmatpush.bf16.msra.mxu0 %v961_v23  ;;  %1033 = vmatpush.bf16.msra.mxu1 %v961_v23 }
  0x59   : > { %1034 = vmatpush.bf16.msra.mxu2 %v961_v23  ;;  %1035 = vmatpush.bf16.msra.mxu3 %v961_v23 }
  0x5c   : > { %567 = vmatpush.bf16.msra.mxu0 %v960_v24  ;;  %1036 = vmatpush.bf16.msra.mxu1 %v960_v24 }
  0x5d   : > { %1037 = vmatpush.bf16.msra.mxu2 %v960_v24  ;;  %1038 = vmatpush.bf16.msra.mxu3 %v960_v24 }
  0x5f   : > { %568 = vmatmul.bf16.vlgmr.msra.gmra.mxu0 %v952_v25  ;;  %578 = vmatmul.bf16.vlgmr.msra.gmra.mxu1 %v954_v26 }
  0x60   : > { %588 = vmatmul.bf16.vlgmr.msra.gmra.mxu2 %v956_v27  ;;  %598 = vmatmul.bf16.vlgmr.msra.gmra.mxu3 %v958_v28 }
  0x6f   : > { %573 = vmatmul.bf16.gmra.mxu0 %v953_v29  ;;  %583 = vmatmul.bf16.gmra.mxu1 %v955_v30 }
  0x70   : > { %593 = vmatmul.bf16.gmra.mxu2 %v957_v31  ;;  %603 = vmatmul.bf16.gmra.mxu3 %v959_v32 }
  0xdc   : > { %v569_v35 = vpop.f32.mrf.mxu0  ;;  %v579_v36 = vpop.f32.mrf.mxu1 }
  0xdd   : > { %v609_v37 = vadd.f32 %v569_v35, %v416_v33  ;;  %v613_v38 = vadd.f32 %v579_v36, %v420_v34 }
  0xdf   : > { %625 = vst [vmem:[#allocation2 + $0x30] sm:$0xff] %v609_v37 }
  0xe0   : > { %629 = vst [vmem:[#allocation2 + $0x50] sm:$0xff] %v613_v38 }
  0xe3   : > { %v589_v43 = vpop.f32.mrf.mxu2  ;;  %v599_v44 = vpop.f32.mrf.mxu3 }
  0xe4   : > { %v617_v45 = vadd.f32 %v589_v43, %v424_v39  ;;  %v621_v46 = vadd.f32 %v599_v44, %v428_v40  ;;  %v571_v47 = vpop.f32.mrf.mxu0  ;;  %v581_v48 = vpop.f32.mrf.mxu1 }
  0xe5   : > { %v610_v49 = vadd.f32 %v571_v47, %v417_v41  ;;  %v614_v50 = vadd.f32 %v581_v48, %v421_v42 }
  0xe6   : > { %633 = vst [vmem:[#allocation2 + $0x40] sm:$0xff] %v617_v45 }
  0xe7   : > { %637 = vst [vmem:[#allocation2 + $0x60] sm:$0xff] %v621_v46 }
  0xe8   : > { %626 = vst [vmem:[#allocation2] sm:$0xff] %v610_v49 }
  0xe9   : > { %630 = vst [vmem:[#allocation2 + $0x68] sm:$0xff] %v614_v50 }
  0xeb   : > { %v591_v55 = vpop.f32.mrf.mxu2  ;;  %v601_v56 = vpop.f32.mrf.mxu3 }
  0xec   : > { %v618_v57 = vadd.f32 %v591_v55, %v425_v51  ;;  %v622_v58 = vadd.f32 %v601_v56, %v429_v52  ;;  %v574_v59 = vpop.f32.mrf.mxu0  ;;  %v584_v60 = vpop.f32.mrf.mxu1 }
  0xed   : > { %v611_v61 = vadd.f32 %v574_v59, %v418_v53  ;;  %v615_v62 = vadd.f32 %v584_v60, %v422_v54 }
  0xee   : > { %634 = vst [vmem:[#allocation2 + $0x20] sm:$0xff] %v618_v57 }
  0xef   : > { %638 = vst [vmem:[#allocation2 + $0x70] sm:$0xff] %v622_v58 }
  0xf0   : > { %627 = vst [vmem:[#allocation2 + $0x58] sm:$0xff] %v611_v61 }
  0xf1   : > { %631 = vst [vmem:[#allocation2 + $0x8] sm:$0xff] %v615_v62 }
  0xf3   : > { %v594_v3 = vpop.f32.mrf.mxu2  ;;  %v604_v4 = vpop.f32.mrf.mxu3 }
  0xf4   : > { %v619_v5 = vadd.f32 %v594_v3, %v426_v63  ;;  %v623_v6 = vadd.f32 %v604_v4, %v430_v0  ;;  %v576_v7 = vpop.f32.mrf.mxu0  ;;  %v586_v8 = vpop.f32.mrf.mxu1 }
  0xf5   : > { %v612_v9 = vadd.f32 %v576_v7, %v419_v1  ;;  %v616_v10 = vadd.f32 %v586_v8, %v423_v2 }
  0xf6   : > { %635 = vst [vmem:[#allocation2 + $0x10] sm:$0xff] %v619_v5 }
  0xf7   : > { %639 = vst [vmem:[#allocation2 + $0x78] sm:$0xff] %v623_v6 }
  0xf8   : > { %628 = vst [vmem:[#allocation2 + $0x18] sm:$0xff] %v612_v9 }
  0xf9   : > { %632 = vst [vmem:[#allocation2 + $0x48] sm:$0xff] %v616_v10 }
  0xfb   : > { %v596_v13 = vpop.f32.mrf.mxu2  ;;  %v606_v14 = vpop.f32.mrf.mxu3  ;;  %644 = sbr.rel (%p947_p11) target bundleno = 277 (0x115), region = 85 }
  0xfc   : > { %v620_v15 = vadd.f32 %v596_v13, %v427_v11  ;;  %v624_v16 = vadd.f32 %v606_v14, %v431_v12 }
  0xfe   : > { %636 = vst [vmem:[#allocation2 + $0x38] sm:$0xff] %v620_v15 }
  0xff   : > { %640 = vst [vmem:[#allocation2 + $0x28] sm:$0xff] %v624_v16 }
 0x100   : > { %v645_v17 = vld [vmem:[#allocation2 + $0x30] sm:$0xff]  ;;  %v646_v18 = vld [vmem:[#allocation2] sm:$0xff]  ;;  %v647_v21 = vld [vmem:[#allocation2 + $0x58] sm:$0xff] }
 0x101   : > { %v1080_v19 = vld [vmem:[%s1303_s2] ss:$0 sm:$0xff]  ;;  %v648_v22 = vld [vmem:[#allocation2 + $0x18] sm:$0xff]  ;;  %v649_v23 = vld [vmem:[#allocation2 + $0x50] sm:$0xff] }
 0x102   : > { %v1244_v20 = vld [vmem:[%s1304_s3] ss:$0 sm:$0xff]  ;;  %v665_v24 = vmul.f32 %v1080_v19, %v645_v17  ;;  %v666_v25 = vmul.f32 %v1080_v19, %v646_v18  ;;  %v667_v26 = vmul.f32 %v1080_v19, %v647_v21  ;;  %v668_v27 = vmul.f32 %v1080_v19, %v648_v22  ;;  %v650_v28 = vld [vmem:[#allocation2 + $0x68] sm:$0xff]  ;;  %v655_v49 = vld [vmem:[#allocation2 + $0x10] sm:$0xff] }
 0x103   : > { %v651_v29 = vld [vmem:[#allocation2 + $0x8] sm:$0xff]  ;;  %v669_v31 = vmul.f32 %v1080_v19, %v649_v23  ;;  %v670_v32 = vmul.f32 %v1080_v19, %v650_v28  ;;  %v653_v43 = vld [vmem:[#allocation2 + $0x40] sm:$0xff]  ;;  %v658_v56 = vld [vmem:[#allocation2 + $0x70] sm:$0xff]  ;;  %v675_v1 = vmul.f32 %v1080_v19, %v655_v49 }
 0x104   : > { %v652_v30 = vld [vmem:[#allocation2 + $0x48] sm:$0xff]  ;;  %v671_v33 = vmul.f32 %v1080_v19, %v651_v29  ;;  %v685_v35 = vadd.f32 %v1244_v20, %v665_v24  ;;  %v686_v36 = vadd.f32 %v1244_v20, %v666_v25  ;;  %v687_v37 = vadd.f32 %v1244_v20, %v667_v26  ;;  %v654_v44 = vld [vmem:[#allocation2 + $0x20] sm:$0xff]  ;;  %v659_v61 = vld [vmem:[#allocation2 + $0x78] sm:$0xff] }
 0x105   : > { %v672_v34 = vmul.f32 %v1080_v19, %v652_v30  ;;  %v688_v38 = vadd.f32 %v1244_v20, %v668_v27  ;;  %v689_v39 = vadd.f32 %v1244_v20, %v669_v31  ;;  %v690_v40 = vadd.f32 %v1244_v20, %v670_v32  ;;  %v656_v50 = vld [vmem:[#allocation2 + $0x38] sm:$0xff]  ;;  %v657_v55 = vld [vmem:[#allocation2 + $0x60] sm:$0xff] }
 0x106   : > { %v691_v41 = vadd.f32 %v1244_v20, %v671_v33  ;;  %v701_v45 = vmax.f32 %v685_v35, 0.0  ;;  %v702_v46 = vmax.f32 %v686_v36, 0.0  ;;  %v703_v47 = vmax.f32 %v687_v37, 0.0  ;;  %v660_v62 = vld [vmem:[#allocation2 + $0x28] sm:$0xff] }
 0x107   : > { %v692_v42 = vadd.f32 %v1244_v20, %v672_v34  ;;  %v704_v48 = vmax.f32 %v688_v38, 0.0  ;;  %v705_v51 = vmax.f32 %v689_v39, 0.0  ;;  %v706_v52 = vmax.f32 %v690_v40, 0.0 }
 0x108   : > { %v707_v53 = vmax.f32 %v691_v41, 0.0  ;;  %v971_v57 = vpack.c.bf16 %v702_v46, %v701_v45  ;;  %v673_v59 = vmul.f32 %v1080_v19, %v653_v43  ;;  %v674_v60 = vmul.f32 %v1080_v19, %v654_v44 }
 0x109   : > { %v708_v54 = vmax.f32 %v692_v42, 0.0  ;;  %v976_v58 = vpack.c.bf16 %v704_v48, %v703_v47  ;;  %v981_v63 = vpack.c.bf16 %v706_v52, %v705_v51  ;;  %v676_v2 = vmul.f32 %v1080_v19, %v656_v50 }
 0x10a   : > { %972 = vst [vmem:[%s1305_s4] sm:$0xff] %v971_v57   ;;  %v693_v3 = vadd.f32 %v1244_v20, %v673_v59  ;;  %v694_v4 = vadd.f32 %v1244_v20, %v674_v60  ;;  %v677_v5 = vmul.f32 %v1080_v19, %v657_v55  ;;  %v678_v6 = vmul.f32 %v1080_v19, %v658_v56 }
 0x10b   : > { %v986_v0 = vpack.c.bf16 %v708_v54, %v707_v53  ;;  %1008 = vst [vmem:[%s1305_s4 + $0x8] sm:$0xff] %v976_v58   ;;  %v695_v7 = vadd.f32 %v1244_v20, %v675_v1  ;;  %v696_v8 = vadd.f32 %v1244_v20, %v676_v2  ;;  %v679_v9 = vmul.f32 %v1080_v19, %v659_v61 }
 0x10c   : > { %v680_v10 = vmul.f32 %v1080_v19, %v660_v62  ;;  %1009 = vst [vmem:[%s1305_s4 + $0x10] sm:$0xff] %v981_v63   ;;  %v709_v11 = vmax.f32 %v693_v3, 0.0  ;;  %v710_v12 = vmax.f32 %v694_v4, 0.0  ;;  %v697_v13 = vadd.f32 %v1244_v20, %v677_v5 }
 0x10d   : > { %v698_v14 = vadd.f32 %v1244_v20, %v678_v6  ;;  %1010 = vst [vmem:[%s1305_s4 + $0x18] sm:$0xff] %v986_v0   ;;  %v711_v15 = vmax.f32 %v695_v7, 0.0  ;;  %v712_v16 = vmax.f32 %v696_v8, 0.0  ;;  %v699_v17 = vadd.f32 %v1244_v20, %v679_v9 }
 0x10e   : > { %v700_v18 = vadd.f32 %v1244_v20, %v680_v10  ;;  %v991_v19 = vpack.c.bf16 %v710_v12, %v709_v11  ;;  %v713_v21 = vmax.f32 %v697_v13, 0.0 }
 0x10f   : > { %v714_v22 = vmax.f32 %v698_v14, 0.0  ;;  %v996_v23 = vpack.c.bf16 %v712_v16, %v711_v15  ;;  %v715_v24 = vmax.f32 %v699_v17, 0.0 }
 0x110   : > { %v716_v25 = vmax.f32 %v700_v18, 0.0  ;;  %1011 = vst [vmem:[%s1305_s4 + $0x20] sm:$0xff] %v991_v19  }
 0x111   : > { %v1001_v26 = vpack.c.bf16 %v714_v22, %v713_v21  ;;  %1012 = vst [vmem:[%s1305_s4 + $0x28] sm:$0xff] %v996_v23  }
 0x112   : > { %v1006_v27 = vpack.c.bf16 %v716_v25, %v715_v24 }
 0x113   : > { %1013 = vst [vmem:[%s1305_s4 + $0x30] sm:$0xff] %v1001_v26  }
 0x114   : > { %1014 = vst [vmem:[%s1305_s4 + $0x38] sm:$0xff] %v1006_v27  }
 0x115 PF: > { %s14_s19 = sadd.s32 1, %s1120_s19   ;;  %s1306_s15 = smov %s1108_s16 }
 0x116   : > { %p11_p12 = scmp.ge.s32.totalorder %s14_s19, 7   ;;  %s1307_s16 = smov %s1183_s23 }
 0x117   : > { %s1308_s17 = smov %s1116_s18  ;;  %s1309_s18 = smov %s1311_s20 }
 0x118   :  { %13 = sbr.rel (!%p11_p12) target bundleno = 3 (0x3), region = 129 }

// kernel: resnet18_forward.27
= control target key start
LH: loop header
LB: loop body
LE: loop exit
PB: predicated region body
PF: predicated region fallthrough
CT: control target
= control target key end

     0   :  { %10 = vsyncpa [#allocation5], 0  ;;  %s1650_s0 = inlined_call_operand.vmem [shape: bf16[128,640], index: 0, kind: input, shape index: {}]   ;;  %s1651_s1 = inlined_call_operand.vmem [shape: bf16[640,128], index: 1, kind: input, shape index: {}]   ;;  %s1652_s2 = inlined_call_operand.hbm [shape: f32[1,128], index: 2, kind: input, shape index: {}]   ;;  %s1653_s3 = inlined_call_operand.hbm [shape: f32[1,128], index: 3, kind: input, shape index: {}]   ;;  %s1654_s4 = inlined_call_operand.vmem [shape: bf16[128,128], index: 4, kind: input, shape index: {}]   ;;  %s1655_s5 = inlined_call_operand.vmem [shape: bf16[128,128], index: 5, kind: output, shape index: {}]  }
   0x1   :  { %11 = vsyncpa [#allocation7], 0  ;;  %s1426_s18 = smov 0   ;;  %s1428_s19 = smov 0  }
   0x2   :  { %s1430_s20 = smov 0   ;;  %s1432_s21 = smov 0  }
   0x3   :  { %s1434_s22 = smov 0  }
   0x4 LB: > { %s1011_s23 = sadd.s32 4294967295, %s1391_s22   ;;  %s29_s24 = sadd.s32 1, %s1387_s21  ;;  %s1391_s22 = sphi %s1434_s22, %s17_s22   ;;  %s1387_s21 = sphi %s1432_s21, %s1662_s21   ;;  %s1383_s20 = sphi %s1430_s20, %s1661_s20   ;;  %s1379_s19 = sphi %s1428_s19, %s1660_s19   ;;  %s1375_s18 = sphi %s1426_s18, %s1659_s18  }
   0x5   : > { %p30_p0 = scmp.ge.s32.totalorder %s29_s24, 5  ;;  %s45_s25 = sadd.s32 1, %s1379_s19 }
   0x6   : > { %p52_p1 = scmp.ne.s32.totalorder %s1379_s19, %s1375_s18  ;;  %p53_p2 = scmp.eq.s32.totalorder %s1391_s22, 0 }
   0x7   : > { %s1664_s24 = smov (%p30_p0, %s29_s24), 0  ;;  %p1012_p4 = scmp.ge.s32.totalorder %s1391_s22, 1 }
   0x8   : > { %p1459_p3 = por %p53_p2, %p52_p1  ;;  %s41_s27 = ssub.s32 %s1387_s21, %s1664_s24 }
   0x9   : > { %p205_p5 = scmp.lt.s32.totalorder %s1391_s22, 6  ;;  %p43_p6 = scmp.eq.s32.totalorder %s41_s27, 0 }
   0xa   : > { %p1471_p8 = scmp.eq.s32.totalorder %s1011_s23, 0  ;;  %s218_s8 = sshll.u32 %s1652_s2, 4  ;;  %s219_s8 = int_to_ptr.hbm [resolvable:$true] %s218_s8 }
   0xb   : > { %p1467_p7 = pnand %p1012_p4, %p205_p5  ;;  %s1393_s9 = smov [#allocation4]  }
   0xc   : > { %s1476_s30 = scalar_select %p43_p6, %s1379_s19, %s45_s25  }
   0xd   : > { %p1229_p9 = pneg %p1467_p7  ;;  %s220_s10 = sshll.u32 %s1393_s9, 4  ;;  %s221_s10 = int_to_ptr.vmem [resolvable:$true] %s220_s10 }
   0xe   : > { %s231_s13 = sshll.u32 %s1653_s3, 4  ;;  %s1394_s14 = smov [#allocation6]   ;;  %s232_s13 = int_to_ptr.hbm [resolvable:$true] %s231_s13 }
   0xf   : > { %p1230_p10 = pnand %p1471_p8, %p1229_p9  ;;  %s233_s15 = sshll.u32 %s1394_s14, 4  ;;  %s234_s15 = int_to_ptr.vmem [resolvable:$true] %s233_s15 }
  0x10   : > { %p1016_p11 = scmp.ge.s32.totalorder %s1391_s22, 5 }
  0x11   : > { %1232 = dma.hbm_to_vmem [thread:$0]  (!%p1230_p10), %s219_s8, 16, %s221_s10, [#allocation5]  }
  0x12   : > { %1235 = dma.hbm_to_vmem [thread:$0]  (!%p1230_p10), %s232_s13, 16, %s234_s15, [#allocation7]  }
  0x13   : > { %252 = sbr.rel (%p1016_p11) target bundleno = 44 (0x2c), region = 28 }
  0x18   : > { %255 = sbr.rel (!%p1459_p3) target bundleno = 44 (0x2c), region = 32  ;;  %s257_s16 = sand.u32 (%p1459_p3), 1, %s1379_s19  }
  0x19   : > { %s1018_s17 = sshll.u32 (%p1459_p3), %s1387_s21, 2  ;;  %s1017_s23 = sshll.u32 (%p1459_p3), %s257_s16, 6 }
  0x1a   : > { %s1496_s6 = scalar_lea.vmem (%p1459_p3), %s1650_s0, %s1018_s17  ;;  %s259_s26 = scalar_lea.vmem (%p1459_p3), [#allocation3], %s1017_s23 }
  0x1b   : > { %v281_v0 = vld [vmem:[%s1496_s6] sm:$0xf] (%p1459_p3)  ;;  %v283_v1 = vld [vmem:[%s1496_s6 + $0x14] sm:$0xf] (%p1459_p3)  ;;  %v285_v2 = vld [vmem:[%s1496_s6 + $0x28] sm:$0xf] (%p1459_p3) }
  0x1c   : > { %282 = vst [vmem:[%s259_s26] sm:$0xf] (%p1459_p3), %v281_v0  ;;  %v287_v3 = vld [vmem:[%s1496_s6 + $0x3c] sm:$0xf] (%p1459_p3)  ;;  %v289_v4 = vld [vmem:[%s1496_s6 + $0x50] sm:$0xf] (%p1459_p3) }
  0x1d   : > { %284 = vst [vmem:[%s259_s26 + $0x4] sm:$0xf] %v283_v1  ;;  %v291_v5 = vld [vmem:[%s1496_s6 + $0x64] sm:$0xf]  ;;  %v293_v6 = vld [vmem:[%s1496_s6 + $0x78] sm:$0xf] }
  0x1e   : > { %286 = vst [vmem:[%s259_s26 + $0x8] sm:$0xf] %v285_v2  ;;  %v295_v7 = vld [vmem:[%s1496_s6 + $0x8c] sm:$0xf]  ;;  %v297_v8 = vld [vmem:[%s1496_s6 + $0xa0] sm:$0xf] }
  0x1f   : > { %288 = vst [vmem:[%s259_s26 + $0xc] sm:$0xf] %v287_v3  ;;  %v299_v9 = vld [vmem:[%s1496_s6 + $0xb4] sm:$0xf]  ;;  %v301_v10 = vld [vmem:[%s1496_s6 + $0xc8] sm:$0xf] }
  0x20   : > { %290 = vst [vmem:[%s259_s26 + $0x10] sm:$0xf] %v289_v4  ;;  %v303_v11 = vld [vmem:[%s1496_s6 + $0xdc] sm:$0xf]  ;;  %v305_v12 = vld [vmem:[%s1496_s6 + $0xf0] sm:$0xf] }
  0x21   : > { %292 = vst [vmem:[%s259_s26 + $0x14] sm:$0xf] %v291_v5  ;;  %v307_v13 = vld [vmem:[%s1496_s6 + $0x104] sm:$0xf]  ;;  %v309_v14 = vld [vmem:[%s1496_s6 + $0x118] sm:$0xf] }
  0x22   : > { %294 = vst [vmem:[%s259_s26 + $0x18] sm:$0xf] %v293_v6  ;;  %v311_v15 = vld [vmem:[%s1496_s6 + $0x12c] sm:$0xf] }
  0x23   : > { %296 = vst [vmem:[%s259_s26 + $0x1c] sm:$0xf] %v295_v7 }
  0x24   : > { %298 = vst [vmem:[%s259_s26 + $0x20] sm:$0xf] %v297_v8 }
  0x25   : > { %300 = vst [vmem:[%s259_s26 + $0x24] sm:$0xf] %v299_v9 }
  0x26   : > { %302 = vst [vmem:[%s259_s26 + $0x28] sm:$0xf] %v301_v10 }
  0x27   : > { %304 = vst [vmem:[%s259_s26 + $0x2c] sm:$0xf] %v303_v11 }
  0x28   : > { %306 = vst [vmem:[%s259_s26 + $0x30] sm:$0xf] %v305_v12 }
  0x29   : > { %308 = vst [vmem:[%s259_s26 + $0x34] sm:$0xf] %v307_v13 }
  0x2a   : > { %310 = vst [vmem:[%s259_s26 + $0x38] sm:$0xf] %v309_v14 }
  0x2b   : > { %312 = vst [vmem:[%s259_s26 + $0x3c] sm:$0xf] %v311_v15 }
  0x2c PF: > { %383 = sbr.rel (%p1467_p7) target bundleno = 299 (0x12b), region = 77  ;;  %s386_s7 = sand.u32 (!%p1467_p7), 1, %s1375_s18  }
  0x2d   : > { %s1020_s8 = sshll.u32 (!%p1467_p7), %s386_s7, 6 }
  0x2e   : > { %s1517_s9 = scalar_lea.vmem (!%p1467_p7), [#allocation3], %s1020_s8 }
  0x31   : > { %1366 = dma.done.wait (%p1471_p8), [#allocation5], 16  }
  0x32   : > { %1368 = vsyncadd (%p1471_p8), [#allocation5], 4294967280 }
  0x33   : > { %1370 = dma.done.wait (%p1471_p8), [#allocation7], 16  }
  0x34   : > { %1372 = vsyncadd (%p1471_p8), [#allocation7], 4294967280  ;;  %s1023_s28 = sshll.u32 %s1383_s20, 4  ;;  %p1025_p13 = scmp.ne.s32.totalorder %s1383_s20, 0 }
  0x35   : > { %p444_p12 = scmp.lt.s32.totalorder %s1023_s28, 79 }
  0x36   : > { %473 = sbr.rel (%p1025_p13) target bundleno = 76 (0x4c), region = 93 }
  0x37   : > { %s1666_s28 = smov (!%p444_p12, %s1023_s28), 79 }
  0x38   : > { %s1024_s10 = sshll.u32 %s1666_s28, 2 }
  0x39   : > { %s1531_s12 = scalar_lea.vmem %s1651_s1, %s1024_s10 }
  0x3b   : > { %v1395_v16 = vmov 0.0  }
  0x3c   : > { %474 = vst [vmem:[#allocation2 + $0x30] sm:$0xff] %v1395_v16 }
  0x3d   : > { %475 = vst [vmem:[#allocation2] sm:$0xff] %v1395_v16 }
  0x3e   : > { %476 = vst [vmem:[#allocation2 + $0x58] sm:$0xff] %v1395_v16 }
  0x3f   : > { %477 = vst [vmem:[#allocation2 + $0x18] sm:$0xff] %v1395_v16 }
  0x40   : > { %478 = vst [vmem:[#allocation2 + $0x50] sm:$0xff] %v1395_v16 }
  0x41   : > { %479 = vst [vmem:[#allocation2 + $0x68] sm:$0xff] %v1395_v16 }
  0x42   : > { %480 = vst [vmem:[#allocation2 + $0x8] sm:$0xff] %v1395_v16 }
  0x43   : > { %481 = vst [vmem:[#allocation2 + $0x48] sm:$0xff] %v1395_v16 }
  0x44   : > { %482 = vst [vmem:[#allocation2 + $0x40] sm:$0xff] %v1395_v16 }
  0x45   : > { %483 = vst [vmem:[#allocation2 + $0x20] sm:$0xff] %v1395_v16 }
  0x46   : > { %484 = vst [vmem:[#allocation2 + $0x10] sm:$0xff] %v1395_v16 }
  0x47   : > { %485 = vst [vmem:[#allocation2 + $0x38] sm:$0xff] %v1395_v16 }
  0x48   : > { %486 = vst [vmem:[#allocation2 + $0x60] sm:$0xff] %v1395_v16 }
  0x49   : > { %487 = vst [vmem:[#allocation2 + $0x70] sm:$0xff] %v1395_v16 }
  0x4a   : > { %488 = vst [vmem:[#allocation2 + $0x78] sm:$0xff] %v1395_v16 }
  0x4b   : > { %489 = vst [vmem:[#allocation2 + $0x28] sm:$0xff] %v1395_v16 }
  0x4c PF: > { %v1110_v17 = vld [vmem:[%s1531_s12 + $0x38] sm:$0xff]  ;;  %v1109_v18 = vld [vmem:[%s1531_s12 + $0x30] sm:$0xff]  ;;  %v1108_v19 = vld [vmem:[%s1531_s12 + $0x28] sm:$0xff]  ;;  %p1090_p0 = scmp.ne.s32.totalorder %s1383_s20, 4 }
  0x4d   : > { %634 = vmatpush.bf16.msra.mxu0 %v1110_v17  ;;  %1197 = vmatpush.bf16.msra.mxu1 %v1110_v17  ;;  %v1107_v20 = vld [vmem:[%s1531_s12 + $0x20] sm:$0xff]  ;;  %v1106_v21 = vld [vmem:[%s1531_s12 + $0x18] sm:$0xff]  ;;  %v1105_v22 = vld [vmem:[%s1531_s12 + $0x10] sm:$0xff] }
  0x4e   : > { %1198 = vmatpush.bf16.msra.mxu2 %v1110_v17  ;;  %1199 = vmatpush.bf16.msra.mxu3 %v1110_v17  ;;  %v1104_v23 = vld [vmem:[%s1531_s12 + $0x8] sm:$0xff]  ;;  %v1103_v24 = vld [vmem:[%s1531_s12] sm:$0xff]  ;;  %v1097_v26 = vld [vmem:[%s1517_s9 + $0x10] sm:$0xff] }
  0x4f   : > { %v1095_v25 = vld [vmem:[%s1517_s9] sm:$0xff]  ;;  %v1101_v28 = vld [vmem:[%s1517_s9 + $0x30] sm:$0xff]  ;;  %v1096_v29 = vld [vmem:[%s1517_s9 + $0x8] sm:$0xff] }
  0x50   : > { %v1099_v27 = vld [vmem:[%s1517_s9 + $0x20] sm:$0xff]  ;;  %v1098_v30 = vld [vmem:[%s1517_s9 + $0x18] sm:$0xff]  ;;  %v1100_v31 = vld [vmem:[%s1517_s9 + $0x28] sm:$0xff] }
  0x51   : > { %635 = vmatpush.bf16.msra.mxu0 %v1109_v18  ;;  %1200 = vmatpush.bf16.msra.mxu1 %v1109_v18  ;;  %v1102_v32 = vld [vmem:[%s1517_s9 + $0x38] sm:$0xff]  ;;  %v490_v33 = vld [vmem:[#allocation2 + $0x30] sm:$0xff]  ;;  %v498_v39 = vld [vmem:[#allocation2 + $0x40] sm:$0xff] }
  0x52   : > { %1201 = vmatpush.bf16.msra.mxu2 %v1109_v18  ;;  %1202 = vmatpush.bf16.msra.mxu3 %v1109_v18  ;;  %v494_v34 = vld [vmem:[#allocation2 + $0x50] sm:$0xff]  ;;  %v502_v40 = vld [vmem:[#allocation2 + $0x60] sm:$0xff]  ;;  %v495_v42 = vld [vmem:[#allocation2 + $0x68] sm:$0xff] }
  0x53   : > { %v491_v41 = vld [vmem:[#allocation2] sm:$0xff]  ;;  %v503_v52 = vld [vmem:[#allocation2 + $0x70] sm:$0xff]  ;;  %v492_v53 = vld [vmem:[#allocation2 + $0x58] sm:$0xff] }
  0x54   : > { %v499_v51 = vld [vmem:[#allocation2 + $0x20] sm:$0xff]  ;;  %v496_v54 = vld [vmem:[#allocation2 + $0x8] sm:$0xff]  ;;  %v500_v63 = vld [vmem:[#allocation2 + $0x10] sm:$0xff] }
  0x55   : > { %636 = vmatpush.bf16.msra.mxu0 %v1108_v19  ;;  %1203 = vmatpush.bf16.msra.mxu1 %v1108_v19  ;;  %v504_v0 = vld [vmem:[#allocation2 + $0x78] sm:$0xff]  ;;  %v497_v2 = vld [vmem:[#allocation2 + $0x48] sm:$0xff] }
  0x56   : > { %1204 = vmatpush.bf16.msra.mxu2 %v1108_v19  ;;  %1205 = vmatpush.bf16.msra.mxu3 %v1108_v19  ;;  %v493_v1 = vld [vmem:[#allocation2 + $0x18] sm:$0xff]  ;;  %v505_v12 = vld [vmem:[#allocation2 + $0x28] sm:$0xff] }
  0x57   : > { %v501_v11 = vld [vmem:[#allocation2 + $0x38] sm:$0xff] }
  0x59   : > { %637 = vmatpush.bf16.msra.mxu0 %v1107_v20  ;;  %1206 = vmatpush.bf16.msra.mxu1 %v1107_v20 }
  0x5a   : > { %1207 = vmatpush.bf16.msra.mxu2 %v1107_v20  ;;  %1208 = vmatpush.bf16.msra.mxu3 %v1107_v20 }
  0x5d   : > { %638 = vmatpush.bf16.msra.mxu0 %v1106_v21  ;;  %1209 = vmatpush.bf16.msra.mxu1 %v1106_v21 }
  0x5e   : > { %1210 = vmatpush.bf16.msra.mxu2 %v1106_v21  ;;  %1211 = vmatpush.bf16.msra.mxu3 %v1106_v21 }
  0x61   : > { %639 = vmatpush.bf16.msra.mxu0 %v1105_v22  ;;  %1212 = vmatpush.bf16.msra.mxu1 %v1105_v22 }
  0x62   : > { %1213 = vmatpush.bf16.msra.mxu2 %v1105_v22  ;;  %1214 = vmatpush.bf16.msra.mxu3 %v1105_v22 }
  0x65   : > { %640 = vmatpush.bf16.msra.mxu0 %v1104_v23  ;;  %1215 = vmatpush.bf16.msra.mxu1 %v1104_v23 }
  0x66   : > { %1216 = vmatpush.bf16.msra.mxu2 %v1104_v23  ;;  %1217 = vmatpush.bf16.msra.mxu3 %v1104_v23 }
  0x69   : > { %641 = vmatpush.bf16.msra.mxu0 %v1103_v24  ;;  %1218 = vmatpush.bf16.msra.mxu1 %v1103_v24 }
  0x6a   : > { %1219 = vmatpush.bf16.msra.mxu2 %v1103_v24  ;;  %1220 = vmatpush.bf16.msra.mxu3 %v1103_v24 }
  0x6c   : > { %642 = vmatmul.bf16.vlgmr.msra.gmra.mxu0 %v1095_v25  ;;  %652 = vmatmul.bf16.vlgmr.msra.gmra.mxu1 %v1097_v26 }
  0x6d   : > { %662 = vmatmul.bf16.vlgmr.msra.gmra.mxu2 %v1099_v27  ;;  %672 = vmatmul.bf16.vlgmr.msra.gmra.mxu3 %v1101_v28 }
  0x7c   : > { %647 = vmatmul.bf16.gmra.mxu0 %v1096_v29  ;;  %657 = vmatmul.bf16.gmra.mxu1 %v1098_v30 }
  0x7d   : > { %667 = vmatmul.bf16.gmra.mxu2 %v1100_v31  ;;  %677 = vmatmul.bf16.gmra.mxu3 %v1102_v32 }
  0xe9   : > { %v643_v35 = vpop.f32.mrf.mxu0  ;;  %v653_v36 = vpop.f32.mrf.mxu1 }
  0xea   : > { %v683_v37 = vadd.f32 %v643_v35, %v490_v33  ;;  %v687_v38 = vadd.f32 %v653_v36, %v494_v34 }
  0xec   : > { %699 = vst [vmem:[#allocation2 + $0x30] sm:$0xff] %v683_v37 }
  0xed   : > { %703 = vst [vmem:[#allocation2 + $0x50] sm:$0xff] %v687_v38 }
  0xf0   : > { %v663_v43 = vpop.f32.mrf.mxu2  ;;  %v673_v44 = vpop.f32.mrf.mxu3 }
  0xf1   : > { %v691_v45 = vadd.f32 %v663_v43, %v498_v39  ;;  %v695_v46 = vadd.f32 %v673_v44, %v502_v40  ;;  %v645_v47 = vpop.f32.mrf.mxu0  ;;  %v655_v48 = vpop.f32.mrf.mxu1 }
  0xf2   : > { %v684_v49 = vadd.f32 %v645_v47, %v491_v41  ;;  %v688_v50 = vadd.f32 %v655_v48, %v495_v42 }
  0xf3   : > { %707 = vst [vmem:[#allocation2 + $0x40] sm:$0xff] %v691_v45 }
  0xf4   : > { %711 = vst [vmem:[#allocation2 + $0x60] sm:$0xff] %v695_v46 }
  0xf5   : > { %700 = vst [vmem:[#allocation2] sm:$0xff] %v684_v49 }
  0xf6   : > { %704 = vst [vmem:[#allocation2 + $0x68] sm:$0xff] %v688_v50 }
  0xf8   : > { %v665_v55 = vpop.f32.mrf.mxu2  ;;  %v675_v56 = vpop.f32.mrf.mxu3 }
  0xf9   : > { %v692_v57 = vadd.f32 %v665_v55, %v499_v51  ;;  %v696_v58 = vadd.f32 %v675_v56, %v503_v52  ;;  %v648_v59 = vpop.f32.mrf.mxu0  ;;  %v658_v60 = vpop.f32.mrf.mxu1 }
  0xfa   : > { %v685_v61 = vadd.f32 %v648_v59, %v492_v53  ;;  %v689_v62 = vadd.f32 %v658_v60, %v496_v54 }
  0xfb   : > { %708 = vst [vmem:[#allocation2 + $0x20] sm:$0xff] %v692_v57 }
  0xfc   : > { %712 = vst [vmem:[#allocation2 + $0x70] sm:$0xff] %v696_v58 }
  0xfd   : > { %701 = vst [vmem:[#allocation2 + $0x58] sm:$0xff] %v685_v61 }
  0xfe   : > { %705 = vst [vmem:[#allocation2 + $0x8] sm:$0xff] %v689_v62 }
 0x100   : > { %v668_v3 = vpop.f32.mrf.mxu2  ;;  %v678_v4 = vpop.f32.mrf.mxu3 }
 0x101   : > { %v693_v5 = vadd.f32 %v668_v3, %v500_v63  ;;  %v697_v6 = vadd.f32 %v678_v4, %v504_v0  ;;  %v650_v7 = vpop.f32.mrf.mxu0  ;;  %v660_v8 = vpop.f32.mrf.mxu1 }
 0x102   : > { %v686_v9 = vadd.f32 %v650_v7, %v493_v1  ;;  %v690_v10 = vadd.f32 %v660_v8, %v497_v2 }
 0x103   : > { %709 = vst [vmem:[#allocation2 + $0x10] sm:$0xff] %v693_v5 }
 0x104   : > { %713 = vst [vmem:[#allocation2 + $0x78] sm:$0xff] %v697_v6 }
 0x105   : > { %702 = vst [vmem:[#allocation2 + $0x18] sm:$0xff] %v686_v9 }
 0x106   : > { %706 = vst [vmem:[#allocation2 + $0x48] sm:$0xff] %v690_v10 }
 0x108   : > { %v670_v13 = vpop.f32.mrf.mxu2  ;;  %v680_v14 = vpop.f32.mrf.mxu3  ;;  %718 = sbr.rel (%p1090_p0) target bundleno = 299 (0x12b), region = 97 }
 0x109   : > { %v694_v15 = vadd.f32 %v670_v13, %v501_v11  ;;  %v698_v16 = vadd.f32 %v680_v14, %v505_v12 }
 0x10b   : > { %710 = vst [vmem:[#allocation2 + $0x38] sm:$0xff] %v694_v15 }
 0x10c   : > { %714 = vst [vmem:[#allocation2 + $0x28] sm:$0xff] %v698_v16 }
 0x10d   : > { %v719_v17 = vld [vmem:[#allocation2 + $0x30] sm:$0xff]  ;;  %v720_v18 = vld [vmem:[#allocation2] sm:$0xff]  ;;  %v721_v22 = vld [vmem:[#allocation2 + $0x58] sm:$0xff] }
 0x10e   : > { %v1551_v19 = vld [vmem:[#allocation4] ss:$0 sm:$0xff]  ;;  %v1553_v20 = vld [vmem:[#allocation6] ss:$0 sm:$0xff]  ;;  %v722_v23 = vld [vmem:[#allocation2 + $0x18] sm:$0xff] }
 0x10f   : > { %v1112_v21 = vld [vmem:[%s1654_s4] sm:$0xff]   ;;  %v739_v24 = vmul.f32 %v1551_v19, %v719_v17  ;;  %v740_v25 = vmul.f32 %v1551_v19, %v720_v18  ;;  %v1183_v28 = vld [vmem:[%s1654_s4 + $0x8] sm:$0xff]   ;;  %v723_v29 = vld [vmem:[#allocation2 + $0x50] sm:$0xff]  ;;  %v741_v31 = vmul.f32 %v1551_v19, %v721_v22  ;;  %v742_v32 = vmul.f32 %v1551_v19, %v722_v23 }
 0x110   : > { %v1113_v26 = vunpack.c.l.bf16 %v1112_v21  ;;  %v1114_v27 = vunpack.c.h.bf16 %v1112_v21  ;;  %v724_v30 = vld [vmem:[#allocation2 + $0x68] sm:$0xff]  ;;  %v1117_v33 = vunpack.c.l.bf16 %v1183_v28  ;;  %v1118_v34 = vunpack.c.h.bf16 %v1183_v28  ;;  %v1184_v35 = vld [vmem:[%s1654_s4 + $0x10] sm:$0xff]   ;;  %v1185_v54 = vld [vmem:[%s1654_s4 + $0x18] sm:$0xff]  }
 0x111   : > { %v759_v36 = vadd.f32 %v1553_v20, %v739_v24  ;;  %v760_v37 = vadd.f32 %v1553_v20, %v740_v25  ;;  %v743_v38 = vmul.f32 %v1551_v19, %v723_v29  ;;  %v744_v39 = vmul.f32 %v1551_v19, %v724_v30  ;;  %v725_v40 = vld [vmem:[#allocation2 + $0x8] sm:$0xff]  ;;  %v727_v59 = vld [vmem:[#allocation2 + $0x40] sm:$0xff]  ;;  %v729_v6 = vld [vmem:[#allocation2 + $0x10] sm:$0xff] }
 0x112   : > { %v726_v41 = vld [vmem:[#allocation2 + $0x48] sm:$0xff]  ;;  %v761_v42 = vadd.f32 %v1553_v20, %v741_v31  ;;  %v762_v43 = vadd.f32 %v1553_v20, %v742_v32  ;;  %v1121_v44 = vunpack.c.l.bf16 %v1184_v35  ;;  %v1122_v45 = vunpack.c.h.bf16 %v1184_v35  ;;  %v728_v60 = vld [vmem:[#allocation2 + $0x20] sm:$0xff]  ;;  %v730_v11 = vld [vmem:[#allocation2 + $0x38] sm:$0xff] }
 0x113   : > { %v807_v46 = vadd.f32 %v1113_v26, %v759_v36  ;;  %v808_v47 = vadd.f32 %v1114_v27, %v760_v37  ;;  %v763_v48 = vadd.f32 %v1553_v20, %v743_v38  ;;  %v764_v49 = vadd.f32 %v1553_v20, %v744_v39  ;;  %v1186_v1 = vld [vmem:[%s1654_s4 + $0x20] sm:$0xff]   ;;  %v1187_v12 = vld [vmem:[%s1654_s4 + $0x28] sm:$0xff]   ;;  %v732_v24 = vld [vmem:[#allocation2 + $0x70] sm:$0xff] }
 0x114   : > { %v809_v50 = vadd.f32 %v1117_v33, %v761_v42  ;;  %v810_v51 = vadd.f32 %v1118_v34, %v762_v43  ;;  %v745_v52 = vmul.f32 %v1551_v19, %v725_v40  ;;  %v746_v53 = vmul.f32 %v1551_v19, %v726_v41  ;;  %v731_v23 = vld [vmem:[#allocation2 + $0x60] sm:$0xff]  ;;  %v1188_v25 = vld [vmem:[%s1654_s4 + $0x30] sm:$0xff]   ;;  %v733_v38 = vld [vmem:[#allocation2 + $0x78] sm:$0xff] }
 0x115   : > { %v823_v55 = vmax.f32 %v807_v46, 0.0  ;;  %v824_v56 = vmax.f32 %v808_v47, 0.0  ;;  %v811_v57 = vadd.f32 %v1121_v44, %v763_v48  ;;  %v812_v58 = vadd.f32 %v1122_v45, %v764_v49  ;;  %v734_v39 = vld [vmem:[#allocation2 + $0x28] sm:$0xff]  ;;  %v1189_v44 = vld [vmem:[%s1654_s4 + $0x38] sm:$0xff]  }
 0x116   : > { %v825_v61 = vmax.f32 %v809_v50, 0.0  ;;  %v826_v62 = vmax.f32 %v810_v51, 0.0  ;;  %v765_v63 = vadd.f32 %v1553_v20, %v745_v52  ;;  %v766_v0 = vadd.f32 %v1553_v20, %v746_v53 }
 0x117   : > { %v1146_v2 = vpack.c.bf16 %v824_v56, %v823_v55  ;;  %v827_v3 = vmax.f32 %v811_v57, 0.0  ;;  %v828_v4 = vmax.f32 %v812_v58, 0.0  ;;  %v1125_v5 = vunpack.c.l.bf16 %v1185_v54 }
 0x118   : > { %v1151_v7 = vpack.c.bf16 %v826_v62, %v825_v61  ;;  %v1126_v8 = vunpack.c.h.bf16 %v1185_v54  ;;  %v747_v9 = vmul.f32 %v1551_v19, %v727_v59  ;;  %v748_v10 = vmul.f32 %v1551_v19, %v728_v60 }
 0x119   : > { %1147 = vst [vmem:[%s1655_s5] sm:$0xff] %v1146_v2   ;;  %v1156_v13 = vpack.c.bf16 %v828_v4, %v827_v3  ;;  %v813_v14 = vadd.f32 %v1125_v5, %v765_v63  ;;  %v1129_v15 = vunpack.c.l.bf16 %v1186_v1  ;;  %v1130_v16 = vunpack.c.h.bf16 %v1186_v1 }
 0x11a   : > { %1190 = vst [vmem:[%s1655_s5 + $0x8] sm:$0xff] %v1151_v7   ;;  %v814_v17 = vadd.f32 %v1126_v8, %v766_v0  ;;  %v767_v18 = vadd.f32 %v1553_v20, %v747_v9  ;;  %v768_v21 = vadd.f32 %v1553_v20, %v748_v10  ;;  %v749_v22 = vmul.f32 %v1551_v19, %v729_v6 }
 0x11b   : > { %1191 = vst [vmem:[%s1655_s5 + $0x10] sm:$0xff] %v1156_v13   ;;  %v829_v26 = vmax.f32 %v813_v14, 0.0  ;;  %v750_v27 = vmul.f32 %v1551_v19, %v730_v11  ;;  %v1133_v28 = vunpack.c.l.bf16 %v1187_v12  ;;  %v1134_v29 = vunpack.c.h.bf16 %v1187_v12 }
 0x11c   : > { %v830_v30 = vmax.f32 %v814_v17, 0.0  ;;  %v815_v31 = vadd.f32 %v1129_v15, %v767_v18  ;;  %v816_v32 = vadd.f32 %v1130_v16, %v768_v21  ;;  %v769_v33 = vadd.f32 %v1553_v20, %v749_v22 }
 0x11d   : > { %v770_v34 = vadd.f32 %v1553_v20, %v750_v27  ;;  %v751_v35 = vmul.f32 %v1551_v19, %v731_v23  ;;  %v752_v36 = vmul.f32 %v1551_v19, %v732_v24  ;;  %v1137_v37 = vunpack.c.l.bf16 %v1188_v25 }
 0x11e   : > { %v1161_v40 = vpack.c.bf16 %v830_v30, %v829_v26  ;;  %v831_v41 = vmax.f32 %v815_v31, 0.0  ;;  %v832_v42 = vmax.f32 %v816_v32, 0.0  ;;  %v817_v43 = vadd.f32 %v1133_v28, %v769_v33 }
 0x11f   : > { %v818_v45 = vadd.f32 %v1134_v29, %v770_v34  ;;  %v771_v46 = vadd.f32 %v1553_v20, %v751_v35  ;;  %v772_v47 = vadd.f32 %v1553_v20, %v752_v36  ;;  %v1138_v48 = vunpack.c.h.bf16 %v1188_v25 }
 0x120   : > { %1192 = vst [vmem:[%s1655_s5 + $0x18] sm:$0xff] %v1161_v40   ;;  %v1166_v49 = vpack.c.bf16 %v832_v42, %v831_v41  ;;  %v833_v50 = vmax.f32 %v817_v43, 0.0  ;;  %v753_v51 = vmul.f32 %v1551_v19, %v733_v38  ;;  %v754_v52 = vmul.f32 %v1551_v19, %v734_v39 }
 0x121   : > { %v834_v53 = vmax.f32 %v818_v45, 0.0  ;;  %v819_v54 = vadd.f32 %v1137_v37, %v771_v46  ;;  %v820_v55 = vadd.f32 %v1138_v48, %v772_v47  ;;  %v1141_v56 = vunpack.c.l.bf16 %v1189_v44 }
 0x122   : > { %1193 = vst [vmem:[%s1655_s5 + $0x20] sm:$0xff] %v1166_v49   ;;  %v773_v57 = vadd.f32 %v1553_v20, %v753_v51  ;;  %v774_v58 = vadd.f32 %v1553_v20, %v754_v52  ;;  %v1142_v59 = vunpack.c.h.bf16 %v1189_v44 }
 0x123   : > { %v1171_v60 = vpack.c.bf16 %v834_v53, %v833_v50  ;;  %v835_v61 = vmax.f32 %v819_v54, 0.0  ;;  %v836_v62 = vmax.f32 %v820_v55, 0.0 }
 0x124   : > { %v821_v63 = vadd.f32 %v1141_v56, %v773_v57  ;;  %v822_v0 = vadd.f32 %v1142_v59, %v774_v58 }
 0x125   : > { %1194 = vst [vmem:[%s1655_s5 + $0x28] sm:$0xff] %v1171_v60   ;;  %v1176_v19 = vpack.c.bf16 %v836_v62, %v835_v61 }
 0x126   : > { %v837_v1 = vmax.f32 %v821_v63, 0.0  ;;  %v838_v2 = vmax.f32 %v822_v0, 0.0 }
 0x127   : > { %1195 = vst [vmem:[%s1655_s5 + $0x30] sm:$0xff] %v1176_v19  }
 0x128   : > { %v1181_v3 = vpack.c.bf16 %v838_v2, %v837_v1 }
 0x12a   : > { %1196 = vst [vmem:[%s1655_s5 + $0x38] sm:$0xff] %v1181_v3  }
 0x12b PF: > { %s17_s22 = sadd.s32 1, %s1391_s22   ;;  %s1659_s18 = smov %s1379_s19 }
 0x12c   : > { %p14_p1 = scmp.ge.s32.totalorder %s17_s22, 7   ;;  %s1660_s19 = smov %s1476_s30 }
 0x12d   : > { %s1661_s20 = smov %s1387_s21  ;;  %s1662_s21 = smov %s1664_s24 }
 0x12e   :  { %16 = sbr.rel (!%p14_p1) target bundleno = 4 (0x4), region = 141 }
 0x133   :  { %899 = vsyncpa [#allocation5], 1 }
 0x134   :  { %901 = vsyncpa [#allocation5 + $0x1], 1 }
 0x135   :  { %902 = vsyncpa [#allocation7], 1 }

// kernel: resnet18_forward.25
= control target key start
LH: loop header
LB: loop body
LE: loop exit
PB: predicated region body
PF: predicated region fallthrough
CT: control target
= control target key end

     0   :  { %s1319_s18 = smov 0   ;;  %s1321_s19 = smov 0   ;;  %s1514_s0 = inlined_call_operand.vmem [shape: bf16[128,640], index: 0, kind: input, shape index: {}]   ;;  %s1515_s1 = inlined_call_operand.vmem [shape: bf16[640,128], index: 1, kind: input, shape index: {}]   ;;  %s1516_s2 = inlined_call_operand.vmem [shape: f32[1,128], index: 2, kind: input, shape index: {}]   ;;  %s1517_s3 = inlined_call_operand.vmem [shape: f32[1,128], index: 3, kind: input, shape index: {}]   ;;  %s1518_s4 = inlined_call_operand.vmem [shape: bf16[128,128], index: 4, kind: input, shape index: {}]   ;;  %s1519_s5 = inlined_call_operand.vmem [shape: bf16[128,128], index: 5, kind: output, shape index: {}]  }
   0x1   :  { %s1323_s20 = smov 0   ;;  %s1325_s21 = smov 0  }
   0x2   :  { %s1327_s22 = smov 0  }
   0x3 LB: > { %s27_s23 = sadd.s32 1, %s1282_s21  ;;  %p50_p1 = scmp.ne.s32.totalorder %s1274_s19, %s1270_s18  ;;  %s1286_s22 = sphi %s1327_s22, %s15_s22   ;;  %s1282_s21 = sphi %s1325_s21, %s1523_s21   ;;  %s1278_s20 = sphi %s1323_s20, %s1522_s20   ;;  %s1274_s19 = sphi %s1321_s19, %s1521_s19   ;;  %s1270_s18 = sphi %s1319_s18, %s1520_s18  }
   0x4   : > { %p28_p0 = scmp.ge.s32.totalorder %s27_s23, 5  ;;  %p51_p2 = scmp.eq.s32.totalorder %s1286_s22, 0 }
   0x5   : > { %s43_s25 = sadd.s32 1, %s1274_s19  ;;  %p1002_p5 = scmp.ge.s32.totalorder %s1286_s22, 5 }
   0x6   : > { %s1525_s23 = smov (%p28_p0, %s27_s23), 0  ;;  %p52_p3 = por %p51_p2, %p50_p1 }
   0x7   : > { %s39_s24 = ssub.s32 %s1282_s21, %s1525_s23  ;;  %236 = sbr.rel (%p1002_p5) target bundleno = 32 (0x20), region = 28 }
   0x8   : > { %p41_p4 = scmp.eq.s32.totalorder %s39_s24, 0 }
   0xa   : > { %s1354_s26 = scalar_select %p41_p4, %s1274_s19, %s43_s25  }
   0xc   : > { %239 = sbr.rel (!%p52_p3) target bundleno = 32 (0x20), region = 32  ;;  %s241_s27 = sand.u32 (%p52_p3), 1, %s1274_s19  }
   0xd   : > { %s1004_s28 = sshll.u32 (%p52_p3), %s1282_s21, 2  ;;  %s1003_s29 = sshll.u32 (%p52_p3), %s241_s27, 6 }
   0xe   : > { %s1362_s7 = scalar_lea.vmem (%p52_p3), %s1514_s0, %s1004_s28  ;;  %s243_s8 = scalar_lea.vmem (%p52_p3), [#allocation3], %s1003_s29 }
   0xf   : > { %v265_v0 = vld [vmem:[%s1362_s7] sm:$0xf] (%p52_p3)  ;;  %v267_v1 = vld [vmem:[%s1362_s7 + $0x14] sm:$0xf] (%p52_p3)  ;;  %v269_v2 = vld [vmem:[%s1362_s7 + $0x28] sm:$0xf] (%p52_p3) }
  0x10   : > { %266 = vst [vmem:[%s243_s8] sm:$0xf] (%p52_p3), %v265_v0  ;;  %v271_v3 = vld [vmem:[%s1362_s7 + $0x3c] sm:$0xf] (%p52_p3)  ;;  %v273_v4 = vld [vmem:[%s1362_s7 + $0x50] sm:$0xf] (%p52_p3) }
  0x11   : > { %268 = vst [vmem:[%s243_s8 + $0x4] sm:$0xf] %v267_v1  ;;  %v275_v5 = vld [vmem:[%s1362_s7 + $0x64] sm:$0xf]  ;;  %v277_v6 = vld [vmem:[%s1362_s7 + $0x78] sm:$0xf] }
  0x12   : > { %270 = vst [vmem:[%s243_s8 + $0x8] sm:$0xf] %v269_v2  ;;  %v279_v7 = vld [vmem:[%s1362_s7 + $0x8c] sm:$0xf]  ;;  %v281_v8 = vld [vmem:[%s1362_s7 + $0xa0] sm:$0xf] }
  0x13   : > { %272 = vst [vmem:[%s243_s8 + $0xc] sm:$0xf] %v271_v3  ;;  %v283_v9 = vld [vmem:[%s1362_s7 + $0xb4] sm:$0xf]  ;;  %v285_v10 = vld [vmem:[%s1362_s7 + $0xc8] sm:$0xf] }
  0x14   : > { %274 = vst [vmem:[%s243_s8 + $0x10] sm:$0xf] %v273_v4  ;;  %v287_v11 = vld [vmem:[%s1362_s7 + $0xdc] sm:$0xf]  ;;  %v289_v12 = vld [vmem:[%s1362_s7 + $0xf0] sm:$0xf] }
  0x15   : > { %276 = vst [vmem:[%s243_s8 + $0x14] sm:$0xf] %v275_v5  ;;  %v291_v13 = vld [vmem:[%s1362_s7 + $0x104] sm:$0xf]  ;;  %v293_v14 = vld [vmem:[%s1362_s7 + $0x118] sm:$0xf] }
  0x16   : > { %278 = vst [vmem:[%s243_s8 + $0x18] sm:$0xf] %v277_v6  ;;  %v295_v15 = vld [vmem:[%s1362_s7 + $0x12c] sm:$0xf] }
  0x17   : > { %280 = vst [vmem:[%s243_s8 + $0x1c] sm:$0xf] %v279_v7 }
  0x18   : > { %282 = vst [vmem:[%s243_s8 + $0x20] sm:$0xf] %v281_v8 }
  0x19   : > { %284 = vst [vmem:[%s243_s8 + $0x24] sm:$0xf] %v283_v9 }
  0x1a   : > { %286 = vst [vmem:[%s243_s8 + $0x28] sm:$0xf] %v285_v10 }
  0x1b   : > { %288 = vst [vmem:[%s243_s8 + $0x2c] sm:$0xf] %v287_v11 }
  0x1c   : > { %290 = vst [vmem:[%s243_s8 + $0x30] sm:$0xf] %v289_v12 }
  0x1d   : > { %292 = vst [vmem:[%s243_s8 + $0x34] sm:$0xf] %v291_v13 }
  0x1e   : > { %294 = vst [vmem:[%s243_s8 + $0x38] sm:$0xf] %v293_v14 }
  0x1f   : > { %296 = vst [vmem:[%s243_s8 + $0x3c] sm:$0xf] %v295_v15 }
  0x20 PF: > { %p1005_p6 = scmp.ge.s32.totalorder %s1286_s22, 1  ;;  %p363_p7 = scmp.lt.s32.totalorder %s1286_s22, 6 }
  0x22   : > { %p364_p8 = pnand %p1005_p6, %p363_p7 }
  0x23   : > { %s370_s9 = sand.u32 (!%p364_p8), 1, %s1270_s18   ;;  %s1007_s10 = sshll.u32 (!%p364_p8), %s1278_s20, 4 }
  0x24   : > { %367 = sbr.rel (%p364_p8) target bundleno = 286 (0x11e), region = 77  ;;  %s1006_s11 = sshll.u32 (!%p364_p8), %s370_s9, 6 }
  0x25   : > { %p424_p9 = scmp.lt.s32.totalorder (!%p364_p8), %s1007_s10, 79  ;;  %s1389_s16 = scalar_lea.vmem (!%p364_p8), [#allocation3], %s1006_s11 }
  0x26   : > { %p1009_p10 = scmp.ne.s32.totalorder (!%p364_p8), %s1278_s20, 0 }
  0x29   : > { %s1527_s10 = smov (!%p424_p9, %s1007_s10), 79  ;;  %459 = sbr.rel (%p1009_p10) target bundleno = 63 (0x3f), region = 85 }
  0x2a   : > { %s1008_s12 = sshll.u32 %s1527_s10, 2 }
  0x2b   : > { %s1387_s15 = scalar_lea.vmem %s1515_s1, %s1008_s12 }
  0x2e   : > { %v1288_v16 = vmov 0.0  }
  0x2f   : > { %460 = vst [vmem:[#allocation2 + $0x30] sm:$0xff] %v1288_v16 }
  0x30   : > { %461 = vst [vmem:[#allocation2] sm:$0xff] %v1288_v16 }
  0x31   : > { %462 = vst [vmem:[#allocation2 + $0x58] sm:$0xff] %v1288_v16 }
  0x32   : > { %463 = vst [vmem:[#allocation2 + $0x18] sm:$0xff] %v1288_v16 }
  0x33   : > { %464 = vst [vmem:[#allocation2 + $0x50] sm:$0xff] %v1288_v16 }
  0x34   : > { %465 = vst [vmem:[#allocation2 + $0x68] sm:$0xff] %v1288_v16 }
  0x35   : > { %466 = vst [vmem:[#allocation2 + $0x8] sm:$0xff] %v1288_v16 }
  0x36   : > { %467 = vst [vmem:[#allocation2 + $0x48] sm:$0xff] %v1288_v16 }
  0x37   : > { %468 = vst [vmem:[#allocation2 + $0x40] sm:$0xff] %v1288_v16 }
  0x38   : > { %469 = vst [vmem:[#allocation2 + $0x20] sm:$0xff] %v1288_v16 }
  0x39   : > { %470 = vst [vmem:[#allocation2 + $0x10] sm:$0xff] %v1288_v16 }
  0x3a   : > { %471 = vst [vmem:[#allocation2 + $0x38] sm:$0xff] %v1288_v16 }
  0x3b   : > { %472 = vst [vmem:[#allocation2 + $0x60] sm:$0xff] %v1288_v16 }
  0x3c   : > { %473 = vst [vmem:[#allocation2 + $0x70] sm:$0xff] %v1288_v16 }
  0x3d   : > { %474 = vst [vmem:[#allocation2 + $0x78] sm:$0xff] %v1288_v16 }
  0x3e   : > { %475 = vst [vmem:[#allocation2 + $0x28] sm:$0xff] %v1288_v16 }
  0x3f PF: > { %v1094_v17 = vld [vmem:[%s1387_s15 + $0x38] sm:$0xff]  ;;  %v1093_v18 = vld [vmem:[%s1387_s15 + $0x30] sm:$0xff]  ;;  %v1092_v19 = vld [vmem:[%s1387_s15 + $0x28] sm:$0xff]  ;;  %p1074_p11 = scmp.ne.s32.totalorder %s1278_s20, 4 }
  0x40   : > { %620 = vmatpush.bf16.msra.mxu0 %v1094_v17  ;;  %1181 = vmatpush.bf16.msra.mxu1 %v1094_v17  ;;  %v1091_v20 = vld [vmem:[%s1387_s15 + $0x20] sm:$0xff]  ;;  %v1090_v21 = vld [vmem:[%s1387_s15 + $0x18] sm:$0xff]  ;;  %v1089_v22 = vld [vmem:[%s1387_s15 + $0x10] sm:$0xff] }
  0x41   : > { %1182 = vmatpush.bf16.msra.mxu2 %v1094_v17  ;;  %1183 = vmatpush.bf16.msra.mxu3 %v1094_v17  ;;  %v1088_v23 = vld [vmem:[%s1387_s15 + $0x8] sm:$0xff]  ;;  %v1087_v24 = vld [vmem:[%s1387_s15] sm:$0xff]  ;;  %v1081_v26 = vld [vmem:[%s1389_s16 + $0x10] sm:$0xff] }
  0x42   : > { %v1079_v25 = vld [vmem:[%s1389_s16] sm:$0xff]  ;;  %v1085_v28 = vld [vmem:[%s1389_s16 + $0x30] sm:$0xff]  ;;  %v1080_v29 = vld [vmem:[%s1389_s16 + $0x8] sm:$0xff] }
  0x43   : > { %v1083_v27 = vld [vmem:[%s1389_s16 + $0x20] sm:$0xff]  ;;  %v1082_v30 = vld [vmem:[%s1389_s16 + $0x18] sm:$0xff]  ;;  %v1084_v31 = vld [vmem:[%s1389_s16 + $0x28] sm:$0xff] }
  0x44   : > { %621 = vmatpush.bf16.msra.mxu0 %v1093_v18  ;;  %1184 = vmatpush.bf16.msra.mxu1 %v1093_v18  ;;  %v1086_v32 = vld [vmem:[%s1389_s16 + $0x38] sm:$0xff]  ;;  %v476_v33 = vld [vmem:[#allocation2 + $0x30] sm:$0xff]  ;;  %v484_v39 = vld [vmem:[#allocation2 + $0x40] sm:$0xff] }
  0x45   : > { %1185 = vmatpush.bf16.msra.mxu2 %v1093_v18  ;;  %1186 = vmatpush.bf16.msra.mxu3 %v1093_v18  ;;  %v480_v34 = vld [vmem:[#allocation2 + $0x50] sm:$0xff]  ;;  %v488_v40 = vld [vmem:[#allocation2 + $0x60] sm:$0xff]  ;;  %v481_v42 = vld [vmem:[#allocation2 + $0x68] sm:$0xff] }
  0x46   : > { %v477_v41 = vld [vmem:[#allocation2] sm:$0xff]  ;;  %v489_v52 = vld [vmem:[#allocation2 + $0x70] sm:$0xff]  ;;  %v478_v53 = vld [vmem:[#allocation2 + $0x58] sm:$0xff] }
  0x47   : > { %v485_v51 = vld [vmem:[#allocation2 + $0x20] sm:$0xff]  ;;  %v482_v54 = vld [vmem:[#allocation2 + $0x8] sm:$0xff]  ;;  %v486_v63 = vld [vmem:[#allocation2 + $0x10] sm:$0xff] }
  0x48   : > { %622 = vmatpush.bf16.msra.mxu0 %v1092_v19  ;;  %1187 = vmatpush.bf16.msra.mxu1 %v1092_v19  ;;  %v490_v0 = vld [vmem:[#allocation2 + $0x78] sm:$0xff]  ;;  %v483_v2 = vld [vmem:[#allocation2 + $0x48] sm:$0xff] }
  0x49   : > { %1188 = vmatpush.bf16.msra.mxu2 %v1092_v19  ;;  %1189 = vmatpush.bf16.msra.mxu3 %v1092_v19  ;;  %v479_v1 = vld [vmem:[#allocation2 + $0x18] sm:$0xff]  ;;  %v491_v12 = vld [vmem:[#allocation2 + $0x28] sm:$0xff] }
  0x4a   : > { %v487_v11 = vld [vmem:[#allocation2 + $0x38] sm:$0xff] }
  0x4c   : > { %623 = vmatpush.bf16.msra.mxu0 %v1091_v20  ;;  %1190 = vmatpush.bf16.msra.mxu1 %v1091_v20 }
  0x4d   : > { %1191 = vmatpush.bf16.msra.mxu2 %v1091_v20  ;;  %1192 = vmatpush.bf16.msra.mxu3 %v1091_v20 }
  0x50   : > { %624 = vmatpush.bf16.msra.mxu0 %v1090_v21  ;;  %1193 = vmatpush.bf16.msra.mxu1 %v1090_v21 }
  0x51   : > { %1194 = vmatpush.bf16.msra.mxu2 %v1090_v21  ;;  %1195 = vmatpush.bf16.msra.mxu3 %v1090_v21 }
  0x54   : > { %625 = vmatpush.bf16.msra.mxu0 %v1089_v22  ;;  %1196 = vmatpush.bf16.msra.mxu1 %v1089_v22 }
  0x55   : > { %1197 = vmatpush.bf16.msra.mxu2 %v1089_v22  ;;  %1198 = vmatpush.bf16.msra.mxu3 %v1089_v22 }
  0x58   : > { %626 = vmatpush.bf16.msra.mxu0 %v1088_v23  ;;  %1199 = vmatpush.bf16.msra.mxu1 %v1088_v23 }
  0x59   : > { %1200 = vmatpush.bf16.msra.mxu2 %v1088_v23  ;;  %1201 = vmatpush.bf16.msra.mxu3 %v1088_v23 }
  0x5c   : > { %627 = vmatpush.bf16.msra.mxu0 %v1087_v24  ;;  %1202 = vmatpush.bf16.msra.mxu1 %v1087_v24 }
  0x5d   : > { %1203 = vmatpush.bf16.msra.mxu2 %v1087_v24  ;;  %1204 = vmatpush.bf16.msra.mxu3 %v1087_v24 }
  0x5f   : > { %628 = vmatmul.bf16.vlgmr.msra.gmra.mxu0 %v1079_v25  ;;  %638 = vmatmul.bf16.vlgmr.msra.gmra.mxu1 %v1081_v26 }
  0x60   : > { %648 = vmatmul.bf16.vlgmr.msra.gmra.mxu2 %v1083_v27  ;;  %658 = vmatmul.bf16.vlgmr.msra.gmra.mxu3 %v1085_v28 }
  0x6f   : > { %633 = vmatmul.bf16.gmra.mxu0 %v1080_v29  ;;  %643 = vmatmul.bf16.gmra.mxu1 %v1082_v30 }
  0x70   : > { %653 = vmatmul.bf16.gmra.mxu2 %v1084_v31  ;;  %663 = vmatmul.bf16.gmra.mxu3 %v1086_v32 }
  0xdc   : > { %v629_v35 = vpop.f32.mrf.mxu0  ;;  %v639_v36 = vpop.f32.mrf.mxu1 }
  0xdd   : > { %v669_v37 = vadd.f32 %v629_v35, %v476_v33  ;;  %v673_v38 = vadd.f32 %v639_v36, %v480_v34 }
  0xdf   : > { %685 = vst [vmem:[#allocation2 + $0x30] sm:$0xff] %v669_v37 }
  0xe0   : > { %689 = vst [vmem:[#allocation2 + $0x50] sm:$0xff] %v673_v38 }
  0xe3   : > { %v649_v43 = vpop.f32.mrf.mxu2  ;;  %v659_v44 = vpop.f32.mrf.mxu3 }
  0xe4   : > { %v677_v45 = vadd.f32 %v649_v43, %v484_v39  ;;  %v681_v46 = vadd.f32 %v659_v44, %v488_v40  ;;  %v631_v47 = vpop.f32.mrf.mxu0  ;;  %v641_v48 = vpop.f32.mrf.mxu1 }
  0xe5   : > { %v670_v49 = vadd.f32 %v631_v47, %v477_v41  ;;  %v674_v50 = vadd.f32 %v641_v48, %v481_v42 }
  0xe6   : > { %693 = vst [vmem:[#allocation2 + $0x40] sm:$0xff] %v677_v45 }
  0xe7   : > { %697 = vst [vmem:[#allocation2 + $0x60] sm:$0xff] %v681_v46 }
  0xe8   : > { %686 = vst [vmem:[#allocation2] sm:$0xff] %v670_v49 }
  0xe9   : > { %690 = vst [vmem:[#allocation2 + $0x68] sm:$0xff] %v674_v50 }
  0xeb   : > { %v651_v55 = vpop.f32.mrf.mxu2  ;;  %v661_v56 = vpop.f32.mrf.mxu3 }
  0xec   : > { %v678_v57 = vadd.f32 %v651_v55, %v485_v51  ;;  %v682_v58 = vadd.f32 %v661_v56, %v489_v52  ;;  %v634_v59 = vpop.f32.mrf.mxu0  ;;  %v644_v60 = vpop.f32.mrf.mxu1 }
  0xed   : > { %v671_v61 = vadd.f32 %v634_v59, %v478_v53  ;;  %v675_v62 = vadd.f32 %v644_v60, %v482_v54 }
  0xee   : > { %694 = vst [vmem:[#allocation2 + $0x20] sm:$0xff] %v678_v57 }
  0xef   : > { %698 = vst [vmem:[#allocation2 + $0x70] sm:$0xff] %v682_v58 }
  0xf0   : > { %687 = vst [vmem:[#allocation2 + $0x58] sm:$0xff] %v671_v61 }
  0xf1   : > { %691 = vst [vmem:[#allocation2 + $0x8] sm:$0xff] %v675_v62 }
  0xf3   : > { %v654_v3 = vpop.f32.mrf.mxu2  ;;  %v664_v4 = vpop.f32.mrf.mxu3 }
  0xf4   : > { %v679_v5 = vadd.f32 %v654_v3, %v486_v63  ;;  %v683_v6 = vadd.f32 %v664_v4, %v490_v0  ;;  %v636_v7 = vpop.f32.mrf.mxu0  ;;  %v646_v8 = vpop.f32.mrf.mxu1 }
  0xf5   : > { %v672_v9 = vadd.f32 %v636_v7, %v479_v1  ;;  %v676_v10 = vadd.f32 %v646_v8, %v483_v2 }
  0xf6   : > { %695 = vst [vmem:[#allocation2 + $0x10] sm:$0xff] %v679_v5 }
  0xf7   : > { %699 = vst [vmem:[#allocation2 + $0x78] sm:$0xff] %v683_v6 }
  0xf8   : > { %688 = vst [vmem:[#allocation2 + $0x18] sm:$0xff] %v672_v9 }
  0xf9   : > { %692 = vst [vmem:[#allocation2 + $0x48] sm:$0xff] %v676_v10 }
  0xfb   : > { %v656_v13 = vpop.f32.mrf.mxu2  ;;  %v666_v14 = vpop.f32.mrf.mxu3  ;;  %704 = sbr.rel (%p1074_p11) target bundleno = 286 (0x11e), region = 89 }
  0xfc   : > { %v680_v15 = vadd.f32 %v656_v13, %v487_v11  ;;  %v684_v16 = vadd.f32 %v666_v14, %v491_v12 }
  0xfe   : > { %696 = vst [vmem:[#allocation2 + $0x38] sm:$0xff] %v680_v15 }
  0xff   : > { %700 = vst [vmem:[#allocation2 + $0x28] sm:$0xff] %v684_v16 }
 0x100   : > { %v705_v17 = vld [vmem:[#allocation2 + $0x30] sm:$0xff]  ;;  %v706_v18 = vld [vmem:[#allocation2] sm:$0xff]  ;;  %v707_v22 = vld [vmem:[#allocation2 + $0x58] sm:$0xff] }
 0x101   : > { %v1412_v19 = vld [vmem:[%s1516_s2] ss:$0 sm:$0xff]  ;;  %v708_v23 = vld [vmem:[#allocation2 + $0x18] sm:$0xff]  ;;  %v1167_v28 = vld [vmem:[%s1518_s4 + $0x8] sm:$0xff]  }
 0x102   : > { %v1417_v20 = vld [vmem:[%s1517_s3] ss:$0 sm:$0xff]  ;;  %v725_v24 = vmul.f32 %v1412_v19, %v705_v17  ;;  %v726_v25 = vmul.f32 %v1412_v19, %v706_v18  ;;  %v709_v29 = vld [vmem:[#allocation2 + $0x50] sm:$0xff]  ;;  %v710_v30 = vld [vmem:[#allocation2 + $0x68] sm:$0xff]  ;;  %v727_v31 = vmul.f32 %v1412_v19, %v707_v22  ;;  %v728_v32 = vmul.f32 %v1412_v19, %v708_v23 }
 0x103   : > { %v1096_v21 = vld [vmem:[%s1518_s4] sm:$0xff]   ;;  %v1101_v33 = vunpack.c.l.bf16 %v1167_v28  ;;  %v1102_v34 = vunpack.c.h.bf16 %v1167_v28  ;;  %v1168_v35 = vld [vmem:[%s1518_s4 + $0x10] sm:$0xff]   ;;  %v729_v38 = vmul.f32 %v1412_v19, %v709_v29  ;;  %v730_v39 = vmul.f32 %v1412_v19, %v710_v30  ;;  %v711_v40 = vld [vmem:[#allocation2 + $0x8] sm:$0xff] }
 0x104   : > { %v1097_v26 = vunpack.c.l.bf16 %v1096_v21  ;;  %v1098_v27 = vunpack.c.h.bf16 %v1096_v21  ;;  %v745_v36 = vadd.f32 %v1417_v20, %v725_v24  ;;  %v746_v37 = vadd.f32 %v1417_v20, %v726_v25  ;;  %v712_v41 = vld [vmem:[#allocation2 + $0x48] sm:$0xff]  ;;  %v1169_v54 = vld [vmem:[%s1518_s4 + $0x18] sm:$0xff]   ;;  %v713_v59 = vld [vmem:[#allocation2 + $0x40] sm:$0xff] }
 0x105   : > { %v747_v42 = vadd.f32 %v1417_v20, %v727_v31  ;;  %v748_v43 = vadd.f32 %v1417_v20, %v728_v32  ;;  %v1105_v44 = vunpack.c.l.bf16 %v1168_v35  ;;  %v1106_v45 = vunpack.c.h.bf16 %v1168_v35  ;;  %v714_v60 = vld [vmem:[#allocation2 + $0x20] sm:$0xff]  ;;  %v715_v6 = vld [vmem:[#allocation2 + $0x10] sm:$0xff]  ;;  %v716_v11 = vld [vmem:[#allocation2 + $0x38] sm:$0xff] }
 0x106   : > { %v793_v46 = vadd.f32 %v1097_v26, %v745_v36  ;;  %v794_v47 = vadd.f32 %v1098_v27, %v746_v37  ;;  %v749_v48 = vadd.f32 %v1417_v20, %v729_v38  ;;  %v750_v49 = vadd.f32 %v1417_v20, %v730_v39  ;;  %v1170_v1 = vld [vmem:[%s1518_s4 + $0x20] sm:$0xff]   ;;  %v1171_v12 = vld [vmem:[%s1518_s4 + $0x28] sm:$0xff]   ;;  %v718_v24 = vld [vmem:[#allocation2 + $0x70] sm:$0xff] }
 0x107   : > { %v795_v50 = vadd.f32 %v1101_v33, %v747_v42  ;;  %v796_v51 = vadd.f32 %v1102_v34, %v748_v43  ;;  %v731_v52 = vmul.f32 %v1412_v19, %v711_v40  ;;  %v732_v53 = vmul.f32 %v1412_v19, %v712_v41  ;;  %v717_v23 = vld [vmem:[#allocation2 + $0x60] sm:$0xff]  ;;  %v1172_v25 = vld [vmem:[%s1518_s4 + $0x30] sm:$0xff]   ;;  %v719_v38 = vld [vmem:[#allocation2 + $0x78] sm:$0xff] }
 0x108   : > { %v809_v55 = vmax.f32 %v793_v46, 0.0  ;;  %v810_v56 = vmax.f32 %v794_v47, 0.0  ;;  %v797_v57 = vadd.f32 %v1105_v44, %v749_v48  ;;  %v798_v58 = vadd.f32 %v1106_v45, %v750_v49  ;;  %v720_v39 = vld [vmem:[#allocation2 + $0x28] sm:$0xff]  ;;  %v1173_v44 = vld [vmem:[%s1518_s4 + $0x38] sm:$0xff]  }
 0x109   : > { %v811_v61 = vmax.f32 %v795_v50, 0.0  ;;  %v812_v62 = vmax.f32 %v796_v51, 0.0  ;;  %v751_v63 = vadd.f32 %v1417_v20, %v731_v52  ;;  %v752_v0 = vadd.f32 %v1417_v20, %v732_v53 }
 0x10a   : > { %v1130_v2 = vpack.c.bf16 %v810_v56, %v809_v55  ;;  %v813_v3 = vmax.f32 %v797_v57, 0.0  ;;  %v814_v4 = vmax.f32 %v798_v58, 0.0  ;;  %v1109_v5 = vunpack.c.l.bf16 %v1169_v54 }
 0x10b   : > { %v1135_v7 = vpack.c.bf16 %v812_v62, %v811_v61  ;;  %v1110_v8 = vunpack.c.h.bf16 %v1169_v54  ;;  %v733_v9 = vmul.f32 %v1412_v19, %v713_v59  ;;  %v734_v10 = vmul.f32 %v1412_v19, %v714_v60 }
 0x10c   : > { %1131 = vst [vmem:[%s1519_s5] sm:$0xff] %v1130_v2   ;;  %v1140_v13 = vpack.c.bf16 %v814_v4, %v813_v3  ;;  %v799_v14 = vadd.f32 %v1109_v5, %v751_v63  ;;  %v1113_v15 = vunpack.c.l.bf16 %v1170_v1  ;;  %v1114_v16 = vunpack.c.h.bf16 %v1170_v1 }
 0x10d   : > { %1174 = vst [vmem:[%s1519_s5 + $0x8] sm:$0xff] %v1135_v7   ;;  %v800_v17 = vadd.f32 %v1110_v8, %v752_v0  ;;  %v753_v18 = vadd.f32 %v1417_v20, %v733_v9  ;;  %v754_v21 = vadd.f32 %v1417_v20, %v734_v10  ;;  %v735_v22 = vmul.f32 %v1412_v19, %v715_v6 }
 0x10e   : > { %1175 = vst [vmem:[%s1519_s5 + $0x10] sm:$0xff] %v1140_v13   ;;  %v815_v26 = vmax.f32 %v799_v14, 0.0  ;;  %v736_v27 = vmul.f32 %v1412_v19, %v716_v11  ;;  %v1117_v28 = vunpack.c.l.bf16 %v1171_v12  ;;  %v1118_v29 = vunpack.c.h.bf16 %v1171_v12 }
 0x10f   : > { %v816_v30 = vmax.f32 %v800_v17, 0.0  ;;  %v801_v31 = vadd.f32 %v1113_v15, %v753_v18  ;;  %v802_v32 = vadd.f32 %v1114_v16, %v754_v21  ;;  %v755_v33 = vadd.f32 %v1417_v20, %v735_v22 }
 0x110   : > { %v756_v34 = vadd.f32 %v1417_v20, %v736_v27  ;;  %v737_v35 = vmul.f32 %v1412_v19, %v717_v23  ;;  %v738_v36 = vmul.f32 %v1412_v19, %v718_v24  ;;  %v1121_v37 = vunpack.c.l.bf16 %v1172_v25 }
 0x111   : > { %v1145_v40 = vpack.c.bf16 %v816_v30, %v815_v26  ;;  %v817_v41 = vmax.f32 %v801_v31, 0.0  ;;  %v818_v42 = vmax.f32 %v802_v32, 0.0  ;;  %v803_v43 = vadd.f32 %v1117_v28, %v755_v33 }
 0x112   : > { %v804_v45 = vadd.f32 %v1118_v29, %v756_v34  ;;  %v757_v46 = vadd.f32 %v1417_v20, %v737_v35  ;;  %v758_v47 = vadd.f32 %v1417_v20, %v738_v36  ;;  %v1122_v48 = vunpack.c.h.bf16 %v1172_v25 }
 0x113   : > { %1176 = vst [vmem:[%s1519_s5 + $0x18] sm:$0xff] %v1145_v40   ;;  %v1150_v49 = vpack.c.bf16 %v818_v42, %v817_v41  ;;  %v819_v50 = vmax.f32 %v803_v43, 0.0  ;;  %v739_v51 = vmul.f32 %v1412_v19, %v719_v38  ;;  %v740_v52 = vmul.f32 %v1412_v19, %v720_v39 }
 0x114   : > { %v820_v53 = vmax.f32 %v804_v45, 0.0  ;;  %v805_v54 = vadd.f32 %v1121_v37, %v757_v46  ;;  %v806_v55 = vadd.f32 %v1122_v48, %v758_v47  ;;  %v1125_v56 = vunpack.c.l.bf16 %v1173_v44 }
 0x115   : > { %1177 = vst [vmem:[%s1519_s5 + $0x20] sm:$0xff] %v1150_v49   ;;  %v759_v57 = vadd.f32 %v1417_v20, %v739_v51  ;;  %v760_v58 = vadd.f32 %v1417_v20, %v740_v52  ;;  %v1126_v59 = vunpack.c.h.bf16 %v1173_v44 }
 0x116   : > { %v1155_v60 = vpack.c.bf16 %v820_v53, %v819_v50  ;;  %v821_v61 = vmax.f32 %v805_v54, 0.0  ;;  %v822_v62 = vmax.f32 %v806_v55, 0.0 }
 0x117   : > { %v807_v63 = vadd.f32 %v1125_v56, %v759_v57  ;;  %v808_v0 = vadd.f32 %v1126_v59, %v760_v58 }
 0x118   : > { %1178 = vst [vmem:[%s1519_s5 + $0x28] sm:$0xff] %v1155_v60   ;;  %v1160_v19 = vpack.c.bf16 %v822_v62, %v821_v61 }
 0x119   : > { %v823_v1 = vmax.f32 %v807_v63, 0.0  ;;  %v824_v2 = vmax.f32 %v808_v0, 0.0 }
 0x11a   : > { %1179 = vst [vmem:[%s1519_s5 + $0x30] sm:$0xff] %v1160_v19  }
 0x11b   : > { %v1165_v3 = vpack.c.bf16 %v824_v2, %v823_v1 }
 0x11d   : > { %1180 = vst [vmem:[%s1519_s5 + $0x38] sm:$0xff] %v1165_v3  }
 0x11e PF: > { %s15_s22 = sadd.s32 1, %s1286_s22   ;;  %s1520_s18 = smov %s1274_s19 }
 0x11f   : > { %p12_p12 = scmp.ge.s32.totalorder %s15_s22, 7   ;;  %s1521_s19 = smov %s1354_s26 }
 0x120   : > { %s1522_s20 = smov %s1282_s21  ;;  %s1523_s21 = smov %s1525_s23 }
 0x121   :  { %14 = sbr.rel (!%p12_p12) target bundleno = 3 (0x3), region = 136 }

// kernel: resnet18_forward.28
= control target key start
LH: loop header
LB: loop body
LE: loop exit
PB: predicated region body
PF: predicated region fallthrough
CT: control target
= control target key end

     0   :  { %9 = vsyncpa [#allocation5], 0  ;;  %s1042_s0 = inlined_call_operand.vmem [shape: bf16[32,640], index: 0, kind: input, shape index: {}]   ;;  %s1043_s1 = inlined_call_operand.vmem [shape: bf16[640,128], index: 1, kind: input, shape index: {}]   ;;  %s1044_s2 = inlined_call_operand.hbm [shape: f32[1,128], index: 2, kind: input, shape index: {}]   ;;  %s1045_s3 = inlined_call_operand.hbm [shape: f32[1,128], index: 3, kind: input, shape index: {}]   ;;  %s1046_s4 = inlined_call_operand.vmem [shape: bf16[32,128], index: 4, kind: output, shape index: {}]  }
   0x1   :  { %10 = vsyncpa [#allocation7], 0  ;;  %s927_s15 = smov 0   ;;  %s929_s16 = smov 0  }
   0x2   :  { %s931_s17 = smov 0   ;;  %s933_s18 = smov 0  }
   0x3   :  { %s935_s19 = smov 0  }
   0x4 LB: > { %s639_s20 = sadd.s32 4294967295, %s897_s19   ;;  %s28_s21 = sadd.s32 1, %s893_s18  ;;  %s897_s19 = sphi %s935_s19, %s16_s19   ;;  %s893_s18 = sphi %s933_s18, %s1053_s18   ;;  %s889_s17 = sphi %s931_s17, %s1052_s17   ;;  %s885_s16 = sphi %s929_s16, %s1051_s16   ;;  %s881_s15 = sphi %s927_s15, %s1050_s15  }
   0x5   : > { %p29_p0 = scmp.ge.s32.totalorder %s28_s21, 5  ;;  %s44_s22 = sadd.s32 1, %s885_s16 }
   0x6   : > { %p51_p1 = scmp.ne.s32.totalorder %s885_s16, %s881_s15  ;;  %p52_p2 = scmp.eq.s32.totalorder %s897_s19, 0 }
   0x7   : > { %s1055_s21 = smov (%p29_p0, %s28_s21), 0  ;;  %p640_p4 = scmp.ge.s32.totalorder %s897_s19, 1 }
   0x8   : > { %p960_p3 = por %p52_p2, %p51_p1  ;;  %s40_s24 = ssub.s32 %s893_s18, %s1055_s21 }
   0x9   : > { %p176_p5 = scmp.lt.s32.totalorder %s897_s19, 6  ;;  %p42_p6 = scmp.eq.s32.totalorder %s40_s24, 0 }
   0xa   : > { %p972_p8 = scmp.eq.s32.totalorder %s639_s20, 0  ;;  %s189_s30 = sshll.u32 %s1044_s2, 4  ;;  %s190_s30 = int_to_ptr.hbm [resolvable:$true] %s189_s30 }
   0xb   : > { %p968_p7 = pnand %p640_p4, %p176_p5  ;;  %s899_s5 = smov [#allocation4]  }
   0xc   : > { %s977_s27 = scalar_select %p42_p6, %s885_s16, %s44_s22  }
   0xd   : > { %p735_p9 = pneg %p968_p7  ;;  %s191_s6 = sshll.u32 %s899_s5, 4  ;;  %s192_s6 = int_to_ptr.vmem [resolvable:$true] %s191_s6 }
   0xe   : > { %s202_s9 = sshll.u32 %s1045_s3, 4  ;;  %s900_s10 = smov [#allocation6]   ;;  %s203_s9 = int_to_ptr.hbm [resolvable:$true] %s202_s9 }
   0xf   : > { %p736_p10 = pnand %p972_p8, %p735_p9  ;;  %s204_s11 = sshll.u32 %s900_s10, 4  ;;  %s205_s11 = int_to_ptr.vmem [resolvable:$true] %s204_s11 }
  0x10   : > { %p643_p11 = scmp.ge.s32.totalorder %s897_s19, 5 }
  0x11   : > { %738 = dma.hbm_to_vmem [thread:$0]  (!%p736_p10), %s190_s30, 16, %s192_s6, [#allocation5]  }
  0x12   : > { %741 = dma.hbm_to_vmem [thread:$0]  (!%p736_p10), %s203_s9, 16, %s205_s11, [#allocation7]  }
  0x13   : > { %211 = sbr.rel (%p643_p11) target bundleno = 32 (0x20), region = 24 }
  0x18   : > { %214 = sbr.rel (!%p960_p3) target bundleno = 32 (0x20), region = 28  ;;  %s216_s12 = sand.u32 (%p960_p3), 1, %s885_s16  }
  0x19   : > { %s645_s13 = sshll.u32 (%p960_p3), %s893_s18, 2  ;;  %s644_s14 = sshll.u32 (%p960_p3), %s216_s12, 4 }
  0x1a   : > { %s223_s24 = scalar_lea.vmem (%p960_p3), %s1042_s0, %s645_s13  ;;  %s218_s28 = scalar_lea.vmem (%p960_p3), [#allocation3], %s644_s14 }
  0x1b   : > { %v240_v0 = vld [vmem:[%s223_s24] sm:$0xf] (%p960_p3)  ;;  %v242_v1 = vld [vmem:[%s223_s24 + $0x14] sm:$0xf] (%p960_p3)  ;;  %v244_v2 = vld [vmem:[%s223_s24 + $0x28] sm:$0xf] (%p960_p3) }
  0x1c   : > { %241 = vst [vmem:[%s218_s28] sm:$0xf] (%p960_p3), %v240_v0  ;;  %v246_v3 = vld [vmem:[%s223_s24 + $0x3c] sm:$0xf] (%p960_p3) }
  0x1d   : > { %243 = vst [vmem:[%s218_s28 + $0x4] sm:$0xf] %v242_v1 }
  0x1e   : > { %245 = vst [vmem:[%s218_s28 + $0x8] sm:$0xf] %v244_v2 }
  0x1f   : > { %247 = vst [vmem:[%s218_s28 + $0xc] sm:$0xf] %v246_v3 }
  0x20 PF: > { %294 = sbr.rel (%p968_p7) target bundleno = 238 (0xee), region = 73  ;;  %s297_s23 = sand.u32 (!%p968_p7), 1, %s881_s15  }
  0x21   : > { %s1000_s29 = sshll.u32 (!%p968_p7), %s297_s23, 4 }
  0x22   : > { %s299_s30 = scalar_lea.vmem (!%p968_p7), [#allocation3], %s1000_s29 }
  0x25   : > { %872 = dma.done.wait (%p972_p8), [#allocation5], 16  }
  0x26   : > { %874 = vsyncadd (%p972_p8), [#allocation5], 4294967280 }
  0x27   : > { %876 = dma.done.wait (%p972_p8), [#allocation7], 16  }
  0x28   : > { %878 = vsyncadd (%p972_p8), [#allocation7], 4294967280  ;;  %s650_s25 = sshll.u32 %s889_s17, 4  ;;  %p652_p13 = scmp.ne.s32.totalorder %s889_s17, 0 }
  0x29   : > { %p345_p12 = scmp.lt.s32.totalorder %s650_s25, 79 }
  0x2a   : > { %365 = sbr.rel (%p652_p13) target bundleno = 52 (0x34), region = 89 }
  0x2b   : > { %s1057_s25 = smov (!%p345_p12, %s650_s25), 79 }
  0x2c   : > { %s651_s15 = sshll.u32 %s1057_s25, 2 }
  0x2d   : > { %s351_s7 = scalar_lea.vmem %s1043_s1, %s651_s15 }
  0x2f   : > { %v901_v4 = vmov 0.0  }
  0x30   : > { %366 = vst [vmem:[#allocation2 + $0x10] sm:$0xff] %v901_v4 }
  0x31   : > { %367 = vst [vmem:[#allocation2] sm:$0xff] %v901_v4 }
  0x32   : > { %368 = vst [vmem:[#allocation2 + $0x18] sm:$0xff] %v901_v4 }
  0x33   : > { %369 = vst [vmem:[#allocation2 + $0x8] sm:$0xff] %v901_v4 }
  0x34 PF: > { %v707_v5 = vld [vmem:[%s351_s7 + $0x38] sm:$0xff]  ;;  %v706_v6 = vld [vmem:[%s351_s7 + $0x30] sm:$0xff]  ;;  %v705_v7 = vld [vmem:[%s351_s7 + $0x28] sm:$0xff]  ;;  %p693_p0 = scmp.ne.s32.totalorder %s889_s17, 4 }
  0x35   : > { %454 = vmatpush.bf16.msra.mxu0 %v707_v5  ;;  %719 = vmatpush.bf16.msra.mxu1 %v707_v5  ;;  %v704_v8 = vld [vmem:[%s351_s7 + $0x20] sm:$0xff]  ;;  %v703_v9 = vld [vmem:[%s351_s7 + $0x18] sm:$0xff]  ;;  %v702_v10 = vld [vmem:[%s351_s7 + $0x10] sm:$0xff] }
  0x36   : > { %v701_v11 = vld [vmem:[%s351_s7 + $0x8] sm:$0xff]  ;;  %v700_v12 = vld [vmem:[%s351_s7] sm:$0xff] }
  0x37   : > { %v698_v13 = vld [vmem:[%s299_s30] sm:$0xff]  ;;  %v699_v14 = vld [vmem:[%s299_s30 + $0x8] sm:$0xff] }
  0x38   : > { %v370_v15 = vld [vmem:[#allocation2 + $0x10] sm:$0xff]  ;;  %v371_v21 = vld [vmem:[#allocation2] sm:$0xff] }
  0x39   : > { %455 = vmatpush.bf16.msra.mxu0 %v706_v6  ;;  %720 = vmatpush.bf16.msra.mxu1 %v706_v6  ;;  %v372_v16 = vld [vmem:[#allocation2 + $0x18] sm:$0xff] }
  0x3a   : > { %v373_v22 = vld [vmem:[#allocation2 + $0x8] sm:$0xff] }
  0x3d   : > { %456 = vmatpush.bf16.msra.mxu0 %v705_v7  ;;  %721 = vmatpush.bf16.msra.mxu1 %v705_v7 }
  0x41   : > { %457 = vmatpush.bf16.msra.mxu0 %v704_v8  ;;  %722 = vmatpush.bf16.msra.mxu1 %v704_v8 }
  0x45   : > { %458 = vmatpush.bf16.msra.mxu0 %v703_v9  ;;  %723 = vmatpush.bf16.msra.mxu1 %v703_v9 }
  0x49   : > { %459 = vmatpush.bf16.msra.mxu0 %v702_v10  ;;  %724 = vmatpush.bf16.msra.mxu1 %v702_v10 }
  0x4d   : > { %460 = vmatpush.bf16.msra.mxu0 %v701_v11  ;;  %725 = vmatpush.bf16.msra.mxu1 %v701_v11 }
  0x51   : > { %461 = vmatpush.bf16.msra.mxu0 %v700_v12  ;;  %726 = vmatpush.bf16.msra.mxu1 %v700_v12 }
  0x54   : > { %462 = vmatmul.bf16.vlgmr.msra.gmra.mxu0 %v698_v13  ;;  %467 = vmatmul.bf16.vlgmr.msra.gmra.mxu1 %v699_v14 }
  0xd1   : > { %v463_v17 = vpop.f32.mrf.mxu0  ;;  %v468_v18 = vpop.f32.mrf.mxu1 }
  0xd2   : > { %v473_v19 = vadd.f32 %v463_v17, %v370_v15  ;;  %v475_v20 = vadd.f32 %v468_v18, %v372_v16 }
  0xd4   : > { %477 = vst [vmem:[#allocation2 + $0x10] sm:$0xff] %v473_v19 }
  0xd5   : > { %479 = vst [vmem:[#allocation2 + $0x18] sm:$0xff] %v475_v20 }
  0xd9   : > { %v465_v23 = vpop.f32.mrf.mxu0  ;;  %v470_v24 = vpop.f32.mrf.mxu1  ;;  %484 = sbr.rel (%p693_p0) target bundleno = 238 (0xee), region = 93 }
  0xda   : > { %v474_v25 = vadd.f32 %v465_v23, %v371_v21  ;;  %v476_v26 = vadd.f32 %v470_v24, %v373_v22 }
  0xdc   : > { %478 = vst [vmem:[#allocation2] sm:$0xff] %v474_v25 }
  0xdd   : > { %480 = vst [vmem:[#allocation2 + $0x8] sm:$0xff] %v476_v26 }
  0xde   : > { %v485_v27 = vld [vmem:[#allocation2 + $0x10] sm:$0xff]  ;;  %v789_v29 = vld [vmem:[#allocation4] ss:$0 sm:$0xff]  ;;  %v790_v30 = vld [vmem:[#allocation6] ss:$0 sm:$0xff] }
  0xdf   : > { %v487_v31 = vld [vmem:[#allocation2 + $0x18] sm:$0xff]  ;;  %v493_v33 = vmul.f32 %v789_v29, %v485_v27 }
  0xe0   : > { %v495_v35 = vmul.f32 %v789_v29, %v487_v31 }
  0xe1   : > { %v501_v37 = vadd.f32 %v790_v30, %v493_v33 }
  0xe2   : > { %v503_v39 = vadd.f32 %v790_v30, %v495_v35 }
  0xe3   : > { %v486_v28 = vld [vmem:[#allocation2] sm:$0xff]  ;;  %v505_v41 = vmax.f32 %v501_v37, 0.0 }
  0xe4   : > { %v488_v32 = vld [vmem:[#allocation2 + $0x8] sm:$0xff]  ;;  %v494_v34 = vmul.f32 %v789_v29, %v486_v28  ;;  %v507_v43 = vmax.f32 %v503_v39, 0.0 }
  0xe5   : > { %v496_v36 = vmul.f32 %v789_v29, %v488_v32 }
  0xe6   : > { %v502_v38 = vadd.f32 %v790_v30, %v494_v34 }
  0xe7   : > { %v504_v40 = vadd.f32 %v790_v30, %v496_v36 }
  0xe8   : > { %v506_v42 = vmax.f32 %v502_v38, 0.0 }
  0xe9   : > { %v508_v44 = vmax.f32 %v504_v40, 0.0 }
  0xea   : > { %v711_v45 = vpack.c.bf16 %v506_v42, %v505_v41 }
  0xeb   : > { %v716_v46 = vpack.c.bf16 %v508_v44, %v507_v43 }
  0xec   : > { %712 = vst [vmem:[%s1046_s4] sm:$0xff] %v711_v45  }
  0xed   : > { %718 = vst [vmem:[%s1046_s4 + $0x8] sm:$0xff] %v716_v46  }
  0xee PF: > { %s16_s19 = sadd.s32 1, %s897_s19   ;;  %s1050_s15 = smov %s885_s16 }
  0xef   : > { %p13_p1 = scmp.ge.s32.totalorder %s16_s19, 7   ;;  %s1051_s16 = smov %s977_s27 }
  0xf0   : > { %s1052_s17 = smov %s893_s18  ;;  %s1053_s18 = smov %s1055_s21 }
  0xf1   :  { %15 = sbr.rel (!%p13_p1) target bundleno = 4 (0x4), region = 134 }
  0xf6   :  { %545 = vsyncpa [#allocation5], 1 }
  0xf7   :  { %547 = vsyncpa [#allocation5 + $0x1], 1 }
  0xf8   :  { %548 = vsyncpa [#allocation7], 1 }

// kernel: resnet18_forward.30
= control target key start
LH: loop header
LB: loop body
LE: loop exit
PB: predicated region body
PF: predicated region fallthrough
CT: control target
= control target key end

     0   :  { %10 = vsyncpa [#allocation5], 0  ;;  %s1479_s0 = inlined_call_operand.vmem [shape: bf16[32,1152], index: 0, kind: input, shape index: {}]   ;;  %s1480_s1 = inlined_call_operand.vmem [shape: bf16[1152,128], index: 1, kind: input, shape index: {}]   ;;  %s1481_s2 = inlined_call_operand.hbm [shape: f32[1,128], index: 2, kind: input, shape index: {}]   ;;  %s1482_s3 = inlined_call_operand.hbm [shape: f32[1,128], index: 3, kind: input, shape index: {}]   ;;  %s1483_s4 = inlined_call_operand.vmem [shape: bf16[32,128], index: 4, kind: input, shape index: {}]   ;;  %s1484_s5 = inlined_call_operand.vmem [shape: bf16[32,128], index: 5, kind: output, shape index: {}]  }
   0x1   :  { %11 = vsyncpa [#allocation7], 0  ;;  %s1325_s18 = smov 0   ;;  %s1327_s19 = smov 0  }
   0x2   :  { %s1329_s20 = smov 0   ;;  %s1331_s21 = smov 0  }
   0x3   :  { %s1333_s22 = smov 0  }
   0x4 LB: > { %s914_s23 = sadd.s32 4294967295, %s1290_s22   ;;  %s29_s24 = sadd.s32 1, %s1286_s21  ;;  %s1290_s22 = sphi %s1333_s22, %s17_s22   ;;  %s1286_s21 = sphi %s1331_s21, %s1491_s21   ;;  %s1282_s20 = sphi %s1329_s20, %s1490_s20   ;;  %s1278_s19 = sphi %s1327_s19, %s1489_s19   ;;  %s1274_s18 = sphi %s1325_s18, %s1488_s18  }
   0x5   : > { %p30_p0 = scmp.ge.s32.totalorder %s29_s24, 3  ;;  %s45_s25 = sadd.s32 1, %s1278_s19 }
   0x6   : > { %p52_p1 = scmp.ne.s32.totalorder %s1278_s19, %s1274_s18  ;;  %p53_p2 = scmp.eq.s32.totalorder %s1290_s22, 0 }
   0x7   : > { %s1493_s24 = smov (%p30_p0, %s29_s24), 0  ;;  %p915_p4 = scmp.ge.s32.totalorder %s1290_s22, 1 }
   0x8   : > { %p1358_p3 = por %p53_p2, %p52_p1  ;;  %s41_s27 = ssub.s32 %s1286_s21, %s1493_s24 }
   0x9   : > { %p205_p5 = scmp.lt.s32.totalorder %s1290_s22, 4  ;;  %p43_p6 = scmp.eq.s32.totalorder %s41_s27, 0 }
   0xa   : > { %p1370_p8 = scmp.eq.s32.totalorder %s914_s23, 0  ;;  %s218_s8 = sshll.u32 %s1481_s2, 4  ;;  %s219_s8 = int_to_ptr.hbm [resolvable:$true] %s218_s8 }
   0xb   : > { %p1366_p7 = pnand %p915_p4, %p205_p5  ;;  %s1292_s9 = smov [#allocation4]  }
   0xc   : > { %s1375_s30 = scalar_select %p43_p6, %s1278_s19, %s45_s25  }
   0xd   : > { %p1128_p9 = pneg %p1366_p7  ;;  %s220_s10 = sshll.u32 %s1292_s9, 4  ;;  %s221_s10 = int_to_ptr.vmem [resolvable:$true] %s220_s10 }
   0xe   : > { %s231_s13 = sshll.u32 %s1482_s3, 4  ;;  %s1293_s14 = smov [#allocation6]   ;;  %s232_s13 = int_to_ptr.hbm [resolvable:$true] %s231_s13 }
   0xf   : > { %p1129_p10 = pnand %p1370_p8, %p1128_p9  ;;  %s233_s15 = sshll.u32 %s1293_s14, 4  ;;  %s234_s15 = int_to_ptr.vmem [resolvable:$true] %s233_s15 }
  0x10   : > { %p919_p11 = scmp.ge.s32.totalorder %s1290_s22, 3 }
  0x11   : > { %1131 = dma.hbm_to_vmem [thread:$0]  (!%p1129_p10), %s219_s8, 16, %s221_s10, [#allocation5]  }
  0x12   : > { %1134 = dma.hbm_to_vmem [thread:$0]  (!%p1129_p10), %s232_s13, 16, %s234_s15, [#allocation7]  }
  0x13   : > { %252 = sbr.rel (%p919_p11) target bundleno = 37 (0x25), region = 28 }
  0x18   : > { %255 = sbr.rel (!%p1358_p3) target bundleno = 37 (0x25), region = 32  ;;  %s257_s16 = sand.u32 (%p1358_p3), 1, %s1278_s19  }
  0x19   : > { %s1059_s17 = smul.u32 (%p1358_p3), 12, %s1286_s21 }
  0x1a   : > { %s1118_s23 = smul.u32 (%p1358_p3), 48, %s257_s16 }
  0x1b   : > { %s265_s6 = scalar_lea.vmem (%p1358_p3), %s1479_s0, %s1059_s17 }
  0x1c   : > { %v280_v0 = vld [vmem:[%s265_s6] sm:$0xff] (%p1358_p3)  ;;  %v284_v2 = vld [vmem:[%s265_s6 + $0x48] sm:$0xff] (%p1358_p3)  ;;  %s259_s7 = scalar_lea.vmem (%p1358_p3), [#allocation3], %s1118_s23  ;;  %v925_v6 = vld [vmem:[%s265_s6 + $0x50] sm:$0xf] (%p1358_p3) }
  0x1d   : > { %v282_v1 = vld [vmem:[%s265_s6 + $0x24] sm:$0xff]  ;;  %281 = vst [vmem:[%s259_s7] sm:$0xff] %v280_v0  ;;  %v286_v3 = vld [vmem:[%s265_s6 + $0x6c] sm:$0xff]  ;;  %v927_v7 = vld [vmem:[%s265_s6 + $0x74] sm:$0xf] }
  0x1e   : > { %283 = vst [vmem:[%s259_s7 + $0xc] sm:$0xff] %v282_v1  ;;  %v921_v4 = vld [vmem:[%s265_s6 + $0x8] sm:$0xf]  ;;  %v923_v5 = vld [vmem:[%s265_s6 + $0x2c] sm:$0xf] }
  0x1f   : > { %285 = vst [vmem:[%s259_s7 + $0x18] sm:$0xff] %v284_v2 }
  0x20   : > { %287 = vst [vmem:[%s259_s7 + $0x24] sm:$0xff] %v286_v3 }
  0x21   : > { %922 = vst [vmem:[%s259_s7 + $0x8] sm:$0xf] %v921_v4 }
  0x22   : > { %924 = vst [vmem:[%s259_s7 + $0x14] sm:$0xf] %v923_v5 }
  0x23   : > { %926 = vst [vmem:[%s259_s7 + $0x20] sm:$0xf] %v925_v6 }
  0x24   : > { %928 = vst [vmem:[%s259_s7 + $0x2c] sm:$0xf] %v927_v7 }
  0x25 PF: > { %324 = sbr.rel (%p1366_p7) target bundleno = 270 (0x10e), region = 62  ;;  %s327_s26 = sand.u32 (!%p1366_p7), 1, %s1274_s18  }
  0x26   : > { %s1119_s8 = smul.u32 (!%p1366_p7), 48, %s327_s26 }
  0x28   : > { %s1398_s9 = scalar_lea.vmem (!%p1366_p7), [#allocation3], %s1119_s8 }
  0x2a   : > { %1265 = dma.done.wait (%p1370_p8), [#allocation5], 16  }
  0x2b   : > { %1267 = vsyncadd (%p1370_p8), [#allocation5], 4294967280 }
  0x2c   : > { %1269 = dma.done.wait (%p1370_p8), [#allocation7], 16  }
  0x2d   : > { %1271 = vsyncadd (%p1370_p8), [#allocation7], 4294967280  ;;  %s385_s28 = smul.u32 48, %s1282_s20  ;;  %p933_p13 = scmp.ne.s32.totalorder %s1282_s20, 0 }
  0x2f   : > { %p386_p12 = scmp.lt.s32.totalorder %s385_s28, 143  ;;  %415 = sbr.rel (%p933_p13) target bundleno = 57 (0x39), region = 78 }
  0x31   : > { %s1495_s28 = smov (!%p386_p12, %s385_s28), 143 }
  0x32   : > { %s932_s10 = sshll.u32 %s1495_s28, 2 }
  0x33   : > { %s1412_s12 = scalar_lea.vmem %s1480_s1, %s932_s10 }
  0x34   : > { %v1294_v8 = vmov 0.0  }
  0x35   : > { %416 = vst [vmem:[#allocation2 + $0x10] sm:$0xff] %v1294_v8 }
  0x36   : > { %417 = vst [vmem:[#allocation2] sm:$0xff] %v1294_v8 }
  0x37   : > { %418 = vst [vmem:[#allocation2 + $0x18] sm:$0xff] %v1294_v8 }
  0x38   : > { %419 = vst [vmem:[#allocation2 + $0x8] sm:$0xff] %v1294_v8 }
  0x39 PF: > { %v1073_v9 = vld [vmem:[%s1412_s12 + $0x38] sm:$0xff]  ;;  %v1072_v12 = vld [vmem:[%s1412_s12 + $0x30] sm:$0xff]  ;;  %v1071_v15 = vld [vmem:[%s1412_s12 + $0x28] sm:$0xff]  ;;  %p1054_p0 = scmp.ne.s32.totalorder %s1282_s20, 2 }
  0x3a   : > { %v1081_v10 = vld [vmem:[%s1412_s12 + $0x78] sm:$0xff]  ;;  %656 = vmatpush.bf16.msra.mxu0 %v1073_v9  ;;  %v1080_v13 = vld [vmem:[%s1412_s12 + $0x70] sm:$0xff]  ;;  %1110 = vmatpush.bf16.msra.mxu3 %v1073_v9  ;;  %v1079_v16 = vld [vmem:[%s1412_s12 + $0x68] sm:$0xff] }
  0x3b   : > { %v1089_v11 = vld [vmem:[%s1412_s12 + $0xb8] sm:$0xff]  ;;  %675 = vmatpush.bf16.msra.mxu1 %v1081_v10  ;;  %v1088_v14 = vld [vmem:[%s1412_s12 + $0xb0] sm:$0xff]  ;;  %v1087_v17 = vld [vmem:[%s1412_s12 + $0xa8] sm:$0xff] }
  0x3c   : > { %694 = vmatpush.bf16.msra.mxu2 %v1089_v11  ;;  %v1070_v18 = vld [vmem:[%s1412_s12 + $0x20] sm:$0xff]  ;;  %v1069_v21 = vld [vmem:[%s1412_s12 + $0x18] sm:$0xff]  ;;  %v1068_v24 = vld [vmem:[%s1412_s12 + $0x10] sm:$0xff] }
  0x3d   : > { %v1078_v19 = vld [vmem:[%s1412_s12 + $0x60] sm:$0xff]  ;;  %v1077_v22 = vld [vmem:[%s1412_s12 + $0x58] sm:$0xff]  ;;  %v1076_v25 = vld [vmem:[%s1412_s12 + $0x50] sm:$0xff] }
  0x3e   : > { %657 = vmatpush.bf16.msra.mxu0 %v1072_v12  ;;  %1111 = vmatpush.bf16.msra.mxu3 %v1072_v12  ;;  %v1086_v20 = vld [vmem:[%s1412_s12 + $0xa0] sm:$0xff]  ;;  %v1085_v23 = vld [vmem:[%s1412_s12 + $0x98] sm:$0xff]  ;;  %v1084_v26 = vld [vmem:[%s1412_s12 + $0x90] sm:$0xff] }
  0x3f   : > { %676 = vmatpush.bf16.msra.mxu1 %v1080_v13  ;;  %v1067_v27 = vld [vmem:[%s1412_s12 + $0x8] sm:$0xff]  ;;  %v1066_v30 = vld [vmem:[%s1412_s12] sm:$0xff]  ;;  %v420_v54 = vld [vmem:[#allocation2 + $0x10] sm:$0xff] }
  0x40   : > { %695 = vmatpush.bf16.msra.mxu2 %v1088_v14  ;;  %v1075_v28 = vld [vmem:[%s1412_s12 + $0x48] sm:$0xff]  ;;  %v1074_v31 = vld [vmem:[%s1412_s12 + $0x40] sm:$0xff]  ;;  %v422_v4 = vld [vmem:[#allocation2 + $0x18] sm:$0xff] }
  0x41   : > { %v1083_v29 = vld [vmem:[%s1412_s12 + $0x88] sm:$0xff]  ;;  %v1082_v32 = vld [vmem:[%s1412_s12 + $0x80] sm:$0xff] }
  0x42   : > { %658 = vmatpush.bf16.msra.mxu0 %v1071_v15  ;;  %1112 = vmatpush.bf16.msra.mxu3 %v1071_v15  ;;  %v936_v33 = vld [vmem:[%s1398_s9] sm:$0xf]  ;;  %v1061_v34 = vld [vmem:[%s1398_s9 + $0x8] sm:$0xf0]  ;;  %v1060_v35 = vld [vmem:[%s1398_s9 + $0x4] sm:$0xf] }
  0x43   : > { %677 = vmatpush.bf16.msra.mxu1 %v1079_v16  ;;  %v938_v36 = vld [vmem:[%s1398_s9 + $0xc] sm:$0xf0]  ;;  %v944_v37 = vld [vmem:[%s1398_s9 + $0x8] sm:$0xf]  ;;  %v1062_v38 = vld [vmem:[%s1398_s9 + $0x10] sm:$0xf0]  ;;  %v937_v41 = vor.u32 %v1061_v34, %v936_v33 }
  0x44   : > { %696 = vmatpush.bf16.msra.mxu2 %v1087_v17  ;;  %v948_v39 = vld [vmem:[%s1398_s9 + $0x18] sm:$0xf]  ;;  %v1064_v40 = vld [vmem:[%s1398_s9 + $0x20] sm:$0xf0]  ;;  %v941_v42 = vor.u32 %v1060_v35, %v938_v36  ;;  %v945_v43 = vor.u32 %v1062_v38, %v944_v37  ;;  %v1063_v45 = vld [vmem:[%s1398_s9 + $0x1c] sm:$0xf] }
  0x45   : > { %v949_v44 = vor.u32 %v1064_v40, %v948_v39  ;;  %v950_v46 = vld [vmem:[%s1398_s9 + $0x24] sm:$0xf0]  ;;  %v956_v47 = vld [vmem:[%s1398_s9 + $0x20] sm:$0xf]  ;;  %v1065_v48 = vld [vmem:[%s1398_s9 + $0x28] sm:$0xf0] }
  0x46   : > { %659 = vmatpush.bf16.msra.mxu0 %v1070_v18  ;;  %1113 = vmatpush.bf16.msra.mxu3 %v1070_v18  ;;  %v953_v49 = vor.u32 %v1063_v45, %v950_v46  ;;  %v957_v50 = vor.u32 %v1065_v48, %v956_v47  ;;  %v421_v61 = vld [vmem:[#allocation2] sm:$0xff]  ;;  %v423_v11 = vld [vmem:[#allocation2 + $0x8] sm:$0xff] }
  0x47   : > { %678 = vmatpush.bf16.msra.mxu1 %v1078_v19 }
  0x48   : > { %697 = vmatpush.bf16.msra.mxu2 %v1086_v20 }
  0x4a   : > { %660 = vmatpush.bf16.msra.mxu0 %v1069_v21  ;;  %1114 = vmatpush.bf16.msra.mxu3 %v1069_v21 }
  0x4b   : > { %679 = vmatpush.bf16.msra.mxu1 %v1077_v22 }
  0x4c   : > { %698 = vmatpush.bf16.msra.mxu2 %v1085_v23 }
  0x4e   : > { %661 = vmatpush.bf16.msra.mxu0 %v1068_v24  ;;  %1115 = vmatpush.bf16.msra.mxu3 %v1068_v24 }
  0x4f   : > { %680 = vmatpush.bf16.msra.mxu1 %v1076_v25 }
  0x50   : > { %699 = vmatpush.bf16.msra.mxu2 %v1084_v26 }
  0x52   : > { %662 = vmatpush.bf16.msra.mxu0 %v1067_v27  ;;  %1116 = vmatpush.bf16.msra.mxu3 %v1067_v27 }
  0x53   : > { %681 = vmatpush.bf16.msra.mxu1 %v1075_v28 }
  0x54   : > { %700 = vmatpush.bf16.msra.mxu2 %v1083_v29 }
  0x56   : > { %663 = vmatpush.bf16.msra.mxu0 %v1066_v30  ;;  %1117 = vmatpush.bf16.msra.mxu3 %v1066_v30 }
  0x57   : > { %682 = vmatpush.bf16.msra.mxu1 %v1074_v31 }
  0x58   : > { %701 = vmatpush.bf16.msra.mxu2 %v1082_v32 }
  0x59   : > { %664 = vmatmul.bf16.vlgmr.msra.gmra.mxu0 %v937_v41  ;;  %669 = vmatmul.bf16.vlgmr.msra.gmra.mxu3 %v949_v44 }
  0x5a   : > { %683 = vmatmul.bf16.vlgmr.msra.gmra.mxu1 %v941_v42 }
  0x5b   : > { %702 = vmatmul.bf16.vlgmr.msra.gmra.mxu2 %v945_v43 }
  0x6a   : > { %688 = vmatmul.bf16.gmra.mxu1 %v953_v49 }
  0x6b   : > { %707 = vmatmul.bf16.gmra.mxu2 %v957_v50 }
  0xd6   : > { %v665_v52 = vpop.f32.mrf.mxu0 }
  0xd7   : > { %v684_v51 = vpop.f32.mrf.mxu1 }
  0xd8   : > { %v685_v53 = vadd.f32 %v684_v51, %v665_v52 }
  0xdc   : > { %v670_v2 = vpop.f32.mrf.mxu3 }
  0xde   : > { %v703_v55 = vpop.f32.mrf.mxu2  ;;  %v667_v59 = vpop.f32.mrf.mxu0 }
  0xdf   : > { %v704_v56 = vadd.f32 %v703_v55, %v685_v53  ;;  %v686_v57 = vpop.f32.mrf.mxu1 }
  0xe0   : > { %v687_v60 = vadd.f32 %v686_v57, %v667_v59 }
  0xe1   : > { %v713_v58 = vadd.f32 %v704_v56, %v420_v54 }
  0xe3   : > { %717 = vst [vmem:[#allocation2 + $0x10] sm:$0xff] %v713_v58 }
  0xe4   : > { %v672_v9 = vpop.f32.mrf.mxu3 }
  0xe6   : > { %v705_v62 = vpop.f32.mrf.mxu2 }
  0xe7   : > { %v706_v63 = vadd.f32 %v705_v62, %v687_v60  ;;  %v689_v0 = vpop.f32.mrf.mxu1 }
  0xe8   : > { %v690_v3 = vadd.f32 %v689_v0, %v670_v2 }
  0xe9   : > { %v714_v1 = vadd.f32 %v706_v63, %v421_v61 }
  0xeb   : > { %718 = vst [vmem:[#allocation2] sm:$0xff] %v714_v1 }
  0xee   : > { %v708_v5 = vpop.f32.mrf.mxu2 }
  0xef   : > { %v709_v6 = vadd.f32 %v708_v5, %v690_v3  ;;  %v691_v8 = vpop.f32.mrf.mxu1 }
  0xf0   : > { %v692_v10 = vadd.f32 %v691_v8, %v672_v9 }
  0xf1   : > { %v715_v7 = vadd.f32 %v709_v6, %v422_v4 }
  0xf3   : > { %719 = vst [vmem:[#allocation2 + $0x18] sm:$0xff] %v715_v7 }
  0xf6   : > { %v710_v12 = vpop.f32.mrf.mxu2 }
  0xf7   : > { %v711_v13 = vadd.f32 %v710_v12, %v692_v10  ;;  %724 = sbr.rel (%p1054_p0) target bundleno = 270 (0x10e), region = 82 }
  0xf9   : > { %v716_v14 = vadd.f32 %v711_v13, %v423_v11 }
  0xfb   : > { %720 = vst [vmem:[#allocation2 + $0x8] sm:$0xff] %v716_v14 }
  0xfc   : > { %v725_v15 = vld [vmem:[#allocation2 + $0x10] sm:$0xff]  ;;  %v726_v16 = vld [vmem:[#allocation2] sm:$0xff]  ;;  %v727_v20 = vld [vmem:[#allocation2 + $0x18] sm:$0xff] }
  0xfd   : > { %v1182_v17 = vld [vmem:[#allocation4] ss:$0 sm:$0xff]  ;;  %v1183_v18 = vld [vmem:[#allocation6] ss:$0 sm:$0xff]  ;;  %v1108_v26 = vld [vmem:[%s1483_s4 + $0x8] sm:$0xff]  }
  0xfe   : > { %v1091_v19 = vld [vmem:[%s1483_s4] sm:$0xff]   ;;  %v733_v22 = vmul.f32 %v1182_v17, %v725_v15  ;;  %v734_v23 = vmul.f32 %v1182_v17, %v726_v16  ;;  %v735_v27 = vmul.f32 %v1182_v17, %v727_v20  ;;  %v1096_v29 = vunpack.c.l.bf16 %v1108_v26 }
  0xff   : > { %v1092_v24 = vunpack.c.l.bf16 %v1091_v19  ;;  %v1093_v25 = vunpack.c.h.bf16 %v1091_v19  ;;  %v1097_v30 = vunpack.c.h.bf16 %v1108_v26 }
 0x100   : > { %v741_v31 = vadd.f32 %v1183_v18, %v733_v22  ;;  %v742_v32 = vadd.f32 %v1183_v18, %v734_v23  ;;  %v743_v33 = vadd.f32 %v1183_v18, %v735_v27 }
 0x102   : > { %v728_v21 = vld [vmem:[#allocation2 + $0x8] sm:$0xff]  ;;  %v753_v35 = vadd.f32 %v1092_v24, %v741_v31  ;;  %v754_v36 = vadd.f32 %v1093_v25, %v742_v32  ;;  %v755_v37 = vadd.f32 %v1096_v29, %v743_v33 }
 0x103   : > { %v736_v28 = vmul.f32 %v1182_v17, %v728_v21 }
 0x104   : > { %v757_v39 = vmax.f32 %v753_v35, 0.0  ;;  %v758_v40 = vmax.f32 %v754_v36, 0.0  ;;  %v759_v41 = vmax.f32 %v755_v37, 0.0 }
 0x105   : > { %v744_v34 = vadd.f32 %v1183_v18, %v736_v28 }
 0x106   : > { %v1101_v43 = vpack.c.bf16 %v758_v40, %v757_v39 }
 0x107   : > { %v756_v38 = vadd.f32 %v1097_v30, %v744_v34 }
 0x108   : > { %1102 = vst [vmem:[%s1484_s5] sm:$0xff] %v1101_v43  }
 0x109   : > { %v760_v42 = vmax.f32 %v756_v38, 0.0 }
 0x10b   : > { %v1106_v44 = vpack.c.bf16 %v760_v42, %v759_v41 }
 0x10d   : > { %1109 = vst [vmem:[%s1484_s5 + $0x8] sm:$0xff] %v1106_v44  }
 0x10e PF: > { %s17_s22 = sadd.s32 1, %s1290_s22   ;;  %s1488_s18 = smov %s1278_s19 }
 0x10f   : > { %p14_p1 = scmp.ge.s32.totalorder %s17_s22, 5   ;;  %s1489_s19 = smov %s1375_s30 }
 0x110   : > { %s1490_s20 = smov %s1286_s21  ;;  %s1491_s21 = smov %s1493_s24 }
 0x111   :  { %16 = sbr.rel (!%p14_p1) target bundleno = 4 (0x4), region = 132 }
 0x116   :  { %797 = vsyncpa [#allocation5], 1 }
 0x117   :  { %799 = vsyncpa [#allocation5 + $0x1], 1 }
 0x118   :  { %800 = vsyncpa [#allocation7], 1 }

// kernel: resnet18_forward.29
= control target key start
LH: loop header
LB: loop body
LE: loop exit
PB: predicated region body
PF: predicated region fallthrough
CT: control target
= control target key end

     0   :  { %9 = vsyncpa [#allocation4], 0  ;;  %s395_s0 = inlined_call_operand.vmem [shape: bf16[32,128], index: 0, kind: input, shape index: {}]   ;;  %s396_s1 = inlined_call_operand.vmem [shape: bf16[128,128], index: 1, kind: input, shape index: {}]   ;;  %s397_s2 = inlined_call_operand.hbm [shape: f32[1,128], index: 2, kind: input, shape index: {}]   ;;  %s398_s3 = inlined_call_operand.hbm [shape: f32[1,128], index: 3, kind: input, shape index: {}]   ;;  %s399_s4 = inlined_call_operand.vmem [shape: bf16[32,128], index: 4, kind: output, shape index: {}]  }
   0x1   :  { %s20_s17 = sshll.u32 %s397_s2, 4  ;;  %s21_s17 = int_to_ptr.hbm [resolvable:$true] %s20_s17 }
   0x2   :  { %10 = vsyncpa [#allocation6], 0  ;;  %s326_s18 = smov [#allocation3]   ;;  %s31_s22 = sshll.u32 %s398_s3, 4  ;;  %s32_s22 = int_to_ptr.hbm [resolvable:$true] %s31_s22 }
   0x3   :  { %s22_s19 = sshll.u32 %s326_s18, 4  ;;  %s327_s23 = smov [#allocation5]   ;;  %s23_s19 = int_to_ptr.vmem [resolvable:$true] %s22_s19 }
   0x4   :  { %25 = dma.hbm_to_vmem [thread:$0]  %s21_s17, 16, %s23_s19, [#allocation4]  }
   0x5   :  { %s33_s24 = sshll.u32 %s327_s23, 4  ;;  %s34_s24 = int_to_ptr.vmem [resolvable:$true] %s33_s24 }
   0x6   :  { %36 = dma.hbm_to_vmem [thread:$0]  %s32_s22, 16, %s34_s24, [#allocation6]  }
   0x7   :  { %322 = dma.done.wait [#allocation4], 16  }
   0x8   :  { %323 = vsyncadd [#allocation4], 4294967280 }
   0x9   :  { %324 = dma.done.wait [#allocation6], 16  }
   0xa   :  { %325 = vsyncadd [#allocation6], 4294967280  ;;  %v250_v0 = vld [vmem:[%s396_s1 + $0x38] sm:$0xff]  ;;  %v249_v1 = vld [vmem:[%s396_s1 + $0x30] sm:$0xff] }
   0xb   :  { %137 = vmatpush.bf16.msra.mxu0 %v250_v0  ;;  %262 = vmatpush.bf16.msra.mxu1 %v250_v0  ;;  %v248_v2 = vld [vmem:[%s396_s1 + $0x28] sm:$0xff]  ;;  %v247_v3 = vld [vmem:[%s396_s1 + $0x20] sm:$0xff]  ;;  %v246_v4 = vld [vmem:[%s396_s1 + $0x18] sm:$0xff] }
   0xc   :  { %v245_v5 = vld [vmem:[%s396_s1 + $0x10] sm:$0xff]  ;;  %v244_v6 = vld [vmem:[%s396_s1 + $0x8] sm:$0xff]  ;;  %v243_v7 = vld [vmem:[%s396_s1] sm:$0xff] }
   0xd   :  { %v241_v8 = vld [vmem:[%s395_s0] sm:$0xff]  ;;  %v242_v9 = vld [vmem:[%s395_s0 + $0x8] sm:$0xff] }
   0xe   :  { %v272_v12 = vld [vmem:[#allocation3] ss:$0 sm:$0xff]  ;;  %v273_v14 = vld [vmem:[#allocation5] ss:$0 sm:$0xff] }
   0xf   :  { %138 = vmatpush.bf16.msra.mxu0 %v249_v1  ;;  %263 = vmatpush.bf16.msra.mxu1 %v249_v1 }
  0x13   :  { %139 = vmatpush.bf16.msra.mxu0 %v248_v2  ;;  %264 = vmatpush.bf16.msra.mxu1 %v248_v2 }
  0x17   :  { %140 = vmatpush.bf16.msra.mxu0 %v247_v3  ;;  %265 = vmatpush.bf16.msra.mxu1 %v247_v3 }
  0x1b   :  { %141 = vmatpush.bf16.msra.mxu0 %v246_v4  ;;  %266 = vmatpush.bf16.msra.mxu1 %v246_v4 }
  0x1f   :  { %142 = vmatpush.bf16.msra.mxu0 %v245_v5  ;;  %267 = vmatpush.bf16.msra.mxu1 %v245_v5 }
  0x23   :  { %143 = vmatpush.bf16.msra.mxu0 %v244_v6  ;;  %268 = vmatpush.bf16.msra.mxu1 %v244_v6 }
  0x27   :  { %144 = vmatpush.bf16.msra.mxu0 %v243_v7  ;;  %269 = vmatpush.bf16.msra.mxu1 %v243_v7 }
  0x2a   :  { %145 = vmatmul.bf16.vlgmr.msra.gmra.mxu0 %v241_v8  ;;  %150 = vmatmul.bf16.vlgmr.msra.gmra.mxu1 %v242_v9 }
  0xa7   :  { %v146_v10 = vpop.f32.mrf.mxu0  ;;  %v151_v11 = vpop.f32.mrf.mxu1 }
  0xa8   :  { %v175_v13 = vmul.f32 %v272_v12, %v146_v10  ;;  %v177_v15 = vmul.f32 %v272_v12, %v151_v11 }
  0xaa   :  { %v183_v20 = vadd.f32 %v273_v14, %v175_v13  ;;  %v185_v21 = vadd.f32 %v273_v14, %v177_v15 }
  0xaf   :  { %v148_v16 = vpop.f32.mrf.mxu0  ;;  %v153_v17 = vpop.f32.mrf.mxu1 }
  0xb0   :  { %v176_v18 = vmul.f32 %v272_v12, %v148_v16  ;;  %v178_v19 = vmul.f32 %v272_v12, %v153_v17 }
  0xb2   :  { %v184_v22 = vadd.f32 %v273_v14, %v176_v18  ;;  %v186_v23 = vadd.f32 %v273_v14, %v178_v19 }
  0xb4   :  { %v254_v24 = vpack.c.bf16 %v184_v22, %v183_v20  ;;  %v259_v25 = vpack.c.bf16 %v186_v23, %v185_v21 }
  0xb6   :  { %255 = vst [vmem:[%s399_s4] sm:$0xff] %v254_v24  }
  0xb7   :  { %261 = vst [vmem:[%s399_s4 + $0x8] sm:$0xff] %v259_v25  }
  0xb8   :  { %199 = vsyncpa [#allocation4], 1 }
  0xb9   :  { %200 = vsyncpa [#allocation6], 1 }

// kernel: resnet18_forward.31
= control target key start
LH: loop header
LB: loop body
LE: loop exit
PB: predicated region body
PF: predicated region fallthrough
CT: control target
= control target key end

     0   :  { %9 = vsyncpa [#allocation5], 0  ;;  %s1368_s0 = inlined_call_operand.vmem [shape: bf16[32,1152], index: 0, kind: input, shape index: {}]   ;;  %s1369_s1 = inlined_call_operand.vmem [shape: bf16[1152,128], index: 1, kind: input, shape index: {}]   ;;  %s1370_s2 = inlined_call_operand.hbm [shape: f32[1,128], index: 2, kind: input, shape index: {}]   ;;  %s1371_s3 = inlined_call_operand.hbm [shape: f32[1,128], index: 3, kind: input, shape index: {}]   ;;  %s1372_s4 = inlined_call_operand.vmem [shape: bf16[32,128], index: 4, kind: output, shape index: {}]  }
   0x1   :  { %10 = vsyncpa [#allocation7], 0  ;;  %s1220_s15 = smov 0   ;;  %s1222_s16 = smov 0  }
   0x2   :  { %s1224_s17 = smov 0   ;;  %s1226_s18 = smov 0  }
   0x3   :  { %s1228_s19 = smov 0  }
   0x4 LB: > { %s824_s20 = sadd.s32 4294967295, %s1190_s19   ;;  %s28_s21 = sadd.s32 1, %s1186_s18  ;;  %s1190_s19 = sphi %s1228_s19, %s16_s19   ;;  %s1186_s18 = sphi %s1226_s18, %s1379_s18   ;;  %s1182_s17 = sphi %s1224_s17, %s1378_s17   ;;  %s1178_s16 = sphi %s1222_s16, %s1377_s16   ;;  %s1174_s15 = sphi %s1220_s15, %s1376_s15  }
   0x5   : > { %p29_p0 = scmp.ge.s32.totalorder %s28_s21, 3  ;;  %s44_s22 = sadd.s32 1, %s1178_s16 }
   0x6   : > { %p51_p1 = scmp.ne.s32.totalorder %s1178_s16, %s1174_s15  ;;  %p52_p2 = scmp.eq.s32.totalorder %s1190_s19, 0 }
   0x7   : > { %s1381_s21 = smov (%p29_p0, %s28_s21), 0  ;;  %p825_p4 = scmp.ge.s32.totalorder %s1190_s19, 1 }
   0x8   : > { %p1253_p3 = por %p52_p2, %p51_p1  ;;  %s40_s24 = ssub.s32 %s1186_s18, %s1381_s21 }
   0x9   : > { %p176_p5 = scmp.lt.s32.totalorder %s1190_s19, 4  ;;  %p42_p6 = scmp.eq.s32.totalorder %s40_s24, 0 }
   0xa   : > { %p1265_p8 = scmp.eq.s32.totalorder %s824_s20, 0  ;;  %s189_s30 = sshll.u32 %s1370_s2, 4  ;;  %s190_s30 = int_to_ptr.hbm [resolvable:$true] %s189_s30 }
   0xb   : > { %p1261_p7 = pnand %p825_p4, %p176_p5  ;;  %s1192_s5 = smov [#allocation4]  }
   0xc   : > { %s1270_s27 = scalar_select %p42_p6, %s1178_s16, %s44_s22  }
   0xd   : > { %p1028_p9 = pneg %p1261_p7  ;;  %s191_s6 = sshll.u32 %s1192_s5, 4  ;;  %s192_s6 = int_to_ptr.vmem [resolvable:$true] %s191_s6 }
   0xe   : > { %s202_s9 = sshll.u32 %s1371_s3, 4  ;;  %s1193_s10 = smov [#allocation6]   ;;  %s203_s9 = int_to_ptr.hbm [resolvable:$true] %s202_s9 }
   0xf   : > { %p1029_p10 = pnand %p1265_p8, %p1028_p9  ;;  %s204_s11 = sshll.u32 %s1193_s10, 4  ;;  %s205_s11 = int_to_ptr.vmem [resolvable:$true] %s204_s11 }
  0x10   : > { %p828_p11 = scmp.ge.s32.totalorder %s1190_s19, 3 }
  0x11   : > { %1031 = dma.hbm_to_vmem [thread:$0]  (!%p1029_p10), %s190_s30, 16, %s192_s6, [#allocation5]  }
  0x12   : > { %1034 = dma.hbm_to_vmem [thread:$0]  (!%p1029_p10), %s203_s9, 16, %s205_s11, [#allocation7]  }
  0x13   : > { %211 = sbr.rel (%p828_p11) target bundleno = 37 (0x25), region = 24 }
  0x18   : > { %214 = sbr.rel (!%p1253_p3) target bundleno = 37 (0x25), region = 28  ;;  %s216_s12 = sand.u32 (%p1253_p3), 1, %s1178_s16  }
  0x19   : > { %s968_s13 = smul.u32 (%p1253_p3), 12, %s1186_s18 }
  0x1a   : > { %s1018_s14 = smul.u32 (%p1253_p3), 48, %s216_s12 }
  0x1b   : > { %s224_s24 = scalar_lea.vmem (%p1253_p3), %s1368_s0, %s968_s13 }
  0x1c   : > { %v239_v0 = vld [vmem:[%s224_s24] sm:$0xff] (%p1253_p3)  ;;  %v243_v2 = vld [vmem:[%s224_s24 + $0x48] sm:$0xff] (%p1253_p3)  ;;  %s218_s28 = scalar_lea.vmem (%p1253_p3), [#allocation3], %s1018_s14  ;;  %v834_v6 = vld [vmem:[%s224_s24 + $0x50] sm:$0xf] (%p1253_p3) }
  0x1d   : > { %v241_v1 = vld [vmem:[%s224_s24 + $0x24] sm:$0xff]  ;;  %240 = vst [vmem:[%s218_s28] sm:$0xff] %v239_v0  ;;  %v245_v3 = vld [vmem:[%s224_s24 + $0x6c] sm:$0xff]  ;;  %v836_v7 = vld [vmem:[%s224_s24 + $0x74] sm:$0xf] }
  0x1e   : > { %242 = vst [vmem:[%s218_s28 + $0xc] sm:$0xff] %v241_v1  ;;  %v830_v4 = vld [vmem:[%s224_s24 + $0x8] sm:$0xf]  ;;  %v832_v5 = vld [vmem:[%s224_s24 + $0x2c] sm:$0xf] }
  0x1f   : > { %244 = vst [vmem:[%s218_s28 + $0x18] sm:$0xff] %v243_v2 }
  0x20   : > { %246 = vst [vmem:[%s218_s28 + $0x24] sm:$0xff] %v245_v3 }
  0x21   : > { %831 = vst [vmem:[%s218_s28 + $0x8] sm:$0xf] %v830_v4 }
  0x22   : > { %833 = vst [vmem:[%s218_s28 + $0x14] sm:$0xf] %v832_v5 }
  0x23   : > { %835 = vst [vmem:[%s218_s28 + $0x20] sm:$0xf] %v834_v6 }
  0x24   : > { %837 = vst [vmem:[%s218_s28 + $0x2c] sm:$0xf] %v836_v7 }
  0x25 PF: > { %283 = sbr.rel (%p1261_p7) target bundleno = 268 (0x10c), region = 58  ;;  %s286_s23 = sand.u32 (!%p1261_p7), 1, %s1174_s15  }
  0x26   : > { %s1019_s29 = smul.u32 (!%p1261_p7), 48, %s286_s23 }
  0x28   : > { %s1293_s30 = scalar_lea.vmem (!%p1261_p7), [#allocation3], %s1019_s29 }
  0x2a   : > { %1165 = dma.done.wait (%p1265_p8), [#allocation5], 16  }
  0x2b   : > { %1167 = vsyncadd (%p1265_p8), [#allocation5], 4294967280 }
  0x2c   : > { %1169 = dma.done.wait (%p1265_p8), [#allocation7], 16  }
  0x2d   : > { %1171 = vsyncadd (%p1265_p8), [#allocation7], 4294967280  ;;  %s334_s25 = smul.u32 48, %s1182_s17  ;;  %p842_p13 = scmp.ne.s32.totalorder %s1182_s17, 0 }
  0x2f   : > { %p335_p12 = scmp.lt.s32.totalorder %s334_s25, 143  ;;  %355 = sbr.rel (%p842_p13) target bundleno = 57 (0x39), region = 74 }
  0x31   : > { %s1383_s25 = smov (!%p335_p12, %s334_s25), 143 }
  0x32   : > { %s841_s5 = sshll.u32 %s1383_s25, 2 }
  0x33   : > { %s1307_s7 = scalar_lea.vmem %s1369_s1, %s841_s5 }
  0x34   : > { %v1194_v8 = vmov 0.0  }
  0x35   : > { %356 = vst [vmem:[#allocation2 + $0x10] sm:$0xff] %v1194_v8 }
  0x36   : > { %357 = vst [vmem:[#allocation2] sm:$0xff] %v1194_v8 }
  0x37   : > { %358 = vst [vmem:[#allocation2 + $0x18] sm:$0xff] %v1194_v8 }
  0x38   : > { %359 = vst [vmem:[#allocation2 + $0x8] sm:$0xff] %v1194_v8 }
  0x39 PF: > { %v982_v9 = vld [vmem:[%s1307_s7 + $0x38] sm:$0xff]  ;;  %v981_v12 = vld [vmem:[%s1307_s7 + $0x30] sm:$0xff]  ;;  %v980_v15 = vld [vmem:[%s1307_s7 + $0x28] sm:$0xff]  ;;  %p963_p0 = scmp.ne.s32.totalorder %s1182_s17, 2 }
  0x3a   : > { %v990_v10 = vld [vmem:[%s1307_s7 + $0x78] sm:$0xff]  ;;  %596 = vmatpush.bf16.msra.mxu0 %v982_v9  ;;  %v989_v13 = vld [vmem:[%s1307_s7 + $0x70] sm:$0xff]  ;;  %1010 = vmatpush.bf16.msra.mxu3 %v982_v9  ;;  %v988_v16 = vld [vmem:[%s1307_s7 + $0x68] sm:$0xff] }
  0x3b   : > { %v998_v11 = vld [vmem:[%s1307_s7 + $0xb8] sm:$0xff]  ;;  %615 = vmatpush.bf16.msra.mxu1 %v990_v10  ;;  %v997_v14 = vld [vmem:[%s1307_s7 + $0xb0] sm:$0xff]  ;;  %v996_v17 = vld [vmem:[%s1307_s7 + $0xa8] sm:$0xff] }
  0x3c   : > { %634 = vmatpush.bf16.msra.mxu2 %v998_v11  ;;  %v979_v18 = vld [vmem:[%s1307_s7 + $0x20] sm:$0xff]  ;;  %v978_v21 = vld [vmem:[%s1307_s7 + $0x18] sm:$0xff]  ;;  %v977_v24 = vld [vmem:[%s1307_s7 + $0x10] sm:$0xff] }
  0x3d   : > { %v987_v19 = vld [vmem:[%s1307_s7 + $0x60] sm:$0xff]  ;;  %v986_v22 = vld [vmem:[%s1307_s7 + $0x58] sm:$0xff]  ;;  %v985_v25 = vld [vmem:[%s1307_s7 + $0x50] sm:$0xff] }
  0x3e   : > { %597 = vmatpush.bf16.msra.mxu0 %v981_v12  ;;  %1011 = vmatpush.bf16.msra.mxu3 %v981_v12  ;;  %v995_v20 = vld [vmem:[%s1307_s7 + $0xa0] sm:$0xff]  ;;  %v994_v23 = vld [vmem:[%s1307_s7 + $0x98] sm:$0xff]  ;;  %v993_v26 = vld [vmem:[%s1307_s7 + $0x90] sm:$0xff] }
  0x3f   : > { %616 = vmatpush.bf16.msra.mxu1 %v989_v13  ;;  %v976_v27 = vld [vmem:[%s1307_s7 + $0x8] sm:$0xff]  ;;  %v975_v30 = vld [vmem:[%s1307_s7] sm:$0xff]  ;;  %v360_v54 = vld [vmem:[#allocation2 + $0x10] sm:$0xff] }
  0x40   : > { %635 = vmatpush.bf16.msra.mxu2 %v997_v14  ;;  %v984_v28 = vld [vmem:[%s1307_s7 + $0x48] sm:$0xff]  ;;  %v983_v31 = vld [vmem:[%s1307_s7 + $0x40] sm:$0xff]  ;;  %v362_v4 = vld [vmem:[#allocation2 + $0x18] sm:$0xff] }
  0x41   : > { %v992_v29 = vld [vmem:[%s1307_s7 + $0x88] sm:$0xff]  ;;  %v991_v32 = vld [vmem:[%s1307_s7 + $0x80] sm:$0xff] }
  0x42   : > { %598 = vmatpush.bf16.msra.mxu0 %v980_v15  ;;  %1012 = vmatpush.bf16.msra.mxu3 %v980_v15  ;;  %v845_v33 = vld [vmem:[%s1293_s30] sm:$0xf]  ;;  %v970_v34 = vld [vmem:[%s1293_s30 + $0x8] sm:$0xf0]  ;;  %v969_v35 = vld [vmem:[%s1293_s30 + $0x4] sm:$0xf] }
  0x43   : > { %617 = vmatpush.bf16.msra.mxu1 %v988_v16  ;;  %v847_v36 = vld [vmem:[%s1293_s30 + $0xc] sm:$0xf0]  ;;  %v853_v37 = vld [vmem:[%s1293_s30 + $0x8] sm:$0xf]  ;;  %v971_v38 = vld [vmem:[%s1293_s30 + $0x10] sm:$0xf0]  ;;  %v846_v41 = vor.u32 %v970_v34, %v845_v33 }
  0x44   : > { %636 = vmatpush.bf16.msra.mxu2 %v996_v17  ;;  %v857_v39 = vld [vmem:[%s1293_s30 + $0x18] sm:$0xf]  ;;  %v973_v40 = vld [vmem:[%s1293_s30 + $0x20] sm:$0xf0]  ;;  %v850_v42 = vor.u32 %v969_v35, %v847_v36  ;;  %v854_v43 = vor.u32 %v971_v38, %v853_v37  ;;  %v972_v45 = vld [vmem:[%s1293_s30 + $0x1c] sm:$0xf] }
  0x45   : > { %v858_v44 = vor.u32 %v973_v40, %v857_v39  ;;  %v859_v46 = vld [vmem:[%s1293_s30 + $0x24] sm:$0xf0]  ;;  %v865_v47 = vld [vmem:[%s1293_s30 + $0x20] sm:$0xf]  ;;  %v974_v48 = vld [vmem:[%s1293_s30 + $0x28] sm:$0xf0] }
  0x46   : > { %599 = vmatpush.bf16.msra.mxu0 %v979_v18  ;;  %1013 = vmatpush.bf16.msra.mxu3 %v979_v18  ;;  %v862_v49 = vor.u32 %v972_v45, %v859_v46  ;;  %v866_v50 = vor.u32 %v974_v48, %v865_v47  ;;  %v361_v61 = vld [vmem:[#allocation2] sm:$0xff]  ;;  %v363_v11 = vld [vmem:[#allocation2 + $0x8] sm:$0xff] }
  0x47   : > { %618 = vmatpush.bf16.msra.mxu1 %v987_v19 }
  0x48   : > { %637 = vmatpush.bf16.msra.mxu2 %v995_v20 }
  0x4a   : > { %600 = vmatpush.bf16.msra.mxu0 %v978_v21  ;;  %1014 = vmatpush.bf16.msra.mxu3 %v978_v21 }
  0x4b   : > { %619 = vmatpush.bf16.msra.mxu1 %v986_v22 }
  0x4c   : > { %638 = vmatpush.bf16.msra.mxu2 %v994_v23 }
  0x4e   : > { %601 = vmatpush.bf16.msra.mxu0 %v977_v24  ;;  %1015 = vmatpush.bf16.msra.mxu3 %v977_v24 }
  0x4f   : > { %620 = vmatpush.bf16.msra.mxu1 %v985_v25 }
  0x50   : > { %639 = vmatpush.bf16.msra.mxu2 %v993_v26 }
  0x52   : > { %602 = vmatpush.bf16.msra.mxu0 %v976_v27  ;;  %1016 = vmatpush.bf16.msra.mxu3 %v976_v27 }
  0x53   : > { %621 = vmatpush.bf16.msra.mxu1 %v984_v28 }
  0x54   : > { %640 = vmatpush.bf16.msra.mxu2 %v992_v29 }
  0x56   : > { %603 = vmatpush.bf16.msra.mxu0 %v975_v30  ;;  %1017 = vmatpush.bf16.msra.mxu3 %v975_v30 }
  0x57   : > { %622 = vmatpush.bf16.msra.mxu1 %v983_v31 }
  0x58   : > { %641 = vmatpush.bf16.msra.mxu2 %v991_v32 }
  0x59   : > { %604 = vmatmul.bf16.vlgmr.msra.gmra.mxu0 %v846_v41  ;;  %609 = vmatmul.bf16.vlgmr.msra.gmra.mxu3 %v858_v44 }
  0x5a   : > { %623 = vmatmul.bf16.vlgmr.msra.gmra.mxu1 %v850_v42 }
  0x5b   : > { %642 = vmatmul.bf16.vlgmr.msra.gmra.mxu2 %v854_v43 }
  0x6a   : > { %628 = vmatmul.bf16.gmra.mxu1 %v862_v49 }
  0x6b   : > { %647 = vmatmul.bf16.gmra.mxu2 %v866_v50 }
  0xd6   : > { %v605_v52 = vpop.f32.mrf.mxu0 }
  0xd7   : > { %v624_v51 = vpop.f32.mrf.mxu1 }
  0xd8   : > { %v625_v53 = vadd.f32 %v624_v51, %v605_v52 }
  0xdc   : > { %v610_v2 = vpop.f32.mrf.mxu3 }
  0xde   : > { %v643_v55 = vpop.f32.mrf.mxu2  ;;  %v607_v59 = vpop.f32.mrf.mxu0 }
  0xdf   : > { %v644_v56 = vadd.f32 %v643_v55, %v625_v53  ;;  %v626_v57 = vpop.f32.mrf.mxu1 }
  0xe0   : > { %v627_v60 = vadd.f32 %v626_v57, %v607_v59 }
  0xe1   : > { %v653_v58 = vadd.f32 %v644_v56, %v360_v54 }
  0xe3   : > { %657 = vst [vmem:[#allocation2 + $0x10] sm:$0xff] %v653_v58 }
  0xe4   : > { %v612_v9 = vpop.f32.mrf.mxu3 }
  0xe6   : > { %v645_v62 = vpop.f32.mrf.mxu2 }
  0xe7   : > { %v646_v63 = vadd.f32 %v645_v62, %v627_v60  ;;  %v629_v0 = vpop.f32.mrf.mxu1 }
  0xe8   : > { %v630_v3 = vadd.f32 %v629_v0, %v610_v2 }
  0xe9   : > { %v654_v1 = vadd.f32 %v646_v63, %v361_v61 }
  0xeb   : > { %658 = vst [vmem:[#allocation2] sm:$0xff] %v654_v1 }
  0xee   : > { %v648_v5 = vpop.f32.mrf.mxu2 }
  0xef   : > { %v649_v6 = vadd.f32 %v648_v5, %v630_v3  ;;  %v631_v8 = vpop.f32.mrf.mxu1 }
  0xf0   : > { %v632_v10 = vadd.f32 %v631_v8, %v612_v9 }
  0xf1   : > { %v655_v7 = vadd.f32 %v649_v6, %v362_v4 }
  0xf3   : > { %659 = vst [vmem:[#allocation2 + $0x18] sm:$0xff] %v655_v7 }
  0xf6   : > { %v650_v12 = vpop.f32.mrf.mxu2 }
  0xf7   : > { %v651_v13 = vadd.f32 %v650_v12, %v632_v10  ;;  %664 = sbr.rel (%p963_p0) target bundleno = 268 (0x10c), region = 78 }
  0xf9   : > { %v656_v14 = vadd.f32 %v651_v13, %v363_v11 }
  0xfb   : > { %660 = vst [vmem:[#allocation2 + $0x8] sm:$0xff] %v656_v14 }
  0xfc   : > { %v665_v15 = vld [vmem:[#allocation2 + $0x10] sm:$0xff]  ;;  %v666_v16 = vld [vmem:[#allocation2] sm:$0xff]  ;;  %v667_v19 = vld [vmem:[#allocation2 + $0x18] sm:$0xff] }
  0xfd   : > { %v1082_v17 = vld [vmem:[#allocation4] ss:$0 sm:$0xff]  ;;  %v1083_v18 = vld [vmem:[#allocation6] ss:$0 sm:$0xff] }
  0xfe   : > { %v673_v21 = vmul.f32 %v1082_v17, %v665_v15  ;;  %v674_v22 = vmul.f32 %v1082_v17, %v666_v16  ;;  %v675_v23 = vmul.f32 %v1082_v17, %v667_v19 }
 0x100   : > { %v681_v25 = vadd.f32 %v1083_v18, %v673_v21  ;;  %v682_v26 = vadd.f32 %v1083_v18, %v674_v22  ;;  %v683_v27 = vadd.f32 %v1083_v18, %v675_v23 }
 0x102   : > { %v668_v20 = vld [vmem:[#allocation2 + $0x8] sm:$0xff]  ;;  %v685_v29 = vmax.f32 %v681_v25, 0.0  ;;  %v686_v30 = vmax.f32 %v682_v26, 0.0  ;;  %v687_v31 = vmax.f32 %v683_v27, 0.0 }
 0x103   : > { %v676_v24 = vmul.f32 %v1082_v17, %v668_v20 }
 0x104   : > { %v1002_v33 = vpack.c.bf16 %v686_v30, %v685_v29 }
 0x105   : > { %v684_v28 = vadd.f32 %v1083_v18, %v676_v24 }
 0x106   : > { %1003 = vst [vmem:[%s1372_s4] sm:$0xff] %v1002_v33  }
 0x107   : > { %v688_v32 = vmax.f32 %v684_v28, 0.0 }
 0x109   : > { %v1007_v34 = vpack.c.bf16 %v688_v32, %v687_v31 }
 0x10b   : > { %1009 = vst [vmem:[%s1372_s4 + $0x8] sm:$0xff] %v1007_v34  }
 0x10c PF: > { %s16_s19 = sadd.s32 1, %s1190_s19   ;;  %s1376_s15 = smov %s1178_s16 }
 0x10d   : > { %p13_p1 = scmp.ge.s32.totalorder %s16_s19, 5   ;;  %s1377_s16 = smov %s1270_s27 }
 0x10e   : > { %s1378_s17 = smov %s1186_s18  ;;  %s1379_s18 = smov %s1381_s21 }
 0x10f   :  { %15 = sbr.rel (!%p13_p1) target bundleno = 4 (0x4), region = 125 }
 0x114   :  { %725 = vsyncpa [#allocation5], 1 }
 0x115   :  { %727 = vsyncpa [#allocation5 + $0x1], 1 }
 0x116   :  { %728 = vsyncpa [#allocation7], 1 }

// kernel: resnet18_forward.33
= control target key start
LH: loop header
LB: loop body
LE: loop exit
PB: predicated region body
PF: predicated region fallthrough
CT: control target
= control target key end

     0   :  { %9 = vsyncpa [#allocation5], 0  ;;  %s1616_s0 = inlined_call_operand.vmem [shape: bf16[8,1152], index: 0, kind: input, shape index: {}]   ;;  %s1617_s1 = inlined_call_operand.vmem [shape: bf16[1152,256], index: 1, kind: input, shape index: {}]   ;;  %s1618_s2 = inlined_call_operand.vmem [shape: f32[1,256], index: 2, kind: input, shape index: {}]   ;;  %s1619_s3 = inlined_call_operand.hbm [shape: f32[1,256], index: 3, kind: input, shape index: {}]   ;;  %s1620_s4 = inlined_call_operand.vmem [shape: bf16[8,256], index: 4, kind: output, shape index: {}]  }
   0x1   :  { %11 = vsyncpa [#allocation5 + $0x1], 0  ;;  %s1314_s15 = smov 0   ;;  %s1316_s16 = smov 0  }
   0x2   :  { %s1318_s17 = smov 0   ;;  %s1320_s18 = smov 0  }
   0x3   :  { %s1322_s19 = smov 0   ;;  %s1324_s20 = smov 0  }
   0x4   :  { %s1326_s21 = smov 0   ;;  %s1328_s22 = smov 0  }
   0x5   :  { %s1330_s23 = smov 0   ;;  %s1332_s24 = smov 0  }
   0x6 LB: > { %s955_s25 = sadd.s32 4294967295, %s1286_s24   ;;  %s29_s26 = sadd.s32 1, %s1278_s22  ;;  %s1286_s24 = sphi %s1332_s24, %s17_s24   ;;  %s1282_s23 = sphi %s1330_s23, %s1632_s23   ;;  %s1278_s22 = sphi %s1328_s22, %s1631_s22   ;;  %s1274_s21 = sphi %s1326_s21, %s1630_s21   ;;  %s1270_s20 = sphi %s1324_s20, %s1629_s20   ;;  %s1266_s19 = sphi %s1322_s19, %s1628_s19   ;;  %s1262_s18 = sphi %s1320_s18, %s1627_s18   ;;  %s1258_s17 = sphi %s1318_s17, %s1626_s17   ;;  %s1254_s16 = sphi %s1316_s16, %s1625_s16   ;;  %s1250_s15 = sphi %s1314_s15, %s1624_s15  }
   0x7   : > { %p30_p0 = scmp.ge.s32.totalorder %s29_s26, 3  ;;  %s32_s27 = sadd.s32 1, %s1282_s23 }
   0x8   : > { %s73_s28 = sadd.s32 1, %s1266_s19  ;;  %p80_p1 = scmp.ne.s32.totalorder %s1266_s19, %s1262_s18 }
   0x9   : > { %s1634_s26 = smov (%p30_p0, %s29_s26), 0  ;;  %s1636_s27 = smov (!%p30_p0, %s32_s27), %s1282_s23 }
   0xa   : > { %s68_s29 = ssub.s32 %s1278_s22, %s1634_s26  ;;  %p81_p2 = scmp.eq.s32.totalorder %s1286_s24, 0 }
   0xb   : > { %p34_p3 = scmp.ge.s32.totalorder %s1636_s27, 2  ;;  %s125_s30 = sadd.s32 1, %s1258_s17 }
   0xc   : > { %p1377_p4 = por %p81_p2, %p80_p1  ;;  %p132_p5 = scmp.ne.s32.totalorder %s1258_s17, %s1254_s16 }
   0xd   : > { %s1638_s27 = smov (%p34_p3, %s1636_s27), 0  ;;  %p138_p7 = scmp.ne.s32.totalorder %s1254_s16, %s1250_s15 }
   0xe   : > { %p1385_p6 = por %p132_p5, %p81_p2  ;;  %s69_s7 = ssub.s32 %s1282_s23, %s1638_s27 }
   0xf   : > { %p139_p8 = scmp.eq.s32.totalorder %s955_s25, 0  ;;  %s70_s8 = sor.u32 %s69_s7, %s68_s29 }
  0x10   : > { %p123_p9 = scmp.eq.s32.totalorder %s69_s7, 0  ;;  %p71_p10 = scmp.eq.s32.totalorder %s70_s8, 0 }
  0x11   : > { %p1393_p11 = por %p139_p8, %p138_p7  ;;  %p958_p12 = scmp.ge.s32.totalorder %s1286_s24, 6 }
  0x12   : > { %s1398_s10 = scalar_select %p123_p9, %s1258_s17, %s125_s30  }
  0x13   : > { %s1401_s11 = scalar_select %p71_p10, %s1266_s19, %s73_s28  }
  0x14   : > { %186 = sbr.rel (%p958_p12) target bundleno = 84 (0x54), region = 16 }
  0x19   : > { %202 = sbr.rel (!%p1377_p4) target bundleno = 80 (0x50), region = 24  ;;  %s204_s12 = sand.u32 (%p1377_p4), 1, %s1266_s19  }
  0x1a   : > { %s1064_s13 = smul.u32 (%p1377_p4), 96, %s1278_s22 }
  0x1b   : > { %s1089_s14 = smul.u32 (%p1377_p4), 192, %s204_s12 }
  0x1c   : > { %s209_s15 = sadd.s32 (%p1377_p4), %s1282_s23, %s1064_s13 }
  0x1d   : > { %s960_s25 = sshll.u32 (%p1377_p4), %s209_s15, 2  ;;  %s1417_s28 = scalar_lea.vmem (%p1377_p4), [#allocation3], %s1089_s14 }
  0x1e   : > { %s1412_s30 = scalar_lea.vmem %s1617_s1, %s960_s25 }
  0x1f   : > { %v228_v0 = vld [vmem:[%s1412_s30] sm:$0xf]  ;;  %v230_v1 = vld [vmem:[%s1412_s30 + $0x8] sm:$0xf]  ;;  %v232_v2 = vld [vmem:[%s1412_s30 + $0x10] sm:$0xf] }
  0x20   : > { %229 = vst [vmem:[%s1417_s28] sm:$0xf] %v228_v0  ;;  %v234_v3 = vld [vmem:[%s1412_s30 + $0x18] sm:$0xf]  ;;  %v236_v4 = vld [vmem:[%s1412_s30 + $0x20] sm:$0xf] }
  0x21   : > { %231 = vst [vmem:[%s1417_s28 + $0x4] sm:$0xf] %v230_v1  ;;  %v238_v5 = vld [vmem:[%s1412_s30 + $0x28] sm:$0xf]  ;;  %v240_v6 = vld [vmem:[%s1412_s30 + $0x30] sm:$0xf] }
  0x22   : > { %233 = vst [vmem:[%s1417_s28 + $0x8] sm:$0xf] %v232_v2  ;;  %v242_v7 = vld [vmem:[%s1412_s30 + $0x38] sm:$0xf]  ;;  %v244_v8 = vld [vmem:[%s1412_s30 + $0x40] sm:$0xf] }
  0x23   : > { %235 = vst [vmem:[%s1417_s28 + $0xc] sm:$0xf] %v234_v3  ;;  %v246_v9 = vld [vmem:[%s1412_s30 + $0x48] sm:$0xf]  ;;  %v248_v10 = vld [vmem:[%s1412_s30 + $0x50] sm:$0xf] }
  0x24   : > { %237 = vst [vmem:[%s1417_s28 + $0x10] sm:$0xf] %v236_v4  ;;  %v250_v11 = vld [vmem:[%s1412_s30 + $0x58] sm:$0xf]  ;;  %v252_v12 = vld [vmem:[%s1412_s30 + $0x60] sm:$0xf] }
  0x25   : > { %239 = vst [vmem:[%s1417_s28 + $0x14] sm:$0xf] %v238_v5  ;;  %v254_v13 = vld [vmem:[%s1412_s30 + $0x68] sm:$0xf]  ;;  %v256_v14 = vld [vmem:[%s1412_s30 + $0x70] sm:$0xf] }
  0x26   : > { %241 = vst [vmem:[%s1417_s28 + $0x18] sm:$0xf] %v240_v6  ;;  %v258_v15 = vld [vmem:[%s1412_s30 + $0x78] sm:$0xf]  ;;  %v260_v16 = vld [vmem:[%s1412_s30 + $0x80] sm:$0xf] }
  0x27   : > { %243 = vst [vmem:[%s1417_s28 + $0x1c] sm:$0xf] %v242_v7  ;;  %v262_v17 = vld [vmem:[%s1412_s30 + $0x88] sm:$0xf]  ;;  %v264_v18 = vld [vmem:[%s1412_s30 + $0x90] sm:$0xf] }
  0x28   : > { %245 = vst [vmem:[%s1417_s28 + $0x20] sm:$0xf] %v244_v8  ;;  %v266_v19 = vld [vmem:[%s1412_s30 + $0x98] sm:$0xf]  ;;  %v268_v20 = vld [vmem:[%s1412_s30 + $0xa0] sm:$0xf] }
  0x29   : > { %247 = vst [vmem:[%s1417_s28 + $0x24] sm:$0xf] %v246_v9  ;;  %v270_v21 = vld [vmem:[%s1412_s30 + $0xa8] sm:$0xf]  ;;  %v272_v22 = vld [vmem:[%s1412_s30 + $0xb0] sm:$0xf] }
  0x2a   : > { %249 = vst [vmem:[%s1417_s28 + $0x28] sm:$0xf] %v248_v10  ;;  %v274_v23 = vld [vmem:[%s1412_s30 + $0xb8] sm:$0xf]  ;;  %v276_v24 = vld [vmem:[%s1412_s30 + $0xc0] sm:$0xf] }
  0x2b   : > { %251 = vst [vmem:[%s1417_s28 + $0x2c] sm:$0xf] %v250_v11  ;;  %v278_v25 = vld [vmem:[%s1412_s30 + $0xc8] sm:$0xf]  ;;  %v280_v26 = vld [vmem:[%s1412_s30 + $0xd0] sm:$0xf] }
  0x2c   : > { %253 = vst [vmem:[%s1417_s28 + $0x30] sm:$0xf] %v252_v12  ;;  %v282_v27 = vld [vmem:[%s1412_s30 + $0xd8] sm:$0xf]  ;;  %v284_v28 = vld [vmem:[%s1412_s30 + $0xe0] sm:$0xf] }
  0x2d   : > { %255 = vst [vmem:[%s1417_s28 + $0x34] sm:$0xf] %v254_v13  ;;  %v286_v29 = vld [vmem:[%s1412_s30 + $0xe8] sm:$0xf]  ;;  %v288_v30 = vld [vmem:[%s1412_s30 + $0xf0] sm:$0xf] }
  0x2e   : > { %257 = vst [vmem:[%s1417_s28 + $0x38] sm:$0xf] %v256_v14  ;;  %v290_v31 = vld [vmem:[%s1412_s30 + $0xf8] sm:$0xf]  ;;  %v292_v32 = vld [vmem:[%s1412_s30 + $0x100] sm:$0xf] }
  0x2f   : > { %259 = vst [vmem:[%s1417_s28 + $0x3c] sm:$0xf] %v258_v15  ;;  %v294_v33 = vld [vmem:[%s1412_s30 + $0x108] sm:$0xf]  ;;  %v296_v34 = vld [vmem:[%s1412_s30 + $0x110] sm:$0xf] }
  0x30   : > { %261 = vst [vmem:[%s1417_s28 + $0x40] sm:$0xf] %v260_v16  ;;  %v298_v35 = vld [vmem:[%s1412_s30 + $0x118] sm:$0xf]  ;;  %v300_v36 = vld [vmem:[%s1412_s30 + $0x120] sm:$0xf] }
  0x31   : > { %263 = vst [vmem:[%s1417_s28 + $0x44] sm:$0xf] %v262_v17  ;;  %v302_v37 = vld [vmem:[%s1412_s30 + $0x128] sm:$0xf]  ;;  %v304_v38 = vld [vmem:[%s1412_s30 + $0x130] sm:$0xf] }
  0x32   : > { %265 = vst [vmem:[%s1417_s28 + $0x48] sm:$0xf] %v264_v18  ;;  %v306_v39 = vld [vmem:[%s1412_s30 + $0x138] sm:$0xf]  ;;  %v308_v40 = vld [vmem:[%s1412_s30 + $0x140] sm:$0xf] }
  0x33   : > { %267 = vst [vmem:[%s1417_s28 + $0x4c] sm:$0xf] %v266_v19  ;;  %v310_v41 = vld [vmem:[%s1412_s30 + $0x148] sm:$0xf]  ;;  %v312_v42 = vld [vmem:[%s1412_s30 + $0x150] sm:$0xf] }
  0x34   : > { %269 = vst [vmem:[%s1417_s28 + $0x50] sm:$0xf] %v268_v20  ;;  %v314_v43 = vld [vmem:[%s1412_s30 + $0x158] sm:$0xf]  ;;  %v316_v44 = vld [vmem:[%s1412_s30 + $0x160] sm:$0xf] }
  0x35   : > { %271 = vst [vmem:[%s1417_s28 + $0x54] sm:$0xf] %v270_v21  ;;  %v318_v45 = vld [vmem:[%s1412_s30 + $0x168] sm:$0xf]  ;;  %v320_v46 = vld [vmem:[%s1412_s30 + $0x170] sm:$0xf] }
  0x36   : > { %273 = vst [vmem:[%s1417_s28 + $0x58] sm:$0xf] %v272_v22  ;;  %v322_v47 = vld [vmem:[%s1412_s30 + $0x178] sm:$0xf] }
  0x37   : > { %275 = vst [vmem:[%s1417_s28 + $0x5c] sm:$0xf] %v274_v23 }
  0x38   : > { %277 = vst [vmem:[%s1417_s28 + $0x60] sm:$0xf] %v276_v24 }
  0x39   : > { %279 = vst [vmem:[%s1417_s28 + $0x64] sm:$0xf] %v278_v25 }
  0x3a   : > { %281 = vst [vmem:[%s1417_s28 + $0x68] sm:$0xf] %v280_v26 }
  0x3b   : > { %283 = vst [vmem:[%s1417_s28 + $0x6c] sm:$0xf] %v282_v27 }
  0x3c   : > { %285 = vst [vmem:[%s1417_s28 + $0x70] sm:$0xf] %v284_v28 }
  0x3d   : > { %287 = vst [vmem:[%s1417_s28 + $0x74] sm:$0xf] %v286_v29 }
  0x3e   : > { %289 = vst [vmem:[%s1417_s28 + $0x78] sm:$0xf] %v288_v30 }
  0x3f   : > { %291 = vst [vmem:[%s1417_s28 + $0x7c] sm:$0xf] %v290_v31 }
  0x40   : > { %293 = vst [vmem:[%s1417_s28 + $0x80] sm:$0xf] %v292_v32 }
  0x41   : > { %295 = vst [vmem:[%s1417_s28 + $0x84] sm:$0xf] %v294_v33 }
  0x42   : > { %297 = vst [vmem:[%s1417_s28 + $0x88] sm:$0xf] %v296_v34 }
  0x43   : > { %299 = vst [vmem:[%s1417_s28 + $0x8c] sm:$0xf] %v298_v35 }
  0x44   : > { %301 = vst [vmem:[%s1417_s28 + $0x90] sm:$0xf] %v300_v36 }
  0x45   : > { %303 = vst [vmem:[%s1417_s28 + $0x94] sm:$0xf] %v302_v37 }
  0x46   : > { %305 = vst [vmem:[%s1417_s28 + $0x98] sm:$0xf] %v304_v38 }
  0x47   : > { %307 = vst [vmem:[%s1417_s28 + $0x9c] sm:$0xf] %v306_v39 }
  0x48   : > { %309 = vst [vmem:[%s1417_s28 + $0xa0] sm:$0xf] %v308_v40 }
  0x49   : > { %311 = vst [vmem:[%s1417_s28 + $0xa4] sm:$0xf] %v310_v41 }
  0x4a   : > { %313 = vst [vmem:[%s1417_s28 + $0xa8] sm:$0xf] %v312_v42 }
  0x4b   : > { %315 = vst [vmem:[%s1417_s28 + $0xac] sm:$0xf] %v314_v43 }
  0x4c   : > { %317 = vst [vmem:[%s1417_s28 + $0xb0] sm:$0xf] %v316_v44 }
  0x4d   : > { %319 = vst [vmem:[%s1417_s28 + $0xb4] sm:$0xf] %v318_v45 }
  0x4e   : > { %321 = vst [vmem:[%s1417_s28 + $0xb8] sm:$0xf] %v320_v46 }
  0x4f   : > { %323 = vst [vmem:[%s1417_s28 + $0xbc] sm:$0xf] %v322_v47 }
  0x50 PF: > { %s450_s5 = sand.u32 1, %s1258_s17   ;;  %s456_s13 = scalar_lea.hbm %s1619_s3, %s1282_s23 }
  0x51   : > { %s458_s14 = sshll.u32 %s456_s13, 4  ;;  %s453_s15 = scalar_lea.vmem [#allocation4], %s450_s5  ;;  %s459_s14 = int_to_ptr.hbm [resolvable:$true] %s458_s14 }
  0x52   : > { %s460_s25 = sshll.u32 %s453_s15, 4  ;;  %s451_s29 = scalar_lea.sflag [#allocation5], %s450_s5  ;;  %s461_s25 = int_to_ptr.vmem [resolvable:$true] %s460_s25 }
  0x53   : > { %1091 = dma.hbm_to_vmem [thread:$0]  (%p1385_p6), %s459_s14, 16, %s461_s25, %s451_s29  }
  0x54 PF: > { %p961_p13 = scmp.ge.s32.totalorder %s1286_s24, 1  ;;  %p465_p0 = scmp.lt.s32.totalorder %s1286_s24, 7 }
  0x56   : > { %p466_p1 = pnand %p961_p13, %p465_p0 }
  0x57   : > { %s472_s7 = sand.u32 (!%p466_p1), 1, %s1262_s18   ;;  %s478_s30 = sand.u32 (!%p466_p1), 1, %s1254_s16  }
  0x58   : > { %469 = sbr.rel (%p466_p1) target bundleno = 293 (0x125), region = 73  ;;  %s479_s12 = scalar_lea.sflag (!%p466_p1), [#allocation5], %s478_s30 }
  0x59   : > { %s1090_s28 = smul.u32 (!%p466_p1), 192, %s472_s7  ;;  %s1525_s13 = scalar_lea.vmem (!%p466_p1), [#allocation4], %s478_s30 }
  0x5b   : > { %s1523_s8 = scalar_lea.vmem (!%p466_p1), [#allocation3], %s1090_s28 }
  0x5d   : > { %1245 = dma.done.wait (%p1393_p11), %s479_s12, 16  }
  0x5e   : > { %1247 = vsyncadd (%p1393_p11), %s479_s12, 4294967280  ;;  %s525_s6 = smul.u32 3, %s1270_s20  ;;  %p536_p2 = scmp.lt.s32.totalorder %s1274_s21, 1 }
  0x5f   : > { %p964_p4 = scmp.ne.s32.totalorder %s1270_s20, 0 }
  0x60   : > { %p528_p3 = scmp.lt.s32.totalorder %s525_s6, 8  ;;  %s1640_s21 = smov (!%p536_p2, %s1274_s21), 1 }
  0x61   : > { %s538_s14 = scalar_lea.vmem %s1618_s2, %s1640_s21  ;;  %s963_s15 = sshll.u32 %s1640_s21, 2 }
  0x62   : > { %s1642_s6 = smov (!%p528_p3, %s525_s6), 8  ;;  %s1544_s7 = scalar_lea.vmem %s1620_s4, %s963_s15 }
  0x63   : > { %s962_s25 = sshll.u32 %s1642_s6, 2  ;;  %550 = sbr.rel (%p964_p4) target bundleno = 106 (0x6a), region = 85 }
  0x64   : > { %s1549_s12 = scalar_lea.vmem %s1616_s0, %s962_s25 }
  0x68   : > { %v1288_v48 = vmov 0.0  }
  0x69   : > { %551 = vst [vmem:[#allocation2] sm:$0xff] %v1288_v48 }
  0x6a PF: > { %v1072_v49 = vld [vmem:[%s1523_s8 + $0x38] sm:$0xff]  ;;  %v1071_v52 = vld [vmem:[%s1523_s8 + $0x30] sm:$0xff]  ;;  %v1070_v55 = vld [vmem:[%s1523_s8 + $0x28] sm:$0xff]  ;;  %p1061_p5 = scmp.ne.s32.totalorder %s1270_s20, 2 }
  0x6b   : > { %v1080_v50 = vld [vmem:[%s1523_s8 + $0x78] sm:$0xff]  ;;  %758 = vmatpush.bf16.msra.mxu0 %v1072_v49  ;;  %v1079_v53 = vld [vmem:[%s1523_s8 + $0x70] sm:$0xff]  ;;  %v1078_v56 = vld [vmem:[%s1523_s8 + $0x68] sm:$0xff] }
  0x6c   : > { %v1088_v51 = vld [vmem:[%s1523_s8 + $0xb8] sm:$0xff]  ;;  %771 = vmatpush.bf16.msra.mxu1 %v1080_v50  ;;  %v1087_v54 = vld [vmem:[%s1523_s8 + $0xb0] sm:$0xff]  ;;  %v1086_v57 = vld [vmem:[%s1523_s8 + $0xa8] sm:$0xff] }
  0x6d   : > { %784 = vmatpush.bf16.msra.mxu2 %v1088_v51  ;;  %v1069_v58 = vld [vmem:[%s1523_s8 + $0x20] sm:$0xff]  ;;  %v1068_v61 = vld [vmem:[%s1523_s8 + $0x18] sm:$0xff]  ;;  %v1067_v0 = vld [vmem:[%s1523_s8 + $0x10] sm:$0xff] }
  0x6e   : > { %v1077_v59 = vld [vmem:[%s1523_s8 + $0x60] sm:$0xff]  ;;  %v1076_v62 = vld [vmem:[%s1523_s8 + $0x58] sm:$0xff]  ;;  %v1075_v1 = vld [vmem:[%s1523_s8 + $0x50] sm:$0xff] }
  0x6f   : > { %759 = vmatpush.bf16.msra.mxu0 %v1071_v52  ;;  %v1085_v60 = vld [vmem:[%s1523_s8 + $0xa0] sm:$0xff]  ;;  %v1084_v63 = vld [vmem:[%s1523_s8 + $0x98] sm:$0xff]  ;;  %v1083_v2 = vld [vmem:[%s1523_s8 + $0x90] sm:$0xff] }
  0x70   : > { %772 = vmatpush.bf16.msra.mxu1 %v1079_v53  ;;  %v1066_v3 = vld [vmem:[%s1523_s8 + $0x8] sm:$0xff]  ;;  %v553_v5 = vld [vmem:[%s1549_s12] sm:$0xff]  ;;  %v554_v7 = vld [vmem:[%s1549_s12 + $0x8] sm:$0xf] }
  0x71   : > { %785 = vmatpush.bf16.msra.mxu2 %v1087_v54  ;;  %v1074_v4 = vld [vmem:[%s1523_s8 + $0x48] sm:$0xff]  ;;  %v605_v8 = vunpack.c.l.b16 %v553_v5  ;;  %v606_v9 = vunpack.c.h.b16 %v553_v5  ;;  %v1065_v10 = vld [vmem:[%s1523_s8] sm:$0xff]  ;;  %v607_v12 = vunpack.c.l.b16 %v554_v7  ;;  %v552_v20 = vld [vmem:[#allocation2] sm:$0xff] }
  0x72   : > { %v1082_v6 = vld [vmem:[%s1523_s8 + $0x88] sm:$0xff]  ;;  %v1073_v11 = vld [vmem:[%s1523_s8 + $0x40] sm:$0xff] }
  0x73   : > { %760 = vmatpush.bf16.msra.mxu0 %v1070_v55  ;;  %v1081_v13 = vld [vmem:[%s1523_s8 + $0x80] sm:$0xff]  ;;  %v608_v14 = vpack.c.b16 %v605_v8, %v605_v8  ;;  %v609_v15 = vpack.c.b16 %v606_v9, %v606_v9  ;;  %v610_v16 = vpack.c.b16 %v607_v12, %v607_v12 }
  0x74   : > { %773 = vmatpush.bf16.msra.mxu1 %v1078_v56 }
  0x75   : > { %786 = vmatpush.bf16.msra.mxu2 %v1086_v57 }
  0x77   : > { %761 = vmatpush.bf16.msra.mxu0 %v1069_v58 }
  0x78   : > { %774 = vmatpush.bf16.msra.mxu1 %v1077_v59 }
  0x79   : > { %787 = vmatpush.bf16.msra.mxu2 %v1085_v60 }
  0x7b   : > { %762 = vmatpush.bf16.msra.mxu0 %v1068_v61 }
  0x7c   : > { %775 = vmatpush.bf16.msra.mxu1 %v1076_v62 }
  0x7d   : > { %788 = vmatpush.bf16.msra.mxu2 %v1084_v63 }
  0x7f   : > { %763 = vmatpush.bf16.msra.mxu0 %v1067_v0 }
  0x80   : > { %776 = vmatpush.bf16.msra.mxu1 %v1075_v1 }
  0x81   : > { %789 = vmatpush.bf16.msra.mxu2 %v1083_v2 }
  0x83   : > { %764 = vmatpush.bf16.msra.mxu0 %v1066_v3 }
  0x84   : > { %777 = vmatpush.bf16.msra.mxu1 %v1074_v4 }
  0x85   : > { %790 = vmatpush.bf16.msra.mxu2 %v1082_v6 }
  0x87   : > { %765 = vmatpush.bf16.msra.mxu0 %v1065_v10 }
  0x88   : > { %778 = vmatpush.bf16.msra.mxu1 %v1073_v11 }
  0x89   : > { %791 = vmatpush.bf16.msra.mxu2 %v1081_v13 }
  0x8a   : > { %766 = vmatmul.bf16.vlgmr.msra.gmra.mxu0 %v608_v14 }
  0x8b   : > { %779 = vmatmul.bf16.vlgmr.msra.gmra.mxu1 %v609_v15 }
  0x8c   : > { %792 = vmatmul.bf16.vlgmr.msra.gmra.mxu2 %v610_v16 }
 0x107   : > { %v767_v17 = vpop.f32.mrf.mxu0 }
 0x108   : > { %v780_v18 = vpop.f32.mrf.mxu1 }
 0x109   : > { %v781_v19 = vadd.f32 %v780_v18, %v767_v17 }
 0x10f   : > { %v793_v21 = vpop.f32.mrf.mxu2  ;;  %v769_v23 = vpop.f32.mrf.mxu0 }
 0x110   : > { %v794_v22 = vadd.f32 %v793_v21, %v781_v19  ;;  %v782_v24 = vpop.f32.mrf.mxu1 }
 0x112   : > { %v797_v25 = vadd.f32 %v794_v22, %v552_v20 }
 0x113   : > { %802 = sbr.rel (%p1061_p5) target bundleno = 293 (0x125), region = 89 }
 0x114   : > { %798 = vst [vmem:[#allocation2] sm:$0xff] %v797_v25 }
 0x117   : > { %v795_v26 = vpop.f32.mrf.mxu2 }
 0x118   : > { %v1174_v28 = vld [vmem:[%s538_s14] ss:$0 sm:$0xff] }
 0x119   : > { %v1175_v29 = vld [vmem:[%s1525_s13] ss:$0 sm:$0xff] }
 0x11b   : > { %v803_v27 = vld [vmem:[#allocation2] sm:$0xff] }
 0x11c   : > { %v808_v30 = vmul.f32 %v1174_v28, %v803_v27 }
 0x11e   : > { %v813_v31 = vadd.f32 %v1175_v29, %v808_v30 }
 0x120   : > { %v814_v32 = vmax.f32 %v813_v31, 0.0 }
 0x122   : > { %v815_v33 = vpack.c.bf16 %v814_v32, %v814_v32 }
 0x124   : > { %816 = vst [vmem:[%s1544_s7] sm:$0xf] %v815_v33 }
 0x125 PF: > { %s17_s24 = sadd.s32 1, %s1286_s24   ;;  %s1624_s15 = smov %s1254_s16 }
 0x126   : > { %p14_p6 = scmp.ge.s32.totalorder %s17_s24, 8   ;;  %s1625_s16 = smov %s1258_s17 }
 0x127   : > { %s1626_s17 = smov %s1398_s10  ;;  %s1627_s18 = smov %s1266_s19 }
 0x128   : > { %s1628_s19 = smov %s1401_s11  ;;  %s1629_s20 = smov %s1278_s22 }
 0x129   : > { %s1630_s21 = smov %s1282_s23  ;;  %s1631_s22 = smov %s1634_s26 }
 0x12a   : > { %s1632_s23 = smov %s1638_s27  ;;  %16 = sbr.rel (!%p14_p6) target bundleno = 6 (0x6), region = 139 }
 0x12f   :  { %844 = vsyncpa [#allocation5], 1 }
 0x130   :  { %846 = vsyncpa [#allocation5 + $0x1], 1 }

// kernel: resnet18_forward.34
= control target key start
LH: loop header
LB: loop body
LE: loop exit
PB: predicated region body
PF: predicated region fallthrough
CT: control target
= control target key end

     0   :  { %9 = vsyncpa [#allocation5], 0  ;;  %s1055_s0 = inlined_call_operand.vmem [shape: bf16[8,128], index: 0, kind: input, shape index: {}]   ;;  %s1056_s1 = inlined_call_operand.vmem [shape: bf16[128,256], index: 1, kind: input, shape index: {}]   ;;  %s1057_s2 = inlined_call_operand.hbm [shape: f32[1,256], index: 2, kind: input, shape index: {}]   ;;  %s1058_s3 = inlined_call_operand.hbm [shape: f32[1,256], index: 3, kind: input, shape index: {}]   ;;  %s1059_s4 = inlined_call_operand.vmem [shape: bf16[8,256], index: 4, kind: output, shape index: {}]  }
   0x1   :  { %11 = vsyncpa [#allocation5 + $0x1], 0 }
   0x2   :  { %12 = vsyncpa [#allocation7], 0 }
   0x3   :  { %14 = vsyncpa [#allocation7 + $0x1], 0  ;;  %s922_s15 = smov 0   ;;  %s924_s16 = smov 0  }
   0x4   :  { %s926_s17 = smov 0   ;;  %s928_s18 = smov 0  }
   0x5   :  { %s930_s19 = smov 0   ;;  %s932_s20 = smov 0  }
   0x6 LB: > { %s679_s21 = sadd.s32 4294967295, %s895_s20   ;;  %s35_s22 = sadd.s32 1, %s891_s19  ;;  %s895_s20 = sphi %s932_s20, %s20_s20   ;;  %s891_s19 = sphi %s930_s19, %s1066_s19   ;;  %s887_s18 = sphi %s928_s18, %s1065_s18   ;;  %s883_s17 = sphi %s926_s17, %s1064_s17   ;;  %s879_s16 = sphi %s924_s16, %s1063_s16   ;;  %s875_s15 = sphi %s922_s15, %s1062_s15  }
   0x7   : > { %p37_p0 = scmp.ge.s32.totalorder %s35_s22, 2  ;;  %s76_s23 = sadd.s32 1, %s883_s17 }
   0x8   : > { %p83_p1 = scmp.ne.s32.totalorder %s883_s17, %s879_s16  ;;  %p84_p2 = scmp.eq.s32.totalorder %s895_s20, 0 }
   0x9   : > { %s1068_s22 = smov (%p37_p0, %s35_s22), 0  ;;  %p115_p4 = scmp.ne.s32.totalorder %s879_s16, %s875_s15 }
   0xa   : > { %p958_p3 = por %p84_p2, %p83_p1  ;;  %s72_s25 = ssub.s32 %s891_s19, %s1068_s22 }
   0xb   : > { %p116_p5 = scmp.eq.s32.totalorder %s679_s21, 0  ;;  %p74_p6 = scmp.eq.s32.totalorder %s72_s25, 0 }
   0xc   : > { %p683_p8 = scmp.ge.s32.totalorder %s895_s20, 2 }
   0xd   : > { %p965_p7 = por %p116_p5, %p115_p4 }
   0xe   : > { %s970_s27 = scalar_select %p74_p6, %s883_s17, %s76_s23  }
   0xf   : > { %199 = sbr.rel (%p683_p8) target bundleno = 48 (0x30), region = 20 }
  0x14   : > { %202 = sbr.rel (!%p958_p3) target bundleno = 40 (0x28), region = 24  ;;  %s204_s28 = sand.u32 (%p958_p3), 1, %s883_s17  }
  0x15   : > { %s685_s29 = sshll.u32 (%p958_p3), %s891_s19, 2  ;;  %s684_s30 = sshll.u32 (%p958_p3), %s204_s28, 6 }
  0x16   : > { %s980_s7 = scalar_lea.vmem (%p958_p3), %s1056_s1, %s685_s29  ;;  %s206_s8 = scalar_lea.vmem (%p958_p3), [#allocation3], %s684_s30 }
  0x17   : > { %v228_v0 = vld [vmem:[%s980_s7] sm:$0xf] (%p958_p3)  ;;  %v230_v1 = vld [vmem:[%s980_s7 + $0x8] sm:$0xf] (%p958_p3)  ;;  %v232_v2 = vld [vmem:[%s980_s7 + $0x10] sm:$0xf] (%p958_p3) }
  0x18   : > { %229 = vst [vmem:[%s206_s8] sm:$0xf] (%p958_p3), %v228_v0  ;;  %v234_v3 = vld [vmem:[%s980_s7 + $0x18] sm:$0xf] (%p958_p3)  ;;  %v236_v4 = vld [vmem:[%s980_s7 + $0x20] sm:$0xf] (%p958_p3) }
  0x19   : > { %231 = vst [vmem:[%s206_s8 + $0x4] sm:$0xf] %v230_v1  ;;  %v238_v5 = vld [vmem:[%s980_s7 + $0x28] sm:$0xf]  ;;  %v240_v6 = vld [vmem:[%s980_s7 + $0x30] sm:$0xf] }
  0x1a   : > { %233 = vst [vmem:[%s206_s8 + $0x8] sm:$0xf] %v232_v2  ;;  %v242_v7 = vld [vmem:[%s980_s7 + $0x38] sm:$0xf]  ;;  %v244_v8 = vld [vmem:[%s980_s7 + $0x40] sm:$0xf] }
  0x1b   : > { %235 = vst [vmem:[%s206_s8 + $0xc] sm:$0xf] %v234_v3  ;;  %v246_v9 = vld [vmem:[%s980_s7 + $0x48] sm:$0xf]  ;;  %v248_v10 = vld [vmem:[%s980_s7 + $0x50] sm:$0xf] }
  0x1c   : > { %237 = vst [vmem:[%s206_s8 + $0x10] sm:$0xf] %v236_v4  ;;  %v250_v11 = vld [vmem:[%s980_s7 + $0x58] sm:$0xf]  ;;  %v252_v12 = vld [vmem:[%s980_s7 + $0x60] sm:$0xf] }
  0x1d   : > { %239 = vst [vmem:[%s206_s8 + $0x14] sm:$0xf] %v238_v5  ;;  %v254_v13 = vld [vmem:[%s980_s7 + $0x68] sm:$0xf]  ;;  %v256_v14 = vld [vmem:[%s980_s7 + $0x70] sm:$0xf] }
  0x1e   : > { %241 = vst [vmem:[%s206_s8 + $0x18] sm:$0xf] %v240_v6  ;;  %v258_v15 = vld [vmem:[%s980_s7 + $0x78] sm:$0xf] }
  0x1f   : > { %243 = vst [vmem:[%s206_s8 + $0x1c] sm:$0xf] %v242_v7 }
  0x20   : > { %245 = vst [vmem:[%s206_s8 + $0x20] sm:$0xf] %v244_v8 }
  0x21   : > { %247 = vst [vmem:[%s206_s8 + $0x24] sm:$0xf] %v246_v9 }
  0x22   : > { %249 = vst [vmem:[%s206_s8 + $0x28] sm:$0xf] %v248_v10 }
  0x23   : > { %251 = vst [vmem:[%s206_s8 + $0x2c] sm:$0xf] %v250_v11 }
  0x24   : > { %253 = vst [vmem:[%s206_s8 + $0x30] sm:$0xf] %v252_v12 }
  0x25   : > { %255 = vst [vmem:[%s206_s8 + $0x34] sm:$0xf] %v254_v13 }
  0x26   : > { %257 = vst [vmem:[%s206_s8 + $0x38] sm:$0xf] %v256_v14 }
  0x27   : > { %259 = vst [vmem:[%s206_s8 + $0x3c] sm:$0xf] %v258_v15 }
  0x28 PF: > { %s316_s9 = sand.u32 1, %s883_s17   ;;  %s322_s12 = scalar_lea.hbm %s1057_s2, %s891_s19 }
  0x29   : > { %s324_s13 = sshll.u32 %s322_s12, 4  ;;  %s319_s14 = scalar_lea.vmem [#allocation4], %s316_s9  ;;  %s325_s13 = int_to_ptr.hbm [resolvable:$true] %s324_s13 }
  0x2a   : > { %s326_s15 = sshll.u32 %s319_s14, 4  ;;  %s317_s21 = scalar_lea.sflag [#allocation5], %s316_s9  ;;  %s327_s15 = int_to_ptr.vmem [resolvable:$true] %s326_s15 }
  0x2b   : > { %731 = dma.hbm_to_vmem [thread:$0]  (%p958_p3), %s325_s13, 16, %s327_s15, %s317_s21  }
  0x2c   : > { %s339_s28 = scalar_lea.hbm %s1058_s3, %s891_s19  ;;  %s336_s29 = scalar_lea.vmem [#allocation6], %s316_s9 }
  0x2d   : > { %s343_s30 = sshll.u32 %s336_s29, 4  ;;  %s341_s5 = sshll.u32 %s339_s28, 4  ;;  %s344_s30 = int_to_ptr.vmem [resolvable:$true] %s343_s30  ;;  %s342_s5 = int_to_ptr.hbm [resolvable:$true] %s341_s5 }
  0x2e   : > { %s334_s6 = scalar_lea.sflag [#allocation7], %s316_s9 }
  0x2f   : > { %732 = dma.hbm_to_vmem [thread:$0]  (%p958_p3), %s342_s5, 16, %s344_s30, %s334_s6  }
  0x30 PF: > { %p686_p9 = scmp.ge.s32.totalorder %s895_s20, 1  ;;  %p348_p10 = scmp.lt.s32.totalorder %s895_s20, 3 }
  0x32   : > { %p349_p11 = pnand %p686_p9, %p348_p10 }
  0x33   : > { %s1014_s7 = sand.u32 (!%p349_p11), 1, %s879_s16  }
  0x34   : > { %352 = sbr.rel (%p349_p11) target bundleno = 226 (0xe2), region = 73  ;;  %s687_s8 = sshll.u32 (!%p349_p11), %s1014_s7, 6 }
  0x35   : > { %s357_s10 = scalar_lea.vmem (!%p349_p11), [#allocation3], %s687_s8  ;;  %s362_s11 = scalar_lea.sflag (!%p349_p11), [#allocation5], %s1014_s7 }
  0x36   : > { %s364_s9 = scalar_lea.vmem (!%p349_p11), [#allocation4], %s1014_s7 }
  0x39   : > { %866 = dma.done.wait (%p965_p7), %s362_s11, 16  }
  0x3a   : > { %868 = vsyncadd (%p965_p7), %s362_s11, 4294967280  ;;  %s371_s24 = scalar_lea.sflag [#allocation7], %s1014_s7  ;;  %s373_s12 = scalar_lea.vmem [#allocation6], %s1014_s7 }
  0x3b   : > { %870 = dma.done.wait (%p965_p7), %s371_s24, 16  }
  0x3c   : > { %872 = vsyncadd (%p965_p7), %s371_s24, 4294967280  ;;  %v730_v16 = vld [vmem:[%s357_s10 + $0x38] sm:$0xff]  ;;  %v729_v17 = vld [vmem:[%s357_s10 + $0x30] sm:$0xff]  ;;  %p426_p12 = scmp.lt.s32.totalorder %s887_s18, 1 }
  0x3d   : > { %503 = vmatpush.bf16.msra.mxu0 %v730_v16  ;;  %v728_v18 = vld [vmem:[%s357_s10 + $0x28] sm:$0xff]  ;;  %v727_v19 = vld [vmem:[%s357_s10 + $0x20] sm:$0xff]  ;;  %v726_v20 = vld [vmem:[%s357_s10 + $0x18] sm:$0xff] }
  0x3e   : > { %v725_v21 = vld [vmem:[%s357_s10 + $0x10] sm:$0xff]  ;;  %v724_v22 = vld [vmem:[%s357_s10 + $0x8] sm:$0xff]  ;;  %v723_v23 = vld [vmem:[%s357_s10] sm:$0xff]  ;;  %s1070_s18 = smov (!%p426_p12, %s887_s18), 1 }
  0x3f   : > { %v438_v24 = vld [vmem:[%s1055_s0] sm:$0xf]  ;;  %s688_s14 = sshll.u32 %s1070_s18, 2 }
  0x40   : > { %v783_v25 = vld [vmem:[%s364_s9] ss:$0 sm:$0xff]  ;;  %s431_s23 = scalar_lea.vmem %s1059_s4, %s688_s14 }
  0x41   : > { %504 = vmatpush.bf16.msra.mxu0 %v729_v17  ;;  %v784_v26 = vld [vmem:[%s373_s12] ss:$0 sm:$0xff] }
  0x45   : > { %505 = vmatpush.bf16.msra.mxu0 %v728_v18 }
  0x49   : > { %506 = vmatpush.bf16.msra.mxu0 %v727_v19 }
  0x4d   : > { %507 = vmatpush.bf16.msra.mxu0 %v726_v20 }
  0x51   : > { %508 = vmatpush.bf16.msra.mxu0 %v725_v21 }
  0x55   : > { %509 = vmatpush.bf16.msra.mxu0 %v724_v22 }
  0x59   : > { %510 = vmatpush.bf16.msra.mxu0 %v723_v23 }
  0x5c   : > { %511 = vmatmul.bf16.vlgmr.msra.gmra.mxu0 %v438_v24 }
  0xd9   : > { %v512_v27 = vpop.f32.mrf.mxu0 }
  0xda   : > { %v526_v28 = vmul.f32 %v783_v25, %v512_v27 }
  0xdc   : > { %v531_v29 = vadd.f32 %v784_v26, %v526_v28 }
  0xde   : > { %v532_v30 = vpack.c.bf16 %v531_v29, %v531_v29 }
  0xe0   : > { %533 = vst [vmem:[%s431_s23] sm:$0xf] %v532_v30 }
  0xe1   : > { %v514_v31 = vpop.f32.mrf.mxu0 }
  0xe2 PF: > { %s20_s20 = sadd.s32 1, %s895_s20   ;;  %s1062_s15 = smov %s879_s16 }
  0xe3   : > { %p17_p13 = scmp.ge.s32.totalorder %s20_s20, 4   ;;  %s1063_s16 = smov %s883_s17 }
  0xe4   : > { %s1064_s17 = smov %s970_s27  ;;  %s1065_s18 = smov %s891_s19 }
  0xe5   : > { %s1066_s19 = smov %s1068_s22  ;;  %19 = sbr.rel (!%p17_p13) target bundleno = 6 (0x6), region = 149 }
  0xea   :  { %561 = vsyncpa [#allocation5], 1 }
  0xeb   :  { %563 = vsyncpa [#allocation5 + $0x1], 1 }
  0xec   :  { %564 = vsyncpa [#allocation7], 1 }
  0xed   :  { %566 = vsyncpa [#allocation7 + $0x1], 1 }

// kernel: resnet18_forward.35
= control target key start
LH: loop header
LB: loop body
LE: loop exit
PB: predicated region body
PF: predicated region fallthrough
CT: control target
= control target key end

     0   :  { %s1777_s0 = inlined_call_operand.vmem [shape: bf16[8,2304], index: 0, kind: input, shape index: {}]   ;;  %s1778_s1 = inlined_call_operand.vmem [shape: bf16[2304,256], index: 1, kind: input, shape index: {}]   ;;  %s1779_s2 = inlined_call_operand.hbm [shape: f32[1,256], index: 2, kind: input, shape index: {}]   ;;  %s1780_s3 = inlined_call_operand.hbm [shape: f32[1,256], index: 3, kind: input, shape index: {}]   ;;  %s1781_s4 = inlined_call_operand.vmem [shape: bf16[8,256], index: 4, kind: input, shape index: {}]   ;;  %s1782_s5 = inlined_call_operand.vmem [shape: bf16[8,256], index: 5, kind: output, shape index: {}]  }
   0x1   :  { %1786 = sst [smem:[#allocation13_spill]] %s1778_s1 }
   0x2   :  { %10 = vsyncpa [#allocation5], 0 }
   0x3   :  { %12 = vsyncpa [#allocation5 + $0x1], 0 }
   0x4   :  { %13 = vsyncpa [#allocation7], 0 }
   0x5   :  { %15 = vsyncpa [#allocation7 + $0x1], 0  ;;  %s1464_s18 = smov 0   ;;  %s1466_s19 = smov 0  }
   0x6   :  { %s1468_s20 = smov 0   ;;  %s1470_s21 = smov 0  }
   0x7   :  { %s1472_s22 = smov 0   ;;  %s1474_s23 = smov 0  }
   0x8   :  { %s1476_s24 = smov 0   ;;  %s1478_s25 = smov 0  }
   0x9   :  { %s1480_s26 = smov 0   ;;  %s1482_s27 = smov 0  }
   0xa LB: > { %1787 = sst [smem:[#allocation10_spill]] %s1423_s25  ;;  %s1065_s28 = sadd.s32 4294967295, %s1431_s27   ;;  %s1431_s27 = sphi %s1482_s27, %s21_s27   ;;  %s1427_s26 = sphi %s1480_s26, %s1803_s26   ;;  %s1423_s25 = sphi %s1478_s25, %s1795_s25   ;;  %s1419_s24 = sphi %s1476_s24, %s1802_s24   ;;  %s1415_s23 = sphi %s1474_s23, %s1794_s23   ;;  %s1411_s22 = sphi %s1472_s22, %s1801_s22   ;;  %s1407_s21 = sphi %s1470_s21, %s1800_s21   ;;  %s1403_s20 = sphi %s1468_s20, %s1799_s20   ;;  %s1399_s19 = sphi %s1466_s19, %s1798_s19   ;;  %s1395_s18 = sphi %s1464_s18, %s1797_s18  }
   0xb   : > { %s33_s29 = sadd.s32 1, %s1423_s25  ;;  %s36_s30 = sadd.s32 1, %s1427_s26 }
   0xc   : > { %p34_p0 = scmp.ge.s32.totalorder %s33_s29, 6  ;;  %s77_s6 = sadd.s32 1, %s1411_s22 }
   0xd   : > { %p84_p1 = scmp.ne.s32.totalorder %s1411_s22, %s1407_s21  ;;  %p85_p2 = scmp.eq.s32.totalorder %s1431_s27, 0 }
   0xe   : > { %s1805_s29 = smov (%p34_p0, %s33_s29), 0  ;;  %s1807_s30 = smov (!%p34_p0, %s36_s30), %s1427_s26 }
   0xf   : > { %1788 = sst [smem:[#allocation11_spill]] %s1805_s29  ;;  %s72_s7 = ssub.s32 %s1423_s25, %s1805_s29 }
  0x10   : > { %p38_p3 = scmp.ge.s32.totalorder %s1807_s30, 2  ;;  %s103_s8 = sadd.s32 1, %s1403_s20 }
  0x11   : > { %p1527_p4 = por %p85_p2, %p84_p1  ;;  %p110_p5 = scmp.ne.s32.totalorder %s1403_s20, %s1399_s19 }
  0x12   : > { %s1809_s30 = smov (%p38_p3, %s1807_s30), 0  ;;  %p116_p7 = scmp.ne.s32.totalorder %s1399_s19, %s1395_s18 }
  0x13   : > { %1790 = sst [smem:[#allocation12_spill]] %s1809_s30  ;;  %p1535_p6 = por %p110_p5, %p85_p2 }
  0x14   : > { %s73_s11 = ssub.s32 %s1427_s26, %s1809_s30  ;;  %p117_p8 = scmp.eq.s32.totalorder %s1065_s28, 0 }
  0x15   : > { %s74_s12 = sor.u32 %s73_s11, %s72_s7  ;;  %p101_p9 = scmp.eq.s32.totalorder %s73_s11, 0 }
  0x16   : > { %p75_p10 = scmp.eq.s32.totalorder %s74_s12, 0  ;;  %p1543_p11 = por %p117_p8, %p116_p7 }
  0x17   : > { %s1548_s14 = scalar_select %p101_p9, %s1403_s20, %s103_s8  }
  0x18   : > { %s1551_s15 = scalar_select %p75_p10, %s1411_s22, %s77_s6  }
  0x19   : > { %p1068_p12 = scmp.ge.s32.totalorder %s1431_s27, 12 }
  0x1b   : > { %218 = sbr.rel (%p1068_p12) target bundleno = 97 (0x61), region = 16 }
  0x20   : > { %234 = sbr.rel (!%p1527_p4) target bundleno = 89 (0x59), region = 24  ;;  %s236_s16 = sand.u32 (%p1527_p4), 1, %s1411_s22  }
  0x21   : > { %s1175_s17 = smul.u32 (%p1527_p4), 96, %s1423_s25  ;;  %s1793_s1 = sld [smem:[#allocation13_spill]] (%p1527_p4) }
  0x22   : > { %s1200_s18 = smul.u32 (%p1527_p4), 192, %s236_s16 }
  0x23   : > { %s241_s28 = sadd.s32 (%p1527_p4), %s1427_s26, %s1175_s17 }
  0x24   : > { %s1070_s7 = sshll.u32 (%p1527_p4), %s241_s28, 2  ;;  %s1567_s6 = scalar_lea.vmem (%p1527_p4), [#allocation3], %s1200_s18 }
  0x27   : > { %s1562_s8 = scalar_lea.vmem %s1793_s1, %s1070_s7 }
  0x28   : > { %v260_v0 = vld [vmem:[%s1562_s8] sm:$0xf]  ;;  %v262_v1 = vld [vmem:[%s1562_s8 + $0x8] sm:$0xf]  ;;  %v264_v2 = vld [vmem:[%s1562_s8 + $0x10] sm:$0xf] }
  0x29   : > { %261 = vst [vmem:[%s1567_s6] sm:$0xf] %v260_v0  ;;  %v266_v3 = vld [vmem:[%s1562_s8 + $0x18] sm:$0xf]  ;;  %v268_v4 = vld [vmem:[%s1562_s8 + $0x20] sm:$0xf] }
  0x2a   : > { %263 = vst [vmem:[%s1567_s6 + $0x4] sm:$0xf] %v262_v1  ;;  %v270_v5 = vld [vmem:[%s1562_s8 + $0x28] sm:$0xf]  ;;  %v272_v6 = vld [vmem:[%s1562_s8 + $0x30] sm:$0xf] }
  0x2b   : > { %265 = vst [vmem:[%s1567_s6 + $0x8] sm:$0xf] %v264_v2  ;;  %v274_v7 = vld [vmem:[%s1562_s8 + $0x38] sm:$0xf]  ;;  %v276_v8 = vld [vmem:[%s1562_s8 + $0x40] sm:$0xf] }
  0x2c   : > { %267 = vst [vmem:[%s1567_s6 + $0xc] sm:$0xf] %v266_v3  ;;  %v278_v9 = vld [vmem:[%s1562_s8 + $0x48] sm:$0xf]  ;;  %v280_v10 = vld [vmem:[%s1562_s8 + $0x50] sm:$0xf] }
  0x2d   : > { %269 = vst [vmem:[%s1567_s6 + $0x10] sm:$0xf] %v268_v4  ;;  %v282_v11 = vld [vmem:[%s1562_s8 + $0x58] sm:$0xf]  ;;  %v284_v12 = vld [vmem:[%s1562_s8 + $0x60] sm:$0xf] }
  0x2e   : > { %271 = vst [vmem:[%s1567_s6 + $0x14] sm:$0xf] %v270_v5  ;;  %v286_v13 = vld [vmem:[%s1562_s8 + $0x68] sm:$0xf]  ;;  %v288_v14 = vld [vmem:[%s1562_s8 + $0x70] sm:$0xf] }
  0x2f   : > { %273 = vst [vmem:[%s1567_s6 + $0x18] sm:$0xf] %v272_v6  ;;  %v290_v15 = vld [vmem:[%s1562_s8 + $0x78] sm:$0xf]  ;;  %v292_v16 = vld [vmem:[%s1562_s8 + $0x80] sm:$0xf] }
  0x30   : > { %275 = vst [vmem:[%s1567_s6 + $0x1c] sm:$0xf] %v274_v7  ;;  %v294_v17 = vld [vmem:[%s1562_s8 + $0x88] sm:$0xf]  ;;  %v296_v18 = vld [vmem:[%s1562_s8 + $0x90] sm:$0xf] }
  0x31   : > { %277 = vst [vmem:[%s1567_s6 + $0x20] sm:$0xf] %v276_v8  ;;  %v298_v19 = vld [vmem:[%s1562_s8 + $0x98] sm:$0xf]  ;;  %v300_v20 = vld [vmem:[%s1562_s8 + $0xa0] sm:$0xf] }
  0x32   : > { %279 = vst [vmem:[%s1567_s6 + $0x24] sm:$0xf] %v278_v9  ;;  %v302_v21 = vld [vmem:[%s1562_s8 + $0xa8] sm:$0xf]  ;;  %v304_v22 = vld [vmem:[%s1562_s8 + $0xb0] sm:$0xf] }
  0x33   : > { %281 = vst [vmem:[%s1567_s6 + $0x28] sm:$0xf] %v280_v10  ;;  %v306_v23 = vld [vmem:[%s1562_s8 + $0xb8] sm:$0xf]  ;;  %v308_v24 = vld [vmem:[%s1562_s8 + $0xc0] sm:$0xf] }
  0x34   : > { %283 = vst [vmem:[%s1567_s6 + $0x2c] sm:$0xf] %v282_v11  ;;  %v310_v25 = vld [vmem:[%s1562_s8 + $0xc8] sm:$0xf]  ;;  %v312_v26 = vld [vmem:[%s1562_s8 + $0xd0] sm:$0xf] }
  0x35   : > { %285 = vst [vmem:[%s1567_s6 + $0x30] sm:$0xf] %v284_v12  ;;  %v314_v27 = vld [vmem:[%s1562_s8 + $0xd8] sm:$0xf]  ;;  %v316_v28 = vld [vmem:[%s1562_s8 + $0xe0] sm:$0xf] }
  0x36   : > { %287 = vst [vmem:[%s1567_s6 + $0x34] sm:$0xf] %v286_v13  ;;  %v318_v29 = vld [vmem:[%s1562_s8 + $0xe8] sm:$0xf]  ;;  %v320_v30 = vld [vmem:[%s1562_s8 + $0xf0] sm:$0xf] }
  0x37   : > { %289 = vst [vmem:[%s1567_s6 + $0x38] sm:$0xf] %v288_v14  ;;  %v322_v31 = vld [vmem:[%s1562_s8 + $0xf8] sm:$0xf]  ;;  %v324_v32 = vld [vmem:[%s1562_s8 + $0x100] sm:$0xf] }
  0x38   : > { %291 = vst [vmem:[%s1567_s6 + $0x3c] sm:$0xf] %v290_v15  ;;  %v326_v33 = vld [vmem:[%s1562_s8 + $0x108] sm:$0xf]  ;;  %v328_v34 = vld [vmem:[%s1562_s8 + $0x110] sm:$0xf] }
  0x39   : > { %293 = vst [vmem:[%s1567_s6 + $0x40] sm:$0xf] %v292_v16  ;;  %v330_v35 = vld [vmem:[%s1562_s8 + $0x118] sm:$0xf]  ;;  %v332_v36 = vld [vmem:[%s1562_s8 + $0x120] sm:$0xf] }
  0x3a   : > { %295 = vst [vmem:[%s1567_s6 + $0x44] sm:$0xf] %v294_v17  ;;  %v334_v37 = vld [vmem:[%s1562_s8 + $0x128] sm:$0xf]  ;;  %v336_v38 = vld [vmem:[%s1562_s8 + $0x130] sm:$0xf] }
  0x3b   : > { %297 = vst [vmem:[%s1567_s6 + $0x48] sm:$0xf] %v296_v18  ;;  %v338_v39 = vld [vmem:[%s1562_s8 + $0x138] sm:$0xf]  ;;  %v340_v40 = vld [vmem:[%s1562_s8 + $0x140] sm:$0xf] }
  0x3c   : > { %299 = vst [vmem:[%s1567_s6 + $0x4c] sm:$0xf] %v298_v19  ;;  %v342_v41 = vld [vmem:[%s1562_s8 + $0x148] sm:$0xf]  ;;  %v344_v42 = vld [vmem:[%s1562_s8 + $0x150] sm:$0xf] }
  0x3d   : > { %301 = vst [vmem:[%s1567_s6 + $0x50] sm:$0xf] %v300_v20  ;;  %v346_v43 = vld [vmem:[%s1562_s8 + $0x158] sm:$0xf]  ;;  %v348_v44 = vld [vmem:[%s1562_s8 + $0x160] sm:$0xf] }
  0x3e   : > { %303 = vst [vmem:[%s1567_s6 + $0x54] sm:$0xf] %v302_v21  ;;  %v350_v45 = vld [vmem:[%s1562_s8 + $0x168] sm:$0xf]  ;;  %v352_v46 = vld [vmem:[%s1562_s8 + $0x170] sm:$0xf] }
  0x3f   : > { %305 = vst [vmem:[%s1567_s6 + $0x58] sm:$0xf] %v304_v22  ;;  %v354_v47 = vld [vmem:[%s1562_s8 + $0x178] sm:$0xf] }
  0x40   : > { %307 = vst [vmem:[%s1567_s6 + $0x5c] sm:$0xf] %v306_v23 }
  0x41   : > { %309 = vst [vmem:[%s1567_s6 + $0x60] sm:$0xf] %v308_v24 }
  0x42   : > { %311 = vst [vmem:[%s1567_s6 + $0x64] sm:$0xf] %v310_v25 }
  0x43   : > { %313 = vst [vmem:[%s1567_s6 + $0x68] sm:$0xf] %v312_v26 }
  0x44   : > { %315 = vst [vmem:[%s1567_s6 + $0x6c] sm:$0xf] %v314_v27 }
  0x45   : > { %317 = vst [vmem:[%s1567_s6 + $0x70] sm:$0xf] %v316_v28 }
  0x46   : > { %319 = vst [vmem:[%s1567_s6 + $0x74] sm:$0xf] %v318_v29 }
  0x47   : > { %321 = vst [vmem:[%s1567_s6 + $0x78] sm:$0xf] %v320_v30 }
  0x48   : > { %323 = vst [vmem:[%s1567_s6 + $0x7c] sm:$0xf] %v322_v31 }
  0x49   : > { %325 = vst [vmem:[%s1567_s6 + $0x80] sm:$0xf] %v324_v32 }
  0x4a   : > { %327 = vst [vmem:[%s1567_s6 + $0x84] sm:$0xf] %v326_v33 }
  0x4b   : > { %329 = vst [vmem:[%s1567_s6 + $0x88] sm:$0xf] %v328_v34 }
  0x4c   : > { %331 = vst [vmem:[%s1567_s6 + $0x8c] sm:$0xf] %v330_v35 }
  0x4d   : > { %333 = vst [vmem:[%s1567_s6 + $0x90] sm:$0xf] %v332_v36 }
  0x4e   : > { %335 = vst [vmem:[%s1567_s6 + $0x94] sm:$0xf] %v334_v37 }
  0x4f   : > { %337 = vst [vmem:[%s1567_s6 + $0x98] sm:$0xf] %v336_v38 }
  0x50   : > { %339 = vst [vmem:[%s1567_s6 + $0x9c] sm:$0xf] %v338_v39 }
  0x51   : > { %341 = vst [vmem:[%s1567_s6 + $0xa0] sm:$0xf] %v340_v40 }
  0x52   : > { %343 = vst [vmem:[%s1567_s6 + $0xa4] sm:$0xf] %v342_v41 }
  0x53   : > { %345 = vst [vmem:[%s1567_s6 + $0xa8] sm:$0xf] %v344_v42 }
  0x54   : > { %347 = vst [vmem:[%s1567_s6 + $0xac] sm:$0xf] %v346_v43 }
  0x55   : > { %349 = vst [vmem:[%s1567_s6 + $0xb0] sm:$0xf] %v348_v44 }
  0x56   : > { %351 = vst [vmem:[%s1567_s6 + $0xb4] sm:$0xf] %v350_v45 }
  0x57   : > { %353 = vst [vmem:[%s1567_s6 + $0xb8] sm:$0xf] %v352_v46 }
  0x58   : > { %355 = vst [vmem:[%s1567_s6 + $0xbc] sm:$0xf] %v354_v47 }
  0x59 PF: > { %s476_s9 = sand.u32 1, %s1403_s20   ;;  %s482_s18 = scalar_lea.hbm %s1779_s2, %s1427_s26 }
  0x5a   : > { %s484_s28 = sshll.u32 %s482_s18, 4  ;;  %s479_s7 = scalar_lea.vmem [#allocation4], %s476_s9  ;;  %s485_s28 = int_to_ptr.hbm [resolvable:$true] %s484_s28 }
  0x5b   : > { %s486_s11 = sshll.u32 %s479_s7, 4  ;;  %s477_s12 = scalar_lea.sflag [#allocation5], %s476_s9  ;;  %s487_s11 = int_to_ptr.vmem [resolvable:$true] %s486_s11 }
  0x5c   : > { %1202 = dma.hbm_to_vmem [thread:$0]  (%p1535_p6), %s485_s28, 16, %s487_s11, %s477_s12  }
  0x5d   : > { %s499_s1 = scalar_lea.hbm %s1780_s3, %s1427_s26  ;;  %s496_s30 = scalar_lea.vmem [#allocation6], %s476_s9 }
  0x5e   : > { %s503_s29 = sshll.u32 %s496_s30, 4  ;;  %s501_s25 = sshll.u32 %s499_s1, 4  ;;  %s504_s29 = int_to_ptr.vmem [resolvable:$true] %s503_s29  ;;  %s502_s25 = int_to_ptr.hbm [resolvable:$true] %s501_s25 }
  0x5f   : > { %s494_s16 = scalar_lea.sflag [#allocation7], %s476_s9 }
  0x60   : > { %1203 = dma.hbm_to_vmem [thread:$0]  (%p1535_p6), %s502_s25, 16, %s504_s29, %s494_s16  }
  0x61 PF: > { %p1071_p13 = scmp.ge.s32.totalorder %s1431_s27, 1  ;;  %p519_p0 = scmp.lt.s32.totalorder %s1431_s27, 13 }
  0x63   : > { %p520_p1 = pnand %p1071_p13, %p519_p0 }
  0x64   : > { %s526_s17 = sand.u32 (!%p520_p1), 1, %s1407_s21   ;;  %s1679_s18 = sand.u32 (!%p520_p1), 1, %s1399_s19  }
  0x65   : > { %523 = sbr.rel (%p520_p1) target bundleno = 308 (0x134), region = 77  ;;  %s533_s10 = scalar_lea.sflag (!%p520_p1), [#allocation5], %s1679_s18 }
  0x66   : > { %s1201_s1 = smul.u32 (!%p520_p1), 192, %s526_s17  ;;  %s535_s25 = scalar_lea.vmem (!%p520_p1), [#allocation4], %s1679_s18 }
  0x68   : > { %s1681_s30 = scalar_lea.vmem (!%p520_p1), [#allocation3], %s1201_s1 }
  0x6a   : > { %1386 = dma.done.wait (%p1543_p11), %s533_s10, 16  }
  0x6b   : > { %1388 = vsyncadd (%p1543_p11), %s533_s10, 4294967280  ;;  %s542_s29 = scalar_lea.sflag [#allocation7], %s1679_s18  ;;  %s544_s9 = scalar_lea.vmem [#allocation6], %s1679_s18 }
  0x6c   : > { %1390 = dma.done.wait (%p1543_p11), %s542_s29, 16  }
  0x6d   : > { %1392 = vsyncadd (%p1543_p11), %s542_s29, 4294967280  ;;  %s599_s21 = smul.u32 3, %s1415_s23  ;;  %p612_p2 = scmp.lt.s32.totalorder %s1419_s24, 1 }
  0x6e   : > { %p1075_p4 = scmp.ne.s32.totalorder %s1415_s23, 0 }
  0x6f   : > { %p602_p3 = scmp.lt.s32.totalorder %s599_s21, 17  ;;  %s1811_s24 = smov (!%p612_p2, %s1419_s24), 1 }
  0x70   : > { %s1073_s28 = sshll.u32 %s1811_s24, 2  ;;  %629 = sbr.rel (%p1075_p4) target bundleno = 119 (0x77), region = 93 }
  0x71   : > { %s1813_s21 = smov (!%p602_p3, %s599_s21), 17  ;;  %s1701_s8 = scalar_lea.vmem %s1781_s4, %s1073_s28 }
  0x72   : > { %s1072_s7 = sshll.u32 %s1813_s21, 2  ;;  %s1711_s10 = scalar_lea.vmem %s1782_s5, %s1073_s28 }
  0x73   : > { %s1706_s13 = scalar_lea.vmem %s1777_s0, %s1072_s7 }
  0x75   : > { %v1433_v48 = vmov 0.0  }
  0x76   : > { %630 = vst [vmem:[#allocation2] sm:$0xff] %v1433_v48 }
  0x77 PF: > { %v1183_v49 = vld [vmem:[%s1681_s30 + $0x38] sm:$0xff]  ;;  %v1182_v52 = vld [vmem:[%s1681_s30 + $0x30] sm:$0xff]  ;;  %v1181_v55 = vld [vmem:[%s1681_s30 + $0x28] sm:$0xff]  ;;  %p1172_p5 = scmp.ne.s32.totalorder %s1415_s23, 5 }
  0x78   : > { %v1191_v50 = vld [vmem:[%s1681_s30 + $0x78] sm:$0xff]  ;;  %837 = vmatpush.bf16.msra.mxu0 %v1183_v49  ;;  %v1190_v53 = vld [vmem:[%s1681_s30 + $0x70] sm:$0xff]  ;;  %v1189_v56 = vld [vmem:[%s1681_s30 + $0x68] sm:$0xff] }
  0x79   : > { %v1199_v51 = vld [vmem:[%s1681_s30 + $0xb8] sm:$0xff]  ;;  %850 = vmatpush.bf16.msra.mxu1 %v1191_v50  ;;  %v1198_v54 = vld [vmem:[%s1681_s30 + $0xb0] sm:$0xff]  ;;  %v1197_v57 = vld [vmem:[%s1681_s30 + $0xa8] sm:$0xff] }
  0x7a   : > { %863 = vmatpush.bf16.msra.mxu2 %v1199_v51  ;;  %v1180_v58 = vld [vmem:[%s1681_s30 + $0x20] sm:$0xff]  ;;  %v1179_v61 = vld [vmem:[%s1681_s30 + $0x18] sm:$0xff]  ;;  %v1178_v0 = vld [vmem:[%s1681_s30 + $0x10] sm:$0xff] }
  0x7b   : > { %v1188_v59 = vld [vmem:[%s1681_s30 + $0x60] sm:$0xff]  ;;  %v1187_v62 = vld [vmem:[%s1681_s30 + $0x58] sm:$0xff]  ;;  %v1186_v1 = vld [vmem:[%s1681_s30 + $0x50] sm:$0xff] }
  0x7c   : > { %838 = vmatpush.bf16.msra.mxu0 %v1182_v52  ;;  %v1196_v60 = vld [vmem:[%s1681_s30 + $0xa0] sm:$0xff]  ;;  %v1195_v63 = vld [vmem:[%s1681_s30 + $0x98] sm:$0xff]  ;;  %v1194_v2 = vld [vmem:[%s1681_s30 + $0x90] sm:$0xff] }
  0x7d   : > { %851 = vmatpush.bf16.msra.mxu1 %v1190_v53  ;;  %v1177_v3 = vld [vmem:[%s1681_s30 + $0x8] sm:$0xff]  ;;  %v632_v5 = vld [vmem:[%s1706_s13] sm:$0xff]  ;;  %v633_v7 = vld [vmem:[%s1706_s13 + $0x8] sm:$0xf] }
  0x7e   : > { %864 = vmatpush.bf16.msra.mxu2 %v1198_v54  ;;  %v1185_v4 = vld [vmem:[%s1681_s30 + $0x48] sm:$0xff]  ;;  %v684_v8 = vunpack.c.l.b16 %v632_v5  ;;  %v685_v9 = vunpack.c.h.b16 %v632_v5  ;;  %v1176_v10 = vld [vmem:[%s1681_s30] sm:$0xff]  ;;  %v686_v12 = vunpack.c.l.b16 %v633_v7  ;;  %v631_v20 = vld [vmem:[#allocation2] sm:$0xff] }
  0x7f   : > { %v1193_v6 = vld [vmem:[%s1681_s30 + $0x88] sm:$0xff]  ;;  %v1184_v11 = vld [vmem:[%s1681_s30 + $0x40] sm:$0xff] }
  0x80   : > { %839 = vmatpush.bf16.msra.mxu0 %v1181_v55  ;;  %v1192_v13 = vld [vmem:[%s1681_s30 + $0x80] sm:$0xff]  ;;  %v687_v14 = vpack.c.b16 %v684_v8, %v684_v8  ;;  %v688_v15 = vpack.c.b16 %v685_v9, %v685_v9  ;;  %v689_v16 = vpack.c.b16 %v686_v12, %v686_v12 }
  0x81   : > { %852 = vmatpush.bf16.msra.mxu1 %v1189_v56 }
  0x82   : > { %865 = vmatpush.bf16.msra.mxu2 %v1197_v57 }
  0x84   : > { %840 = vmatpush.bf16.msra.mxu0 %v1180_v58 }
  0x85   : > { %853 = vmatpush.bf16.msra.mxu1 %v1188_v59 }
  0x86   : > { %866 = vmatpush.bf16.msra.mxu2 %v1196_v60 }
  0x88   : > { %841 = vmatpush.bf16.msra.mxu0 %v1179_v61 }
  0x89   : > { %854 = vmatpush.bf16.msra.mxu1 %v1187_v62 }
  0x8a   : > { %867 = vmatpush.bf16.msra.mxu2 %v1195_v63 }
  0x8c   : > { %842 = vmatpush.bf16.msra.mxu0 %v1178_v0 }
  0x8d   : > { %855 = vmatpush.bf16.msra.mxu1 %v1186_v1 }
  0x8e   : > { %868 = vmatpush.bf16.msra.mxu2 %v1194_v2 }
  0x90   : > { %843 = vmatpush.bf16.msra.mxu0 %v1177_v3 }
  0x91   : > { %856 = vmatpush.bf16.msra.mxu1 %v1185_v4 }
  0x92   : > { %869 = vmatpush.bf16.msra.mxu2 %v1193_v6 }
  0x94   : > { %844 = vmatpush.bf16.msra.mxu0 %v1176_v10 }
  0x95   : > { %857 = vmatpush.bf16.msra.mxu1 %v1184_v11 }
  0x96   : > { %870 = vmatpush.bf16.msra.mxu2 %v1192_v13 }
  0x97   : > { %845 = vmatmul.bf16.vlgmr.msra.gmra.mxu0 %v687_v14 }
  0x98   : > { %858 = vmatmul.bf16.vlgmr.msra.gmra.mxu1 %v688_v15 }
  0x99   : > { %871 = vmatmul.bf16.vlgmr.msra.gmra.mxu2 %v689_v16 }
 0x114   : > { %v846_v17 = vpop.f32.mrf.mxu0 }
 0x115   : > { %v859_v18 = vpop.f32.mrf.mxu1 }
 0x116   : > { %v860_v19 = vadd.f32 %v859_v18, %v846_v17 }
 0x11c   : > { %v872_v21 = vpop.f32.mrf.mxu2  ;;  %v848_v23 = vpop.f32.mrf.mxu0 }
 0x11d   : > { %v873_v22 = vadd.f32 %v872_v21, %v860_v19  ;;  %v861_v24 = vpop.f32.mrf.mxu1 }
 0x11f   : > { %v876_v25 = vadd.f32 %v873_v22, %v631_v20 }
 0x120   : > { %881 = sbr.rel (%p1172_p5) target bundleno = 308 (0x134), region = 97 }
 0x121   : > { %877 = vst [vmem:[#allocation2] sm:$0xff] %v876_v25 }
 0x124   : > { %v874_v26 = vpop.f32.mrf.mxu2 }
 0x125   : > { %v1287_v28 = vld [vmem:[%s535_s25] ss:$0 sm:$0xff] }
 0x126   : > { %v1288_v29 = vld [vmem:[%s544_s9] ss:$0 sm:$0xff] }
 0x127   : > { %v893_v30 = vld [vmem:[%s1701_s8] sm:$0xf] }
 0x128   : > { %v882_v27 = vld [vmem:[#allocation2] sm:$0xff]  ;;  %v894_v32 = vunpack.c.l.bf16 %v893_v30 }
 0x129   : > { %v887_v31 = vmul.f32 %v1287_v28, %v882_v27 }
 0x12b   : > { %v892_v33 = vadd.f32 %v1288_v29, %v887_v31 }
 0x12d   : > { %v895_v34 = vadd.f32 %v894_v32, %v892_v33 }
 0x12f   : > { %v896_v35 = vmax.f32 %v895_v34, 0.0 }
 0x131   : > { %v897_v36 = vpack.c.bf16 %v896_v35, %v896_v35 }
 0x133   : > { %898 = vst [vmem:[%s1711_s10] sm:$0xf] %v897_v36 }
 0x134 PF: > { %s21_s27 = sadd.s32 1, %s1431_s27   ;;  %s1794_s23 = sld [smem:[#allocation10_spill]] }
 0x135   : > { %p18_p6 = scmp.ge.s32.totalorder %s21_s27, 14   ;;  %s1795_s25 = sld [smem:[#allocation11_spill]] }
 0x136   : > { %s1796_s30 = sld [smem:[#allocation12_spill]]  ;;  %s1797_s18 = smov %s1399_s19 }
 0x137   : > { %s1798_s19 = smov %s1403_s20  ;;  %s1799_s20 = smov %s1548_s14 }
 0x138   : > { %s1800_s21 = smov %s1411_s22  ;;  %s1801_s22 = smov %s1551_s15 }
 0x139   : > { %s1802_s24 = smov %s1427_s26  ;;  %20 = sbr.rel (!%p18_p6) target bundleno = 10 (0xa), region = 156 }
 0x13c   : > { %s1803_s26 = smov %s1796_s30 }
 0x13e   :  { %926 = vsyncpa [#allocation5], 1 }
 0x13f   :  { %928 = vsyncpa [#allocation5 + $0x1], 1 }
 0x140   :  { %929 = vsyncpa [#allocation7], 1 }
 0x141   :  { %931 = vsyncpa [#allocation7 + $0x1], 1 }

// kernel: resnet18_forward.36
= control target key start
LH: loop header
LB: loop body
LE: loop exit
PB: predicated region body
PF: predicated region fallthrough
CT: control target
= control target key end

     0   :  { %s1686_s0 = inlined_call_operand.vmem [shape: bf16[8,2304], index: 0, kind: input, shape index: {}]   ;;  %s1687_s1 = inlined_call_operand.vmem [shape: bf16[2304,256], index: 1, kind: input, shape index: {}]   ;;  %s1688_s2 = inlined_call_operand.hbm [shape: f32[1,256], index: 2, kind: input, shape index: {}]   ;;  %s1689_s3 = inlined_call_operand.hbm [shape: f32[1,256], index: 3, kind: input, shape index: {}]   ;;  %s1690_s4 = inlined_call_operand.vmem [shape: bf16[8,256], index: 4, kind: output, shape index: {}]  }
   0x1   :  { %1693 = sst [smem:[#allocation12_spill]] %s1687_s1 }
   0x2   :  { %9 = vsyncpa [#allocation5], 0 }
   0x3   :  { %11 = vsyncpa [#allocation5 + $0x1], 0 }
   0x4   :  { %12 = vsyncpa [#allocation7], 0 }
   0x5   :  { %14 = vsyncpa [#allocation7 + $0x1], 0  ;;  %s1379_s15 = smov 0   ;;  %s1381_s16 = smov 0  }
   0x6   :  { %s1383_s17 = smov 0   ;;  %s1385_s18 = smov 0  }
   0x7   :  { %s1387_s19 = smov 0   ;;  %s1389_s20 = smov 0  }
   0x8   :  { %s1391_s21 = smov 0   ;;  %s1393_s22 = smov 0  }
   0x9   :  { %s1395_s23 = smov 0   ;;  %s1397_s24 = smov 0  }
   0xa LB: > { %s986_s25 = sadd.s32 4294967295, %s1351_s24   ;;  %s32_s26 = sadd.s32 1, %s1343_s22  ;;  %s1351_s24 = sphi %s1397_s24, %s20_s24   ;;  %s1347_s23 = sphi %s1395_s23, %s1710_s23   ;;  %s1343_s22 = sphi %s1393_s22, %s1709_s22   ;;  %s1339_s21 = sphi %s1391_s21, %s1708_s21   ;;  %s1335_s20 = sphi %s1389_s20, %s1707_s20   ;;  %s1331_s19 = sphi %s1387_s19, %s1706_s19   ;;  %s1327_s18 = sphi %s1385_s18, %s1705_s18   ;;  %s1323_s17 = sphi %s1383_s17, %s1704_s17   ;;  %s1319_s16 = sphi %s1381_s16, %s1703_s16   ;;  %s1315_s15 = sphi %s1379_s15, %s1702_s15  }
   0xb   : > { %p33_p0 = scmp.ge.s32.totalorder %s32_s26, 6  ;;  %s35_s27 = sadd.s32 1, %s1347_s23 }
   0xc   : > { %s76_s28 = sadd.s32 1, %s1331_s19  ;;  %p83_p1 = scmp.ne.s32.totalorder %s1331_s19, %s1327_s18 }
   0xd   : > { %s1712_s26 = smov (%p33_p0, %s32_s26), 0  ;;  %s1714_s27 = smov (!%p33_p0, %s35_s27), %s1347_s23 }
   0xe   : > { %1694 = sst [smem:[#allocation10_spill]] %s1712_s26  ;;  %s71_s29 = ssub.s32 %s1343_s22, %s1712_s26 }
   0xf   : > { %p84_p2 = scmp.eq.s32.totalorder %s1351_s24, 0  ;;  %p37_p3 = scmp.ge.s32.totalorder %s1714_s27, 2 }
  0x10   : > { %s102_s30 = sadd.s32 1, %s1323_s17  ;;  %p109_p5 = scmp.ne.s32.totalorder %s1323_s17, %s1319_s16 }
  0x11   : > { %p1442_p4 = por %p84_p2, %p83_p1  ;;  %s1716_s27 = smov (%p37_p3, %s1714_s27), 0 }
  0x12   : > { %1696 = sst [smem:[#allocation11_spill]] %s1716_s27  ;;  %p1450_p6 = por %p109_p5, %p84_p2 }
  0x13   : > { %p115_p7 = scmp.ne.s32.totalorder %s1319_s16, %s1315_s15  ;;  %s72_s7 = ssub.s32 %s1347_s23, %s1716_s27 }
  0x14   : > { %p116_p8 = scmp.eq.s32.totalorder %s986_s25, 0  ;;  %s73_s8 = sor.u32 %s72_s7, %s71_s29 }
  0x15   : > { %p100_p9 = scmp.eq.s32.totalorder %s72_s7, 0  ;;  %p74_p10 = scmp.eq.s32.totalorder %s73_s8, 0 }
  0x16   : > { %p1458_p11 = por %p116_p8, %p115_p7  ;;  %p989_p12 = scmp.ge.s32.totalorder %s1351_s24, 12 }
  0x17   : > { %s1463_s10 = scalar_select %p100_p9, %s1323_s17, %s102_s30  }
  0x18   : > { %s1466_s11 = scalar_select %p74_p10, %s1331_s19, %s76_s28  }
  0x19   : > { %189 = sbr.rel (%p989_p12) target bundleno = 95 (0x5f), region = 16 }
  0x1e   : > { %205 = sbr.rel (!%p1442_p4) target bundleno = 87 (0x57), region = 24  ;;  %s207_s12 = sand.u32 (%p1442_p4), 1, %s1331_s19  }
  0x1f   : > { %s1095_s13 = smul.u32 (%p1442_p4), 96, %s1343_s22  ;;  %s1699_s1 = sld [smem:[#allocation12_spill]] (%p1442_p4) }
  0x20   : > { %s1120_s14 = smul.u32 (%p1442_p4), 192, %s207_s12 }
  0x21   : > { %s212_s15 = sadd.s32 (%p1442_p4), %s1347_s23, %s1095_s13 }
  0x22   : > { %s991_s25 = sshll.u32 (%p1442_p4), %s212_s15, 2  ;;  %s1482_s28 = scalar_lea.vmem (%p1442_p4), [#allocation3], %s1120_s14 }
  0x25   : > { %s1477_s30 = scalar_lea.vmem %s1699_s1, %s991_s25 }
  0x26   : > { %v231_v0 = vld [vmem:[%s1477_s30] sm:$0xf]  ;;  %v233_v1 = vld [vmem:[%s1477_s30 + $0x8] sm:$0xf]  ;;  %v235_v2 = vld [vmem:[%s1477_s30 + $0x10] sm:$0xf] }
  0x27   : > { %232 = vst [vmem:[%s1482_s28] sm:$0xf] %v231_v0  ;;  %v237_v3 = vld [vmem:[%s1477_s30 + $0x18] sm:$0xf]  ;;  %v239_v4 = vld [vmem:[%s1477_s30 + $0x20] sm:$0xf] }
  0x28   : > { %234 = vst [vmem:[%s1482_s28 + $0x4] sm:$0xf] %v233_v1  ;;  %v241_v5 = vld [vmem:[%s1477_s30 + $0x28] sm:$0xf]  ;;  %v243_v6 = vld [vmem:[%s1477_s30 + $0x30] sm:$0xf] }
  0x29   : > { %236 = vst [vmem:[%s1482_s28 + $0x8] sm:$0xf] %v235_v2  ;;  %v245_v7 = vld [vmem:[%s1477_s30 + $0x38] sm:$0xf]  ;;  %v247_v8 = vld [vmem:[%s1477_s30 + $0x40] sm:$0xf] }
  0x2a   : > { %238 = vst [vmem:[%s1482_s28 + $0xc] sm:$0xf] %v237_v3  ;;  %v249_v9 = vld [vmem:[%s1477_s30 + $0x48] sm:$0xf]  ;;  %v251_v10 = vld [vmem:[%s1477_s30 + $0x50] sm:$0xf] }
  0x2b   : > { %240 = vst [vmem:[%s1482_s28 + $0x10] sm:$0xf] %v239_v4  ;;  %v253_v11 = vld [vmem:[%s1477_s30 + $0x58] sm:$0xf]  ;;  %v255_v12 = vld [vmem:[%s1477_s30 + $0x60] sm:$0xf] }
  0x2c   : > { %242 = vst [vmem:[%s1482_s28 + $0x14] sm:$0xf] %v241_v5  ;;  %v257_v13 = vld [vmem:[%s1477_s30 + $0x68] sm:$0xf]  ;;  %v259_v14 = vld [vmem:[%s1477_s30 + $0x70] sm:$0xf] }
  0x2d   : > { %244 = vst [vmem:[%s1482_s28 + $0x18] sm:$0xf] %v243_v6  ;;  %v261_v15 = vld [vmem:[%s1477_s30 + $0x78] sm:$0xf]  ;;  %v263_v16 = vld [vmem:[%s1477_s30 + $0x80] sm:$0xf] }
  0x2e   : > { %246 = vst [vmem:[%s1482_s28 + $0x1c] sm:$0xf] %v245_v7  ;;  %v265_v17 = vld [vmem:[%s1477_s30 + $0x88] sm:$0xf]  ;;  %v267_v18 = vld [vmem:[%s1477_s30 + $0x90] sm:$0xf] }
  0x2f   : > { %248 = vst [vmem:[%s1482_s28 + $0x20] sm:$0xf] %v247_v8  ;;  %v269_v19 = vld [vmem:[%s1477_s30 + $0x98] sm:$0xf]  ;;  %v271_v20 = vld [vmem:[%s1477_s30 + $0xa0] sm:$0xf] }
  0x30   : > { %250 = vst [vmem:[%s1482_s28 + $0x24] sm:$0xf] %v249_v9  ;;  %v273_v21 = vld [vmem:[%s1477_s30 + $0xa8] sm:$0xf]  ;;  %v275_v22 = vld [vmem:[%s1477_s30 + $0xb0] sm:$0xf] }
  0x31   : > { %252 = vst [vmem:[%s1482_s28 + $0x28] sm:$0xf] %v251_v10  ;;  %v277_v23 = vld [vmem:[%s1477_s30 + $0xb8] sm:$0xf]  ;;  %v279_v24 = vld [vmem:[%s1477_s30 + $0xc0] sm:$0xf] }
  0x32   : > { %254 = vst [vmem:[%s1482_s28 + $0x2c] sm:$0xf] %v253_v11  ;;  %v281_v25 = vld [vmem:[%s1477_s30 + $0xc8] sm:$0xf]  ;;  %v283_v26 = vld [vmem:[%s1477_s30 + $0xd0] sm:$0xf] }
  0x33   : > { %256 = vst [vmem:[%s1482_s28 + $0x30] sm:$0xf] %v255_v12  ;;  %v285_v27 = vld [vmem:[%s1477_s30 + $0xd8] sm:$0xf]  ;;  %v287_v28 = vld [vmem:[%s1477_s30 + $0xe0] sm:$0xf] }
  0x34   : > { %258 = vst [vmem:[%s1482_s28 + $0x34] sm:$0xf] %v257_v13  ;;  %v289_v29 = vld [vmem:[%s1477_s30 + $0xe8] sm:$0xf]  ;;  %v291_v30 = vld [vmem:[%s1477_s30 + $0xf0] sm:$0xf] }
  0x35   : > { %260 = vst [vmem:[%s1482_s28 + $0x38] sm:$0xf] %v259_v14  ;;  %v293_v31 = vld [vmem:[%s1477_s30 + $0xf8] sm:$0xf]  ;;  %v295_v32 = vld [vmem:[%s1477_s30 + $0x100] sm:$0xf] }
  0x36   : > { %262 = vst [vmem:[%s1482_s28 + $0x3c] sm:$0xf] %v261_v15  ;;  %v297_v33 = vld [vmem:[%s1477_s30 + $0x108] sm:$0xf]  ;;  %v299_v34 = vld [vmem:[%s1477_s30 + $0x110] sm:$0xf] }
  0x37   : > { %264 = vst [vmem:[%s1482_s28 + $0x40] sm:$0xf] %v263_v16  ;;  %v301_v35 = vld [vmem:[%s1477_s30 + $0x118] sm:$0xf]  ;;  %v303_v36 = vld [vmem:[%s1477_s30 + $0x120] sm:$0xf] }
  0x38   : > { %266 = vst [vmem:[%s1482_s28 + $0x44] sm:$0xf] %v265_v17  ;;  %v305_v37 = vld [vmem:[%s1477_s30 + $0x128] sm:$0xf]  ;;  %v307_v38 = vld [vmem:[%s1477_s30 + $0x130] sm:$0xf] }
  0x39   : > { %268 = vst [vmem:[%s1482_s28 + $0x48] sm:$0xf] %v267_v18  ;;  %v309_v39 = vld [vmem:[%s1477_s30 + $0x138] sm:$0xf]  ;;  %v311_v40 = vld [vmem:[%s1477_s30 + $0x140] sm:$0xf] }
  0x3a   : > { %270 = vst [vmem:[%s1482_s28 + $0x4c] sm:$0xf] %v269_v19  ;;  %v313_v41 = vld [vmem:[%s1477_s30 + $0x148] sm:$0xf]  ;;  %v315_v42 = vld [vmem:[%s1477_s30 + $0x150] sm:$0xf] }
  0x3b   : > { %272 = vst [vmem:[%s1482_s28 + $0x50] sm:$0xf] %v271_v20  ;;  %v317_v43 = vld [vmem:[%s1477_s30 + $0x158] sm:$0xf]  ;;  %v319_v44 = vld [vmem:[%s1477_s30 + $0x160] sm:$0xf] }
  0x3c   : > { %274 = vst [vmem:[%s1482_s28 + $0x54] sm:$0xf] %v273_v21  ;;  %v321_v45 = vld [vmem:[%s1477_s30 + $0x168] sm:$0xf]  ;;  %v323_v46 = vld [vmem:[%s1477_s30 + $0x170] sm:$0xf] }
  0x3d   : > { %276 = vst [vmem:[%s1482_s28 + $0x58] sm:$0xf] %v275_v22  ;;  %v325_v47 = vld [vmem:[%s1477_s30 + $0x178] sm:$0xf] }
  0x3e   : > { %278 = vst [vmem:[%s1482_s28 + $0x5c] sm:$0xf] %v277_v23 }
  0x3f   : > { %280 = vst [vmem:[%s1482_s28 + $0x60] sm:$0xf] %v279_v24 }
  0x40   : > { %282 = vst [vmem:[%s1482_s28 + $0x64] sm:$0xf] %v281_v25 }
  0x41   : > { %284 = vst [vmem:[%s1482_s28 + $0x68] sm:$0xf] %v283_v26 }
  0x42   : > { %286 = vst [vmem:[%s1482_s28 + $0x6c] sm:$0xf] %v285_v27 }
  0x43   : > { %288 = vst [vmem:[%s1482_s28 + $0x70] sm:$0xf] %v287_v28 }
  0x44   : > { %290 = vst [vmem:[%s1482_s28 + $0x74] sm:$0xf] %v289_v29 }
  0x45   : > { %292 = vst [vmem:[%s1482_s28 + $0x78] sm:$0xf] %v291_v30 }
  0x46   : > { %294 = vst [vmem:[%s1482_s28 + $0x7c] sm:$0xf] %v293_v31 }
  0x47   : > { %296 = vst [vmem:[%s1482_s28 + $0x80] sm:$0xf] %v295_v32 }
  0x48   : > { %298 = vst [vmem:[%s1482_s28 + $0x84] sm:$0xf] %v297_v33 }
  0x49   : > { %300 = vst [vmem:[%s1482_s28 + $0x88] sm:$0xf] %v299_v34 }
  0x4a   : > { %302 = vst [vmem:[%s1482_s28 + $0x8c] sm:$0xf] %v301_v35 }
  0x4b   : > { %304 = vst [vmem:[%s1482_s28 + $0x90] sm:$0xf] %v303_v36 }
  0x4c   : > { %306 = vst [vmem:[%s1482_s28 + $0x94] sm:$0xf] %v305_v37 }
  0x4d   : > { %308 = vst [vmem:[%s1482_s28 + $0x98] sm:$0xf] %v307_v38 }
  0x4e   : > { %310 = vst [vmem:[%s1482_s28 + $0x9c] sm:$0xf] %v309_v39 }
  0x4f   : > { %312 = vst [vmem:[%s1482_s28 + $0xa0] sm:$0xf] %v311_v40 }
  0x50   : > { %314 = vst [vmem:[%s1482_s28 + $0xa4] sm:$0xf] %v313_v41 }
  0x51   : > { %316 = vst [vmem:[%s1482_s28 + $0xa8] sm:$0xf] %v315_v42 }
  0x52   : > { %318 = vst [vmem:[%s1482_s28 + $0xac] sm:$0xf] %v317_v43 }
  0x53   : > { %320 = vst [vmem:[%s1482_s28 + $0xb0] sm:$0xf] %v319_v44 }
  0x54   : > { %322 = vst [vmem:[%s1482_s28 + $0xb4] sm:$0xf] %v321_v45 }
  0x55   : > { %324 = vst [vmem:[%s1482_s28 + $0xb8] sm:$0xf] %v323_v46 }
  0x56   : > { %326 = vst [vmem:[%s1482_s28 + $0xbc] sm:$0xf] %v325_v47 }
  0x57 PF: > { %s447_s5 = sand.u32 1, %s1323_s17   ;;  %s453_s13 = scalar_lea.hbm %s1688_s2, %s1347_s23 }
  0x58   : > { %s455_s14 = sshll.u32 %s453_s13, 4  ;;  %s450_s15 = scalar_lea.vmem [#allocation4], %s447_s5  ;;  %s456_s14 = int_to_ptr.hbm [resolvable:$true] %s455_s14 }
  0x59   : > { %s457_s25 = sshll.u32 %s450_s15, 4  ;;  %s448_s29 = scalar_lea.sflag [#allocation5], %s447_s5  ;;  %s458_s25 = int_to_ptr.vmem [resolvable:$true] %s457_s25 }
  0x5a   : > { %1122 = dma.hbm_to_vmem [thread:$0]  (%p1450_p6), %s456_s14, 16, %s458_s25, %s448_s29  }
  0x5b   : > { %s470_s28 = scalar_lea.hbm %s1689_s3, %s1347_s23  ;;  %s467_s1 = scalar_lea.vmem [#allocation6], %s447_s5 }
  0x5c   : > { %s474_s27 = sshll.u32 %s467_s1, 4  ;;  %s472_s26 = sshll.u32 %s470_s28, 4  ;;  %s475_s27 = int_to_ptr.vmem [resolvable:$true] %s474_s27  ;;  %s473_s26 = int_to_ptr.hbm [resolvable:$true] %s472_s26 }
  0x5d   : > { %s465_s8 = scalar_lea.sflag [#allocation7], %s447_s5 }
  0x5e   : > { %1123 = dma.hbm_to_vmem [thread:$0]  (%p1450_p6), %s473_s26, 16, %s475_s27, %s465_s8  }
  0x5f PF: > { %p992_p13 = scmp.ge.s32.totalorder %s1351_s24, 1  ;;  %p479_p0 = scmp.lt.s32.totalorder %s1351_s24, 13 }
  0x61   : > { %p480_p1 = pnand %p992_p13, %p479_p0 }
  0x62   : > { %s486_s12 = sand.u32 (!%p480_p1), 1, %s1327_s18   ;;  %s1594_s13 = sand.u32 (!%p480_p1), 1, %s1319_s16  }
  0x63   : > { %483 = sbr.rel (%p480_p1) target bundleno = 304 (0x130), region = 73  ;;  %s493_s6 = scalar_lea.sflag (!%p480_p1), [#allocation5], %s1594_s13 }
  0x64   : > { %s1121_s1 = smul.u32 (!%p480_p1), 192, %s486_s12  ;;  %s495_s26 = scalar_lea.vmem (!%p480_p1), [#allocation4], %s1594_s13 }
  0x66   : > { %s1596_s14 = scalar_lea.vmem (!%p480_p1), [#allocation3], %s1121_s1 }
  0x68   : > { %1306 = dma.done.wait (%p1458_p11), %s493_s6, 16  }
  0x69   : > { %1308 = vsyncadd (%p1458_p11), %s493_s6, 4294967280  ;;  %s502_s27 = scalar_lea.sflag [#allocation7], %s1594_s13  ;;  %s504_s5 = scalar_lea.vmem [#allocation6], %s1594_s13 }
  0x6a   : > { %1310 = dma.done.wait (%p1458_p11), %s502_s27, 16  }
  0x6b   : > { %1312 = vsyncadd (%p1458_p11), %s502_s27, 4294967280  ;;  %s549_s18 = smul.u32 3, %s1335_s20  ;;  %p562_p2 = scmp.lt.s32.totalorder %s1339_s21, 1 }
  0x6c   : > { %p995_p4 = scmp.ne.s32.totalorder %s1335_s20, 0 }
  0x6d   : > { %p552_p3 = scmp.lt.s32.totalorder %s549_s18, 17  ;;  %s1718_s21 = smov (!%p562_p2, %s1339_s21), 1 }
  0x6e   : > { %s994_s15 = sshll.u32 %s1718_s21, 2  ;;  %571 = sbr.rel (%p995_p4) target bundleno = 117 (0x75), region = 89 }
  0x6f   : > { %s1720_s18 = smov (!%p552_p3, %s549_s18), 17  ;;  %s1616_s30 = scalar_lea.vmem %s1690_s4, %s994_s15 }
  0x70   : > { %s993_s25 = sshll.u32 %s1720_s18, 2 }
  0x71   : > { %s1621_s9 = scalar_lea.vmem %s1686_s0, %s993_s25 }
  0x73   : > { %v1353_v48 = vmov 0.0  }
  0x74   : > { %572 = vst [vmem:[#allocation2] sm:$0xff] %v1353_v48 }
  0x75 PF: > { %v1103_v49 = vld [vmem:[%s1596_s14 + $0x38] sm:$0xff]  ;;  %v1102_v52 = vld [vmem:[%s1596_s14 + $0x30] sm:$0xff]  ;;  %v1101_v55 = vld [vmem:[%s1596_s14 + $0x28] sm:$0xff]  ;;  %p1092_p5 = scmp.ne.s32.totalorder %s1335_s20, 5 }
  0x76   : > { %v1111_v50 = vld [vmem:[%s1596_s14 + $0x78] sm:$0xff]  ;;  %779 = vmatpush.bf16.msra.mxu0 %v1103_v49  ;;  %v1110_v53 = vld [vmem:[%s1596_s14 + $0x70] sm:$0xff]  ;;  %v1109_v56 = vld [vmem:[%s1596_s14 + $0x68] sm:$0xff] }
  0x77   : > { %v1119_v51 = vld [vmem:[%s1596_s14 + $0xb8] sm:$0xff]  ;;  %792 = vmatpush.bf16.msra.mxu1 %v1111_v50  ;;  %v1118_v54 = vld [vmem:[%s1596_s14 + $0xb0] sm:$0xff]  ;;  %v1117_v57 = vld [vmem:[%s1596_s14 + $0xa8] sm:$0xff] }
  0x78   : > { %805 = vmatpush.bf16.msra.mxu2 %v1119_v51  ;;  %v1100_v58 = vld [vmem:[%s1596_s14 + $0x20] sm:$0xff]  ;;  %v1099_v61 = vld [vmem:[%s1596_s14 + $0x18] sm:$0xff]  ;;  %v1098_v0 = vld [vmem:[%s1596_s14 + $0x10] sm:$0xff] }
  0x79   : > { %v1108_v59 = vld [vmem:[%s1596_s14 + $0x60] sm:$0xff]  ;;  %v1107_v62 = vld [vmem:[%s1596_s14 + $0x58] sm:$0xff]  ;;  %v1106_v1 = vld [vmem:[%s1596_s14 + $0x50] sm:$0xff] }
  0x7a   : > { %780 = vmatpush.bf16.msra.mxu0 %v1102_v52  ;;  %v1116_v60 = vld [vmem:[%s1596_s14 + $0xa0] sm:$0xff]  ;;  %v1115_v63 = vld [vmem:[%s1596_s14 + $0x98] sm:$0xff]  ;;  %v1114_v2 = vld [vmem:[%s1596_s14 + $0x90] sm:$0xff] }
  0x7b   : > { %793 = vmatpush.bf16.msra.mxu1 %v1110_v53  ;;  %v1097_v3 = vld [vmem:[%s1596_s14 + $0x8] sm:$0xff]  ;;  %v574_v5 = vld [vmem:[%s1621_s9] sm:$0xff]  ;;  %v575_v7 = vld [vmem:[%s1621_s9 + $0x8] sm:$0xf] }
  0x7c   : > { %806 = vmatpush.bf16.msra.mxu2 %v1118_v54  ;;  %v1105_v4 = vld [vmem:[%s1596_s14 + $0x48] sm:$0xff]  ;;  %v626_v8 = vunpack.c.l.b16 %v574_v5  ;;  %v627_v9 = vunpack.c.h.b16 %v574_v5  ;;  %v1096_v10 = vld [vmem:[%s1596_s14] sm:$0xff]  ;;  %v628_v12 = vunpack.c.l.b16 %v575_v7  ;;  %v573_v20 = vld [vmem:[#allocation2] sm:$0xff] }
  0x7d   : > { %v1113_v6 = vld [vmem:[%s1596_s14 + $0x88] sm:$0xff]  ;;  %v1104_v11 = vld [vmem:[%s1596_s14 + $0x40] sm:$0xff] }
  0x7e   : > { %781 = vmatpush.bf16.msra.mxu0 %v1101_v55  ;;  %v1112_v13 = vld [vmem:[%s1596_s14 + $0x80] sm:$0xff]  ;;  %v629_v14 = vpack.c.b16 %v626_v8, %v626_v8  ;;  %v630_v15 = vpack.c.b16 %v627_v9, %v627_v9  ;;  %v631_v16 = vpack.c.b16 %v628_v12, %v628_v12 }
  0x7f   : > { %794 = vmatpush.bf16.msra.mxu1 %v1109_v56 }
  0x80   : > { %807 = vmatpush.bf16.msra.mxu2 %v1117_v57 }
  0x82   : > { %782 = vmatpush.bf16.msra.mxu0 %v1100_v58 }
  0x83   : > { %795 = vmatpush.bf16.msra.mxu1 %v1108_v59 }
  0x84   : > { %808 = vmatpush.bf16.msra.mxu2 %v1116_v60 }
  0x86   : > { %783 = vmatpush.bf16.msra.mxu0 %v1099_v61 }
  0x87   : > { %796 = vmatpush.bf16.msra.mxu1 %v1107_v62 }
  0x88   : > { %809 = vmatpush.bf16.msra.mxu2 %v1115_v63 }
  0x8a   : > { %784 = vmatpush.bf16.msra.mxu0 %v1098_v0 }
  0x8b   : > { %797 = vmatpush.bf16.msra.mxu1 %v1106_v1 }
  0x8c   : > { %810 = vmatpush.bf16.msra.mxu2 %v1114_v2 }
  0x8e   : > { %785 = vmatpush.bf16.msra.mxu0 %v1097_v3 }
  0x8f   : > { %798 = vmatpush.bf16.msra.mxu1 %v1105_v4 }
  0x90   : > { %811 = vmatpush.bf16.msra.mxu2 %v1113_v6 }
  0x92   : > { %786 = vmatpush.bf16.msra.mxu0 %v1096_v10 }
  0x93   : > { %799 = vmatpush.bf16.msra.mxu1 %v1104_v11 }
  0x94   : > { %812 = vmatpush.bf16.msra.mxu2 %v1112_v13 }
  0x95   : > { %787 = vmatmul.bf16.vlgmr.msra.gmra.mxu0 %v629_v14 }
  0x96   : > { %800 = vmatmul.bf16.vlgmr.msra.gmra.mxu1 %v630_v15 }
  0x97   : > { %813 = vmatmul.bf16.vlgmr.msra.gmra.mxu2 %v631_v16 }
 0x112   : > { %v788_v17 = vpop.f32.mrf.mxu0 }
 0x113   : > { %v801_v18 = vpop.f32.mrf.mxu1 }
 0x114   : > { %v802_v19 = vadd.f32 %v801_v18, %v788_v17 }
 0x11a   : > { %v814_v21 = vpop.f32.mrf.mxu2  ;;  %v790_v23 = vpop.f32.mrf.mxu0 }
 0x11b   : > { %v815_v22 = vadd.f32 %v814_v21, %v802_v19  ;;  %v803_v24 = vpop.f32.mrf.mxu1 }
 0x11d   : > { %v818_v25 = vadd.f32 %v815_v22, %v573_v20 }
 0x11e   : > { %823 = sbr.rel (%p1092_p5) target bundleno = 304 (0x130), region = 93 }
 0x11f   : > { %819 = vst [vmem:[#allocation2] sm:$0xff] %v818_v25 }
 0x122   : > { %v816_v26 = vpop.f32.mrf.mxu2 }
 0x123   : > { %v1207_v28 = vld [vmem:[%s495_s26] ss:$0 sm:$0xff] }
 0x124   : > { %v1208_v29 = vld [vmem:[%s504_s5] ss:$0 sm:$0xff] }
 0x126   : > { %v824_v27 = vld [vmem:[#allocation2] sm:$0xff] }
 0x127   : > { %v829_v30 = vmul.f32 %v1207_v28, %v824_v27 }
 0x129   : > { %v834_v31 = vadd.f32 %v1208_v29, %v829_v30 }
 0x12b   : > { %v835_v32 = vmax.f32 %v834_v31, 0.0 }
 0x12d   : > { %v836_v33 = vpack.c.bf16 %v835_v32, %v835_v32 }
 0x12f   : > { %837 = vst [vmem:[%s1616_s30] sm:$0xf] %v836_v33 }
 0x130 PF: > { %s20_s24 = sadd.s32 1, %s1351_s24   ;;  %s1700_s12 = sld [smem:[#allocation10_spill]] }
 0x131   : > { %p17_p6 = scmp.ge.s32.totalorder %s20_s24, 14   ;;  %s1701_s13 = sld [smem:[#allocation11_spill]] }
 0x132   : > { %s1702_s15 = smov %s1319_s16  ;;  %s1703_s16 = smov %s1323_s17 }
 0x133   : > { %s1704_s17 = smov %s1463_s10  ;;  %s1705_s18 = smov %s1331_s19 }
 0x134   : > { %s1706_s19 = smov %s1466_s11  ;;  %s1707_s20 = smov %s1343_s22 }
 0x135   : > { %s1708_s21 = smov %s1347_s23  ;;  %19 = sbr.rel (!%p17_p6) target bundleno = 10 (0xa), region = 149 }
 0x136   : > { %s1709_s22 = smov %s1700_s12 }
 0x137   : > { %s1710_s23 = smov %s1701_s13 }
 0x13a   :  { %865 = vsyncpa [#allocation5], 1 }
 0x13b   :  { %867 = vsyncpa [#allocation5 + $0x1], 1 }
 0x13c   :  { %868 = vsyncpa [#allocation7], 1 }
 0x13d   :  { %870 = vsyncpa [#allocation7 + $0x1], 1 }

// kernel: resnet18_forward.38
= control target key start
LH: loop header
LB: loop body
LE: loop exit
PB: predicated region body
PF: predicated region fallthrough
CT: control target
= control target key end

     0   :  { %s1200_s15 = smov 0   ;;  %s1202_s16 = smov 0   ;;  %s1449_s0 = inlined_call_operand.vmem [shape: bf16[8,2304], index: 0, kind: input, shape index: {}]   ;;  %s1450_s1 = inlined_call_operand.vmem [shape: bf16[2304,512], index: 1, kind: input, shape index: {}]   ;;  %s1451_s2 = inlined_call_operand.vmem [shape: f32[1,512], index: 2, kind: input, shape index: {}]   ;;  %s1452_s3 = inlined_call_operand.vmem [shape: f32[1,512], index: 3, kind: input, shape index: {}]   ;;  %s1453_s4 = inlined_call_operand.vmem [shape: bf16[8,512], index: 4, kind: output, shape index: {}]  }
   0x1   :  { %s1204_s17 = smov 0   ;;  %s1206_s18 = smov 0  }
   0x2   :  { %s1208_s19 = smov 0   ;;  %s1210_s20 = smov 0  }
   0x3   :  { %s1212_s21 = smov 0  }
   0x4 LB: > { %s26_s22 = sadd.s32 1, %s1164_s19  ;;  %s29_s23 = sadd.s32 1, %s1168_s20  ;;  %s1172_s21 = sphi %s1212_s21, %s14_s21   ;;  %s1168_s20 = sphi %s1210_s20, %s1459_s20   ;;  %s1164_s19 = sphi %s1208_s19, %s1458_s19   ;;  %s1160_s18 = sphi %s1206_s18, %s1457_s18   ;;  %s1156_s17 = sphi %s1204_s17, %s1456_s17   ;;  %s1152_s16 = sphi %s1202_s16, %s1455_s16   ;;  %s1148_s15 = sphi %s1200_s15, %s1454_s15  }
   0x5   : > { %p27_p0 = scmp.ge.s32.totalorder %s26_s22, 6  ;;  %p77_p1 = scmp.ne.s32.totalorder %s1152_s16, %s1148_s15 }
   0x6   : > { %p78_p2 = scmp.eq.s32.totalorder %s1172_s21, 0  ;;  %s70_s27 = sadd.s32 1, %s1152_s16 }
   0x7   : > { %s1461_s22 = smov (%p27_p0, %s26_s22), 0  ;;  %s1463_s23 = smov (!%p27_p0, %s29_s23), %s1168_s20 }
   0x8   : > { %p79_p3 = por %p78_p2, %p77_p1  ;;  %p31_p4 = scmp.ge.s32.totalorder %s1463_s23, 4 }
   0x9   : > { %s65_s24 = ssub.s32 %s1164_s19, %s1461_s22  ;;  %p926_p6 = scmp.ge.s32.totalorder %s1172_s21, 24 }
   0xa   : > { %s1465_s23 = smov (%p31_p4, %s1463_s23), 0 }
   0xb   : > { %s66_s25 = ssub.s32 %s1168_s20, %s1465_s23  ;;  %183 = sbr.rel (%p926_p6) target bundleno = 71 (0x47), region = 16 }
   0xc   : > { %s67_s26 = sor.u32 %s66_s25, %s65_s24 }
   0xd   : > { %p68_p5 = scmp.eq.s32.totalorder %s67_s26, 0 }
   0xf   : > { %s1251_s28 = scalar_select %p68_p5, %s1152_s16, %s70_s27  }
  0x10   : > { %199 = sbr.rel (!%p79_p3) target bundleno = 71 (0x47), region = 24  ;;  %s201_s29 = sand.u32 (%p79_p3), 1, %s1152_s16  }
  0x11   : > { %s1032_s30 = smul.u32 (%p79_p3), 192, %s1164_s19 }
  0x12   : > { %s1057_s5 = smul.u32 (%p79_p3), 192, %s201_s29 }
  0x13   : > { %s206_s6 = sadd.s32 (%p79_p3), %s1168_s20, %s1032_s30 }
  0x14   : > { %s928_s7 = sshll.u32 (%p79_p3), %s206_s6, 2  ;;  %s1265_s11 = scalar_lea.vmem (%p79_p3), [#allocation3], %s1057_s5 }
  0x15   : > { %s1260_s10 = scalar_lea.vmem %s1450_s1, %s928_s7 }
  0x16   : > { %v225_v0 = vld [vmem:[%s1260_s10] sm:$0xf]  ;;  %v227_v1 = vld [vmem:[%s1260_s10 + $0x10] sm:$0xf] }
  0x17   : > { %v229_v2 = vld [vmem:[%s1260_s10 + $0x20] sm:$0xf]  ;;  %226 = vst [vmem:[%s1265_s11] sm:$0xf] %v225_v0  ;;  %v231_v3 = vld [vmem:[%s1260_s10 + $0x30] sm:$0xf] }
  0x18   : > { %228 = vst [vmem:[%s1265_s11 + $0x4] sm:$0xf] %v227_v1  ;;  %v233_v4 = vld [vmem:[%s1260_s10 + $0x40] sm:$0xf]  ;;  %v235_v5 = vld [vmem:[%s1260_s10 + $0x50] sm:$0xf] }
  0x19   : > { %230 = vst [vmem:[%s1265_s11 + $0x8] sm:$0xf] %v229_v2  ;;  %v237_v6 = vld [vmem:[%s1260_s10 + $0x60] sm:$0xf]  ;;  %v239_v7 = vld [vmem:[%s1260_s10 + $0x70] sm:$0xf] }
  0x1a   : > { %232 = vst [vmem:[%s1265_s11 + $0xc] sm:$0xf] %v231_v3  ;;  %v241_v8 = vld [vmem:[%s1260_s10 + $0x80] sm:$0xf]  ;;  %v243_v9 = vld [vmem:[%s1260_s10 + $0x90] sm:$0xf] }
  0x1b   : > { %234 = vst [vmem:[%s1265_s11 + $0x10] sm:$0xf] %v233_v4  ;;  %v245_v10 = vld [vmem:[%s1260_s10 + $0xa0] sm:$0xf]  ;;  %v247_v11 = vld [vmem:[%s1260_s10 + $0xb0] sm:$0xf] }
  0x1c   : > { %236 = vst [vmem:[%s1265_s11 + $0x14] sm:$0xf] %v235_v5  ;;  %v249_v12 = vld [vmem:[%s1260_s10 + $0xc0] sm:$0xf]  ;;  %v251_v13 = vld [vmem:[%s1260_s10 + $0xd0] sm:$0xf] }
  0x1d   : > { %238 = vst [vmem:[%s1265_s11 + $0x18] sm:$0xf] %v237_v6  ;;  %v253_v14 = vld [vmem:[%s1260_s10 + $0xe0] sm:$0xf]  ;;  %v255_v15 = vld [vmem:[%s1260_s10 + $0xf0] sm:$0xf] }
  0x1e   : > { %240 = vst [vmem:[%s1265_s11 + $0x1c] sm:$0xf] %v239_v7  ;;  %v257_v16 = vld [vmem:[%s1260_s10 + $0x100] sm:$0xf]  ;;  %v259_v17 = vld [vmem:[%s1260_s10 + $0x110] sm:$0xf] }
  0x1f   : > { %242 = vst [vmem:[%s1265_s11 + $0x20] sm:$0xf] %v241_v8  ;;  %v261_v18 = vld [vmem:[%s1260_s10 + $0x120] sm:$0xf]  ;;  %v263_v19 = vld [vmem:[%s1260_s10 + $0x130] sm:$0xf] }
  0x20   : > { %244 = vst [vmem:[%s1265_s11 + $0x24] sm:$0xf] %v243_v9  ;;  %v265_v20 = vld [vmem:[%s1260_s10 + $0x140] sm:$0xf]  ;;  %v267_v21 = vld [vmem:[%s1260_s10 + $0x150] sm:$0xf] }
  0x21   : > { %246 = vst [vmem:[%s1265_s11 + $0x28] sm:$0xf] %v245_v10  ;;  %v269_v22 = vld [vmem:[%s1260_s10 + $0x160] sm:$0xf]  ;;  %v271_v23 = vld [vmem:[%s1260_s10 + $0x170] sm:$0xf] }
  0x22   : > { %248 = vst [vmem:[%s1265_s11 + $0x2c] sm:$0xf] %v247_v11  ;;  %v273_v24 = vld [vmem:[%s1260_s10 + $0x180] sm:$0xf]  ;;  %v275_v25 = vld [vmem:[%s1260_s10 + $0x190] sm:$0xf] }
  0x23   : > { %250 = vst [vmem:[%s1265_s11 + $0x30] sm:$0xf] %v249_v12  ;;  %v277_v26 = vld [vmem:[%s1260_s10 + $0x1a0] sm:$0xf]  ;;  %v279_v27 = vld [vmem:[%s1260_s10 + $0x1b0] sm:$0xf] }
  0x24   : > { %252 = vst [vmem:[%s1265_s11 + $0x34] sm:$0xf] %v251_v13  ;;  %v281_v28 = vld [vmem:[%s1260_s10 + $0x1c0] sm:$0xf]  ;;  %v283_v29 = vld [vmem:[%s1260_s10 + $0x1d0] sm:$0xf] }
  0x25   : > { %254 = vst [vmem:[%s1265_s11 + $0x38] sm:$0xf] %v253_v14  ;;  %v285_v30 = vld [vmem:[%s1260_s10 + $0x1e0] sm:$0xf]  ;;  %v287_v31 = vld [vmem:[%s1260_s10 + $0x1f0] sm:$0xf] }
  0x26   : > { %256 = vst [vmem:[%s1265_s11 + $0x3c] sm:$0xf] %v255_v15  ;;  %v289_v32 = vld [vmem:[%s1260_s10 + $0x200] sm:$0xf]  ;;  %v291_v33 = vld [vmem:[%s1260_s10 + $0x210] sm:$0xf] }
  0x27   : > { %258 = vst [vmem:[%s1265_s11 + $0x40] sm:$0xf] %v257_v16  ;;  %v293_v34 = vld [vmem:[%s1260_s10 + $0x220] sm:$0xf]  ;;  %v295_v35 = vld [vmem:[%s1260_s10 + $0x230] sm:$0xf] }
  0x28   : > { %260 = vst [vmem:[%s1265_s11 + $0x44] sm:$0xf] %v259_v17  ;;  %v297_v36 = vld [vmem:[%s1260_s10 + $0x240] sm:$0xf]  ;;  %v299_v37 = vld [vmem:[%s1260_s10 + $0x250] sm:$0xf] }
  0x29   : > { %262 = vst [vmem:[%s1265_s11 + $0x48] sm:$0xf] %v261_v18  ;;  %v301_v38 = vld [vmem:[%s1260_s10 + $0x260] sm:$0xf]  ;;  %v303_v39 = vld [vmem:[%s1260_s10 + $0x270] sm:$0xf] }
  0x2a   : > { %264 = vst [vmem:[%s1265_s11 + $0x4c] sm:$0xf] %v263_v19  ;;  %v305_v40 = vld [vmem:[%s1260_s10 + $0x280] sm:$0xf]  ;;  %v307_v41 = vld [vmem:[%s1260_s10 + $0x290] sm:$0xf] }
  0x2b   : > { %266 = vst [vmem:[%s1265_s11 + $0x50] sm:$0xf] %v265_v20  ;;  %v309_v42 = vld [vmem:[%s1260_s10 + $0x2a0] sm:$0xf]  ;;  %v311_v43 = vld [vmem:[%s1260_s10 + $0x2b0] sm:$0xf] }
  0x2c   : > { %268 = vst [vmem:[%s1265_s11 + $0x54] sm:$0xf] %v267_v21  ;;  %v313_v44 = vld [vmem:[%s1260_s10 + $0x2c0] sm:$0xf]  ;;  %v315_v45 = vld [vmem:[%s1260_s10 + $0x2d0] sm:$0xf] }
  0x2d   : > { %270 = vst [vmem:[%s1265_s11 + $0x58] sm:$0xf] %v269_v22  ;;  %v317_v46 = vld [vmem:[%s1260_s10 + $0x2e0] sm:$0xf]  ;;  %v319_v47 = vld [vmem:[%s1260_s10 + $0x2f0] sm:$0xf] }
  0x2e   : > { %272 = vst [vmem:[%s1265_s11 + $0x5c] sm:$0xf] %v271_v23 }
  0x2f   : > { %274 = vst [vmem:[%s1265_s11 + $0x60] sm:$0xf] %v273_v24 }
  0x30   : > { %276 = vst [vmem:[%s1265_s11 + $0x64] sm:$0xf] %v275_v25 }
  0x31   : > { %278 = vst [vmem:[%s1265_s11 + $0x68] sm:$0xf] %v277_v26 }
  0x32   : > { %280 = vst [vmem:[%s1265_s11 + $0x6c] sm:$0xf] %v279_v27 }
  0x33   : > { %282 = vst [vmem:[%s1265_s11 + $0x70] sm:$0xf] %v281_v28 }
  0x34   : > { %284 = vst [vmem:[%s1265_s11 + $0x74] sm:$0xf] %v283_v29 }
  0x35   : > { %286 = vst [vmem:[%s1265_s11 + $0x78] sm:$0xf] %v285_v30 }
  0x36   : > { %288 = vst [vmem:[%s1265_s11 + $0x7c] sm:$0xf] %v287_v31 }
  0x37   : > { %290 = vst [vmem:[%s1265_s11 + $0x80] sm:$0xf] %v289_v32 }
  0x38   : > { %292 = vst [vmem:[%s1265_s11 + $0x84] sm:$0xf] %v291_v33 }
  0x39   : > { %294 = vst [vmem:[%s1265_s11 + $0x88] sm:$0xf] %v293_v34 }
  0x3a   : > { %296 = vst [vmem:[%s1265_s11 + $0x8c] sm:$0xf] %v295_v35 }
  0x3b   : > { %298 = vst [vmem:[%s1265_s11 + $0x90] sm:$0xf] %v297_v36 }
  0x3c   : > { %300 = vst [vmem:[%s1265_s11 + $0x94] sm:$0xf] %v299_v37 }
  0x3d   : > { %302 = vst [vmem:[%s1265_s11 + $0x98] sm:$0xf] %v301_v38 }
  0x3e   : > { %304 = vst [vmem:[%s1265_s11 + $0x9c] sm:$0xf] %v303_v39 }
  0x3f   : > { %306 = vst [vmem:[%s1265_s11 + $0xa0] sm:$0xf] %v305_v40 }
  0x40   : > { %308 = vst [vmem:[%s1265_s11 + $0xa4] sm:$0xf] %v307_v41 }
  0x41   : > { %310 = vst [vmem:[%s1265_s11 + $0xa8] sm:$0xf] %v309_v42 }
  0x42   : > { %312 = vst [vmem:[%s1265_s11 + $0xac] sm:$0xf] %v311_v43 }
  0x43   : > { %314 = vst [vmem:[%s1265_s11 + $0xb0] sm:$0xf] %v313_v44 }
  0x44   : > { %316 = vst [vmem:[%s1265_s11 + $0xb4] sm:$0xf] %v315_v45 }
  0x45   : > { %318 = vst [vmem:[%s1265_s11 + $0xb8] sm:$0xf] %v317_v46 }
  0x46   : > { %320 = vst [vmem:[%s1265_s11 + $0xbc] sm:$0xf] %v319_v47 }
  0x47 PF: > { %p929_p7 = scmp.ge.s32.totalorder %s1172_s21, 1  ;;  %p451_p8 = scmp.lt.s32.totalorder %s1172_s21, 25 }
  0x49   : > { %p452_p9 = pnand %p929_p7, %p451_p8 }
  0x4a   : > { %s458_s12 = sand.u32 (!%p452_p9), 1, %s1148_s15   ;;  %s501_s13 = smul.u32 (!%p452_p9), 3, %s1156_s17 }
  0x4b   : > { %455 = sbr.rel (%p452_p9) target bundleno = 277 (0x115), region = 73  ;;  %p512_p10 = scmp.lt.s32.totalorder (!%p452_p9), %s1160_s18, 3 }
  0x4c   : > { %s1058_s14 = smul.u32 (!%p452_p9), 192, %s458_s12  ;;  %p504_p11 = scmp.lt.s32.totalorder (!%p452_p9), %s501_s13, 17 }
  0x4d   : > { %p932_p12 = scmp.ne.s32.totalorder (!%p452_p9), %s1156_s17, 0 }
  0x4e   : > { %s1387_s12 = scalar_lea.vmem (!%p452_p9), [#allocation3], %s1058_s14 }
  0x50   : > { %s1467_s13 = smov (!%p504_p11, %s501_s13), 17  ;;  %s1469_s18 = smov (!%p512_p10, %s1160_s18), 3 }
  0x51   : > { %s930_s24 = sshll.u32 %s1467_s13, 2  ;;  %s514_s15 = scalar_lea.vmem %s1451_s2, %s1469_s18 }
  0x52   : > { %s1371_s27 = scalar_lea.vmem %s1449_s0, %s930_s24  ;;  %s517_s7 = scalar_lea.vmem %s1452_s3, %s1469_s18 }
  0x53   : > { %s931_s8 = sshll.u32 %s1469_s18, 2  ;;  %529 = sbr.rel (%p932_p12) target bundleno = 90 (0x5a), region = 81 }
  0x54   : > { %s1385_s11 = scalar_lea.vmem %s1453_s4, %s931_s8 }
  0x58   : > { %v1174_v48 = vmov 0.0  }
  0x59   : > { %530 = vst [vmem:[#allocation2] sm:$0xff] %v1174_v48 }
  0x5a PF: > { %v1040_v49 = vld [vmem:[%s1387_s12 + $0x38] sm:$0xff]  ;;  %v1039_v52 = vld [vmem:[%s1387_s12 + $0x30] sm:$0xff]  ;;  %v1038_v55 = vld [vmem:[%s1387_s12 + $0x28] sm:$0xff]  ;;  %p1029_p13 = scmp.ne.s32.totalorder %s1156_s17, 5 }
  0x5b   : > { %v1048_v50 = vld [vmem:[%s1387_s12 + $0x78] sm:$0xff]  ;;  %737 = vmatpush.bf16.msra.mxu0 %v1040_v49  ;;  %v1047_v53 = vld [vmem:[%s1387_s12 + $0x70] sm:$0xff]  ;;  %v1046_v56 = vld [vmem:[%s1387_s12 + $0x68] sm:$0xff] }
  0x5c   : > { %v1056_v51 = vld [vmem:[%s1387_s12 + $0xb8] sm:$0xff]  ;;  %750 = vmatpush.bf16.msra.mxu1 %v1048_v50  ;;  %v1055_v54 = vld [vmem:[%s1387_s12 + $0xb0] sm:$0xff]  ;;  %v1054_v57 = vld [vmem:[%s1387_s12 + $0xa8] sm:$0xff] }
  0x5d   : > { %763 = vmatpush.bf16.msra.mxu2 %v1056_v51  ;;  %v1037_v58 = vld [vmem:[%s1387_s12 + $0x20] sm:$0xff]  ;;  %v1036_v61 = vld [vmem:[%s1387_s12 + $0x18] sm:$0xff]  ;;  %v1035_v0 = vld [vmem:[%s1387_s12 + $0x10] sm:$0xff] }
  0x5e   : > { %v1045_v59 = vld [vmem:[%s1387_s12 + $0x60] sm:$0xff]  ;;  %v1044_v62 = vld [vmem:[%s1387_s12 + $0x58] sm:$0xff]  ;;  %v1043_v1 = vld [vmem:[%s1387_s12 + $0x50] sm:$0xff] }
  0x5f   : > { %738 = vmatpush.bf16.msra.mxu0 %v1039_v52  ;;  %v1053_v60 = vld [vmem:[%s1387_s12 + $0xa0] sm:$0xff]  ;;  %v1052_v63 = vld [vmem:[%s1387_s12 + $0x98] sm:$0xff]  ;;  %v1051_v2 = vld [vmem:[%s1387_s12 + $0x90] sm:$0xff] }
  0x60   : > { %751 = vmatpush.bf16.msra.mxu1 %v1047_v53  ;;  %v1034_v3 = vld [vmem:[%s1387_s12 + $0x8] sm:$0xff]  ;;  %v532_v5 = vld [vmem:[%s1371_s27] sm:$0xff]  ;;  %v533_v7 = vld [vmem:[%s1371_s27 + $0x8] sm:$0xf] }
  0x61   : > { %764 = vmatpush.bf16.msra.mxu2 %v1055_v54  ;;  %v1042_v4 = vld [vmem:[%s1387_s12 + $0x48] sm:$0xff]  ;;  %v584_v8 = vunpack.c.l.b16 %v532_v5  ;;  %v585_v9 = vunpack.c.h.b16 %v532_v5  ;;  %v1033_v10 = vld [vmem:[%s1387_s12] sm:$0xff]  ;;  %v586_v12 = vunpack.c.l.b16 %v533_v7  ;;  %v531_v20 = vld [vmem:[#allocation2] sm:$0xff] }
  0x62   : > { %v1050_v6 = vld [vmem:[%s1387_s12 + $0x88] sm:$0xff]  ;;  %v1041_v11 = vld [vmem:[%s1387_s12 + $0x40] sm:$0xff] }
  0x63   : > { %739 = vmatpush.bf16.msra.mxu0 %v1038_v55  ;;  %v1049_v13 = vld [vmem:[%s1387_s12 + $0x80] sm:$0xff]  ;;  %v587_v14 = vpack.c.b16 %v584_v8, %v584_v8  ;;  %v588_v15 = vpack.c.b16 %v585_v9, %v585_v9  ;;  %v589_v16 = vpack.c.b16 %v586_v12, %v586_v12 }
  0x64   : > { %752 = vmatpush.bf16.msra.mxu1 %v1046_v56 }
  0x65   : > { %765 = vmatpush.bf16.msra.mxu2 %v1054_v57 }
  0x67   : > { %740 = vmatpush.bf16.msra.mxu0 %v1037_v58 }
  0x68   : > { %753 = vmatpush.bf16.msra.mxu1 %v1045_v59 }
  0x69   : > { %766 = vmatpush.bf16.msra.mxu2 %v1053_v60 }
  0x6b   : > { %741 = vmatpush.bf16.msra.mxu0 %v1036_v61 }
  0x6c   : > { %754 = vmatpush.bf16.msra.mxu1 %v1044_v62 }
  0x6d   : > { %767 = vmatpush.bf16.msra.mxu2 %v1052_v63 }
  0x6f   : > { %742 = vmatpush.bf16.msra.mxu0 %v1035_v0 }
  0x70   : > { %755 = vmatpush.bf16.msra.mxu1 %v1043_v1 }
  0x71   : > { %768 = vmatpush.bf16.msra.mxu2 %v1051_v2 }
  0x73   : > { %743 = vmatpush.bf16.msra.mxu0 %v1034_v3 }
  0x74   : > { %756 = vmatpush.bf16.msra.mxu1 %v1042_v4 }
  0x75   : > { %769 = vmatpush.bf16.msra.mxu2 %v1050_v6 }
  0x77   : > { %744 = vmatpush.bf16.msra.mxu0 %v1033_v10 }
  0x78   : > { %757 = vmatpush.bf16.msra.mxu1 %v1041_v11 }
  0x79   : > { %770 = vmatpush.bf16.msra.mxu2 %v1049_v13 }
  0x7a   : > { %745 = vmatmul.bf16.vlgmr.msra.gmra.mxu0 %v587_v14 }
  0x7b   : > { %758 = vmatmul.bf16.vlgmr.msra.gmra.mxu1 %v588_v15 }
  0x7c   : > { %771 = vmatmul.bf16.vlgmr.msra.gmra.mxu2 %v589_v16 }
  0xf7   : > { %v746_v17 = vpop.f32.mrf.mxu0 }
  0xf8   : > { %v759_v18 = vpop.f32.mrf.mxu1 }
  0xf9   : > { %v760_v19 = vadd.f32 %v759_v18, %v746_v17 }
  0xff   : > { %v772_v21 = vpop.f32.mrf.mxu2  ;;  %v748_v23 = vpop.f32.mrf.mxu0 }
 0x100   : > { %v773_v22 = vadd.f32 %v772_v21, %v760_v19  ;;  %v761_v24 = vpop.f32.mrf.mxu1 }
 0x102   : > { %v776_v25 = vadd.f32 %v773_v22, %v531_v20 }
 0x103   : > { %781 = sbr.rel (%p1029_p13) target bundleno = 277 (0x115), region = 85 }
 0x104   : > { %777 = vst [vmem:[#allocation2] sm:$0xff] %v776_v25 }
 0x107   : > { %v774_v26 = vpop.f32.mrf.mxu2 }
 0x108   : > { %v1116_v28 = vld [vmem:[%s514_s15] ss:$0 sm:$0xff] }
 0x109   : > { %v1117_v29 = vld [vmem:[%s517_s7] ss:$0 sm:$0xff] }
 0x10b   : > { %v782_v27 = vld [vmem:[#allocation2] sm:$0xff] }
 0x10c   : > { %v787_v30 = vmul.f32 %v1116_v28, %v782_v27 }
 0x10e   : > { %v792_v31 = vadd.f32 %v1117_v29, %v787_v30 }
 0x110   : > { %v793_v32 = vmax.f32 %v792_v31, 0.0 }
 0x112   : > { %v794_v33 = vpack.c.bf16 %v793_v32, %v793_v32 }
 0x114   : > { %795 = vst [vmem:[%s1385_s11] sm:$0xf] %v794_v33 }
 0x115 PF: > { %s14_s21 = sadd.s32 1, %s1172_s21   ;;  %s1454_s15 = smov %s1152_s16 }
 0x116   : > { %p11_p0 = scmp.ge.s32.totalorder %s14_s21, 26   ;;  %s1455_s16 = smov %s1251_s28 }
 0x117   : > { %s1456_s17 = smov %s1164_s19  ;;  %s1457_s18 = smov %s1168_s20 }
 0x118   : > { %s1458_s19 = smov %s1461_s22  ;;  %s1459_s20 = smov %s1465_s23 }
 0x119   :  { %13 = sbr.rel (!%p11_p0) target bundleno = 4 (0x4), region = 129 }

// kernel: resnet18_forward.39
= control target key start
LH: loop header
LB: loop body
LE: loop exit
PB: predicated region body
PF: predicated region fallthrough
CT: control target
= control target key end

     0   :  { %s975_s15 = smov 0   ;;  %s977_s16 = smov 0   ;;  %s1136_s0 = inlined_call_operand.vmem [shape: bf16[8,256], index: 0, kind: input, shape index: {}]   ;;  %s1137_s1 = inlined_call_operand.vmem [shape: bf16[256,512], index: 1, kind: input, shape index: {}]   ;;  %s1138_s2 = inlined_call_operand.vmem [shape: f32[1,512], index: 2, kind: input, shape index: {}]   ;;  %s1139_s3 = inlined_call_operand.vmem [shape: f32[1,512], index: 3, kind: input, shape index: {}]   ;;  %s1140_s4 = inlined_call_operand.vmem [shape: bf16[8,512], index: 4, kind: output, shape index: {}]  }
   0x1   :  { %s979_s17 = smov 0   ;;  %s981_s18 = smov 0  }
   0x2   :  { %s983_s19 = smov 0  }
   0x3 LB: > { %s29_s20 = sadd.s32 1, %s944_s18  ;;  %p77_p1 = scmp.ne.s32.totalorder %s936_s16, %s932_s15  ;;  %s948_s19 = sphi %s983_s19, %s14_s19   ;;  %s944_s18 = sphi %s981_s18, %s1144_s18   ;;  %s940_s17 = sphi %s979_s17, %s1143_s17   ;;  %s936_s16 = sphi %s977_s16, %s1142_s16   ;;  %s932_s15 = sphi %s975_s15, %s1141_s15  }
   0x4   : > { %p31_p0 = scmp.ge.s32.totalorder %s29_s20, 4  ;;  %p78_p2 = scmp.eq.s32.totalorder %s948_s19, 0 }
   0x5   : > { %s70_s22 = sadd.s32 1, %s936_s16  ;;  %p780_p5 = scmp.ge.s32.totalorder %s948_s19, 4 }
   0x6   : > { %s1146_s20 = smov (%p31_p0, %s29_s20), 0  ;;  %p79_p3 = por %p78_p2, %p77_p1 }
   0x7   : > { %s66_s21 = ssub.s32 %s944_s18, %s1146_s20  ;;  %196 = sbr.rel (%p780_p5) target bundleno = 48 (0x30), region = 20 }
   0x8   : > { %p68_p4 = scmp.eq.s32.totalorder %s66_s21, 0 }
   0xa   : > { %s1010_s23 = scalar_select %p68_p4, %s936_s16, %s70_s22  }
   0xc   : > { %199 = sbr.rel (!%p79_p3) target bundleno = 48 (0x30), region = 24  ;;  %s201_s24 = sand.u32 (%p79_p3), 1, %s936_s16  }
   0xd   : > { %s782_s25 = sshll.u32 (%p79_p3), %s944_s18, 2  ;;  %s781_s26 = sshll.u32 (%p79_p3), %s201_s24, 7 }
   0xe   : > { %s1018_s29 = scalar_lea.vmem (%p79_p3), %s1137_s1, %s782_s25  ;;  %s1022_s30 = scalar_lea.vmem (%p79_p3), [#allocation3], %s781_s26 }
   0xf   : > { %v225_v0 = vld [vmem:[%s1018_s29] sm:$0xf] (%p79_p3)  ;;  %v227_v1 = vld [vmem:[%s1018_s29 + $0x10] sm:$0xf] (%p79_p3) }
  0x10   : > { %226 = vst [vmem:[%s1022_s30] sm:$0xf] (%p79_p3), %v225_v0  ;;  %v229_v2 = vld [vmem:[%s1018_s29 + $0x20] sm:$0xf] (%p79_p3)  ;;  %v231_v3 = vld [vmem:[%s1018_s29 + $0x30] sm:$0xf] (%p79_p3) }
  0x11   : > { %228 = vst [vmem:[%s1022_s30 + $0x4] sm:$0xf] %v227_v1  ;;  %v233_v4 = vld [vmem:[%s1018_s29 + $0x40] sm:$0xf]  ;;  %v235_v5 = vld [vmem:[%s1018_s29 + $0x50] sm:$0xf] }
  0x12   : > { %230 = vst [vmem:[%s1022_s30 + $0x8] sm:$0xf] %v229_v2  ;;  %v237_v6 = vld [vmem:[%s1018_s29 + $0x60] sm:$0xf]  ;;  %v239_v7 = vld [vmem:[%s1018_s29 + $0x70] sm:$0xf] }
  0x13   : > { %232 = vst [vmem:[%s1022_s30 + $0xc] sm:$0xf] %v231_v3  ;;  %v241_v8 = vld [vmem:[%s1018_s29 + $0x80] sm:$0xf]  ;;  %v243_v9 = vld [vmem:[%s1018_s29 + $0x90] sm:$0xf] }
  0x14   : > { %234 = vst [vmem:[%s1022_s30 + $0x10] sm:$0xf] %v233_v4  ;;  %v245_v10 = vld [vmem:[%s1018_s29 + $0xa0] sm:$0xf]  ;;  %v247_v11 = vld [vmem:[%s1018_s29 + $0xb0] sm:$0xf] }
  0x15   : > { %236 = vst [vmem:[%s1022_s30 + $0x14] sm:$0xf] %v235_v5  ;;  %v249_v12 = vld [vmem:[%s1018_s29 + $0xc0] sm:$0xf]  ;;  %v251_v13 = vld [vmem:[%s1018_s29 + $0xd0] sm:$0xf] }
  0x16   : > { %238 = vst [vmem:[%s1022_s30 + $0x18] sm:$0xf] %v237_v6  ;;  %v253_v14 = vld [vmem:[%s1018_s29 + $0xe0] sm:$0xf]  ;;  %v255_v15 = vld [vmem:[%s1018_s29 + $0xf0] sm:$0xf] }
  0x17   : > { %240 = vst [vmem:[%s1022_s30 + $0x1c] sm:$0xf] %v239_v7  ;;  %v257_v16 = vld [vmem:[%s1018_s29 + $0x100] sm:$0xf]  ;;  %v259_v17 = vld [vmem:[%s1018_s29 + $0x110] sm:$0xf] }
  0x18   : > { %242 = vst [vmem:[%s1022_s30 + $0x20] sm:$0xf] %v241_v8  ;;  %v261_v18 = vld [vmem:[%s1018_s29 + $0x120] sm:$0xf]  ;;  %v263_v19 = vld [vmem:[%s1018_s29 + $0x130] sm:$0xf] }
  0x19   : > { %244 = vst [vmem:[%s1022_s30 + $0x24] sm:$0xf] %v243_v9  ;;  %v265_v20 = vld [vmem:[%s1018_s29 + $0x140] sm:$0xf]  ;;  %v267_v21 = vld [vmem:[%s1018_s29 + $0x150] sm:$0xf] }
  0x1a   : > { %246 = vst [vmem:[%s1022_s30 + $0x28] sm:$0xf] %v245_v10  ;;  %v269_v22 = vld [vmem:[%s1018_s29 + $0x160] sm:$0xf]  ;;  %v271_v23 = vld [vmem:[%s1018_s29 + $0x170] sm:$0xf] }
  0x1b   : > { %248 = vst [vmem:[%s1022_s30 + $0x2c] sm:$0xf] %v247_v11  ;;  %v273_v24 = vld [vmem:[%s1018_s29 + $0x180] sm:$0xf]  ;;  %v275_v25 = vld [vmem:[%s1018_s29 + $0x190] sm:$0xf] }
  0x1c   : > { %250 = vst [vmem:[%s1022_s30 + $0x30] sm:$0xf] %v249_v12  ;;  %v277_v26 = vld [vmem:[%s1018_s29 + $0x1a0] sm:$0xf]  ;;  %v279_v27 = vld [vmem:[%s1018_s29 + $0x1b0] sm:$0xf] }
  0x1d   : > { %252 = vst [vmem:[%s1022_s30 + $0x34] sm:$0xf] %v251_v13  ;;  %v281_v28 = vld [vmem:[%s1018_s29 + $0x1c0] sm:$0xf]  ;;  %v283_v29 = vld [vmem:[%s1018_s29 + $0x1d0] sm:$0xf] }
  0x1e   : > { %254 = vst [vmem:[%s1022_s30 + $0x38] sm:$0xf] %v253_v14  ;;  %v285_v30 = vld [vmem:[%s1018_s29 + $0x1e0] sm:$0xf]  ;;  %v287_v31 = vld [vmem:[%s1018_s29 + $0x1f0] sm:$0xf] }
  0x1f   : > { %256 = vst [vmem:[%s1022_s30 + $0x3c] sm:$0xf] %v255_v15 }
  0x20   : > { %258 = vst [vmem:[%s1022_s30 + $0x40] sm:$0xf] %v257_v16 }
  0x21   : > { %260 = vst [vmem:[%s1022_s30 + $0x44] sm:$0xf] %v259_v17 }
  0x22   : > { %262 = vst [vmem:[%s1022_s30 + $0x48] sm:$0xf] %v261_v18 }
  0x23   : > { %264 = vst [vmem:[%s1022_s30 + $0x4c] sm:$0xf] %v263_v19 }
  0x24   : > { %266 = vst [vmem:[%s1022_s30 + $0x50] sm:$0xf] %v265_v20 }
  0x25   : > { %268 = vst [vmem:[%s1022_s30 + $0x54] sm:$0xf] %v267_v21 }
  0x26   : > { %270 = vst [vmem:[%s1022_s30 + $0x58] sm:$0xf] %v269_v22 }
  0x27   : > { %272 = vst [vmem:[%s1022_s30 + $0x5c] sm:$0xf] %v271_v23 }
  0x28   : > { %274 = vst [vmem:[%s1022_s30 + $0x60] sm:$0xf] %v273_v24 }
  0x29   : > { %276 = vst [vmem:[%s1022_s30 + $0x64] sm:$0xf] %v275_v25 }
  0x2a   : > { %278 = vst [vmem:[%s1022_s30 + $0x68] sm:$0xf] %v277_v26 }
  0x2b   : > { %280 = vst [vmem:[%s1022_s30 + $0x6c] sm:$0xf] %v279_v27 }
  0x2c   : > { %282 = vst [vmem:[%s1022_s30 + $0x70] sm:$0xf] %v281_v28 }
  0x2d   : > { %284 = vst [vmem:[%s1022_s30 + $0x74] sm:$0xf] %v283_v29 }
  0x2e   : > { %286 = vst [vmem:[%s1022_s30 + $0x78] sm:$0xf] %v285_v30 }
  0x2f   : > { %288 = vst [vmem:[%s1022_s30 + $0x7c] sm:$0xf] %v287_v31 }
  0x30 PF: > { %p783_p6 = scmp.ge.s32.totalorder %s948_s19, 1  ;;  %p387_p7 = scmp.lt.s32.totalorder %s948_s19, 5 }
  0x32   : > { %p388_p8 = pnand %p783_p6, %p387_p7 }
  0x33   : > { %s394_s5 = sand.u32 (!%p388_p8), 1, %s932_s15   ;;  %p448_p9 = scmp.lt.s32.totalorder (!%p388_p8), %s940_s17, 3 }
  0x34   : > { %391 = sbr.rel (%p388_p8) target bundleno = 225 (0xe1), region = 73  ;;  %s784_s6 = sshll.u32 (!%p388_p8), %s394_s5, 7 }
  0x35   : > { %s1089_s7 = scalar_lea.vmem (!%p388_p8), [#allocation3], %s784_s6 }
  0x39   : > { %v859_v32 = vld [vmem:[%s1089_s7 + $0x38] sm:$0xff]  ;;  %v858_v34 = vld [vmem:[%s1089_s7 + $0x30] sm:$0xff]  ;;  %v857_v36 = vld [vmem:[%s1089_s7 + $0x28] sm:$0xff]  ;;  %s1148_s17 = smov (!%p448_p9, %s940_s17), 3 }
  0x3a   : > { %v867_v33 = vld [vmem:[%s1089_s7 + $0x78] sm:$0xff]  ;;  %604 = vmatpush.bf16.msra.mxu0 %v859_v32  ;;  %v866_v35 = vld [vmem:[%s1089_s7 + $0x70] sm:$0xff]  ;;  %v865_v37 = vld [vmem:[%s1089_s7 + $0x68] sm:$0xff]  ;;  %s450_s12 = scalar_lea.vmem %s1138_s2, %s1148_s17  ;;  %s453_s15 = scalar_lea.vmem %s1139_s3, %s1148_s17 }
  0x3b   : > { %617 = vmatpush.bf16.msra.mxu1 %v867_v33  ;;  %v856_v38 = vld [vmem:[%s1089_s7 + $0x20] sm:$0xff]  ;;  %v855_v40 = vld [vmem:[%s1089_s7 + $0x18] sm:$0xff]  ;;  %v854_v42 = vld [vmem:[%s1089_s7 + $0x10] sm:$0xff]  ;;  %s785_s21 = sshll.u32 %s1148_s17, 2 }
  0x3c   : > { %v864_v39 = vld [vmem:[%s1089_s7 + $0x60] sm:$0xff]  ;;  %v863_v41 = vld [vmem:[%s1089_s7 + $0x58] sm:$0xff]  ;;  %v862_v43 = vld [vmem:[%s1089_s7 + $0x50] sm:$0xff]  ;;  %s461_s25 = scalar_lea.vmem %s1140_s4, %s785_s21 }
  0x3d   : > { %v853_v44 = vld [vmem:[%s1089_s7 + $0x8] sm:$0xff]  ;;  %v468_v46 = vld [vmem:[%s1136_s0] sm:$0xff] }
  0x3e   : > { %605 = vmatpush.bf16.msra.mxu0 %v858_v34  ;;  %v861_v45 = vld [vmem:[%s1089_s7 + $0x48] sm:$0xff]  ;;  %v502_v47 = vunpack.c.l.b16 %v468_v46  ;;  %v503_v48 = vunpack.c.h.b16 %v468_v46  ;;  %v852_v49 = vld [vmem:[%s1089_s7] sm:$0xff] }
  0x3f   : > { %618 = vmatpush.bf16.msra.mxu1 %v866_v35  ;;  %v860_v50 = vld [vmem:[%s1089_s7 + $0x40] sm:$0xff] }
  0x40   : > { %v504_v51 = vpack.c.b16 %v502_v47, %v502_v47  ;;  %v505_v52 = vpack.c.b16 %v503_v48, %v503_v48  ;;  %v908_v53 = vld [vmem:[%s450_s12] ss:$0 sm:$0xff] }
  0x41   : > { %v909_v57 = vld [vmem:[%s453_s15] ss:$0 sm:$0xff] }
  0x42   : > { %606 = vmatpush.bf16.msra.mxu0 %v857_v36 }
  0x43   : > { %619 = vmatpush.bf16.msra.mxu1 %v865_v37 }
  0x46   : > { %607 = vmatpush.bf16.msra.mxu0 %v856_v38 }
  0x47   : > { %620 = vmatpush.bf16.msra.mxu1 %v864_v39 }
  0x4a   : > { %608 = vmatpush.bf16.msra.mxu0 %v855_v40 }
  0x4b   : > { %621 = vmatpush.bf16.msra.mxu1 %v863_v41 }
  0x4e   : > { %609 = vmatpush.bf16.msra.mxu0 %v854_v42 }
  0x4f   : > { %622 = vmatpush.bf16.msra.mxu1 %v862_v43 }
  0x52   : > { %610 = vmatpush.bf16.msra.mxu0 %v853_v44 }
  0x53   : > { %623 = vmatpush.bf16.msra.mxu1 %v861_v45 }
  0x56   : > { %611 = vmatpush.bf16.msra.mxu0 %v852_v49 }
  0x57   : > { %624 = vmatpush.bf16.msra.mxu1 %v860_v50 }
  0x59   : > { %612 = vmatmul.bf16.vlgmr.msra.gmra.mxu0 %v504_v51 }
  0x5a   : > { %625 = vmatmul.bf16.vlgmr.msra.gmra.mxu1 %v505_v52 }
  0xd6   : > { %v613_v54 = vpop.f32.mrf.mxu0 }
  0xd7   : > { %v626_v55 = vpop.f32.mrf.mxu1 }
  0xd8   : > { %v627_v56 = vadd.f32 %v626_v55, %v613_v54 }
  0xda   : > { %v640_v58 = vmul.f32 %v908_v53, %v627_v56 }
  0xdc   : > { %v645_v59 = vadd.f32 %v909_v57, %v640_v58 }
  0xde   : > { %v646_v60 = vpack.c.bf16 %v645_v59, %v645_v59  ;;  %v615_v61 = vpop.f32.mrf.mxu0 }
  0xdf   : > { %v628_v62 = vpop.f32.mrf.mxu1 }
  0xe0   : > { %647 = vst [vmem:[%s461_s25] sm:$0xf] %v646_v60 }
  0xe1 PF: > { %s14_s19 = sadd.s32 1, %s948_s19   ;;  %s1141_s15 = smov %s936_s16 }
  0xe2   : > { %p11_p10 = scmp.ge.s32.totalorder %s14_s19, 6   ;;  %s1142_s16 = smov %s1010_s23 }
  0xe3   : > { %s1143_s17 = smov %s944_s18  ;;  %s1144_s18 = smov %s1146_s20 }
  0xe4   :  { %13 = sbr.rel (!%p11_p10) target bundleno = 3 (0x3), region = 129 }

// kernel: resnet18_forward.40
= control target key start
LH: loop header
LB: loop body
LE: loop exit
PB: predicated region body
PF: predicated region fallthrough
CT: control target
= control target key end

     0   :  { %s1766_s0 = inlined_call_operand.vmem [shape: bf16[8,4608], index: 0, kind: input, shape index: {}]   ;;  %s1767_s1 = inlined_call_operand.vmem [shape: bf16[4608,512], index: 1, kind: input, shape index: {}]   ;;  %s1768_s2 = inlined_call_operand.vmem [shape: f32[1,512], index: 2, kind: input, shape index: {}]   ;;  %s1769_s3 = inlined_call_operand.vmem [shape: f32[1,512], index: 3, kind: input, shape index: {}]   ;;  %s1770_s4 = inlined_call_operand.vmem [shape: bf16[8,512], index: 4, kind: input, shape index: {}]   ;;  %s1771_s5 = inlined_call_operand.vmem [shape: bf16[8,512], index: 5, kind: output, shape index: {}]  }
   0x1   :  { %1772 = sst [smem:[#allocation4_spill]] %s1767_s1 }
   0x2   :  { %s1471_s18 = smov 0   ;;  %s1473_s19 = smov 0  }
   0x3   :  { %s1475_s20 = smov 0   ;;  %s1477_s21 = smov 0  }
   0x4   :  { %s1479_s22 = smov 0   ;;  %s1481_s23 = smov 0  }
   0x5   :  { %s1483_s24 = smov 0  }
   0x6 LB: > { %s27_s25 = sadd.s32 1, %s1430_s22  ;;  %s30_s26 = sadd.s32 1, %s1434_s23  ;;  %s1438_s24 = sphi %s1483_s24, %s15_s24   ;;  %s1434_s23 = sphi %s1481_s23, %s1779_s23   ;;  %s1430_s22 = sphi %s1479_s22, %s1778_s22   ;;  %s1426_s21 = sphi %s1477_s21, %s1777_s21   ;;  %s1422_s20 = sphi %s1475_s20, %s1776_s20   ;;  %s1418_s19 = sphi %s1473_s19, %s1775_s19   ;;  %s1414_s18 = sphi %s1471_s18, %s1774_s18  }
   0x7   : > { %p28_p0 = scmp.ge.s32.totalorder %s27_s25, 9  ;;  %p78_p1 = scmp.ne.s32.totalorder %s1418_s19, %s1414_s18 }
   0x8   : > { %p79_p2 = scmp.eq.s32.totalorder %s1438_s24, 0  ;;  %s71_s30 = sadd.s32 1, %s1418_s19 }
   0x9   : > { %s1781_s25 = smov (%p28_p0, %s27_s25), 0  ;;  %s1783_s26 = smov (!%p28_p0, %s30_s26), %s1434_s23 }
   0xa   : > { %p80_p3 = por %p79_p2, %p78_p1  ;;  %p32_p4 = scmp.ge.s32.totalorder %s1783_s26, 4 }
   0xb   : > { %s66_s27 = ssub.s32 %s1430_s22, %s1781_s25  ;;  %p1149_p6 = scmp.ge.s32.totalorder %s1438_s24, 36 }
   0xc   : > { %s1785_s26 = smov (%p32_p4, %s1783_s26), 0 }
   0xd   : > { %s67_s28 = ssub.s32 %s1434_s23, %s1785_s26  ;;  %212 = sbr.rel (%p1149_p6) target bundleno = 92 (0x5c), region = 16 }
   0xe   : > { %s68_s29 = sor.u32 %s67_s28, %s66_s27 }
   0xf   : > { %p69_p5 = scmp.eq.s32.totalorder %s68_s29, 0 }
  0x11   : > { %s1522_s6 = scalar_select %p69_p5, %s1418_s19, %s71_s30  }
  0x12   : > { %228 = sbr.rel (!%p80_p3) target bundleno = 92 (0x5c), region = 24  ;;  %s230_s7 = sand.u32 (%p80_p3), 1, %s1418_s19  }
  0x13   : > { %s1292_s8 = sshll.u32 (%p80_p3), %s1430_s22, 8  ;;  %s1150_s9 = sshll.u32 (%p80_p3), %s230_s7, 8 }
  0x14   : > { %s235_s10 = sadd.s32 (%p80_p3), %s1434_s23, %s1292_s8  ;;  %s1773_s1 = sld [smem:[#allocation4_spill]] (%p80_p3) }
  0x15   : > { %s1153_s11 = sshll.u32 (%p80_p3), %s235_s10, 2  ;;  %s1536_s15 = scalar_lea.vmem (%p80_p3), [#allocation3], %s1150_s9 }
  0x1a   : > { %s1531_s14 = scalar_lea.vmem %s1773_s1, %s1153_s11 }
  0x1b   : > { %v254_v0 = vld [vmem:[%s1531_s14] sm:$0xf]  ;;  %v256_v1 = vld [vmem:[%s1531_s14 + $0x10] sm:$0xf] }
  0x1c   : > { %v258_v2 = vld [vmem:[%s1531_s14 + $0x20] sm:$0xf]  ;;  %255 = vst [vmem:[%s1536_s15] sm:$0xf] %v254_v0  ;;  %v260_v3 = vld [vmem:[%s1531_s14 + $0x30] sm:$0xf] }
  0x1d   : > { %257 = vst [vmem:[%s1536_s15 + $0x4] sm:$0xf] %v256_v1  ;;  %v262_v4 = vld [vmem:[%s1531_s14 + $0x40] sm:$0xf]  ;;  %v264_v5 = vld [vmem:[%s1531_s14 + $0x50] sm:$0xf] }
  0x1e   : > { %259 = vst [vmem:[%s1536_s15 + $0x8] sm:$0xf] %v258_v2  ;;  %v266_v6 = vld [vmem:[%s1531_s14 + $0x60] sm:$0xf]  ;;  %v268_v7 = vld [vmem:[%s1531_s14 + $0x70] sm:$0xf] }
  0x1f   : > { %261 = vst [vmem:[%s1536_s15 + $0xc] sm:$0xf] %v260_v3  ;;  %v270_v8 = vld [vmem:[%s1531_s14 + $0x80] sm:$0xf]  ;;  %v272_v9 = vld [vmem:[%s1531_s14 + $0x90] sm:$0xf] }
  0x20   : > { %263 = vst [vmem:[%s1536_s15 + $0x10] sm:$0xf] %v262_v4  ;;  %v274_v10 = vld [vmem:[%s1531_s14 + $0xa0] sm:$0xf]  ;;  %v276_v11 = vld [vmem:[%s1531_s14 + $0xb0] sm:$0xf] }
  0x21   : > { %265 = vst [vmem:[%s1536_s15 + $0x14] sm:$0xf] %v264_v5  ;;  %v278_v12 = vld [vmem:[%s1531_s14 + $0xc0] sm:$0xf]  ;;  %v280_v13 = vld [vmem:[%s1531_s14 + $0xd0] sm:$0xf] }
  0x22   : > { %267 = vst [vmem:[%s1536_s15 + $0x18] sm:$0xf] %v266_v6  ;;  %v282_v14 = vld [vmem:[%s1531_s14 + $0xe0] sm:$0xf]  ;;  %v284_v15 = vld [vmem:[%s1531_s14 + $0xf0] sm:$0xf] }
  0x23   : > { %269 = vst [vmem:[%s1536_s15 + $0x1c] sm:$0xf] %v268_v7  ;;  %v286_v16 = vld [vmem:[%s1531_s14 + $0x100] sm:$0xf]  ;;  %v288_v17 = vld [vmem:[%s1531_s14 + $0x110] sm:$0xf] }
  0x24   : > { %271 = vst [vmem:[%s1536_s15 + $0x20] sm:$0xf] %v270_v8  ;;  %v290_v18 = vld [vmem:[%s1531_s14 + $0x120] sm:$0xf]  ;;  %v292_v19 = vld [vmem:[%s1531_s14 + $0x130] sm:$0xf] }
  0x25   : > { %273 = vst [vmem:[%s1536_s15 + $0x24] sm:$0xf] %v272_v9  ;;  %v294_v20 = vld [vmem:[%s1531_s14 + $0x140] sm:$0xf]  ;;  %v296_v21 = vld [vmem:[%s1531_s14 + $0x150] sm:$0xf] }
  0x26   : > { %275 = vst [vmem:[%s1536_s15 + $0x28] sm:$0xf] %v274_v10  ;;  %v298_v22 = vld [vmem:[%s1531_s14 + $0x160] sm:$0xf]  ;;  %v300_v23 = vld [vmem:[%s1531_s14 + $0x170] sm:$0xf] }
  0x27   : > { %277 = vst [vmem:[%s1536_s15 + $0x2c] sm:$0xf] %v276_v11  ;;  %v302_v24 = vld [vmem:[%s1531_s14 + $0x180] sm:$0xf]  ;;  %v304_v25 = vld [vmem:[%s1531_s14 + $0x190] sm:$0xf] }
  0x28   : > { %279 = vst [vmem:[%s1536_s15 + $0x30] sm:$0xf] %v278_v12  ;;  %v306_v26 = vld [vmem:[%s1531_s14 + $0x1a0] sm:$0xf]  ;;  %v308_v27 = vld [vmem:[%s1531_s14 + $0x1b0] sm:$0xf] }
  0x29   : > { %281 = vst [vmem:[%s1536_s15 + $0x34] sm:$0xf] %v280_v13  ;;  %v310_v28 = vld [vmem:[%s1531_s14 + $0x1c0] sm:$0xf]  ;;  %v312_v29 = vld [vmem:[%s1531_s14 + $0x1d0] sm:$0xf] }
  0x2a   : > { %283 = vst [vmem:[%s1536_s15 + $0x38] sm:$0xf] %v282_v14  ;;  %v314_v30 = vld [vmem:[%s1531_s14 + $0x1e0] sm:$0xf]  ;;  %v316_v31 = vld [vmem:[%s1531_s14 + $0x1f0] sm:$0xf] }
  0x2b   : > { %285 = vst [vmem:[%s1536_s15 + $0x3c] sm:$0xf] %v284_v15  ;;  %v318_v32 = vld [vmem:[%s1531_s14 + $0x200] sm:$0xf]  ;;  %v320_v33 = vld [vmem:[%s1531_s14 + $0x210] sm:$0xf] }
  0x2c   : > { %287 = vst [vmem:[%s1536_s15 + $0x40] sm:$0xf] %v286_v16  ;;  %v322_v34 = vld [vmem:[%s1531_s14 + $0x220] sm:$0xf]  ;;  %v324_v35 = vld [vmem:[%s1531_s14 + $0x230] sm:$0xf] }
  0x2d   : > { %289 = vst [vmem:[%s1536_s15 + $0x44] sm:$0xf] %v288_v17  ;;  %v326_v36 = vld [vmem:[%s1531_s14 + $0x240] sm:$0xf]  ;;  %v328_v37 = vld [vmem:[%s1531_s14 + $0x250] sm:$0xf] }
  0x2e   : > { %291 = vst [vmem:[%s1536_s15 + $0x48] sm:$0xf] %v290_v18  ;;  %v330_v38 = vld [vmem:[%s1531_s14 + $0x260] sm:$0xf]  ;;  %v332_v39 = vld [vmem:[%s1531_s14 + $0x270] sm:$0xf] }
  0x2f   : > { %293 = vst [vmem:[%s1536_s15 + $0x4c] sm:$0xf] %v292_v19  ;;  %v334_v40 = vld [vmem:[%s1531_s14 + $0x280] sm:$0xf]  ;;  %v336_v41 = vld [vmem:[%s1531_s14 + $0x290] sm:$0xf] }
  0x30   : > { %295 = vst [vmem:[%s1536_s15 + $0x50] sm:$0xf] %v294_v20  ;;  %v338_v42 = vld [vmem:[%s1531_s14 + $0x2a0] sm:$0xf]  ;;  %v340_v43 = vld [vmem:[%s1531_s14 + $0x2b0] sm:$0xf] }
  0x31   : > { %297 = vst [vmem:[%s1536_s15 + $0x54] sm:$0xf] %v296_v21  ;;  %v342_v44 = vld [vmem:[%s1531_s14 + $0x2c0] sm:$0xf]  ;;  %v344_v45 = vld [vmem:[%s1531_s14 + $0x2d0] sm:$0xf] }
  0x32   : > { %299 = vst [vmem:[%s1536_s15 + $0x58] sm:$0xf] %v298_v22  ;;  %v346_v46 = vld [vmem:[%s1531_s14 + $0x2e0] sm:$0xf]  ;;  %v348_v47 = vld [vmem:[%s1531_s14 + $0x2f0] sm:$0xf] }
  0x33   : > { %301 = vst [vmem:[%s1536_s15 + $0x5c] sm:$0xf] %v300_v23  ;;  %v350_v48 = vld [vmem:[%s1531_s14 + $0x300] sm:$0xf]  ;;  %v352_v49 = vld [vmem:[%s1531_s14 + $0x310] sm:$0xf] }
  0x34   : > { %303 = vst [vmem:[%s1536_s15 + $0x60] sm:$0xf] %v302_v24  ;;  %v354_v50 = vld [vmem:[%s1531_s14 + $0x320] sm:$0xf]  ;;  %v356_v51 = vld [vmem:[%s1531_s14 + $0x330] sm:$0xf] }
  0x35   : > { %305 = vst [vmem:[%s1536_s15 + $0x64] sm:$0xf] %v304_v25  ;;  %v358_v52 = vld [vmem:[%s1531_s14 + $0x340] sm:$0xf]  ;;  %v360_v53 = vld [vmem:[%s1531_s14 + $0x350] sm:$0xf] }
  0x36   : > { %307 = vst [vmem:[%s1536_s15 + $0x68] sm:$0xf] %v306_v26  ;;  %v362_v54 = vld [vmem:[%s1531_s14 + $0x360] sm:$0xf]  ;;  %v364_v55 = vld [vmem:[%s1531_s14 + $0x370] sm:$0xf] }
  0x37   : > { %309 = vst [vmem:[%s1536_s15 + $0x6c] sm:$0xf] %v308_v27  ;;  %v366_v56 = vld [vmem:[%s1531_s14 + $0x380] sm:$0xf]  ;;  %v368_v57 = vld [vmem:[%s1531_s14 + $0x390] sm:$0xf] }
  0x38   : > { %311 = vst [vmem:[%s1536_s15 + $0x70] sm:$0xf] %v310_v28  ;;  %v370_v58 = vld [vmem:[%s1531_s14 + $0x3a0] sm:$0xf]  ;;  %v372_v59 = vld [vmem:[%s1531_s14 + $0x3b0] sm:$0xf] }
  0x39   : > { %313 = vst [vmem:[%s1536_s15 + $0x74] sm:$0xf] %v312_v29  ;;  %v374_v60 = vld [vmem:[%s1531_s14 + $0x3c0] sm:$0xf]  ;;  %v376_v61 = vld [vmem:[%s1531_s14 + $0x3d0] sm:$0xf] }
  0x3a   : > { %315 = vst [vmem:[%s1536_s15 + $0x78] sm:$0xf] %v314_v30  ;;  %v378_v62 = vld [vmem:[%s1531_s14 + $0x3e0] sm:$0xf]  ;;  %v380_v63 = vld [vmem:[%s1531_s14 + $0x3f0] sm:$0xf] }
  0x3b   : > { %317 = vst [vmem:[%s1536_s15 + $0x7c] sm:$0xf] %v316_v31 }
  0x3c   : > { %319 = vst [vmem:[%s1536_s15 + $0x80] sm:$0xf] %v318_v32 }
  0x3d   : > { %321 = vst [vmem:[%s1536_s15 + $0x84] sm:$0xf] %v320_v33 }
  0x3e   : > { %323 = vst [vmem:[%s1536_s15 + $0x88] sm:$0xf] %v322_v34 }
  0x3f   : > { %325 = vst [vmem:[%s1536_s15 + $0x8c] sm:$0xf] %v324_v35 }
  0x40   : > { %327 = vst [vmem:[%s1536_s15 + $0x90] sm:$0xf] %v326_v36 }
  0x41   : > { %329 = vst [vmem:[%s1536_s15 + $0x94] sm:$0xf] %v328_v37 }
  0x42   : > { %331 = vst [vmem:[%s1536_s15 + $0x98] sm:$0xf] %v330_v38 }
  0x43   : > { %333 = vst [vmem:[%s1536_s15 + $0x9c] sm:$0xf] %v332_v39 }
  0x44   : > { %335 = vst [vmem:[%s1536_s15 + $0xa0] sm:$0xf] %v334_v40 }
  0x45   : > { %337 = vst [vmem:[%s1536_s15 + $0xa4] sm:$0xf] %v336_v41 }
  0x46   : > { %339 = vst [vmem:[%s1536_s15 + $0xa8] sm:$0xf] %v338_v42 }
  0x47   : > { %341 = vst [vmem:[%s1536_s15 + $0xac] sm:$0xf] %v340_v43 }
  0x48   : > { %343 = vst [vmem:[%s1536_s15 + $0xb0] sm:$0xf] %v342_v44 }
  0x49   : > { %345 = vst [vmem:[%s1536_s15 + $0xb4] sm:$0xf] %v344_v45 }
  0x4a   : > { %347 = vst [vmem:[%s1536_s15 + $0xb8] sm:$0xf] %v346_v46 }
  0x4b   : > { %349 = vst [vmem:[%s1536_s15 + $0xbc] sm:$0xf] %v348_v47 }
  0x4c   : > { %351 = vst [vmem:[%s1536_s15 + $0xc0] sm:$0xf] %v350_v48 }
  0x4d   : > { %353 = vst [vmem:[%s1536_s15 + $0xc4] sm:$0xf] %v352_v49 }
  0x4e   : > { %355 = vst [vmem:[%s1536_s15 + $0xc8] sm:$0xf] %v354_v50 }
  0x4f   : > { %357 = vst [vmem:[%s1536_s15 + $0xcc] sm:$0xf] %v356_v51 }
  0x50   : > { %359 = vst [vmem:[%s1536_s15 + $0xd0] sm:$0xf] %v358_v52 }
  0x51   : > { %361 = vst [vmem:[%s1536_s15 + $0xd4] sm:$0xf] %v360_v53 }
  0x52   : > { %363 = vst [vmem:[%s1536_s15 + $0xd8] sm:$0xf] %v362_v54 }
  0x53   : > { %365 = vst [vmem:[%s1536_s15 + $0xdc] sm:$0xf] %v364_v55 }
  0x54   : > { %367 = vst [vmem:[%s1536_s15 + $0xe0] sm:$0xf] %v366_v56 }
  0x55   : > { %369 = vst [vmem:[%s1536_s15 + $0xe4] sm:$0xf] %v368_v57 }
  0x56   : > { %371 = vst [vmem:[%s1536_s15 + $0xe8] sm:$0xf] %v370_v58 }
  0x57   : > { %373 = vst [vmem:[%s1536_s15 + $0xec] sm:$0xf] %v372_v59 }
  0x58   : > { %375 = vst [vmem:[%s1536_s15 + $0xf0] sm:$0xf] %v374_v60 }
  0x59   : > { %377 = vst [vmem:[%s1536_s15 + $0xf4] sm:$0xf] %v376_v61 }
  0x5a   : > { %379 = vst [vmem:[%s1536_s15 + $0xf8] sm:$0xf] %v378_v62 }
  0x5b   : > { %381 = vst [vmem:[%s1536_s15 + $0xfc] sm:$0xf] %v380_v63 }
  0x5c PF: > { %p1154_p7 = scmp.ge.s32.totalorder %s1438_s24, 1  ;;  %p555_p8 = scmp.lt.s32.totalorder %s1438_s24, 37 }
  0x5e   : > { %p556_p9 = pnand %p1154_p7, %p555_p8 }
  0x5f   : > { %s562_s16 = sand.u32 (!%p556_p9), 1, %s1414_s18   ;;  %s1156_s17 = sshll.u32 (!%p556_p9), %s1422_s20, 2 }
  0x60   : > { %559 = sbr.rel (%p556_p9) target bundleno = 304 (0x130), region = 77  ;;  %s1155_s27 = sshll.u32 (!%p556_p9), %s562_s16, 8 }
  0x61   : > { %p618_p10 = scmp.lt.s32.totalorder (!%p556_p9), %s1156_s17, 35  ;;  %p626_p11 = scmp.lt.s32.totalorder (!%p556_p9), %s1426_s21, 3 }
  0x62   : > { %p1160_p12 = scmp.ne.s32.totalorder (!%p556_p9), %s1422_s20, 0 }
  0x65   : > { %s1787_s17 = smov (!%p618_p10, %s1156_s17), 35  ;;  %s1789_s21 = smov (!%p626_p11, %s1426_s21), 3 }
  0x66   : > { %s1157_s28 = sshll.u32 %s1787_s17, 2  ;;  %s628_s18 = scalar_lea.vmem %s1768_s2, %s1789_s21 }
  0x67   : > { %s1674_s7 = scalar_lea.vmem %s1766_s0, %s1157_s28  ;;  %s631_s12 = scalar_lea.vmem %s1769_s3, %s1789_s21 }
  0x68   : > { %s1158_s13 = sshll.u32 %s1789_s21, 2  ;;  %s1695_s28 = scalar_lea.vmem [#allocation3], %s1155_s27 }
  0x69   : > { %s1688_s16 = scalar_lea.vmem %s1770_s4, %s1158_s13  ;;  %s1693_s29 = scalar_lea.vmem %s1771_s5, %s1158_s13 }
  0x6a   : > { %651 = sbr.rel (%p1160_p12) target bundleno = 113 (0x71), region = 85 }
  0x6f   : > { %v1440_v0 = vmov 0.0  }
  0x70   : > { %652 = vst [vmem:[#allocation2] sm:$0xff] %v1440_v0 }
  0x71 PF: > { %v1300_v1 = vld [vmem:[%s1695_s28 + $0x38] sm:$0xff]  ;;  %v1299_v5 = vld [vmem:[%s1695_s28 + $0x30] sm:$0xff]  ;;  %v1298_v9 = vld [vmem:[%s1695_s28 + $0x28] sm:$0xff]  ;;  %p1289_p13 = scmp.ne.s32.totalorder %s1422_s20, 8 }
  0x72   : > { %v1308_v2 = vld [vmem:[%s1695_s28 + $0x78] sm:$0xff]  ;;  %926 = vmatpush.bf16.msra.mxu0 %v1300_v1  ;;  %v1307_v6 = vld [vmem:[%s1695_s28 + $0x70] sm:$0xff]  ;;  %v1306_v10 = vld [vmem:[%s1695_s28 + $0x68] sm:$0xff] }
  0x73   : > { %v1316_v3 = vld [vmem:[%s1695_s28 + $0xb8] sm:$0xff]  ;;  %939 = vmatpush.bf16.msra.mxu1 %v1308_v2  ;;  %v1315_v7 = vld [vmem:[%s1695_s28 + $0xb0] sm:$0xff]  ;;  %v1314_v11 = vld [vmem:[%s1695_s28 + $0xa8] sm:$0xff] }
  0x74   : > { %v1324_v4 = vld [vmem:[%s1695_s28 + $0xf8] sm:$0xff]  ;;  %952 = vmatpush.bf16.msra.mxu2 %v1316_v3  ;;  %v1323_v8 = vld [vmem:[%s1695_s28 + $0xf0] sm:$0xff]  ;;  %v1322_v12 = vld [vmem:[%s1695_s28 + $0xe8] sm:$0xff] }
  0x75   : > { %965 = vmatpush.bf16.msra.mxu3 %v1324_v4  ;;  %v1297_v13 = vld [vmem:[%s1695_s28 + $0x20] sm:$0xff]  ;;  %v1296_v17 = vld [vmem:[%s1695_s28 + $0x18] sm:$0xff]  ;;  %v1295_v21 = vld [vmem:[%s1695_s28 + $0x10] sm:$0xff] }
  0x76   : > { %927 = vmatpush.bf16.msra.mxu0 %v1299_v5  ;;  %v1305_v14 = vld [vmem:[%s1695_s28 + $0x60] sm:$0xff]  ;;  %v1304_v18 = vld [vmem:[%s1695_s28 + $0x58] sm:$0xff]  ;;  %v1303_v22 = vld [vmem:[%s1695_s28 + $0x50] sm:$0xff] }
  0x77   : > { %940 = vmatpush.bf16.msra.mxu1 %v1307_v6  ;;  %v1313_v15 = vld [vmem:[%s1695_s28 + $0xa0] sm:$0xff]  ;;  %v1312_v19 = vld [vmem:[%s1695_s28 + $0x98] sm:$0xff]  ;;  %v1311_v23 = vld [vmem:[%s1695_s28 + $0x90] sm:$0xff] }
  0x78   : > { %953 = vmatpush.bf16.msra.mxu2 %v1315_v7  ;;  %v1321_v16 = vld [vmem:[%s1695_s28 + $0xe0] sm:$0xff]  ;;  %v1320_v20 = vld [vmem:[%s1695_s28 + $0xd8] sm:$0xff]  ;;  %v1319_v24 = vld [vmem:[%s1695_s28 + $0xd0] sm:$0xff] }
  0x79   : > { %966 = vmatpush.bf16.msra.mxu3 %v1323_v8  ;;  %v1294_v25 = vld [vmem:[%s1695_s28 + $0x8] sm:$0xff]  ;;  %v654_v27 = vld [vmem:[%s1674_s7] sm:$0xff]  ;;  %v655_v30 = vld [vmem:[%s1674_s7 + $0x8] sm:$0xff] }
  0x7a   : > { %928 = vmatpush.bf16.msra.mxu0 %v1298_v9  ;;  %v1302_v26 = vld [vmem:[%s1695_s28 + $0x48] sm:$0xff]  ;;  %v722_v31 = vunpack.c.l.b16 %v654_v27  ;;  %v723_v32 = vunpack.c.h.b16 %v654_v27  ;;  %v1293_v33 = vld [vmem:[%s1695_s28] sm:$0xff]  ;;  %v724_v35 = vunpack.c.l.b16 %v655_v30  ;;  %v725_v36 = vunpack.c.h.b16 %v655_v30  ;;  %v653_v51 = vld [vmem:[#allocation2] sm:$0xff] }
  0x7b   : > { %941 = vmatpush.bf16.msra.mxu1 %v1306_v10  ;;  %v1310_v28 = vld [vmem:[%s1695_s28 + $0x88] sm:$0xff]  ;;  %v1301_v34 = vld [vmem:[%s1695_s28 + $0x40] sm:$0xff] }
  0x7c   : > { %954 = vmatpush.bf16.msra.mxu2 %v1314_v11  ;;  %v1318_v29 = vld [vmem:[%s1695_s28 + $0xc8] sm:$0xff]  ;;  %v1309_v37 = vld [vmem:[%s1695_s28 + $0x80] sm:$0xff]  ;;  %v726_v39 = vpack.c.b16 %v722_v31, %v722_v31  ;;  %v727_v40 = vpack.c.b16 %v723_v32, %v723_v32  ;;  %v728_v41 = vpack.c.b16 %v724_v35, %v724_v35  ;;  %v729_v42 = vpack.c.b16 %v725_v36, %v725_v36 }
  0x7d   : > { %967 = vmatpush.bf16.msra.mxu3 %v1322_v12  ;;  %v1317_v38 = vld [vmem:[%s1695_s28 + $0xc0] sm:$0xff] }
  0x7e   : > { %929 = vmatpush.bf16.msra.mxu0 %v1297_v13 }
  0x7f   : > { %942 = vmatpush.bf16.msra.mxu1 %v1305_v14 }
  0x80   : > { %955 = vmatpush.bf16.msra.mxu2 %v1313_v15 }
  0x81   : > { %968 = vmatpush.bf16.msra.mxu3 %v1321_v16 }
  0x82   : > { %930 = vmatpush.bf16.msra.mxu0 %v1296_v17 }
  0x83   : > { %943 = vmatpush.bf16.msra.mxu1 %v1304_v18 }
  0x84   : > { %956 = vmatpush.bf16.msra.mxu2 %v1312_v19 }
  0x85   : > { %969 = vmatpush.bf16.msra.mxu3 %v1320_v20 }
  0x86   : > { %931 = vmatpush.bf16.msra.mxu0 %v1295_v21 }
  0x87   : > { %944 = vmatpush.bf16.msra.mxu1 %v1303_v22 }
  0x88   : > { %957 = vmatpush.bf16.msra.mxu2 %v1311_v23 }
  0x89   : > { %970 = vmatpush.bf16.msra.mxu3 %v1319_v24 }
  0x8a   : > { %932 = vmatpush.bf16.msra.mxu0 %v1294_v25 }
  0x8b   : > { %945 = vmatpush.bf16.msra.mxu1 %v1302_v26 }
  0x8c   : > { %958 = vmatpush.bf16.msra.mxu2 %v1310_v28 }
  0x8d   : > { %971 = vmatpush.bf16.msra.mxu3 %v1318_v29 }
  0x8e   : > { %933 = vmatpush.bf16.msra.mxu0 %v1293_v33 }
  0x8f   : > { %946 = vmatpush.bf16.msra.mxu1 %v1301_v34 }
  0x90   : > { %959 = vmatpush.bf16.msra.mxu2 %v1309_v37 }
  0x91   : > { %972 = vmatpush.bf16.msra.mxu3 %v1317_v38  ;;  %934 = vmatmul.bf16.vlgmr.msra.gmra.mxu0 %v726_v39 }
  0x92   : > { %947 = vmatmul.bf16.vlgmr.msra.gmra.mxu1 %v727_v40 }
  0x93   : > { %960 = vmatmul.bf16.vlgmr.msra.gmra.mxu2 %v728_v41 }
  0x94   : > { %973 = vmatmul.bf16.vlgmr.msra.gmra.mxu3 %v729_v42 }
 0x10e   : > { %v935_v43 = vpop.f32.mrf.mxu0 }
 0x10f   : > { %v948_v44 = vpop.f32.mrf.mxu1 }
 0x110   : > { %v949_v45 = vadd.f32 %v948_v44, %v935_v43 }
 0x116   : > { %v961_v46 = vpop.f32.mrf.mxu2  ;;  %v937_v49 = vpop.f32.mrf.mxu0 }
 0x117   : > { %v974_v47 = vpop.f32.mrf.mxu3  ;;  %v962_v48 = vadd.f32 %v961_v46, %v949_v45  ;;  %v950_v50 = vpop.f32.mrf.mxu1 }
 0x119   : > { %v975_v52 = vadd.f32 %v974_v47, %v962_v48 }
 0x11b   : > { %v978_v53 = vadd.f32 %v975_v52, %v653_v51  ;;  %983 = sbr.rel (%p1289_p13) target bundleno = 304 (0x130), region = 89 }
 0x11d   : > { %979 = vst [vmem:[#allocation2] sm:$0xff] %v978_v53 }
 0x11e   : > { %v963_v54 = vpop.f32.mrf.mxu2 }
 0x11f   : > { %v976_v55 = vpop.f32.mrf.mxu3 }
 0x120   : > { %v1382_v57 = vld [vmem:[%s628_s18] ss:$0 sm:$0xff] }
 0x121   : > { %v1383_v58 = vld [vmem:[%s631_s12] ss:$0 sm:$0xff] }
 0x122   : > { %v995_v59 = vld [vmem:[%s1688_s16] sm:$0xf] }
 0x123   : > { %v996_v61 = vunpack.c.l.bf16 %v995_v59 }
 0x124   : > { %v984_v56 = vld [vmem:[#allocation2] sm:$0xff] }
 0x125   : > { %v989_v60 = vmul.f32 %v1382_v57, %v984_v56 }
 0x127   : > { %v994_v62 = vadd.f32 %v1383_v58, %v989_v60 }
 0x129   : > { %v997_v63 = vadd.f32 %v996_v61, %v994_v62 }
 0x12b   : > { %v998_v0 = vmax.f32 %v997_v63, 0.0 }
 0x12d   : > { %v999_v1 = vpack.c.bf16 %v998_v0, %v998_v0 }
 0x12f   : > { %1000 = vst [vmem:[%s1693_s29] sm:$0xf] %v999_v1 }
 0x130 PF: > { %s15_s24 = sadd.s32 1, %s1438_s24   ;;  %s1774_s18 = smov %s1418_s19 }
 0x131   : > { %p12_p0 = scmp.ge.s32.totalorder %s15_s24, 38   ;;  %s1775_s19 = smov %s1522_s6 }
 0x132   : > { %s1776_s20 = smov %s1430_s22  ;;  %s1777_s21 = smov %s1434_s23 }
 0x133   : > { %s1778_s22 = smov %s1781_s25  ;;  %s1779_s23 = smov %s1785_s26 }
 0x134   :  { %14 = sbr.rel (!%p12_p0) target bundleno = 6 (0x6), region = 136 }

// kernel: resnet18_forward.41
= control target key start
LH: loop header
LB: loop body
LE: loop exit
PB: predicated region body
PF: predicated region fallthrough
CT: control target
= control target key end

     0   :  { %s1386_s15 = smov 0   ;;  %s1388_s16 = smov 0   ;;  %s1675_s0 = inlined_call_operand.vmem [shape: bf16[8,4608], index: 0, kind: input, shape index: {}]   ;;  %s1676_s1 = inlined_call_operand.vmem [shape: bf16[4608,512], index: 1, kind: input, shape index: {}]   ;;  %s1677_s2 = inlined_call_operand.vmem [shape: f32[1,512], index: 2, kind: input, shape index: {}]   ;;  %s1678_s3 = inlined_call_operand.vmem [shape: f32[1,512], index: 3, kind: input, shape index: {}]   ;;  %s1679_s4 = inlined_call_operand.vmem [shape: bf16[8,512], index: 4, kind: output, shape index: {}]  }
   0x1   :  { %s1390_s17 = smov 0   ;;  %s1392_s18 = smov 0  }
   0x2   :  { %s1394_s19 = smov 0   ;;  %s1396_s20 = smov 0  }
   0x3   :  { %s1398_s21 = smov 0  }
   0x4 LB: > { %s26_s22 = sadd.s32 1, %s1350_s19  ;;  %s29_s23 = sadd.s32 1, %s1354_s20  ;;  %s1358_s21 = sphi %s1398_s21, %s14_s21   ;;  %s1354_s20 = sphi %s1396_s20, %s1685_s20   ;;  %s1350_s19 = sphi %s1394_s19, %s1684_s19   ;;  %s1346_s18 = sphi %s1392_s18, %s1683_s18   ;;  %s1342_s17 = sphi %s1390_s17, %s1682_s17   ;;  %s1338_s16 = sphi %s1388_s16, %s1681_s16   ;;  %s1334_s15 = sphi %s1386_s15, %s1680_s15  }
   0x5   : > { %p27_p0 = scmp.ge.s32.totalorder %s26_s22, 9  ;;  %p77_p1 = scmp.ne.s32.totalorder %s1338_s16, %s1334_s15 }
   0x6   : > { %p78_p2 = scmp.eq.s32.totalorder %s1358_s21, 0  ;;  %s70_s27 = sadd.s32 1, %s1338_s16 }
   0x7   : > { %s1687_s22 = smov (%p27_p0, %s26_s22), 0  ;;  %s1689_s23 = smov (!%p27_p0, %s29_s23), %s1354_s20 }
   0x8   : > { %p79_p3 = por %p78_p2, %p77_p1  ;;  %p31_p4 = scmp.ge.s32.totalorder %s1689_s23, 4 }
   0x9   : > { %s65_s24 = ssub.s32 %s1350_s19, %s1687_s22  ;;  %p1070_p6 = scmp.ge.s32.totalorder %s1358_s21, 36 }
   0xa   : > { %s1691_s23 = smov (%p31_p4, %s1689_s23), 0 }
   0xb   : > { %s66_s25 = ssub.s32 %s1354_s20, %s1691_s23  ;;  %183 = sbr.rel (%p1070_p6) target bundleno = 86 (0x56), region = 16 }
   0xc   : > { %s67_s26 = sor.u32 %s66_s25, %s65_s24 }
   0xd   : > { %p68_p5 = scmp.eq.s32.totalorder %s67_s26, 0 }
   0xf   : > { %s1437_s28 = scalar_select %p68_p5, %s1338_s16, %s70_s27  }
  0x10   : > { %199 = sbr.rel (!%p79_p3) target bundleno = 86 (0x56), region = 24  ;;  %s201_s29 = sand.u32 (%p79_p3), 1, %s1338_s16  }
  0x11   : > { %s1212_s30 = sshll.u32 (%p79_p3), %s1350_s19, 8  ;;  %s1071_s5 = sshll.u32 (%p79_p3), %s201_s29, 8 }
  0x12   : > { %s206_s6 = sadd.s32 (%p79_p3), %s1354_s20, %s1212_s30  ;;  %s1451_s11 = scalar_lea.vmem (%p79_p3), [#allocation3], %s1071_s5 }
  0x13   : > { %s1074_s7 = sshll.u32 (%p79_p3), %s206_s6, 2 }
  0x14   : > { %s1446_s10 = scalar_lea.vmem (%p79_p3), %s1676_s1, %s1074_s7 }
  0x15   : > { %v225_v0 = vld [vmem:[%s1446_s10] sm:$0xf]  ;;  %v227_v1 = vld [vmem:[%s1446_s10 + $0x10] sm:$0xf] }
  0x16   : > { %v229_v2 = vld [vmem:[%s1446_s10 + $0x20] sm:$0xf]  ;;  %226 = vst [vmem:[%s1451_s11] sm:$0xf] %v225_v0  ;;  %v231_v3 = vld [vmem:[%s1446_s10 + $0x30] sm:$0xf] }
  0x17   : > { %228 = vst [vmem:[%s1451_s11 + $0x4] sm:$0xf] %v227_v1  ;;  %v233_v4 = vld [vmem:[%s1446_s10 + $0x40] sm:$0xf]  ;;  %v235_v5 = vld [vmem:[%s1446_s10 + $0x50] sm:$0xf] }
  0x18   : > { %230 = vst [vmem:[%s1451_s11 + $0x8] sm:$0xf] %v229_v2  ;;  %v237_v6 = vld [vmem:[%s1446_s10 + $0x60] sm:$0xf]  ;;  %v239_v7 = vld [vmem:[%s1446_s10 + $0x70] sm:$0xf] }
  0x19   : > { %232 = vst [vmem:[%s1451_s11 + $0xc] sm:$0xf] %v231_v3  ;;  %v241_v8 = vld [vmem:[%s1446_s10 + $0x80] sm:$0xf]  ;;  %v243_v9 = vld [vmem:[%s1446_s10 + $0x90] sm:$0xf] }
  0x1a   : > { %234 = vst [vmem:[%s1451_s11 + $0x10] sm:$0xf] %v233_v4  ;;  %v245_v10 = vld [vmem:[%s1446_s10 + $0xa0] sm:$0xf]  ;;  %v247_v11 = vld [vmem:[%s1446_s10 + $0xb0] sm:$0xf] }
  0x1b   : > { %236 = vst [vmem:[%s1451_s11 + $0x14] sm:$0xf] %v235_v5  ;;  %v249_v12 = vld [vmem:[%s1446_s10 + $0xc0] sm:$0xf]  ;;  %v251_v13 = vld [vmem:[%s1446_s10 + $0xd0] sm:$0xf] }
  0x1c   : > { %238 = vst [vmem:[%s1451_s11 + $0x18] sm:$0xf] %v237_v6  ;;  %v253_v14 = vld [vmem:[%s1446_s10 + $0xe0] sm:$0xf]  ;;  %v255_v15 = vld [vmem:[%s1446_s10 + $0xf0] sm:$0xf] }
  0x1d   : > { %240 = vst [vmem:[%s1451_s11 + $0x1c] sm:$0xf] %v239_v7  ;;  %v257_v16 = vld [vmem:[%s1446_s10 + $0x100] sm:$0xf]  ;;  %v259_v17 = vld [vmem:[%s1446_s10 + $0x110] sm:$0xf] }
  0x1e   : > { %242 = vst [vmem:[%s1451_s11 + $0x20] sm:$0xf] %v241_v8  ;;  %v261_v18 = vld [vmem:[%s1446_s10 + $0x120] sm:$0xf]  ;;  %v263_v19 = vld [vmem:[%s1446_s10 + $0x130] sm:$0xf] }
  0x1f   : > { %244 = vst [vmem:[%s1451_s11 + $0x24] sm:$0xf] %v243_v9  ;;  %v265_v20 = vld [vmem:[%s1446_s10 + $0x140] sm:$0xf]  ;;  %v267_v21 = vld [vmem:[%s1446_s10 + $0x150] sm:$0xf] }
  0x20   : > { %246 = vst [vmem:[%s1451_s11 + $0x28] sm:$0xf] %v245_v10  ;;  %v269_v22 = vld [vmem:[%s1446_s10 + $0x160] sm:$0xf]  ;;  %v271_v23 = vld [vmem:[%s1446_s10 + $0x170] sm:$0xf] }
  0x21   : > { %248 = vst [vmem:[%s1451_s11 + $0x2c] sm:$0xf] %v247_v11  ;;  %v273_v24 = vld [vmem:[%s1446_s10 + $0x180] sm:$0xf]  ;;  %v275_v25 = vld [vmem:[%s1446_s10 + $0x190] sm:$0xf] }
  0x22   : > { %250 = vst [vmem:[%s1451_s11 + $0x30] sm:$0xf] %v249_v12  ;;  %v277_v26 = vld [vmem:[%s1446_s10 + $0x1a0] sm:$0xf]  ;;  %v279_v27 = vld [vmem:[%s1446_s10 + $0x1b0] sm:$0xf] }
  0x23   : > { %252 = vst [vmem:[%s1451_s11 + $0x34] sm:$0xf] %v251_v13  ;;  %v281_v28 = vld [vmem:[%s1446_s10 + $0x1c0] sm:$0xf]  ;;  %v283_v29 = vld [vmem:[%s1446_s10 + $0x1d0] sm:$0xf] }
  0x24   : > { %254 = vst [vmem:[%s1451_s11 + $0x38] sm:$0xf] %v253_v14  ;;  %v285_v30 = vld [vmem:[%s1446_s10 + $0x1e0] sm:$0xf]  ;;  %v287_v31 = vld [vmem:[%s1446_s10 + $0x1f0] sm:$0xf] }
  0x25   : > { %256 = vst [vmem:[%s1451_s11 + $0x3c] sm:$0xf] %v255_v15  ;;  %v289_v32 = vld [vmem:[%s1446_s10 + $0x200] sm:$0xf]  ;;  %v291_v33 = vld [vmem:[%s1446_s10 + $0x210] sm:$0xf] }
  0x26   : > { %258 = vst [vmem:[%s1451_s11 + $0x40] sm:$0xf] %v257_v16  ;;  %v293_v34 = vld [vmem:[%s1446_s10 + $0x220] sm:$0xf]  ;;  %v295_v35 = vld [vmem:[%s1446_s10 + $0x230] sm:$0xf] }
  0x27   : > { %260 = vst [vmem:[%s1451_s11 + $0x44] sm:$0xf] %v259_v17  ;;  %v297_v36 = vld [vmem:[%s1446_s10 + $0x240] sm:$0xf]  ;;  %v299_v37 = vld [vmem:[%s1446_s10 + $0x250] sm:$0xf] }
  0x28   : > { %262 = vst [vmem:[%s1451_s11 + $0x48] sm:$0xf] %v261_v18  ;;  %v301_v38 = vld [vmem:[%s1446_s10 + $0x260] sm:$0xf]  ;;  %v303_v39 = vld [vmem:[%s1446_s10 + $0x270] sm:$0xf] }
  0x29   : > { %264 = vst [vmem:[%s1451_s11 + $0x4c] sm:$0xf] %v263_v19  ;;  %v305_v40 = vld [vmem:[%s1446_s10 + $0x280] sm:$0xf]  ;;  %v307_v41 = vld [vmem:[%s1446_s10 + $0x290] sm:$0xf] }
  0x2a   : > { %266 = vst [vmem:[%s1451_s11 + $0x50] sm:$0xf] %v265_v20  ;;  %v309_v42 = vld [vmem:[%s1446_s10 + $0x2a0] sm:$0xf]  ;;  %v311_v43 = vld [vmem:[%s1446_s10 + $0x2b0] sm:$0xf] }
  0x2b   : > { %268 = vst [vmem:[%s1451_s11 + $0x54] sm:$0xf] %v267_v21  ;;  %v313_v44 = vld [vmem:[%s1446_s10 + $0x2c0] sm:$0xf]  ;;  %v315_v45 = vld [vmem:[%s1446_s10 + $0x2d0] sm:$0xf] }
  0x2c   : > { %270 = vst [vmem:[%s1451_s11 + $0x58] sm:$0xf] %v269_v22  ;;  %v317_v46 = vld [vmem:[%s1446_s10 + $0x2e0] sm:$0xf]  ;;  %v319_v47 = vld [vmem:[%s1446_s10 + $0x2f0] sm:$0xf] }
  0x2d   : > { %272 = vst [vmem:[%s1451_s11 + $0x5c] sm:$0xf] %v271_v23  ;;  %v321_v48 = vld [vmem:[%s1446_s10 + $0x300] sm:$0xf]  ;;  %v323_v49 = vld [vmem:[%s1446_s10 + $0x310] sm:$0xf] }
  0x2e   : > { %274 = vst [vmem:[%s1451_s11 + $0x60] sm:$0xf] %v273_v24  ;;  %v325_v50 = vld [vmem:[%s1446_s10 + $0x320] sm:$0xf]  ;;  %v327_v51 = vld [vmem:[%s1446_s10 + $0x330] sm:$0xf] }
  0x2f   : > { %276 = vst [vmem:[%s1451_s11 + $0x64] sm:$0xf] %v275_v25  ;;  %v329_v52 = vld [vmem:[%s1446_s10 + $0x340] sm:$0xf]  ;;  %v331_v53 = vld [vmem:[%s1446_s10 + $0x350] sm:$0xf] }
  0x30   : > { %278 = vst [vmem:[%s1451_s11 + $0x68] sm:$0xf] %v277_v26  ;;  %v333_v54 = vld [vmem:[%s1446_s10 + $0x360] sm:$0xf]  ;;  %v335_v55 = vld [vmem:[%s1446_s10 + $0x370] sm:$0xf] }
  0x31   : > { %280 = vst [vmem:[%s1451_s11 + $0x6c] sm:$0xf] %v279_v27  ;;  %v337_v56 = vld [vmem:[%s1446_s10 + $0x380] sm:$0xf]  ;;  %v339_v57 = vld [vmem:[%s1446_s10 + $0x390] sm:$0xf] }
  0x32   : > { %282 = vst [vmem:[%s1451_s11 + $0x70] sm:$0xf] %v281_v28  ;;  %v341_v58 = vld [vmem:[%s1446_s10 + $0x3a0] sm:$0xf]  ;;  %v343_v59 = vld [vmem:[%s1446_s10 + $0x3b0] sm:$0xf] }
  0x33   : > { %284 = vst [vmem:[%s1451_s11 + $0x74] sm:$0xf] %v283_v29  ;;  %v345_v60 = vld [vmem:[%s1446_s10 + $0x3c0] sm:$0xf]  ;;  %v347_v61 = vld [vmem:[%s1446_s10 + $0x3d0] sm:$0xf] }
  0x34   : > { %286 = vst [vmem:[%s1451_s11 + $0x78] sm:$0xf] %v285_v30  ;;  %v349_v62 = vld [vmem:[%s1446_s10 + $0x3e0] sm:$0xf]  ;;  %v351_v63 = vld [vmem:[%s1446_s10 + $0x3f0] sm:$0xf] }
  0x35   : > { %288 = vst [vmem:[%s1451_s11 + $0x7c] sm:$0xf] %v287_v31 }
  0x36   : > { %290 = vst [vmem:[%s1451_s11 + $0x80] sm:$0xf] %v289_v32 }
  0x37   : > { %292 = vst [vmem:[%s1451_s11 + $0x84] sm:$0xf] %v291_v33 }
  0x38   : > { %294 = vst [vmem:[%s1451_s11 + $0x88] sm:$0xf] %v293_v34 }
  0x39   : > { %296 = vst [vmem:[%s1451_s11 + $0x8c] sm:$0xf] %v295_v35 }
  0x3a   : > { %298 = vst [vmem:[%s1451_s11 + $0x90] sm:$0xf] %v297_v36 }
  0x3b   : > { %300 = vst [vmem:[%s1451_s11 + $0x94] sm:$0xf] %v299_v37 }
  0x3c   : > { %302 = vst [vmem:[%s1451_s11 + $0x98] sm:$0xf] %v301_v38 }
  0x3d   : > { %304 = vst [vmem:[%s1451_s11 + $0x9c] sm:$0xf] %v303_v39 }
  0x3e   : > { %306 = vst [vmem:[%s1451_s11 + $0xa0] sm:$0xf] %v305_v40 }
  0x3f   : > { %308 = vst [vmem:[%s1451_s11 + $0xa4] sm:$0xf] %v307_v41 }
  0x40   : > { %310 = vst [vmem:[%s1451_s11 + $0xa8] sm:$0xf] %v309_v42 }
  0x41   : > { %312 = vst [vmem:[%s1451_s11 + $0xac] sm:$0xf] %v311_v43 }
  0x42   : > { %314 = vst [vmem:[%s1451_s11 + $0xb0] sm:$0xf] %v313_v44 }
  0x43   : > { %316 = vst [vmem:[%s1451_s11 + $0xb4] sm:$0xf] %v315_v45 }
  0x44   : > { %318 = vst [vmem:[%s1451_s11 + $0xb8] sm:$0xf] %v317_v46 }
  0x45   : > { %320 = vst [vmem:[%s1451_s11 + $0xbc] sm:$0xf] %v319_v47 }
  0x46   : > { %322 = vst [vmem:[%s1451_s11 + $0xc0] sm:$0xf] %v321_v48 }
  0x47   : > { %324 = vst [vmem:[%s1451_s11 + $0xc4] sm:$0xf] %v323_v49 }
  0x48   : > { %326 = vst [vmem:[%s1451_s11 + $0xc8] sm:$0xf] %v325_v50 }
  0x49   : > { %328 = vst [vmem:[%s1451_s11 + $0xcc] sm:$0xf] %v327_v51 }
  0x4a   : > { %330 = vst [vmem:[%s1451_s11 + $0xd0] sm:$0xf] %v329_v52 }
  0x4b   : > { %332 = vst [vmem:[%s1451_s11 + $0xd4] sm:$0xf] %v331_v53 }
  0x4c   : > { %334 = vst [vmem:[%s1451_s11 + $0xd8] sm:$0xf] %v333_v54 }
  0x4d   : > { %336 = vst [vmem:[%s1451_s11 + $0xdc] sm:$0xf] %v335_v55 }
  0x4e   : > { %338 = vst [vmem:[%s1451_s11 + $0xe0] sm:$0xf] %v337_v56 }
  0x4f   : > { %340 = vst [vmem:[%s1451_s11 + $0xe4] sm:$0xf] %v339_v57 }
  0x50   : > { %342 = vst [vmem:[%s1451_s11 + $0xe8] sm:$0xf] %v341_v58 }
  0x51   : > { %344 = vst [vmem:[%s1451_s11 + $0xec] sm:$0xf] %v343_v59 }
  0x52   : > { %346 = vst [vmem:[%s1451_s11 + $0xf0] sm:$0xf] %v345_v60 }
  0x53   : > { %348 = vst [vmem:[%s1451_s11 + $0xf4] sm:$0xf] %v347_v61 }
  0x54   : > { %350 = vst [vmem:[%s1451_s11 + $0xf8] sm:$0xf] %v349_v62 }
  0x55   : > { %352 = vst [vmem:[%s1451_s11 + $0xfc] sm:$0xf] %v351_v63 }
  0x56 PF: > { %p1075_p7 = scmp.ge.s32.totalorder %s1358_s21, 1  ;;  %p515_p8 = scmp.lt.s32.totalorder %s1358_s21, 37 }
  0x58   : > { %p516_p9 = pnand %p1075_p7, %p515_p8 }
  0x59   : > { %s522_s12 = sand.u32 (!%p516_p9), 1, %s1334_s15   ;;  %s1077_s13 = sshll.u32 (!%p516_p9), %s1342_s17, 2 }
  0x5a   : > { %519 = sbr.rel (%p516_p9) target bundleno = 294 (0x126), region = 73  ;;  %s1076_s14 = sshll.u32 (!%p516_p9), %s522_s12, 8 }
  0x5b   : > { %p568_p10 = scmp.lt.s32.totalorder (!%p516_p9), %s1077_s13, 35  ;;  %p576_p11 = scmp.lt.s32.totalorder (!%p516_p9), %s1346_s18, 3 }
  0x5c   : > { %s1605_s12 = scalar_lea.vmem (!%p516_p9), [#allocation3], %s1076_s14  ;;  %p1080_p12 = scmp.ne.s32.totalorder (!%p516_p9), %s1342_s17, 0 }
  0x5f   : > { %s1693_s13 = smov (!%p568_p10, %s1077_s13), 35  ;;  %s1695_s18 = smov (!%p576_p11, %s1346_s18), 3 }
  0x60   : > { %s1078_s24 = sshll.u32 %s1693_s13, 2  ;;  %s578_s15 = scalar_lea.vmem %s1677_s2, %s1695_s18 }
  0x61   : > { %s1589_s27 = scalar_lea.vmem %s1675_s0, %s1078_s24  ;;  %s581_s7 = scalar_lea.vmem %s1678_s3, %s1695_s18 }
  0x62   : > { %s1079_s8 = sshll.u32 %s1695_s18, 2  ;;  %593 = sbr.rel (%p1080_p12) target bundleno = 105 (0x69), region = 81 }
  0x63   : > { %s1603_s11 = scalar_lea.vmem %s1679_s4, %s1079_s8 }
  0x67   : > { %v1360_v0 = vmov 0.0  }
  0x68   : > { %594 = vst [vmem:[#allocation2] sm:$0xff] %v1360_v0 }
  0x69 PF: > { %v1220_v1 = vld [vmem:[%s1605_s12 + $0x38] sm:$0xff]  ;;  %v1219_v5 = vld [vmem:[%s1605_s12 + $0x30] sm:$0xff]  ;;  %v1218_v9 = vld [vmem:[%s1605_s12 + $0x28] sm:$0xff]  ;;  %p1209_p13 = scmp.ne.s32.totalorder %s1342_s17, 8 }
  0x6a   : > { %v1228_v2 = vld [vmem:[%s1605_s12 + $0x78] sm:$0xff]  ;;  %868 = vmatpush.bf16.msra.mxu0 %v1220_v1  ;;  %v1227_v6 = vld [vmem:[%s1605_s12 + $0x70] sm:$0xff]  ;;  %v1226_v10 = vld [vmem:[%s1605_s12 + $0x68] sm:$0xff] }
  0x6b   : > { %v1236_v3 = vld [vmem:[%s1605_s12 + $0xb8] sm:$0xff]  ;;  %881 = vmatpush.bf16.msra.mxu1 %v1228_v2  ;;  %v1235_v7 = vld [vmem:[%s1605_s12 + $0xb0] sm:$0xff]  ;;  %v1234_v11 = vld [vmem:[%s1605_s12 + $0xa8] sm:$0xff] }
  0x6c   : > { %v1244_v4 = vld [vmem:[%s1605_s12 + $0xf8] sm:$0xff]  ;;  %894 = vmatpush.bf16.msra.mxu2 %v1236_v3  ;;  %v1243_v8 = vld [vmem:[%s1605_s12 + $0xf0] sm:$0xff]  ;;  %v1242_v12 = vld [vmem:[%s1605_s12 + $0xe8] sm:$0xff] }
  0x6d   : > { %907 = vmatpush.bf16.msra.mxu3 %v1244_v4  ;;  %v1217_v13 = vld [vmem:[%s1605_s12 + $0x20] sm:$0xff]  ;;  %v1216_v17 = vld [vmem:[%s1605_s12 + $0x18] sm:$0xff]  ;;  %v1215_v21 = vld [vmem:[%s1605_s12 + $0x10] sm:$0xff] }
  0x6e   : > { %869 = vmatpush.bf16.msra.mxu0 %v1219_v5  ;;  %v1225_v14 = vld [vmem:[%s1605_s12 + $0x60] sm:$0xff]  ;;  %v1224_v18 = vld [vmem:[%s1605_s12 + $0x58] sm:$0xff]  ;;  %v1223_v22 = vld [vmem:[%s1605_s12 + $0x50] sm:$0xff] }
  0x6f   : > { %882 = vmatpush.bf16.msra.mxu1 %v1227_v6  ;;  %v1233_v15 = vld [vmem:[%s1605_s12 + $0xa0] sm:$0xff]  ;;  %v1232_v19 = vld [vmem:[%s1605_s12 + $0x98] sm:$0xff]  ;;  %v1231_v23 = vld [vmem:[%s1605_s12 + $0x90] sm:$0xff] }
  0x70   : > { %895 = vmatpush.bf16.msra.mxu2 %v1235_v7  ;;  %v1241_v16 = vld [vmem:[%s1605_s12 + $0xe0] sm:$0xff]  ;;  %v1240_v20 = vld [vmem:[%s1605_s12 + $0xd8] sm:$0xff]  ;;  %v1239_v24 = vld [vmem:[%s1605_s12 + $0xd0] sm:$0xff] }
  0x71   : > { %908 = vmatpush.bf16.msra.mxu3 %v1243_v8  ;;  %v1214_v25 = vld [vmem:[%s1605_s12 + $0x8] sm:$0xff]  ;;  %v596_v27 = vld [vmem:[%s1589_s27] sm:$0xff]  ;;  %v597_v30 = vld [vmem:[%s1589_s27 + $0x8] sm:$0xff] }
  0x72   : > { %870 = vmatpush.bf16.msra.mxu0 %v1218_v9  ;;  %v1222_v26 = vld [vmem:[%s1605_s12 + $0x48] sm:$0xff]  ;;  %v664_v31 = vunpack.c.l.b16 %v596_v27  ;;  %v665_v32 = vunpack.c.h.b16 %v596_v27  ;;  %v1213_v33 = vld [vmem:[%s1605_s12] sm:$0xff]  ;;  %v666_v35 = vunpack.c.l.b16 %v597_v30  ;;  %v667_v36 = vunpack.c.h.b16 %v597_v30  ;;  %v595_v51 = vld [vmem:[#allocation2] sm:$0xff] }
  0x73   : > { %883 = vmatpush.bf16.msra.mxu1 %v1226_v10  ;;  %v1230_v28 = vld [vmem:[%s1605_s12 + $0x88] sm:$0xff]  ;;  %v1221_v34 = vld [vmem:[%s1605_s12 + $0x40] sm:$0xff] }
  0x74   : > { %896 = vmatpush.bf16.msra.mxu2 %v1234_v11  ;;  %v1238_v29 = vld [vmem:[%s1605_s12 + $0xc8] sm:$0xff]  ;;  %v1229_v37 = vld [vmem:[%s1605_s12 + $0x80] sm:$0xff]  ;;  %v668_v39 = vpack.c.b16 %v664_v31, %v664_v31  ;;  %v669_v40 = vpack.c.b16 %v665_v32, %v665_v32  ;;  %v670_v41 = vpack.c.b16 %v666_v35, %v666_v35  ;;  %v671_v42 = vpack.c.b16 %v667_v36, %v667_v36 }
  0x75   : > { %909 = vmatpush.bf16.msra.mxu3 %v1242_v12  ;;  %v1237_v38 = vld [vmem:[%s1605_s12 + $0xc0] sm:$0xff] }
  0x76   : > { %871 = vmatpush.bf16.msra.mxu0 %v1217_v13 }
  0x77   : > { %884 = vmatpush.bf16.msra.mxu1 %v1225_v14 }
  0x78   : > { %897 = vmatpush.bf16.msra.mxu2 %v1233_v15 }
  0x79   : > { %910 = vmatpush.bf16.msra.mxu3 %v1241_v16 }
  0x7a   : > { %872 = vmatpush.bf16.msra.mxu0 %v1216_v17 }
  0x7b   : > { %885 = vmatpush.bf16.msra.mxu1 %v1224_v18 }
  0x7c   : > { %898 = vmatpush.bf16.msra.mxu2 %v1232_v19 }
  0x7d   : > { %911 = vmatpush.bf16.msra.mxu3 %v1240_v20 }
  0x7e   : > { %873 = vmatpush.bf16.msra.mxu0 %v1215_v21 }
  0x7f   : > { %886 = vmatpush.bf16.msra.mxu1 %v1223_v22 }
  0x80   : > { %899 = vmatpush.bf16.msra.mxu2 %v1231_v23 }
  0x81   : > { %912 = vmatpush.bf16.msra.mxu3 %v1239_v24 }
  0x82   : > { %874 = vmatpush.bf16.msra.mxu0 %v1214_v25 }
  0x83   : > { %887 = vmatpush.bf16.msra.mxu1 %v1222_v26 }
  0x84   : > { %900 = vmatpush.bf16.msra.mxu2 %v1230_v28 }
  0x85   : > { %913 = vmatpush.bf16.msra.mxu3 %v1238_v29 }
  0x86   : > { %875 = vmatpush.bf16.msra.mxu0 %v1213_v33 }
  0x87   : > { %888 = vmatpush.bf16.msra.mxu1 %v1221_v34 }
  0x88   : > { %901 = vmatpush.bf16.msra.mxu2 %v1229_v37 }
  0x89   : > { %914 = vmatpush.bf16.msra.mxu3 %v1237_v38  ;;  %876 = vmatmul.bf16.vlgmr.msra.gmra.mxu0 %v668_v39 }
  0x8a   : > { %889 = vmatmul.bf16.vlgmr.msra.gmra.mxu1 %v669_v40 }
  0x8b   : > { %902 = vmatmul.bf16.vlgmr.msra.gmra.mxu2 %v670_v41 }
  0x8c   : > { %915 = vmatmul.bf16.vlgmr.msra.gmra.mxu3 %v671_v42 }
 0x106   : > { %v877_v43 = vpop.f32.mrf.mxu0 }
 0x107   : > { %v890_v44 = vpop.f32.mrf.mxu1 }
 0x108   : > { %v891_v45 = vadd.f32 %v890_v44, %v877_v43 }
 0x10e   : > { %v903_v46 = vpop.f32.mrf.mxu2  ;;  %v879_v49 = vpop.f32.mrf.mxu0 }
 0x10f   : > { %v916_v47 = vpop.f32.mrf.mxu3  ;;  %v904_v48 = vadd.f32 %v903_v46, %v891_v45  ;;  %v892_v50 = vpop.f32.mrf.mxu1 }
 0x111   : > { %v917_v52 = vadd.f32 %v916_v47, %v904_v48 }
 0x113   : > { %v920_v53 = vadd.f32 %v917_v52, %v595_v51  ;;  %925 = sbr.rel (%p1209_p13) target bundleno = 294 (0x126), region = 85 }
 0x115   : > { %921 = vst [vmem:[#allocation2] sm:$0xff] %v920_v53 }
 0x116   : > { %v905_v54 = vpop.f32.mrf.mxu2 }
 0x117   : > { %v918_v55 = vpop.f32.mrf.mxu3 }
 0x118   : > { %v1302_v57 = vld [vmem:[%s578_s15] ss:$0 sm:$0xff] }
 0x119   : > { %v1303_v58 = vld [vmem:[%s581_s7] ss:$0 sm:$0xff] }
 0x11c   : > { %v926_v56 = vld [vmem:[#allocation2] sm:$0xff] }
 0x11d   : > { %v931_v59 = vmul.f32 %v1302_v57, %v926_v56 }
 0x11f   : > { %v936_v60 = vadd.f32 %v1303_v58, %v931_v59 }
 0x121   : > { %v937_v61 = vmax.f32 %v936_v60, 0.0 }
 0x123   : > { %v938_v62 = vpack.c.bf16 %v937_v61, %v937_v61 }
 0x125   : > { %939 = vst [vmem:[%s1603_s11] sm:$0xf] %v938_v62 }
 0x126 PF: > { %s14_s21 = sadd.s32 1, %s1358_s21   ;;  %s1680_s15 = smov %s1338_s16 }
 0x127   : > { %p11_p0 = scmp.ge.s32.totalorder %s14_s21, 38   ;;  %s1681_s16 = smov %s1437_s28 }
 0x128   : > { %s1682_s17 = smov %s1350_s19  ;;  %s1683_s18 = smov %s1354_s20 }
 0x129   : > { %s1684_s19 = smov %s1687_s22  ;;  %s1685_s20 = smov %s1691_s23 }
 0x12a   :  { %13 = sbr.rel (!%p11_p0) target bundleno = 4 (0x4), region = 129 }

// kernel: resnet18_forward.43
= control target key start
LH: loop header
LB: loop body
LE: loop exit
PB: predicated region body
PF: predicated region fallthrough
CT: control target
= control target key end

     0   :  { %8 = vsyncpa [#allocation3], 0  ;;  %s506_s0 = inlined_call_operand.vmem [shape: bf16[2,1,512], index: 0, kind: input, shape index: {}]   ;;  %s507_s1 = inlined_call_operand.vmem [shape: f32[512,128], index: 1, kind: input, shape index: {}]   ;;  %s508_s2 = inlined_call_operand.hbm [shape: f32[1,128], index: 2, kind: input, shape index: {}]   ;;  %s509_s3 = inlined_call_operand.hbm [shape: f32[2,128], index: 3, kind: output, shape index: {}]  }
   0x1   :  { %9 = vsyncpa [#allocation4], 0  ;;  %s19_s14 = sshll.u32 %s508_s2, 4  ;;  %s279_s15 = smov [#allocation2]   ;;  %s20_s14 = int_to_ptr.hbm [resolvable:$true] %s19_s14 }
   0x2   :  { %s21_s16 = sshll.u32 %s279_s15, 4  ;;  %s22_s16 = int_to_ptr.vmem [resolvable:$true] %s21_s16 }
   0x3   :  { %24 = dma.hbm_to_vmem [thread:$0]  %s20_s14, 16, %s22_s16, [#allocation3]  }
   0x4   :  { %275 = dma.done.wait [#allocation3], 16  }
   0x5   :  { %276 = vsyncadd [#allocation3], 4294967280  ;;  %v82_v0 = vld [vmem:[%s507_s1 + $0x178] sm:$0xff]  ;;  %v81_v2 = vld [vmem:[%s507_s1 + $0x170] sm:$0xff]  ;;  %vm113_vm0 = vcmask 1041409  }
   0x6   :  { %v50_v1 = vld [vmem:[%s507_s1 + $0x78] sm:$0xff]  ;;  %162 = vmatpush.msra.mxu2 %v82_v0  ;;  %v49_v4 = vld [vmem:[%s507_s1 + $0x70] sm:$0xff]  ;;  %v80_v6 = vld [vmem:[%s507_s1 + $0x168] sm:$0xff] }
   0x7   :  { %122 = vmatpush.msra.mxu0 %v50_v1  ;;  %v98_v3 = vld [vmem:[%s507_s1 + $0x1f8] sm:$0xff]  ;;  %v97_v7 = vld [vmem:[%s507_s1 + $0x1f0] sm:$0xff]  ;;  %v48_v8 = vld [vmem:[%s507_s1 + $0x68] sm:$0xff] }
   0x8   :  { %v66_v5 = vld [vmem:[%s507_s1 + $0xf8] sm:$0xff]  ;;  %182 = vmatpush.msra.mxu3 %v98_v3  ;;  %163 = vmatpush.msra.mxu2 %v81_v2  ;;  %v65_v9 = vld [vmem:[%s507_s1 + $0xf0] sm:$0xff]  ;;  %v96_v10 = vld [vmem:[%s507_s1 + $0x1e8] sm:$0xff] }
   0x9   :  { %142 = vmatpush.msra.mxu1 %v66_v5  ;;  %123 = vmatpush.msra.mxu0 %v49_v4  ;;  %v79_v11 = vld [vmem:[%s507_s1 + $0x160] sm:$0xff]  ;;  %v64_v13 = vld [vmem:[%s507_s1 + $0xe8] sm:$0xff]  ;;  %v78_v16 = vld [vmem:[%s507_s1 + $0x158] sm:$0xff] }
   0xa   :  { %183 = vmatpush.msra.mxu3 %v97_v7  ;;  %v47_v12 = vld [vmem:[%s507_s1 + $0x60] sm:$0xff]  ;;  %164 = vmatpush.msra.mxu2 %v80_v6  ;;  %v46_v17 = vld [vmem:[%s507_s1 + $0x58] sm:$0xff]  ;;  %v77_v20 = vld [vmem:[%s507_s1 + $0x150] sm:$0xff] }
   0xb   :  { %143 = vmatpush.msra.mxu1 %v65_v9  ;;  %124 = vmatpush.msra.mxu0 %v48_v8  ;;  %v95_v14 = vld [vmem:[%s507_s1 + $0x1e0] sm:$0xff]  ;;  %v94_v18 = vld [vmem:[%s507_s1 + $0x1d8] sm:$0xff]  ;;  %v45_v21 = vld [vmem:[%s507_s1 + $0x50] sm:$0xff] }
   0xc   :  { %v63_v15 = vld [vmem:[%s507_s1 + $0xe0] sm:$0xff]  ;;  %184 = vmatpush.msra.mxu3 %v96_v10  ;;  %165 = vmatpush.msra.mxu2 %v79_v11  ;;  %v62_v19 = vld [vmem:[%s507_s1 + $0xd8] sm:$0xff]  ;;  %v93_v22 = vld [vmem:[%s507_s1 + $0x1d0] sm:$0xff] }
   0xd   :  { %144 = vmatpush.msra.mxu1 %v64_v13  ;;  %125 = vmatpush.msra.mxu0 %v47_v12  ;;  %v61_v23 = vld [vmem:[%s507_s1 + $0xd0] sm:$0xff]  ;;  %v76_v24 = vld [vmem:[%s507_s1 + $0x148] sm:$0xff]  ;;  %v75_v28 = vld [vmem:[%s507_s1 + $0x140] sm:$0xff] }
   0xe   :  { %185 = vmatpush.msra.mxu3 %v95_v14  ;;  %166 = vmatpush.msra.mxu2 %v78_v16  ;;  %v44_v25 = vld [vmem:[%s507_s1 + $0x48] sm:$0xff]  ;;  %v43_v29 = vld [vmem:[%s507_s1 + $0x40] sm:$0xff]  ;;  %v74_v32 = vld [vmem:[%s507_s1 + $0x138] sm:$0xff] }
   0xf   :  { %145 = vmatpush.msra.mxu1 %v63_v15  ;;  %126 = vmatpush.msra.mxu0 %v46_v17  ;;  %v92_v26 = vld [vmem:[%s507_s1 + $0x1c8] sm:$0xff]  ;;  %v91_v30 = vld [vmem:[%s507_s1 + $0x1c0] sm:$0xff]  ;;  %v42_v33 = vld [vmem:[%s507_s1 + $0x38] sm:$0xff] }
  0x10   :  { %186 = vmatpush.msra.mxu3 %v94_v18  ;;  %167 = vmatpush.msra.mxu2 %v77_v20  ;;  %v60_v27 = vld [vmem:[%s507_s1 + $0xc8] sm:$0xff]  ;;  %v59_v31 = vld [vmem:[%s507_s1 + $0xc0] sm:$0xff]  ;;  %v90_v34 = vld [vmem:[%s507_s1 + $0x1b8] sm:$0xff] }
  0x11   :  { %146 = vmatpush.msra.mxu1 %v62_v19  ;;  %127 = vmatpush.msra.mxu0 %v45_v21  ;;  %v58_v35 = vld [vmem:[%s507_s1 + $0xb8] sm:$0xff]  ;;  %v73_v36 = vld [vmem:[%s507_s1 + $0x130] sm:$0xff]  ;;  %v72_v40 = vld [vmem:[%s507_s1 + $0x128] sm:$0xff] }
  0x12   :  { %187 = vmatpush.msra.mxu3 %v93_v22  ;;  %168 = vmatpush.msra.mxu2 %v76_v24  ;;  %v41_v37 = vld [vmem:[%s507_s1 + $0x30] sm:$0xff]  ;;  %v40_v41 = vld [vmem:[%s507_s1 + $0x28] sm:$0xff]  ;;  %v71_v44 = vld [vmem:[%s507_s1 + $0x120] sm:$0xff] }
  0x13   :  { %147 = vmatpush.msra.mxu1 %v61_v23  ;;  %128 = vmatpush.msra.mxu0 %v44_v25  ;;  %v89_v38 = vld [vmem:[%s507_s1 + $0x1b0] sm:$0xff]  ;;  %v88_v42 = vld [vmem:[%s507_s1 + $0x1a8] sm:$0xff]  ;;  %v39_v45 = vld [vmem:[%s507_s1 + $0x20] sm:$0xff] }
  0x14   :  { %188 = vmatpush.msra.mxu3 %v92_v26  ;;  %169 = vmatpush.msra.mxu2 %v75_v28  ;;  %v57_v39 = vld [vmem:[%s507_s1 + $0xb0] sm:$0xff]  ;;  %v56_v43 = vld [vmem:[%s507_s1 + $0xa8] sm:$0xff]  ;;  %v221_v46 = vld [vmem:[%s506_s0] sm:$0xff]   ;;  %s280_s0 = smov [#allocation5]  }
  0x15   :  { %148 = vmatpush.msra.mxu1 %v60_v27  ;;  %129 = vmatpush.msra.mxu0 %v43_v29  ;;  %v87_v47 = vld [vmem:[%s507_s1 + $0x1a0] sm:$0xff]  ;;  %v222_v49 = vunpack.c.l.bf16 %v221_v46  ;;  %v223_v50 = vunpack.c.h.bf16 %v221_v46  ;;  %v70_v51 = vld [vmem:[%s507_s1 + $0x118] sm:$0xff]  ;;  %v69_v55 = vld [vmem:[%s507_s1 + $0x110] sm:$0xff]  ;;  %s208_s6 = sshll.u32 %s280_s0, 4  ;;  %s209_s6 = int_to_ptr.vmem [resolvable:$true] %s208_s6 }
  0x16   :  { %189 = vmatpush.msra.mxu3 %v91_v30  ;;  %170 = vmatpush.msra.mxu2 %v74_v32  ;;  %v55_v48 = vld [vmem:[%s507_s1 + $0xa0] sm:$0xff]  ;;  %v38_v52 = vld [vmem:[%s507_s1 + $0x18] sm:$0xff]  ;;  %v37_v56 = vld [vmem:[%s507_s1 + $0x10] sm:$0xff] }
  0x17   :  { %149 = vmatpush.msra.mxu1 %v59_v31  ;;  %130 = vmatpush.msra.mxu0 %v42_v33  ;;  %v86_v53 = vld [vmem:[%s507_s1 + $0x198] sm:$0xff]  ;;  %v85_v57 = vld [vmem:[%s507_s1 + $0x190] sm:$0xff]  ;;  %v107_v59 = vperm.slane %v222_v49, 4  ;;  %v111_v60 = vperm.slane %v223_v50, 4  ;;  %v68_v61 = vld [vmem:[%s507_s1 + $0x108] sm:$0xff]  ;;  %v105_v63 = vperm.slane %v222_v49, 0 }
  0x18   :  { %190 = vmatpush.msra.mxu3 %v90_v34  ;;  %171 = vmatpush.msra.mxu2 %v73_v36  ;;  %v54_v54 = vld [vmem:[%s507_s1 + $0x98] sm:$0xff]  ;;  %v53_v58 = vld [vmem:[%s507_s1 + $0x90] sm:$0xff]  ;;  %v36_v62 = vld [vmem:[%s507_s1 + $0x8] sm:$0xff]  ;;  %v109_v0 = vperm.slane %v223_v50, 0  ;;  %v108_v1 = vperm.slane %v222_v49, 6  ;;  %v112_v2 = vperm.slane %v223_v50, 6 }
  0x19   :  { %150 = vmatpush.msra.mxu1 %v58_v35  ;;  %131 = vmatpush.msra.mxu0 %v41_v37  ;;  %v84_v3 = vld [vmem:[%s507_s1 + $0x188] sm:$0xff]  ;;  %v67_v5 = vld [vmem:[%s507_s1 + $0x100] sm:$0xff]  ;;  %v106_v7 = vperm.slane %v222_v49, 2  ;;  %v110_v8 = vperm.slane %v223_v50, 2  ;;  %v116_v9 = vsel %vm113_vm0, %v111_v60, %v107_v59 }
  0x1a   :  { %191 = vmatpush.msra.mxu3 %v89_v38  ;;  %172 = vmatpush.msra.mxu2 %v72_v40  ;;  %v52_v4 = vld [vmem:[%s507_s1 + $0x88] sm:$0xff]  ;;  %v35_v6 = vld [vmem:[%s507_s1] sm:$0xff]  ;;  %v114_v11 = vsel %vm113_vm0, %v109_v0, %v105_v63  ;;  %v117_v12 = vsel %vm113_vm0, %v112_v2, %v108_v1 }
  0x1b   :  { %151 = vmatpush.msra.mxu1 %v57_v39  ;;  %132 = vmatpush.msra.mxu0 %v40_v41  ;;  %v83_v10 = vld [vmem:[%s507_s1 + $0x180] sm:$0xff]  ;;  %v115_v14 = vsel %vm113_vm0, %v110_v8, %v106_v7 }
  0x1c   :  { %192 = vmatpush.msra.mxu3 %v88_v42  ;;  %173 = vmatpush.msra.mxu2 %v71_v44  ;;  %v51_v13 = vld [vmem:[%s507_s1 + $0x80] sm:$0xff]  ;;  %s210_s1 = sshll.u32 %s509_s3, 4  ;;  %s211_s1 = int_to_ptr.hbm [resolvable:$true] %s210_s1 }
  0x1d   :  { %152 = vmatpush.msra.mxu1 %v56_v43  ;;  %133 = vmatpush.msra.mxu0 %v39_v45  ;;  %v226_v15 = vld [vmem:[#allocation2] ss:$0 sm:$0xff] }
  0x1e   :  { %193 = vmatpush.msra.mxu3 %v87_v47  ;;  %174 = vmatpush.msra.mxu2 %v70_v51 }
  0x1f   :  { %153 = vmatpush.msra.mxu1 %v55_v48  ;;  %134 = vmatpush.msra.mxu0 %v38_v52 }
  0x20   :  { %194 = vmatpush.msra.mxu3 %v86_v53  ;;  %175 = vmatpush.msra.mxu2 %v69_v55 }
  0x21   :  { %154 = vmatpush.msra.mxu1 %v54_v54  ;;  %135 = vmatpush.msra.mxu0 %v37_v56 }
  0x22   :  { %195 = vmatpush.msra.mxu3 %v85_v57  ;;  %176 = vmatpush.msra.mxu2 %v68_v61 }
  0x23   :  { %155 = vmatpush.msra.mxu1 %v53_v58  ;;  %136 = vmatpush.msra.mxu0 %v36_v62 }
  0x24   :  { %196 = vmatpush.msra.mxu3 %v84_v3  ;;  %177 = vmatpush.msra.mxu2 %v67_v5 }
  0x25   :  { %156 = vmatpush.msra.mxu1 %v52_v4  ;;  %137 = vmatpush.msra.mxu0 %v35_v6 }
  0x26   :  { %178 = vmatmul.f32.vlgmr.msra.gmra.mxu2 %v116_v9  ;;  %197 = vmatpush.msra.mxu3 %v83_v10 }
  0x27   :  { %138 = vmatmul.f32.vlgmr.msra.gmra.mxu0 %v114_v11  ;;  %198 = vmatmul.f32.vlgmr.msra.gmra.mxu3 %v117_v12 }
  0x28   :  { %157 = vmatpush.msra.mxu1 %v51_v13 }
  0x29   :  { %158 = vmatmul.f32.vlgmr.msra.gmra.mxu1 %v115_v14 }
  0xa4   :  { %v139_v16 = vpop.f32.mrf.mxu0 }
  0xa5   :  { %v140_v17 = vadd.f32 %v226_v15, %v139_v16 }
  0xa6   :  { %v159_v18 = vpop.f32.mrf.mxu1 }
  0xa7   :  { %v160_v19 = vadd.f32 %v159_v18, %v140_v17 }
  0xa9   :  { %v179_v20 = vpop.f32.mrf.mxu2 }
  0xaa   :  { %v180_v21 = vadd.f32 %v179_v20, %v160_v19  ;;  %v199_v22 = vpop.f32.mrf.mxu3 }
  0xac   :  { %v200_v23 = vadd.f32 %v199_v22, %v180_v21 }
  0xae   :  { %202 = vst [vmem:[#allocation5] sm:$0x3] %v200_v23 }
  0xaf   :  { %213 = dma.vmem_to_hbm [thread:$0]  %s209_s6, 32, %s211_s1, [#allocation4]  }
  0xb0   :  { %277 = dma.done.wait [#allocation4], 32  }
  0xb1   :  { %278 = vsyncadd [#allocation4], 4294967264 }
  0xb2   :  { %218 = vsyncpa [#allocation3], 1 }
  0xb3   :  { %219 = vsyncpa [#allocation4], 1 }

</bundles_post_ra>
